<compile_context>
chip_gen: v7x
topology: tpu7x:2x2x1
jax: 0.10.0
libtpu: 0.0.40
codegen_flags: <defaults>
</compile_context>

<pallas_src>
import jax
import jax.numpy as jnp
from jax.experimental import pallas as pl
from jax.experimental.pallas import tpu as pltpu

NEG_SLOPE = 0.2  # LeakyReLU(0.2)


def _leaky_relu(x):
    return jnp.where(x >= 0, x, NEG_SLOPE * x)


def _sigmoid(x):
    return 1.0 / (1.0 + jnp.exp(-x))


def optical_convolution_forward(ffeat, params, *, chunk=512):
    """ffeat: (B, n_feature, T) float32 (NCW), exactly like the PyTorch module."""
    w1, b1, w2, b2, w3, b3, w4, b4 = params
    B, C1, T = ffeat.shape
    K, _, E = w1.shape          # (3, n_feature, 1024)
    H = w2.shape[2]             # 512
    assert C1 == E, "n_feature must equal embed_dim for sigmoid(h1) * ffeat"
    assert E % chunk == 0
    nc = E // chunk
    BT = B * T

    # NCW -> (B*T, C): channels on the lane axis, batch fused into matmul M.
    x_flat = jnp.transpose(ffeat, (0, 2, 1)).reshape(BT, C1)
    x_bf = x_flat.astype(jnp.bfloat16)        # matmul operand (resident, DMA once)

    # bf16 weights (MXU-native, halves weight DMA); dots accumulate in f32.
    # w1 pre-chunked so each grid step's weight slab is one contiguous DMA.
    w1c = jnp.transpose(w1.astype(jnp.bfloat16).reshape(K, C1, nc, chunk),
                        (2, 0, 1, 3))          # (nc, K, C1, chunk)
    w2b = w2.astype(jnp.bfloat16)              # (K, E, H)
    w3b = w3.astype(jnp.bfloat16)              # (K, H, H)

    def kernel(xbf_ref, xck_ref, w1_ref, b1_ref, w2_ref, b2_ref,
               w3_ref, b3_ref, w4_ref, b4_ref, attn_ref, filt_ref, h2_acc):
        c = pl.program_id(0)

        # Batch-boundary masks for the +/-1 time shifts (conv padding = 1).
        # Valid only because rows are laid out as B contiguous blocks of T.
        row = jax.lax.broadcasted_iota(jnp.int32, (BT, 1), 0)
        keep_prev = ((row % T) != 0).astype(jnp.float32)        # t-1 exists
        keep_next = ((row % T) != (T - 1)).astype(jnp.float32)  # t+1 exists

        def conv3(lhs_bf16, w_ref):
            # out[t] = x[t-1] @ w[0] + x[t] @ w[1] + x[t+1] @ w[2]
            # Tap-by-tap accumulation: at most two f32 tap results live.
            acc = jnp.dot(lhs_bf16, w_ref[1], preferred_element_type=jnp.float32)
            y0 = jnp.dot(lhs_bf16, w_ref[0], preferred_element_type=jnp.float32)
            acc += pltpu.roll(y0, shift=1, axis=0) * keep_prev
            y2 = jnp.dot(lhs_bf16, w_ref[2], preferred_element_type=jnp.float32)
            acc += pltpu.roll(y2, shift=BT - 1, axis=0) * keep_next
            return acc

        # --- layer 1 (this chunk of output channels): Conv1d + LeakyReLU ---
        h1 = _leaky_relu(conv3(xbf_ref[...], w1_ref) + b1_ref[...])   # (BT, chunk)

        # filter_ffeat chunk = sigmoid(h1) * ffeat (exact f32 ffeat chunk).
        filt = _sigmoid(h1) * xck_ref[...]                            # (BT, chunk)
        filt_ref[...] = filt

        # --- layer 2: accumulate partial conv over input-channel chunks ---
        @pl.when(c == 0)
        def _():
            h2_acc[...] = jnp.zeros_like(h2_acc)

        h2_acc[...] += conv3(filt.astype(jnp.bfloat16), w2_ref)       # (BT, H)

        # --- last step: finish the attention branch ---
        @pl.when(c == pl.num_programs(0) - 1)
        def _():
            h2 = _leaky_relu(h2_acc[...] + b2_ref[...])               # (BT, H)
            h3 = _leaky_relu(conv3(h2.astype(jnp.bfloat16), w3_ref)
                             + b3_ref[...])                           # (BT, H)
            # Conv1d(512 -> 1, k=1): VPU multiply + lane reduction.
            logits = jnp.sum(h3 * w4_ref[...], axis=-1, keepdims=True) + b4_ref[...]
            attn_ref[...] = _sigmoid(logits)                          # (BT, 1)

    grid_spec = pltpu.PrefetchScalarGridSpec(
        num_scalar_prefetch=0,
        grid=(nc,),
        in_specs=[
            pl.BlockSpec((BT, C1), lambda c: (0, 0)),              # x bf16 (resident)
            pl.BlockSpec((BT, chunk), lambda c: (0, c)),           # x f32 channel chunk
            pl.BlockSpec((None, K, C1, chunk),
                         lambda c: (c, 0, 0, 0)),                  # w1 chunk (contiguous slab)
            pl.BlockSpec((1, chunk), lambda c: (0, c)),            # b1 chunk
            pl.BlockSpec((K, chunk, H), lambda c: (0, c, 0)),      # w2 chunk (bf16)
            pl.BlockSpec((1, H), lambda c: (0, 0)),                # b2
            pl.BlockSpec((K, H, H), lambda c: (0, 0, 0)),          # w3 (resident, bf16)
            pl.BlockSpec((1, H), lambda c: (0, 0)),                # b3
            pl.BlockSpec((1, H), lambda c: (0, 0)),                # w4
            pl.BlockSpec((1, 1), lambda c: (0, 0)),                # b4
        ],
        out_specs=(
            pl.BlockSpec((BT, 1), lambda c: (0, 0)),               # attn (resident)
            pl.BlockSpec((BT, chunk), lambda c: (0, c)),           # filter_ffeat chunk
        ),
        scratch_shapes=[pltpu.VMEM((BT, H), jnp.float32)],         # layer-2 accumulator
    )

    attn_flat, filt_flat = pl.pallas_call(
        kernel,
        out_shape=(jax.ShapeDtypeStruct((BT, 1), jnp.float32),
                   jax.ShapeDtypeStruct((BT, C1), jnp.float32)),
        grid_spec=grid_spec,
        compiler_params=pltpu.CompilerParams(
            # The chunk axis carries the layer-2 accumulation -> "arbitrary".
            dimension_semantics=("arbitrary",),
            # ~12.5 MiB double-buffered working set at chunk=512; bump the
            # scoped limit so v5e's 16 MiB default is never the binding cap.
            vmem_limit_bytes=32 * 1024 * 1024),
    )(x_bf, x_flat, w1c, b1, w2b, b2, w3b, b3, w4, b4)

    opt_attn = jnp.transpose(attn_flat.reshape(B, T, 1), (0, 2, 1))       # (B, 1, T)
    filter_ffeat = jnp.transpose(filt_flat.reshape(B, T, C1), (0, 2, 1))  # (B, C, T)
    return opt_attn, filter_ffeat


def init_params(key, n_feature):
    """Deterministic synthetic init; conv weights stored as (K, Cin, Cout)."""
    embed_dim, hidden = 1024, 512
    ks = jax.random.split(key, 8)
    s = 0.02
    w1 = s * jax.random.normal(ks[0], (3, n_feature, embed_dim), jnp.float32)
    b1 = s * jax.random.normal(ks[1], (1, embed_dim), jnp.float32)
    w2 = s * jax.random.normal(ks[2], (3, embed_dim, hidden), jnp.float32)
    b2 = s * jax.random.normal(ks[3], (1, hidden), jnp.float32)
    w3 = s * jax.random.normal(ks[4], (3, hidden, hidden), jnp.float32)
    b3 = s * jax.random.normal(ks[5], (1, hidden), jnp.float32)
    w4 = s * jax.random.normal(ks[6], (1, hidden), jnp.float32)   # 1x1 conv head
    b4 = s * jax.random.normal(ks[7], (1, 1), jnp.float32)
    return (w1, b1, w2, b2, w3, b3, w4, b4)


def reference_forward(ffeat, params):
    """Pure-JAX reference (eval mode), mirroring the kernel's bf16-weight /
    f32-accumulate numerics."""
    w1, b1, w2, b2, w3, b3, w4, b4 = params
    x = jnp.transpose(ffeat, (0, 2, 1))  # (B, T, C)
    T = x.shape[1]

    def conv1d(src, w, bias):  # src: (B, T, Cin) f32; w: (3, Cin, Cout)
        sp = jnp.pad(src, ((0, 0), (1, 1), (0, 0)))
        out = sum(jnp.einsum('btc,cd->btd',
                             sp[:, k:k + T, :].astype(jnp.bfloat16),
                             w[k].astype(jnp.bfloat16),
                             preferred_element_type=jnp.float32)
                  for k in range(3))
        return out + bias[None]

    h1 = _leaky_relu(conv1d(x, w1, b1))
    filt = _sigmoid(h1) * x
    h2 = _leaky_relu(conv1d(filt, w2, b2))
    h3 = _leaky_relu(conv1d(h2, w3, b3))
    attn = _sigmoid(jnp.sum(h3 * w4[0], axis=-1, keepdims=True) + b4)
    return jnp.transpose(attn, (0, 2, 1)), jnp.transpose(filt, (0, 2, 1))


if __name__ == "__main__":
    # n_feature must equal embed_dim (1024) for `sigmoid(opt_wise_attn) * ffeat`
    # to broadcast, exactly as in the PyTorch module's intended usage.
    B, n_feature, T = 2, 1024, 16

    key = jax.random.PRNGKey(0)
    k_x, k_p = jax.random.split(key)
    ffeat = jax.random.normal(k_x, (B, n_feature, T), jnp.float32)
    params = init_params(k_p, n_feature)

    opt_attn, filter_ffeat = optical_convolution_forward(ffeat, params)
    jax.block_until_ready((opt_attn, filter_ffeat))

    ref_attn, ref_filt = reference_forward(ffeat, params)
    assert opt_attn.shape == (B, 1, T)
    assert filter_ffeat.shape == (B, n_feature, T)
    assert jnp.allclose(opt_attn, ref_attn, atol=5e-3, rtol=5e-3)
    assert jnp.allclose(filter_ffeat, ref_filt, atol=5e-3, rtol=5e-3)

    print("KERNEL_OK")
</pallas_src>

<mosaic_0001>
module attributes {stable_mosaic.version = 11 : i64} {
  func.func @kernel(%arg0: i32, %arg1: memref<32x1024xbf16, #tpu.memory_space<vmem>>, %arg2: memref<32x512xf32, #tpu.memory_space<vmem>>, %arg3: memref<1x3x1024x512xbf16, #tpu.memory_space<vmem>>, %arg4: memref<1x512xf32, #tpu.memory_space<vmem>>, %arg5: memref<3x512x512xbf16, #tpu.memory_space<vmem>>, %arg6: memref<1x512xf32, #tpu.memory_space<vmem>>, %arg7: memref<3x512x512xbf16, #tpu.memory_space<vmem>>, %arg8: memref<1x512xf32, #tpu.memory_space<vmem>>, %arg9: memref<1x512xf32, #tpu.memory_space<vmem>>, %arg10: memref<1x1xf32, #tpu.memory_space<vmem>>, %arg11: memref<32x1xf32, #tpu.memory_space<vmem>>, %arg12: memref<32x512xf32, #tpu.memory_space<vmem>>, %arg13: memref<32x512xf32, #tpu.memory_space<vmem>>) attributes {dimension_semantics = [#tpu.dimension_semantics<arbitrary>], iteration_bounds = array<i64: 2>, scalar_prefetch = 0 : i64, scratch_operands = 1 : i64, tpu.core_type = #tpu.core_type<tc>, window_params = [{pipeline_mode = #tpu.pipeline_mode<synchronous>, transform_indices = @transform_0, window_bounds = array<i64: 32, 1024>}, {transform_indices = @transform_1, window_bounds = array<i64: 32, 512>}, {transform_indices = @transform_2, window_bounds = array<i64: 1, 3, 1024, 512>}, {transform_indices = @transform_3, window_bounds = array<i64: 1, 512>}, {transform_indices = @transform_4, window_bounds = array<i64: 3, 512, 512>}, {pipeline_mode = #tpu.pipeline_mode<synchronous>, transform_indices = @transform_5, window_bounds = array<i64: 1, 512>}, {pipeline_mode = #tpu.pipeline_mode<synchronous>, transform_indices = @transform_6, window_bounds = array<i64: 3, 512, 512>}, {pipeline_mode = #tpu.pipeline_mode<synchronous>, transform_indices = @transform_7, window_bounds = array<i64: 1, 512>}, {pipeline_mode = #tpu.pipeline_mode<synchronous>, transform_indices = @transform_8, window_bounds = array<i64: 1, 512>}, {pipeline_mode = #tpu.pipeline_mode<synchronous>, transform_indices = @transform_9, window_bounds = array<i64: 1, 1>}, {pipeline_mode = #tpu.pipeline_mode<synchronous>, transform_indices = @transform_10, window_bounds = array<i64: 32, 1>}, {transform_indices = @transform_11, window_bounds = array<i64: 32, 512>}]} {
    %0 = tpu.iota {dimensions = array<i32: 0>} : vector<32x1xi32>
    %c16_i32 = arith.constant 16 : i32
    %c0_i32 = arith.constant 0 : i32
    %1 = arith.cmpi eq, %c16_i32, %c0_i32 : i32
    %c1_i32 = arith.constant 1 : i32
    %2 = arith.select %1, %c1_i32, %c16_i32 : i32
    %3 = vector.broadcast %2 : i32 to vector<32x1xi32>
    %4 = arith.remsi %0, %3 : vector<32x1xi32>
    %c0_i32_0 = arith.constant 0 : i32
    %5 = vector.broadcast %c0_i32_0 : i32 to vector<32x1xi32>
    %6 = arith.cmpi ne, %4, %5 : vector<32x1xi32>
    %c0_i32_1 = arith.constant 0 : i32
    %7 = vector.broadcast %c0_i32_1 : i32 to vector<32x1xi32>
    %8 = arith.cmpi slt, %4, %7 : vector<32x1xi32>
    %c0_i32_2 = arith.constant 0 : i32
    %9 = arith.cmpi slt, %2, %c0_i32_2 : i32
    %10 = vector.broadcast %9 : i1 to vector<32x1xi1>
    %11 = vector.broadcast %10 : vector<32x1xi1> to vector<32x1xi1>
    %12 = arith.xori %8, %11 : vector<32x1xi1>
    %13 = arith.andi %12, %6 : vector<32x1xi1>
    %14 = vector.broadcast %2 : i32 to vector<32x1xi32>
    %15 = arith.addi %4, %14 : vector<32x1xi32>
    %16 = arith.select %13, %15, %4 : vector<32x1xi1>, vector<32x1xi32>
    %c0_i32_3 = arith.constant 0 : i32
    %17 = vector.broadcast %c0_i32_3 : i32 to vector<32x1xi32>
    %18 = arith.cmpi ne, %16, %17 : vector<32x1xi32>
    %19 = arith.extui %18 : vector<32x1xi1> to vector<32x1xi32>
    %20 = arith.sitofp %19 : vector<32x1xi32> to vector<32x1xf32>
    %c16_i32_4 = arith.constant 16 : i32
    %c0_i32_5 = arith.constant 0 : i32
    %21 = arith.cmpi eq, %c16_i32_4, %c0_i32_5 : i32
    %c1_i32_6 = arith.constant 1 : i32
    %22 = arith.select %21, %c1_i32_6, %c16_i32_4 : i32
    %23 = vector.broadcast %22 : i32 to vector<32x1xi32>
    %24 = arith.remsi %0, %23 : vector<32x1xi32>
    %c0_i32_7 = arith.constant 0 : i32
    %25 = vector.broadcast %c0_i32_7 : i32 to vector<32x1xi32>
    %26 = arith.cmpi ne, %24, %25 : vector<32x1xi32>
    %c0_i32_8 = arith.constant 0 : i32
    %27 = vector.broadcast %c0_i32_8 : i32 to vector<32x1xi32>
    %28 = arith.cmpi slt, %24, %27 : vector<32x1xi32>
    %c0_i32_9 = arith.constant 0 : i32
    %29 = arith.cmpi slt, %22, %c0_i32_9 : i32
    %30 = vector.broadcast %29 : i1 to vector<32x1xi1>
    %31 = vector.broadcast %30 : vector<32x1xi1> to vector<32x1xi1>
    %32 = arith.xori %28, %31 : vector<32x1xi1>
    %33 = arith.andi %32, %26 : vector<32x1xi1>
    %34 = vector.broadcast %22 : i32 to vector<32x1xi32>
    %35 = arith.addi %24, %34 : vector<32x1xi32>
    %36 = arith.select %33, %35, %24 : vector<32x1xi1>, vector<32x1xi32>
    %c15_i32 = arith.constant 15 : i32
    %37 = vector.broadcast %c15_i32 : i32 to vector<32x1xi32>
    %38 = arith.cmpi ne, %36, %37 : vector<32x1xi32>
    %39 = arith.extui %38 : vector<32x1xi1> to vector<32x1xi32>
    %40 = arith.sitofp %39 : vector<32x1xi32> to vector<32x1xf32>
    %c0 = arith.constant 0 : index
    %c0_10 = arith.constant 0 : index
    %41 = vector.load %arg1[%c0, %c0_10] : memref<32x1024xbf16, #tpu.memory_space<vmem>>, vector<32x1024xbf16>
    %c0_11 = arith.constant 0 : index
    %c1 = arith.constant 1 : index
    %c0_12 = arith.constant 0 : index
    %c0_13 = arith.constant 0 : index
    %42 = vector.load %arg3[%c0_11, %c1, %c0_12, %c0_13] : memref<1x3x1024x512xbf16, #tpu.memory_space<vmem>>, vector<1x1x1024x512xbf16>
    %43 = vector.shape_cast %42 : vector<1x1x1024x512xbf16> to vector<1024x512xbf16>
    %cst = arith.constant dense<0.000000e+00> : vector<32x512xf32>
    %44 = tpu.matmul %41, %43, %cst {dimension_numbers = #tpu.dot_dimension_numbers<[1], [0], [0], [1], [0, 0, 1, 1], [], []>} : vector<32x1024xbf16>, vector<1024x512xbf16>, vector<32x512xf32> -> vector<32x512xf32>
    %c0_14 = arith.constant 0 : index
    %c0_15 = arith.constant 0 : index
    %c0_16 = arith.constant 0 : index
    %c0_17 = arith.constant 0 : index
    %45 = vector.load %arg3[%c0_14, %c0_15, %c0_16, %c0_17] : memref<1x3x1024x512xbf16, #tpu.memory_space<vmem>>, vector<1x1x1024x512xbf16>
    %46 = vector.shape_cast %45 : vector<1x1x1024x512xbf16> to vector<1024x512xbf16>
    %cst_18 = arith.constant dense<0.000000e+00> : vector<32x512xf32>
    %47 = tpu.matmul %41, %46, %cst_18 {dimension_numbers = #tpu.dot_dimension_numbers<[1], [0], [0], [1], [0, 0, 1, 1], [], []>} : vector<32x1024xbf16>, vector<1024x512xbf16>, vector<32x512xf32> -> vector<32x512xf32>
    %c1_i32_19 = arith.constant 1 : i32
    %48 = tpu.dynamic_rotate %47 by %c1_i32_19 dim 0 : vector<32x512xf32>, i32 -> vector<32x512xf32>
    %49 = vector.broadcast %20 : vector<32x1xf32> to vector<32x512xf32>
    %50 = arith.mulf %48, %49 : vector<32x512xf32>
    %51 = arith.addf %44, %50 : vector<32x512xf32>
    %c0_20 = arith.constant 0 : index
    %c2 = arith.constant 2 : index
    %c0_21 = arith.constant 0 : index
    %c0_22 = arith.constant 0 : index
    %52 = vector.load %arg3[%c0_20, %c2, %c0_21, %c0_22] : memref<1x3x1024x512xbf16, #tpu.memory_space<vmem>>, vector<1x1x1024x512xbf16>
    %53 = vector.shape_cast %52 : vector<1x1x1024x512xbf16> to vector<1024x512xbf16>
    %cst_23 = arith.constant dense<0.000000e+00> : vector<32x512xf32>
    %54 = tpu.matmul %41, %53, %cst_23 {dimension_numbers = #tpu.dot_dimension_numbers<[1], [0], [0], [1], [0, 0, 1, 1], [], []>} : vector<32x1024xbf16>, vector<1024x512xbf16>, vector<32x512xf32> -> vector<32x512xf32>
    %c31_i32 = arith.constant 31 : i32
    %55 = tpu.dynamic_rotate %54 by %c31_i32 dim 0 : vector<32x512xf32>, i32 -> vector<32x512xf32>
    %56 = vector.broadcast %40 : vector<32x1xf32> to vector<32x512xf32>
    %57 = arith.mulf %55, %56 : vector<32x512xf32>
    %58 = arith.addf %51, %57 : vector<32x512xf32>
    %c0_24 = arith.constant 0 : index
    %c0_25 = arith.constant 0 : index
    %59 = vector.load %arg4[%c0_24, %c0_25] : memref<1x512xf32, #tpu.memory_space<vmem>>, vector<1x512xf32>
    %60 = vector.broadcast %59 : vector<1x512xf32> to vector<32x512xf32>
    %61 = arith.addf %58, %60 : vector<32x512xf32>
    %cst_26 = arith.constant 0.000000e+00 : f32
    %62 = vector.broadcast %cst_26 : f32 to vector<32x512xf32>
    %63 = arith.cmpf oge, %61, %62 : vector<32x512xf32>
    %cst_27 = arith.constant 2.000000e-01 : f32
    %64 = vector.broadcast %cst_27 : f32 to vector<32x512xf32>
    %65 = arith.mulf %64, %61 : vector<32x512xf32>
    %66 = arith.select %63, %61, %65 : vector<32x512xi1>, vector<32x512xf32>
    %cst_28 = arith.constant 0.000000e+00 : f32
    %67 = vector.broadcast %cst_28 : f32 to vector<32x512xf32>
    %68 = arith.subf %67, %66 : vector<32x512xf32>
    %69 = math.exp %68 : vector<32x512xf32>
    %cst_29 = arith.constant 1.000000e+00 : f32
    %70 = vector.broadcast %cst_29 : f32 to vector<32x512xf32>
    %71 = arith.addf %70, %69 : vector<32x512xf32>
    %cst_30 = arith.constant 1.000000e+00 : f32
    %72 = vector.broadcast %cst_30 : f32 to vector<32x512xf32>
    %73 = arith.divf %72, %71 : vector<32x512xf32>
    %c0_31 = arith.constant 0 : index
    %c0_32 = arith.constant 0 : index
    %74 = vector.load %arg2[%c0_31, %c0_32] : memref<32x512xf32, #tpu.memory_space<vmem>>, vector<32x512xf32>
    %75 = arith.mulf %73, %74 : vector<32x512xf32>
    %c0_33 = arith.constant 0 : index
    %c0_34 = arith.constant 0 : index
    %76 = vector.load %arg12[%c0_33, %c0_34] : memref<32x512xf32, #tpu.memory_space<vmem>>, vector<32x512xf32>
    tpu.vector_store %arg12[%c0_33, %c0_34], %75 {strides = array<i32>} : memref<32x512xf32, #tpu.memory_space<vmem>>, vector<32x512xf32>,
    %c0_i32_35 = arith.constant 0 : i32
    %77 = arith.cmpi eq, %arg0, %c0_i32_35 : i32
    %78 = arith.extui %77 : i1 to i32
    %c0_i32_36 = arith.constant 0 : i32
    %79 = arith.cmpi ne, %78, %c0_i32_36 : i32
    scf.if %79 {
      %cst_57 = arith.constant 0.000000e+00 : f32
      %104 = vector.broadcast %cst_57 : f32 to vector<32x512xf32>
      %c0_58 = arith.constant 0 : index
      %c0_59 = arith.constant 0 : index
      %105 = vector.load %arg13[%c0_58, %c0_59] : memref<32x512xf32, #tpu.memory_space<vmem>>, vector<32x512xf32>
      tpu.vector_store %arg13[%c0_58, %c0_59], %104 {strides = array<i32>} : memref<32x512xf32, #tpu.memory_space<vmem>>, vector<32x512xf32>,
    } else {
    }
    %c0_37 = arith.constant 0 : index
    %c0_38 = arith.constant 0 : index
    %80 = vector.load %arg13[%c0_37, %c0_38] : memref<32x512xf32, #tpu.memory_space<vmem>>, vector<32x512xf32>
    %81 = arith.truncf %75 : vector<32x512xf32> to vector<32x512xbf16>
    %c1_39 = arith.constant 1 : index
    %c0_40 = arith.constant 0 : index
    %c0_41 = arith.constant 0 : index
    %82 = vector.load %arg5[%c1_39, %c0_40, %c0_41] : memref<3x512x512xbf16, #tpu.memory_space<vmem>>, vector<1x512x512xbf16>
    %83 = vector.shape_cast %82 : vector<1x512x512xbf16> to vector<512x512xbf16>
    %cst_42 = arith.constant dense<0.000000e+00> : vector<32x512xf32>
    %84 = tpu.matmul %81, %83, %cst_42 {dimension_numbers = #tpu.dot_dimension_numbers<[1], [0], [0], [1], [0, 0, 1, 1], [], []>} : vector<32x512xbf16>, vector<512x512xbf16>, vector<32x512xf32> -> vector<32x512xf32>
    %c0_43 = arith.constant 0 : index
    %c0_44 = arith.constant 0 : index
    %c0_45 = arith.constant 0 : index
    %85 = vector.load %arg5[%c0_43, %c0_44, %c0_45] : memref<3x512x512xbf16, #tpu.memory_space<vmem>>, vector<1x512x512xbf16>
    %86 = vector.shape_cast %85 : vector<1x512x512xbf16> to vector<512x512xbf16>
    %cst_46 = arith.constant dense<0.000000e+00> : vector<32x512xf32>
    %87 = tpu.matmul %81, %86, %cst_46 {dimension_numbers = #tpu.dot_dimension_numbers<[1], [0], [0], [1], [0, 0, 1, 1], [], []>} : vector<32x512xbf16>, vector<512x512xbf16>, vector<32x512xf32> -> vector<32x512xf32>
    %c1_i32_47 = arith.constant 1 : i32
    %88 = tpu.dynamic_rotate %87 by %c1_i32_47 dim 0 : vector<32x512xf32>, i32 -> vector<32x512xf32>
    %89 = vector.broadcast %20 : vector<32x1xf32> to vector<32x512xf32>
    %90 = arith.mulf %88, %89 : vector<32x512xf32>
    %91 = arith.addf %84, %90 : vector<32x512xf32>
    %c2_48 = arith.constant 2 : index
    %c0_49 = arith.constant 0 : index
    %c0_50 = arith.constant 0 : index
    %92 = vector.load %arg5[%c2_48, %c0_49, %c0_50] : memref<3x512x512xbf16, #tpu.memory_space<vmem>>, vector<1x512x512xbf16>
    %93 = vector.shape_cast %92 : vector<1x512x512xbf16> to vector<512x512xbf16>
    %cst_51 = arith.constant dense<0.000000e+00> : vector<32x512xf32>
    %94 = tpu.matmul %81, %93, %cst_51 {dimension_numbers = #tpu.dot_dimension_numbers<[1], [0], [0], [1], [0, 0, 1, 1], [], []>} : vector<32x512xbf16>, vector<512x512xbf16>, vector<32x512xf32> -> vector<32x512xf32>
    %c31_i32_52 = arith.constant 31 : i32
    %95 = tpu.dynamic_rotate %94 by %c31_i32_52 dim 0 : vector<32x512xf32>, i32 -> vector<32x512xf32>
    %96 = vector.broadcast %40 : vector<32x1xf32> to vector<32x512xf32>
    %97 = arith.mulf %95, %96 : vector<32x512xf32>
    %98 = arith.addf %91, %97 : vector<32x512xf32>
    %99 = arith.addf %80, %98 : vector<32x512xf32>
    %c0_53 = arith.constant 0 : index
    %c0_54 = arith.constant 0 : index
    %100 = vector.load %arg13[%c0_53, %c0_54] : memref<32x512xf32, #tpu.memory_space<vmem>>, vector<32x512xf32>
    tpu.vector_store %arg13[%c0_53, %c0_54], %99 {strides = array<i32>} : memref<32x512xf32, #tpu.memory_space<vmem>>, vector<32x512xf32>,
    %c1_i32_55 = arith.constant 1 : i32
    %101 = arith.cmpi eq, %arg0, %c1_i32_55 : i32
    %102 = arith.extui %101 : i1 to i32
    %c0_i32_56 = arith.constant 0 : i32
    %103 = arith.cmpi ne, %102, %c0_i32_56 : i32
    scf.if %103 {
      %c0_57 = arith.constant 0 : index
      %c0_58 = arith.constant 0 : index
      %104 = vector.load %arg13[%c0_57, %c0_58] : memref<32x512xf32, #tpu.memory_space<vmem>>, vector<32x512xf32>
      %c0_59 = arith.constant 0 : index
      %c0_60 = arith.constant 0 : index
      %105 = vector.load %arg6[%c0_59, %c0_60] : memref<1x512xf32, #tpu.memory_space<vmem>>, vector<1x512xf32>
      %106 = vector.broadcast %105 : vector<1x512xf32> to vector<32x512xf32>
      %107 = arith.addf %104, %106 : vector<32x512xf32>
      %cst_61 = arith.constant 0.000000e+00 : f32
      %108 = vector.broadcast %cst_61 : f32 to vector<32x512xf32>
      %109 = arith.cmpf oge, %107, %108 : vector<32x512xf32>
      %cst_62 = arith.constant 2.000000e-01 : f32
      %110 = vector.broadcast %cst_62 : f32 to vector<32x512xf32>
      %111 = arith.mulf %110, %107 : vector<32x512xf32>
      %112 = arith.select %109, %107, %111 : vector<32x512xi1>, vector<32x512xf32>
      %113 = arith.truncf %112 : vector<32x512xf32> to vector<32x512xbf16>
      %c1_63 = arith.constant 1 : index
      %c0_64 = arith.constant 0 : index
      %c0_65 = arith.constant 0 : index
      %114 = vector.load %arg7[%c1_63, %c0_64, %c0_65] : memref<3x512x512xbf16, #tpu.memory_space<vmem>>, vector<1x512x512xbf16>
      %115 = vector.shape_cast %114 : vector<1x512x512xbf16> to vector<512x512xbf16>
      %cst_66 = arith.constant dense<0.000000e+00> : vector<32x512xf32>
      %116 = tpu.matmul %113, %115, %cst_66 {dimension_numbers = #tpu.dot_dimension_numbers<[1], [0], [0], [1], [0, 0, 1, 1], [], []>} : vector<32x512xbf16>, vector<512x512xbf16>, vector<32x512xf32> -> vector<32x512xf32>
      %c0_67 = arith.constant 0 : index
      %c0_68 = arith.constant 0 : index
      %c0_69 = arith.constant 0 : index
      %117 = vector.load %arg7[%c0_67, %c0_68, %c0_69] : memref<3x512x512xbf16, #tpu.memory_space<vmem>>, vector<1x512x512xbf16>
      %118 = vector.shape_cast %117 : vector<1x512x512xbf16> to vector<512x512xbf16>
      %cst_70 = arith.constant dense<0.000000e+00> : vector<32x512xf32>
      %119 = tpu.matmul %113, %118, %cst_70 {dimension_numbers = #tpu.dot_dimension_numbers<[1], [0], [0], [1], [0, 0, 1, 1], [], []>} : vector<32x512xbf16>, vector<512x512xbf16>, vector<32x512xf32> -> vector<32x512xf32>
      %c1_i32_71 = arith.constant 1 : i32
      %120 = tpu.dynamic_rotate %119 by %c1_i32_71 dim 0 : vector<32x512xf32>, i32 -> vector<32x512xf32>
      %121 = vector.broadcast %20 : vector<32x1xf32> to vector<32x512xf32>
      %122 = arith.mulf %120, %121 : vector<32x512xf32>
      %123 = arith.addf %116, %122 : vector<32x512xf32>
      %c2_72 = arith.constant 2 : index
      %c0_73 = arith.constant 0 : index
      %c0_74 = arith.constant 0 : index
      %124 = vector.load %arg7[%c2_72, %c0_73, %c0_74] : memref<3x512x512xbf16, #tpu.memory_space<vmem>>, vector<1x512x512xbf16>
      %125 = vector.shape_cast %124 : vector<1x512x512xbf16> to vector<512x512xbf16>
      %cst_75 = arith.constant dense<0.000000e+00> : vector<32x512xf32>
      %126 = tpu.matmul %113, %125, %cst_75 {dimension_numbers = #tpu.dot_dimension_numbers<[1], [0], [0], [1], [0, 0, 1, 1], [], []>} : vector<32x512xbf16>, vector<512x512xbf16>, vector<32x512xf32> -> vector<32x512xf32>
      %c31_i32_76 = arith.constant 31 : i32
      %127 = tpu.dynamic_rotate %126 by %c31_i32_76 dim 0 : vector<32x512xf32>, i32 -> vector<32x512xf32>
      %128 = vector.broadcast %40 : vector<32x1xf32> to vector<32x512xf32>
      %129 = arith.mulf %127, %128 : vector<32x512xf32>
      %130 = arith.addf %123, %129 : vector<32x512xf32>
      %c0_77 = arith.constant 0 : index
      %c0_78 = arith.constant 0 : index
      %131 = vector.load %arg8[%c0_77, %c0_78] : memref<1x512xf32, #tpu.memory_space<vmem>>, vector<1x512xf32>
      %132 = vector.broadcast %131 : vector<1x512xf32> to vector<32x512xf32>
      %133 = arith.addf %130, %132 : vector<32x512xf32>
      %cst_79 = arith.constant 0.000000e+00 : f32
      %134 = vector.broadcast %cst_79 : f32 to vector<32x512xf32>
      %135 = arith.cmpf oge, %133, %134 : vector<32x512xf32>
      %cst_80 = arith.constant 2.000000e-01 : f32
      %136 = vector.broadcast %cst_80 : f32 to vector<32x512xf32>
      %137 = arith.mulf %136, %133 : vector<32x512xf32>
      %138 = arith.select %135, %133, %137 : vector<32x512xi1>, vector<32x512xf32>
      %c0_81 = arith.constant 0 : index
      %c0_82 = arith.constant 0 : index
      %139 = vector.load %arg9[%c0_81, %c0_82] : memref<1x512xf32, #tpu.memory_space<vmem>>, vector<1x512xf32>
      %140 = vector.broadcast %139 : vector<1x512xf32> to vector<32x512xf32>
      %141 = arith.mulf %138, %140 : vector<32x512xf32>
      %cst_83 = arith.constant dense<0.000000e+00> : vector<32xf32>
      %142 = vector.multi_reduction <add>, %141, %cst_83 [1] : vector<32x512xf32> to vector<32xf32>
      %143 = vector.shape_cast %142 : vector<32xf32> to vector<32x1xf32>
      %c0_84 = arith.constant 0 : index
      %c0_85 = arith.constant 0 : index
      %144 = vector.load %arg10[%c0_84, %c0_85] : memref<1x1xf32, #tpu.memory_space<vmem>>, vector<1x1xf32>
      %145 = vector.broadcast %144 : vector<1x1xf32> to vector<32x1xf32>
      %146 = arith.addf %143, %145 : vector<32x1xf32>
      %cst_86 = arith.constant 0.000000e+00 : f32
      %147 = vector.broadcast %cst_86 : f32 to vector<32x1xf32>
      %148 = arith.subf %147, %146 : vector<32x1xf32>
      %149 = math.exp %148 : vector<32x1xf32>
      %cst_87 = arith.constant 1.000000e+00 : f32
      %150 = vector.broadcast %cst_87 : f32 to vector<32x1xf32>
      %151 = arith.addf %150, %149 : vector<32x1xf32>
      %cst_88 = arith.constant 1.000000e+00 : f32
      %152 = vector.broadcast %cst_88 : f32 to vector<32x1xf32>
      %153 = arith.divf %152, %151 : vector<32x1xf32>
      %c0_89 = arith.constant 0 : index
      %c0_90 = arith.constant 0 : index
      %154 = vector.load %arg11[%c0_89, %c0_90] : memref<32x1xf32, #tpu.memory_space<vmem>>, vector<32x1xf32>
      tpu.vector_store %arg11[%c0_89, %c0_90], %153 {strides = array<i32>} : memref<32x1xf32, #tpu.memory_space<vmem>>, vector<32x1xf32>,
    } else {
    }
    return
  }
  func.func @transform_0(%arg0: i32) -> (i32, i32) {
    %c0_i32 = arith.constant 0 : i32
    %c0_i32_0 = arith.constant 0 : i32
    %c0_i32_1 = arith.constant 0 : i32
    return %c0_i32, %c0_i32_0 : i32, i32
  }
  func.func @transform_1(%arg0: i32) -> (i32, i32) {
    %c0_i32 = arith.constant 0 : i32
    %c0_i32_0 = arith.constant 0 : i32
    return %c0_i32, %arg0 : i32, i32
  }
  func.func @transform_2(%arg0: i32) -> (i32, i32, i32, i32) {
    %c0_i32 = arith.constant 0 : i32
    %c0_i32_0 = arith.constant 0 : i32
    %c0_i32_1 = arith.constant 0 : i32
    %c0_i32_2 = arith.constant 0 : i32
    return %arg0, %c0_i32, %c0_i32_0, %c0_i32_1 : i32, i32, i32, i32
  }
  func.func @transform_3(%arg0: i32) -> (i32, i32) {
    %c0_i32 = arith.constant 0 : i32
    %c0_i32_0 = arith.constant 0 : i32
    return %c0_i32, %arg0 : i32, i32
  }
  func.func @transform_4(%arg0: i32) -> (i32, i32, i32) {
    %c0_i32 = arith.constant 0 : i32
    %c0_i32_0 = arith.constant 0 : i32
    %c0_i32_1 = arith.constant 0 : i32
    return %c0_i32, %arg0, %c0_i32_0 : i32, i32, i32
  }
  func.func @transform_5(%arg0: i32) -> (i32, i32) {
    %c0_i32 = arith.constant 0 : i32
    %c0_i32_0 = arith.constant 0 : i32
    %c0_i32_1 = arith.constant 0 : i32
    return %c0_i32, %c0_i32_0 : i32, i32
  }
  func.func @transform_6(%arg0: i32) -> (i32, i32, i32) {
    %c0_i32 = arith.constant 0 : i32
    %c0_i32_0 = arith.constant 0 : i32
    %c0_i32_1 = arith.constant 0 : i32
    %c0_i32_2 = arith.constant 0 : i32
    return %c0_i32, %c0_i32_0, %c0_i32_1 : i32, i32, i32
  }
  func.func @transform_7(%arg0: i32) -> (i32, i32) {
    %c0_i32 = arith.constant 0 : i32
    %c0_i32_0 = arith.constant 0 : i32
    %c0_i32_1 = arith.constant 0 : i32
    return %c0_i32, %c0_i32_0 : i32, i32
  }
  func.func @transform_8(%arg0: i32) -> (i32, i32) {
    %c0_i32 = arith.constant 0 : i32
    %c0_i32_0 = arith.constant 0 : i32
    %c0_i32_1 = arith.constant 0 : i32
    return %c0_i32, %c0_i32_0 : i32, i32
  }
  func.func @transform_9(%arg0: i32) -> (i32, i32) {
    %c0_i32 = arith.constant 0 : i32
    %c0_i32_0 = arith.constant 0 : i32
    %c0_i32_1 = arith.constant 0 : i32
    return %c0_i32, %c0_i32_0 : i32, i32
  }
  func.func @transform_10(%arg0: i32) -> (i32, i32) {
    %c0_i32 = arith.constant 0 : i32
    %c0_i32_0 = arith.constant 0 : i32
    %c0_i32_1 = arith.constant 0 : i32
    return %c0_i32, %c0_i32_0 : i32, i32
  }
  func.func @transform_11(%arg0: i32) -> (i32, i32) {
    %c0_i32 = arith.constant 0 : i32
    %c0_i32_0 = arith.constant 0 : i32
    return %c0_i32, %arg0 : i32, i32
  }
}

</mosaic_0001>

<bundles_post_ra>
// kernel: tpu_custom_call.1
= control target key start
LH: loop header
LB: loop body
LE: loop exit
PB: predicated region body
PF: predicated region fallthrough
CT: control target
= control target key end

     0   :  { %s22075_s0 = inlined_call_operand.hbm [shape: bf16[32,1024], index: 0, kind: input, shape index: {}]   ;;  %s22076_s1 = inlined_call_operand.hbm [shape: f32[32,1024], index: 1, kind: input, shape index: {}]   ;;  %s22077_s2 = inlined_call_operand.hbm [shape: bf16[2,3,1024,512], index: 2, kind: input, shape index: {}]   ;;  %s22078_s3 = inlined_call_operand.hbm [shape: f32[1,1024], index: 3, kind: input, shape index: {}]   ;;  %s22079_s4 = inlined_call_operand.hbm [shape: bf16[3,1024,512], index: 4, kind: input, shape index: {}]   ;;  %s22080_s5 = inlined_call_operand.hbm [shape: f32[1,512], index: 5, kind: input, shape index: {}]   ;;  %s22081_s6 = inlined_call_operand.hbm [shape: bf16[3,512,512], index: 6, kind: input, shape index: {}]   ;;  %s22082_s7 = inlined_call_operand.hbm [shape: f32[1,512], index: 7, kind: input, shape index: {}]   ;;  %s22083_s8 = inlined_call_operand.hbm [shape: f32[1,512], index: 8, kind: input, shape index: {}]   ;;  %s22084_s9 = inlined_call_operand.<no memory space> [shape: f32[1,1], index: 9, kind: input, shape index: {}]   ;;  %s22085_s10 = inlined_call_operand.vmem [shape: f32[32,1], index: 10, kind: output, shape index: {0}]   ;;  %s22086_s11 = inlined_call_operand.hbm [shape: f32[32,1024], index: 11, kind: output, shape index: {1}]  }
   0x1   :  { %22101 = sst [smem:[#allocation34_spill]] %s22080_s5  ;;  %v17_v0 = vstv %s22084_s9 }
   0x2   :  { %22102 = sst [smem:[#allocation35_spill]] %s22082_s7  ;;  %18 = vst [vmem:[#allocation3] sm:$0x1] %v17_v0 }
   0x3   :  { %22103 = sst [smem:[#allocation36_spill]] %s22086_s11 }
   0x4   :  { %19 = vsyncpa [#allocation5], 0 }
   0x5   :  { %20 = vsyncpa [#allocation8], 0 }
   0x6   :  { %22 = vsyncpa [#allocation8 + $0x1], 0 }
   0x7   :  { %23 = vsyncpa [#allocation11], 0 }
   0x8   :  { %25 = vsyncpa [#allocation11 + $0x1], 0 }
   0x9   :  { %26 = vsyncpa [#allocation14], 0 }
   0xa   :  { %27 = vsyncpa [#allocation17], 0 }
   0xb   :  { %28 = vsyncpa [#allocation6], 0 }
   0xc   :  { %30 = vsyncpa [#allocation6 + $0x1], 0  ;;  %s19269_s19 = smov 0   ;;  %s19271_s20 = smov 0  }
   0xd   :  { %s19273_s21 = smov 0   ;;  %s19275_s22 = smov 0  }
   0xe LB: > { %22104 = sst [smem:[#allocation29_spill]] %s19163_s19  ;;  %s19290_s9 = sadd.s32 4294967295, %s19175_s22   ;;  %s19175_s22 = sphi %s19275_s22, %s22138_s22   ;;  %s19171_s21 = sphi %s19273_s21, %s22142_s21   ;;  %s19167_s20 = sphi %s19271_s20, %s22141_s20   ;;  %s19163_s19 = sphi %s19269_s19, %s22140_s19  }
   0xf   : > { %s13701_s23 = sadd.s32 4294967294, %s19175_s22   ;;  %s19294_s24 = sadd.s32 1, %s19175_s22  }
  0x10   : > { %22105 = sst [smem:[#allocation30_spill]] %s19294_s24  ;;  %s64_s25 = sadd.s32 1, %s19171_s21 }
  0x11   : > { %s61_s26 = ssub.s32 %s19175_s22, %s19294_s24  ;;  %p71_p0 = scmp.ne.s32.totalorder %s19171_s21, %s19167_s20 }
  0x12   : > { %p62_p1 = scmp.eq.s32.totalorder %s61_s26, 0  ;;  %p72_p2 = scmp.eq.s32.totalorder %s19175_s22, 0 }
  0x13   : > { %p77_p3 = scmp.ne.s32.totalorder %s19167_s20, %s19163_s19  ;;  %p22091_p4 = scmp.eq.s32.totalorder %s19290_s9, 0 }
  0x14   : > { %s19306_s27 = scalar_select %p62_p1, %s19171_s21, %s64_s25  }
  0x15   : > { %p19308_p5 = por %p72_p2, %p71_p0  ;;  %p19314_p6 = por %p22091_p4, %p77_p3 }
  0x16   : > { %22106 = sst [smem:[#allocation31_spill]] %s19306_s27  ;;  %p305_p7 = scmp.eq.s32.totalorder %s19290_s9, 1 }
  0x17   : > { %s22107_s28 = scalar_select %p19308_p5, 1, 0 }
  0x18   : > { %s22108_s29 = scalar_select %p19314_p6, 1, 0 }
  0x19   : > { %p311_p8 = scmp.eq.s32.totalorder %s13701_s23, 1  ;;  %p13702_p9 = scmp.ge.s32.totalorder %s19175_s22, 1 }
  0x1a   : > { %p318_p10 = scmp.lt.s32.totalorder %s19175_s22, 3  ;;  %p19321_p11 = por %p305_p7, %p71_p0 }
  0x1b   : > { %p19325_p12 = por %p311_p8, %p77_p3  ;;  %s19177_s14 = smov [#allocation13]  }
  0x1c   : > { %s22109_s30 = scalar_select %p19321_p11, 1, 0 }
  0x1d   : > { %s22111_s12 = scalar_select %p19325_p12, 1, 0 }
  0x1e   : > { %22110 = sst [smem:[#allocation32_spill]] %s22109_s30  ;;  %p19329_p13 = pnand %p13702_p9, %p318_p10 }
  0x1f   : > { %22112 = sst [smem:[#allocation33_spill]] %s22111_s12  ;;  %s344_s15 = sshll.u32 %s19177_s14, 4  ;;  %s345_s15 = int_to_ptr.vmem [resolvable:$true] %s344_s15 }
  0x20   : > { %s22113_s13 = scalar_select %p19329_p13, 1, 0 }
  0x21   : > { %p16397_p2 = pneg %p19329_p13  ;;  %s19178_s16 = smov [#allocation16]  }
  0x22   : > { %s368_s17 = sshll.u32 %s19178_s16, 4  ;;  %s19179_s23 = smov [#allocation4]   ;;  %s19342_s17 = int_to_ptr.vmem [resolvable:$true] %s368_s17 }
  0x23   : > { %p19338_p0 = pnand %p16397_p2, %p22091_p4  ;;  %s19344_s25 = sshll.u32 %s19179_s23, 4  ;;  %s331_s25 = int_to_ptr.vmem [resolvable:$true] %s19344_s25 }
  0x24   : > { %s22115_s5 = sld [smem:[#allocation34_spill]] }
  0x25   : > { %p19354_p7 = pneg %p19338_p0 }
  0x2a   : > { %s18869_s24 = scalar_lea.hbm %s22115_s5, 64 }
  0x2b   : > { %p18870_p3 = scmp.ne.s32.totalorder %s22115_s5, %s18869_s24  ;;  %p18876_p10 = scmp.lt.u32.totalorder %s18869_s24, %s22115_s5 }
  0x2d   : > { %p18872_p8 = pnand %p19354_p7, %p18870_p3 }
  0x2f   : > { %p18873_p9 = pneg %p18872_p8 }
  0x31   : > { %p18878_p2 = pnand %p18876_p10, %p18873_p9 }
  0x33   : > { %18881 = shalt.err (!%p18878_p2)
}
  0x34   : > { %s18882_s27 = scalar_lea.vmem %s345_s15, 64  ;;  %p18890_p11 = scmp.lt.s32.totalorder %s345_s15, %s345_s15 }
  0x35   : > { %p18883_p1 = scmp.ne.s32.totalorder %s345_s15, %s18882_s27  ;;  %p18891_p6 = scmp.lt.s32.totalorder %s18882_s27, %s18882_s27 }
  0x37   : > { %p18885_p4 = pnand %p18883_p1, %p19354_p7  ;;  %p18892_p13 = por %p18891_p6, %p18890_p11 }
  0x39   : > { %p18886_p12 = pneg %p18885_p4 }
  0x3b   : > { %p18893_p5 = pnand %p18892_p13, %p18886_p12 }
  0x3d   : > { %18896 = shalt.err (!%p18893_p5)
}
  0x3e   : > { %16403 = dma.hbm_to_vmem [thread:$0]  (!%p19338_p0), %s22115_s5, 64, %s345_s15, [#allocation14]  }
  0x3f   : > { %s22117_s7 = sld [smem:[#allocation35_spill]] }
  0x45   : > { %s18897_s14 = scalar_lea.hbm %s22117_s7, 64 }
  0x46   : > { %p18898_p4 = scmp.ne.s32.totalorder %s22117_s7, %s18897_s14  ;;  %p18904_p5 = scmp.lt.u32.totalorder %s18897_s14, %s22117_s7 }
  0x48   : > { %p18900_p1 = pnand %p18898_p4, %p19354_p7 }
  0x4a   : > { %p18901_p6 = pneg %p18900_p1 }
  0x4c   : > { %p18906_p11 = pnand %p18904_p5, %p18901_p6 }
  0x4e   : > { %18909 = shalt.err (!%p18906_p11)
}
  0x4f   : > { %s18910_s15 = scalar_lea.vmem %s19342_s17, 64  ;;  %p18918_p8 = scmp.lt.s32.totalorder %s19342_s17, %s19342_s17 }
  0x50   : > { %p18911_p12 = scmp.ne.s32.totalorder %s19342_s17, %s18910_s15  ;;  %p18919_p9 = scmp.lt.s32.totalorder %s18910_s15, %s18910_s15 }
  0x52   : > { %p18913_p13 = pnand %p18911_p12, %p19354_p7  ;;  %p18920_p10 = por %p18919_p9, %p18918_p8 }
  0x54   : > { %p18914_p3 = pneg %p18913_p13 }
  0x56   : > { %p18921_p2 = pnand %p18920_p10, %p18914_p3 }
  0x58   : > { %18924 = shalt.err (!%p18921_p2)
}
  0x59   : > { %16409 = dma.hbm_to_vmem [thread:$0]  (!%p19338_p0), %s22117_s7, 64, %s19342_s17, [#allocation17]  }
  0x5a   : > { %s18925_s19 = scalar_lea.hbm %s22075_s0, 2048 }
  0x5b   : > { %p18926_p4 = scmp.ne.s32.totalorder %s22075_s0, %s18925_s19  ;;  %p18932_p5 = scmp.lt.u32.totalorder %s18925_s19, %s22075_s0 }
  0x5d   : > { %p18928_p1 = pnand %p18926_p4, %p19354_p7 }
  0x5f   : > { %p18929_p6 = pneg %p18928_p1 }
  0x61   : > { %p18934_p11 = pnand %p18932_p5, %p18929_p6 }
  0x63   : > { %18937 = shalt.err (!%p18934_p11)
}
  0x64   : > { %s18938_s15 = scalar_lea.vmem %s331_s25, 2048  ;;  %p18946_p8 = scmp.lt.s32.totalorder %s331_s25, %s331_s25 }
  0x65   : > { %p18939_p12 = scmp.ne.s32.totalorder %s331_s25, %s18938_s15  ;;  %p18947_p9 = scmp.lt.s32.totalorder %s18938_s15, %s18938_s15 }
  0x67   : > { %p18941_p13 = pnand %p18939_p12, %p19354_p7  ;;  %p18948_p10 = por %p18947_p9, %p18946_p8 }
  0x69   : > { %p18942_p3 = pneg %p18941_p13 }
  0x6b   : > { %p18949_p2 = pnand %p18948_p10, %p18942_p3 }
  0x6d   : > { %18952 = shalt.err (!%p18949_p2)
}
  0x6e   : > { %s19180_s17 = smov 512   ;;  %s19181_s11 = smov 32  }
  0x6f   : > { %16400 = dma.hbm_to_vmem [thread:$0]  (!%p19338_p0), %s22075_s0, 2048, %s331_s25, [#allocation5], %s19180_s17, %s19180_s17, %s19181_s11  }
  0x70   : > { %s19182_s26 = smov [#allocation15]   ;;  %s18953_s23 = scalar_lea.hbm %s22081_s6, 49152 }
  0x71   : > { %s354_s19 = sshll.u32 %s19182_s26, 4  ;;  %p18954_p4 = scmp.ne.s32.totalorder %s22081_s6, %s18953_s23  ;;  %s355_s19 = int_to_ptr.vmem [resolvable:$true] %s354_s19 }
  0x72   : > { %p18960_p5 = scmp.lt.u32.totalorder %s18953_s23, %s22081_s6 }
  0x73   : > { %p18956_p1 = pnand %p18954_p4, %p19354_p7 }
  0x75   : > { %p18957_p6 = pneg %p18956_p1 }
  0x77   : > { %p18962_p11 = pnand %p18960_p5, %p18957_p6 }
  0x79   : > { %18965 = shalt.err (!%p18962_p11)
}
  0x7a   : > { %s18966_s25 = scalar_lea.vmem %s355_s19, 49152  ;;  %p18974_p8 = scmp.lt.s32.totalorder %s355_s19, %s355_s19 }
  0x7b   : > { %p18967_p12 = scmp.ne.s32.totalorder %s355_s19, %s18966_s25  ;;  %p18975_p9 = scmp.lt.s32.totalorder %s18966_s25, %s18966_s25 }
  0x7d   : > { %p18969_p13 = pnand %p18967_p12, %p19354_p7  ;;  %p18976_p10 = por %p18975_p9, %p18974_p8 }
  0x7f   : > { %p18970_p3 = pneg %p18969_p13 }
  0x81   : > { %p18977_p2 = pnand %p18976_p10, %p18970_p3 }
  0x83   : > { %18980 = shalt.err (!%p18977_p2)
}
  0x84   : > { %s19183_s17 = smov 256   ;;  %s19184_s11 = smov 16  }
  0x85   : > { %16406 = dma.hbm_to_vmem [thread:$0]  (!%p19338_p0), %s22081_s6, 49152, %s355_s19, [#allocation14], %s19183_s17, %s19183_s17, %s19184_s11  }
  0x86   : > { %s19185_s30 = smov [#allocation18]   ;;  %s18981_s14 = scalar_lea.hbm %s22083_s8, 64 }
  0x87   : > { %s379_s12 = sshll.u32 %s19185_s30, 4  ;;  %p18982_p4 = scmp.ne.s32.totalorder %s22083_s8, %s18981_s14  ;;  %s380_s12 = int_to_ptr.vmem [resolvable:$true] %s379_s12 }
  0x88   : > { %p18988_p5 = scmp.lt.u32.totalorder %s18981_s14, %s22083_s8 }
  0x89   : > { %p18984_p1 = pnand %p18982_p4, %p19354_p7 }
  0x8b   : > { %p18985_p6 = pneg %p18984_p1 }
  0x8d   : > { %p18990_p11 = pnand %p18988_p5, %p18985_p6 }
  0x8f   : > { %18993 = shalt.err (!%p18990_p11)
}
  0x90   : > { %s18994_s19 = scalar_lea.vmem %s380_s12, 64  ;;  %p19002_p8 = scmp.lt.s32.totalorder %s380_s12, %s380_s12 }
  0x91   : > { %p18995_p12 = scmp.ne.s32.totalorder %s380_s12, %s18994_s19  ;;  %p19003_p9 = scmp.lt.s32.totalorder %s18994_s19, %s18994_s19 }
  0x93   : > { %p18997_p13 = pnand %p18995_p12, %p19354_p7  ;;  %p19004_p10 = por %p19003_p9, %p19002_p8 }
  0x95   : > { %p18998_p3 = pneg %p18997_p13 }
  0x97   : > { %p19005_p2 = pnand %p19004_p10, %p18998_p3 }
  0x99   : > { %19008 = shalt.err (!%p19005_p2)
}
  0x9a   : > { %16412 = dma.hbm_to_vmem [thread:$0]  (!%p19338_p0), %s22083_s8, 64, %s380_s12, [#allocation17]  }
  0x9b   : > { %p22100_p4 = scmp.ge.s32.totalorder %s19175_s22, 2 }
  0x9c   : > { %s22099_s16 = sand.u32 (!%p22100_p4), 1, %s19175_s22   ;;  %s19453_s5 = sand.u32 (!%p22100_p4), 1, %s19171_s21  }
  0x9d   : > { %389 = sbr.rel (%p22100_p4) target bundleno = 249 (0xf9), region = 40  ;;  %s13709_s7 = sshll.u32 (!%p22100_p4), %s19453_s5, 7 }
  0x9e   : > { %s16062_s18 = sshll.u32 (!%p22100_p4), %s19175_s22, 9  ;;  %s397_s24 = scalar_lea.vmem (!%p22100_p4), [#allocation7], %s13709_s7 }
  0x9f   : > { %s19460_s12 = scalar_lea.hbm (!%p22100_p4), %s22076_s1, %s16062_s18  ;;  %s404_s14 = sshll.u32 (!%p22100_p4), %s397_s24, 4  ;;  %s19462_s14 = int_to_ptr.vmem [resolvable:$true] %s404_s14 }
  0xa0   : > { %s19466_s23 = scalar_lea.sflag (!%p22100_p4), [#allocation8], %s22099_s16  ;;  %s19009_s27 = scalar_lea.hbm (!%p22100_p4), %s19460_s12, 2048 }
  0xa1   : > { %p19010_p0 = scmp.ne.s32.totalorder (!%p22100_p4), %s19460_s12, %s19009_s27  ;;  %p22118_p7 = scmp.ne.s32.totalorder (!%p22100_p4), %s22107_s28, 0 }
  0xa2   : > { %s19013_s19 = scalar_lea.hbm (!%p22100_p4), %s22076_s1, 4096  ;;  %p19014_p5 = scmp.lt.u32.totalorder (!%p22100_p4), %s19460_s12, %s22076_s1 }
  0xa3   : > { %p19011_p1 = pnand (!%p22100_p4), %p19010_p0, %p22118_p7  ;;  %p19015_p11 = scmp.lt.u32.totalorder (!%p22100_p4), %s19013_s19, %s19009_s27 }
  0xa4   : > { %p19017_p13 = scmp.lt.u32.totalorder %s19009_s27, %s19460_s12 }
  0xa5   : > { %p19012_p6 = pneg %p19011_p1  ;;  %p19016_p12 = por %p19015_p11, %p19014_p5 }
  0xa7   : > { %p19018_p3 = por %p19017_p13, %p19016_p12 }
  0xa9   : > { %p19019_p8 = pnand %p19018_p3, %p19012_p6 }
  0xab   : > { %19022 = shalt.err (!%p19019_p8)
}
  0xac   : > { %s19023_s7 = scalar_lea.vmem %s19462_s14, 2048  ;;  %s19186_s18 = smov [#allocation7]  }
  0xad   : > { %p19024_p9 = scmp.ne.s32.totalorder %s19462_s14, %s19023_s7  ;;  %s19027_s30 = sshll.u32 %s19186_s18, 4  ;;  %s19028_s30 = int_to_ptr.vmem [resolvable:$false] %s19027_s30 }
  0xae   : > { %s19029_s26 = scalar_lea.vmem %s19028_s30, 4096  ;;  %p19030_p0 = scmp.lt.s32.totalorder %s19462_s14, %s19028_s30 }
  0xaf   : > { %p19025_p10 = pnand %p19024_p9, %p22118_p7  ;;  %p19031_p1 = scmp.lt.s32.totalorder %s19029_s26, %s19023_s7 }
  0xb1   : > { %p19026_p2 = pneg %p19025_p10  ;;  %p19032_p5 = por %p19031_p1, %p19030_p0 }
  0xb3   : > { %p19033_p11 = pnand %p19032_p5, %p19026_p2 }
  0xb5   : > { %19036 = shalt.err (!%p19033_p11)
}
  0xb6   : > { %s19187_s24 = smov 1024   ;;  %s19188_s27 = smov 512  }
  0xb7   : > { %s19189_s15 = smov 32   ;;  %s16355_s25 = smul.u32 6144, %s19453_s5 }
  0xb8   : > { %16370 = dma.hbm_to_vmem [thread:$0]  (%p22118_p7), %s19460_s12, 2048, %s19462_s14, %s19466_s23, %s19187_s24, %s19188_s27, %s19189_s15  }
  0xb9   : > { %s16356_s19 = smul.u32 98304, %s19175_s22  ;;  %s418_s18 = scalar_lea.vmem [#allocation9], %s16355_s25 }
  0xba   : > { %s425_s30 = sshll.u32 %s418_s18, 4  ;;  %s13713_s26 = sshll.u32 %s19453_s5, 2  ;;  %s19497_s30 = int_to_ptr.vmem [resolvable:$true] %s425_s30 }
  0xbb   : > { %s19495_s7 = scalar_lea.hbm %s22077_s2, %s16356_s19  ;;  %s19041_s24 = scalar_lea.hbm %s22077_s2, 196608 }
  0xbc   : > { %s19037_s16 = scalar_lea.hbm %s19495_s7, 98304  ;;  %p19042_p3 = scmp.lt.u32.totalorder %s19495_s7, %s22077_s2 }
  0xbd   : > { %p19038_p6 = scmp.ne.s32.totalorder %s19495_s7, %s19037_s16  ;;  %p19043_p8 = scmp.lt.u32.totalorder %s19041_s24, %s19037_s16 }
  0xbe   : > { %p19045_p10 = scmp.lt.u32.totalorder %s19037_s16, %s19495_s7 }
  0xbf   : > { %p19039_p12 = pnand %p19038_p6, %p22118_p7  ;;  %p19044_p9 = por %p19043_p8, %p19042_p3 }
  0xc1   : > { %p19040_p13 = pneg %p19039_p12  ;;  %p19046_p2 = por %p19045_p10, %p19044_p9 }
  0xc3   : > { %p19047_p0 = pnand %p19046_p2, %p19040_p13 }
  0xc5   : > { %19050 = shalt.err (!%p19047_p0)
}
  0xc6   : > { %s19051_s25 = scalar_lea.vmem %s19497_s30, 98304  ;;  %s19190_s19 = smov [#allocation9]  }
  0xc7   : > { %p19052_p1 = scmp.ne.s32.totalorder %s19497_s30, %s19051_s25  ;;  %s19055_s17 = sshll.u32 %s19190_s19, 4  ;;  %s19056_s17 = int_to_ptr.vmem [resolvable:$false] %s19055_s17 }
  0xc8   : > { %s19057_s11 = scalar_lea.vmem %s19056_s17, 196608  ;;  %p19058_p6 = scmp.lt.s32.totalorder %s19497_s30, %s19056_s17 }
  0xc9   : > { %p19053_p5 = pnand %p19052_p1, %p22118_p7  ;;  %p19059_p12 = scmp.lt.s32.totalorder %s19057_s11, %s19051_s25 }
  0xcb   : > { %p19054_p11 = pneg %p19053_p5  ;;  %p19060_p3 = por %p19059_p12, %p19058_p6 }
  0xcd   : > { %p19061_p8 = pnand %p19060_p3, %p19054_p11 }
  0xcf   : > { %19064 = shalt.err (!%p19061_p8)
}
  0xd0   : > { %s19191_s16 = smov 256   ;;  %s19192_s18 = smov 16  }
  0xd1   : > { %16371 = dma.hbm_to_vmem [thread:$0]  (%p22118_p7), %s19495_s7, 98304, %s19497_s30, %s19466_s23, %s19191_s16, %s19191_s16, %s19192_s18  }
  0xd2   : > { %s16063_s12 = sshll.u32 %s19175_s22, 6  ;;  %s439_s15 = scalar_lea.vmem [#allocation10], %s13713_s26 }
  0xd3   : > { %s19526_s27 = scalar_lea.hbm %s22078_s3, %s16063_s12  ;;  %s447_s25 = sshll.u32 %s439_s15, 4  ;;  %s448_s25 = int_to_ptr.vmem [resolvable:$true] %s447_s25 }
  0xd4   : > { %s22119_s19 = sand.u32 1, %s19175_s22   ;;  %s19065_s11 = scalar_lea.hbm %s19526_s27, 64 }
  0xd5   : > { %s19532_s17 = scalar_lea.sflag [#allocation11], %s22119_s19  ;;  %p19066_p13 = scmp.ne.s32.totalorder %s19526_s27, %s19065_s11 }
  0xd6   : > { %s19069_s30 = scalar_lea.hbm %s22078_s3, 128  ;;  %p19070_p2 = scmp.lt.u32.totalorder %s19526_s27, %s22078_s3 }
  0xd7   : > { %p19067_p9 = pnand %p19066_p13, %p22118_p7  ;;  %p19071_p0 = scmp.lt.u32.totalorder %s19069_s30, %s19065_s11 }
  0xd8   : > { %p19073_p5 = scmp.lt.u32.totalorder %s19065_s11, %s19526_s27 }
  0xd9   : > { %p19068_p10 = pneg %p19067_p9  ;;  %p19072_p1 = por %p19071_p0, %p19070_p2 }
  0xdb   : > { %p19074_p11 = por %p19073_p5, %p19072_p1 }
  0xdd   : > { %p19075_p6 = pnand %p19074_p11, %p19068_p10 }
  0xdf   : > { %19078 = shalt.err (!%p19075_p6)
}
  0xe0   : > { %s19079_s26 = scalar_lea.vmem %s448_s25, 64  ;;  %s19193_s12 = smov [#allocation10]  }
  0xe1   : > { %p19080_p12 = scmp.ne.s32.totalorder %s448_s25, %s19079_s26  ;;  %s19083_s14 = sshll.u32 %s19193_s12, 4  ;;  %s19084_s14 = int_to_ptr.vmem [resolvable:$false] %s19083_s14 }
  0xe2   : > { %s19085_s24 = scalar_lea.vmem %s19084_s14, 128  ;;  %p19086_p13 = scmp.lt.s32.totalorder %s448_s25, %s19084_s14 }
  0xe3   : > { %p19081_p3 = pnand %p19080_p12, %p22118_p7  ;;  %p19087_p9 = scmp.lt.s32.totalorder %s19085_s24, %s19079_s26 }
  0xe5   : > { %p19082_p8 = pneg %p19081_p3  ;;  %p19088_p4 = por %p19087_p9, %p19086_p13 }
  0xe7   : > { %p19089_p0 = pnand %p19088_p4, %p19082_p8 }
  0xe9   : > { %19092 = shalt.err (!%p19089_p0)
}
  0xea   : > { %16372 = dma.hbm_to_vmem [thread:$0]  (%p22118_p7), %s19526_s27, 64, %s448_s25, %s19532_s17  }
  0xeb   : > { %s16357_s15 = smul.u32 3072, %s19453_s5  ;;  %s16065_s19 = sshll.u32 %s19175_s22, 14 }
  0xec   : > { %s19194_s11 = smov 32768   ;;  %s465_s27 = scalar_lea.hbm %s22079_s4, %s16065_s19 }
  0xed   : > { %16374 = sst [smem:[#allocation21]] (%p22118_p7), %s19194_s11  ;;  %s458_s16 = scalar_lea.vmem [#allocation12], %s16357_s15 }
  0xee   : > { %s16373_s23 = scalar_select %p22118_p7, [#allocation0], [#allocation22] }
  0xef   : > { %s478_s18 = sshll.u32 %s458_s16, 4  ;;  %s19195_s26 = smov 16384   ;;  %s479_s18 = int_to_ptr.vmem [resolvable:$true] %s478_s18 }
  0xf0   : > { %s470_s25 = sld [smem:[%s16373_s23]]   ;;  %s19196_s5 = smov 64  }
  0xf1   : > { %16375 = sst [smem:[#allocation21 + $0x1]] (%p22118_p7), %s19195_s26  ;;  %s19197_s12 = smov 256  }
  0xf2   : > { %16376 = sst [smem:[#allocation21 + $0x2]] (%p22118_p7), %s19196_s5  ;;  %s19198_s14 = smov 16  }
  0xf3   : > { %16377 = sst [smem:[#allocation21 + $0x3]] (%p22118_p7), %s19197_s12  ;;  %s19199_s11 = smov [#allocation20]  }
  0xf4   : > { %16378 = sst [smem:[#allocation21 + $0x4]] (%p22118_p7), %s19197_s12 }
  0xf5   : > { %16379 = sst [smem:[#allocation21 + $0x5]] (%p22118_p7), %s19198_s14 }
  0xf6   : > { %s13719_s24 = sshll.u32 %s470_s25, 26 }
  0xf7   : > { %s13720_s19 = sadd.s32 134217728, %s13719_s24 }
  0xf8   : > { %16380 = dma.general (%p22118_p7), %s465_s27, 49152, %s479_s18, %s19532_s17, %s19199_s11, [#allocation21], %s13720_s19, 0  }
  0xf9 PF: > { %p22120_p4 = scmp.ne.s32.totalorder %s22113_s13, 0 }
  0xfa   : > { %p22121_p10 = scmp.eq.s32.totalorder (!%p22120_p4), %s19290_s9, 0 }
  0xfb   : > { %503 = sbr.rel (%p22120_p4) target bundleno = 2804 (0xaf4), region = 60 }
 0x102   : > { %19138 = dma.done.wait (%p22121_p10), [#allocation5], 2048   ;;  %p22122_p2 = pmov %p22121_p10 }
 0x103   : > { %s509_s15 = sand.u32 1, %s19290_s9   ;;  %s19582_s23 = sand.u32 1, %s19167_s20  }
 0x104   : > { %19140 = vsyncadd (%p22122_p2), [#allocation5], 4294965248  ;;  %s13723_s28 = sshll.u32 %s19582_s23, 7  ;;  %s510_s17 = scalar_lea.sflag [#allocation8], %s509_s15 }
 0x105   : > { %s19587_s7 = scalar_lea.vmem [#allocation7], %s13723_s28  ;;  %p22123_p7 = scmp.ne.s32.totalorder %s22108_s29, 0 }
 0x107   : > { %19142 = dma.done.wait (%p22123_p7), %s510_s17, 100352  }
 0x108   : > { %19144 = vsyncadd (%p22123_p7), %s510_s17, 4294866944  ;;  %s16358_s13 = smul.u32 6144, %s19582_s23  ;;  %s13724_s30 = sshll.u32 %s19582_s23, 2 }
 0x109   : > { %s528_s25 = scalar_lea.sflag [#allocation11], %s509_s15  ;;  %s19597_s16 = scalar_lea.vmem [#allocation10], %s13724_s30 }
 0x10a   : > { %s19595_s27 = scalar_lea.vmem [#allocation9], %s16358_s13 }
 0x10b   : > { %19146 = dma.done.wait (%p22123_p7), %s528_s25, 49216  }
 0x10c   : > { %19148 = vsyncadd (%p22123_p7), %s528_s25, 4294918080  ;;  %s16359_s18 = smul.u32 3072, %s19582_s23  ;;  %p22124_p1 = pmov %p22122_p2 }
 0x10e   : > { %s19604_s26 = scalar_lea.vmem [#allocation12], %s16359_s18 }
 0x10f   : > { %19150 = dma.done.wait (%p22124_p1), [#allocation14], 49216   ;;  %p22125_p5 = pmov %p22124_p1 }
 0x110   : > { %p22126_p11 = pmov %p22124_p1 }
 0x111   : > { %19152 = vsyncadd (%p22125_p5), [#allocation14], 4294918080 }
 0x112   : > { %19154 = dma.done.wait (%p22126_p11), [#allocation17], 128   ;;  %p22127_p6 = pmov %p22124_p1 }
 0x113   : > { %v16485_v1 = vld [vmem:[%s19595_s27 + $0x4] ss:$16 sps:$4 sm:$0xff]   ;;  %v16487_v2 = vld [vmem:[%s19595_s27 + $0xc] ss:$16 sps:$4 sm:$0xff]   ;;  %v16489_v3 = vld [vmem:[%s19595_s27] ss:$16 sps:$4 sm:$0xff]  }
 0x114   : > { %19156 = vsyncadd (%p22127_p6), [#allocation17], 4294967168  ;;  %2580 = vmatprep.subr.bf16.mxu0 %v16485_v1  ;;  %v16490_v4 = vld [vmem:[%s19595_s27 + $0x8] ss:$16 sps:$4 sm:$0xff]   ;;  %2792 = vmatprep.subr.bf16.mxu1 %v16487_v2  ;;  %v16491_v5 = vld [vmem:[%s19595_s27 + $0x24] ss:$16 sps:$4 sm:$0xff]  }
 0x115   : > { %2581 = vmatpush1.bf16.msra.mxu0 %v16489_v3  ;;  %2793 = vmatpush1.bf16.msra.mxu1 %v16490_v4  ;;  %v16493_v6 = vld [vmem:[%s19595_s27 + $0x2c] ss:$16 sps:$4 sm:$0xff]   ;;  %v16495_v7 = vld [vmem:[%s19595_s27 + $0x20] ss:$16 sps:$4 sm:$0xff]   ;;  %v16496_v8 = vld [vmem:[%s19595_s27 + $0x28] ss:$16 sps:$4 sm:$0xff]  }
 0x116   : > { %2582 = vmatprep.subr.bf16.mxu0 %v16491_v5  ;;  %2794 = vmatprep.subr.bf16.mxu1 %v16493_v6  ;;  %v16497_v9 = vld [vmem:[%s19595_s27 + $0x44] ss:$16 sps:$4 sm:$0xff]   ;;  %v16499_v10 = vld [vmem:[%s19595_s27 + $0x4c] ss:$16 sps:$4 sm:$0xff]   ;;  %v16501_v11 = vld [vmem:[%s19595_s27 + $0x40] ss:$16 sps:$4 sm:$0xff]  }
 0x117   : > { %v16502_v12 = vld [vmem:[%s19595_s27 + $0x48] ss:$16 sps:$4 sm:$0xff]   ;;  %v16503_v13 = vld [vmem:[%s19595_s27 + $0x64] ss:$16 sps:$4 sm:$0xff]   ;;  %v16505_v14 = vld [vmem:[%s19595_s27 + $0x6c] ss:$16 sps:$4 sm:$0xff]  }
 0x118   : > { %v16507_v15 = vld [vmem:[%s19595_s27 + $0x60] ss:$16 sps:$4 sm:$0xff]   ;;  %v16508_v16 = vld [vmem:[%s19595_s27 + $0x68] ss:$16 sps:$4 sm:$0xff]   ;;  %v16509_v17 = vld [vmem:[%s19595_s27 + $0x84] ss:$16 sps:$4 sm:$0xff]  }
 0x119   : > { %2583 = vmatpush1.bf16.msra.mxu0 %v16495_v7  ;;  %2795 = vmatpush1.bf16.msra.mxu1 %v16496_v8  ;;  %v16511_v18 = vld [vmem:[%s19595_s27 + $0x8c] ss:$16 sps:$4 sm:$0xff]   ;;  %v16513_v19 = vld [vmem:[%s19595_s27 + $0x80] ss:$16 sps:$4 sm:$0xff]   ;;  %v16514_v20 = vld [vmem:[%s19595_s27 + $0x88] ss:$16 sps:$4 sm:$0xff]  }
 0x11a   : > { %2584 = vmatprep.subr.bf16.mxu0 %v16497_v9  ;;  %2796 = vmatprep.subr.bf16.mxu1 %v16499_v10  ;;  %v16515_v21 = vld [vmem:[%s19595_s27 + $0xa4] ss:$16 sps:$4 sm:$0xff]   ;;  %v16517_v22 = vld [vmem:[%s19595_s27 + $0xac] ss:$16 sps:$4 sm:$0xff]   ;;  %v16519_v23 = vld [vmem:[%s19595_s27 + $0xa0] ss:$16 sps:$4 sm:$0xff]  }
 0x11b   : > { %v16520_v24 = vld [vmem:[%s19595_s27 + $0xa8] ss:$16 sps:$4 sm:$0xff]   ;;  %v16521_v25 = vld [vmem:[%s19595_s27 + $0xc4] ss:$16 sps:$4 sm:$0xff]   ;;  %v16523_v26 = vld [vmem:[%s19595_s27 + $0xcc] ss:$16 sps:$4 sm:$0xff]  }
 0x11c   : > { %v16525_v27 = vld [vmem:[%s19595_s27 + $0xc0] ss:$16 sps:$4 sm:$0xff]   ;;  %v16526_v28 = vld [vmem:[%s19595_s27 + $0xc8] ss:$16 sps:$4 sm:$0xff]   ;;  %v16527_v29 = vld [vmem:[%s19595_s27 + $0xe4] ss:$16 sps:$4 sm:$0xff]  }
 0x11d   : > { %2585 = vmatpush1.bf16.msra.mxu0 %v16501_v11  ;;  %2797 = vmatpush1.bf16.msra.mxu1 %v16502_v12  ;;  %v16529_v30 = vld [vmem:[%s19595_s27 + $0xec] ss:$16 sps:$4 sm:$0xff]   ;;  %v16531_v31 = vld [vmem:[%s19595_s27 + $0xe0] ss:$16 sps:$4 sm:$0xff]   ;;  %v16532_v32 = vld [vmem:[%s19595_s27 + $0xe8] ss:$16 sps:$4 sm:$0xff]  }
 0x11e   : > { %2586 = vmatprep.subr.bf16.mxu0 %v16503_v13  ;;  %2798 = vmatprep.subr.bf16.mxu1 %v16505_v14  ;;  %v16533_v33 = vld [vmem:[%s19595_s27 + $0x104] ss:$16 sps:$4 sm:$0xff]   ;;  %v16535_v34 = vld [vmem:[%s19595_s27 + $0x10c] ss:$16 sps:$4 sm:$0xff]   ;;  %v16537_v35 = vld [vmem:[%s19595_s27 + $0x100] ss:$16 sps:$4 sm:$0xff]  }
 0x11f   : > { %v16538_v36 = vld [vmem:[%s19595_s27 + $0x108] ss:$16 sps:$4 sm:$0xff]   ;;  %v16539_v37 = vld [vmem:[%s19595_s27 + $0x124] ss:$16 sps:$4 sm:$0xff]   ;;  %v16541_v38 = vld [vmem:[%s19595_s27 + $0x12c] ss:$16 sps:$4 sm:$0xff]  }
 0x120   : > { %v16543_v39 = vld [vmem:[%s19595_s27 + $0x120] ss:$16 sps:$4 sm:$0xff]   ;;  %v16544_v40 = vld [vmem:[%s19595_s27 + $0x128] ss:$16 sps:$4 sm:$0xff]   ;;  %v16545_v41 = vld [vmem:[%s19595_s27 + $0x144] ss:$16 sps:$4 sm:$0xff]  }
 0x121   : > { %2587 = vmatpush1.bf16.msra.mxu0 %v16507_v15  ;;  %2799 = vmatpush1.bf16.msra.mxu1 %v16508_v16  ;;  %v16547_v42 = vld [vmem:[%s19595_s27 + $0x14c] ss:$16 sps:$4 sm:$0xff]   ;;  %v16549_v43 = vld [vmem:[%s19595_s27 + $0x140] ss:$16 sps:$4 sm:$0xff]   ;;  %v16550_v44 = vld [vmem:[%s19595_s27 + $0x148] ss:$16 sps:$4 sm:$0xff]  }
 0x122   : > { %2588 = vmatprep.subr.bf16.mxu0 %v16509_v17  ;;  %2800 = vmatprep.subr.bf16.mxu1 %v16511_v18  ;;  %v16551_v45 = vld [vmem:[%s19595_s27 + $0x164] ss:$16 sps:$4 sm:$0xff]   ;;  %v16553_v46 = vld [vmem:[%s19595_s27 + $0x16c] ss:$16 sps:$4 sm:$0xff]   ;;  %v16555_v49 = vld [vmem:[%s19595_s27 + $0x160] ss:$16 sps:$4 sm:$0xff]  }
 0x123   : > { %v691_v47 = vld [vmem:[#allocation4] sm:$0xff]  ;;  %v16556_v50 = vld [vmem:[%s19595_s27 + $0x168] ss:$16 sps:$4 sm:$0xff]   ;;  %v16559_v53 = vld [vmem:[%s19595_s27 + $0x18c] ss:$16 sps:$4 sm:$0xff]   ;;  %s20855_s29 = scalar_lea.vmem [#allocation19], %s13723_s28 }
 0x124   : > { %v695_v48 = vld [vmem:[#allocation4 + $0x20] sm:$0xff]  ;;  %v16562_v55 = vld [vmem:[%s19595_s27 + $0x188] ss:$16 sps:$4 sm:$0xff]   ;;  %v16565_v57 = vld [vmem:[%s19595_s27 + $0x1ac] ss:$16 sps:$4 sm:$0xff]   ;;  %p22130_p12 = scmp.ne.s32.totalorder %s19290_s9, 0 }
 0x125   : > { %2589 = vmatpush1.bf16.msra.mxu0 %v16513_v19  ;;  %2801 = vmatpush1.bf16.msra.mxu1 %v16514_v20  ;;  %v19662_v51 = vcombine.high %v691_v47, %v695_v48  ;;  %v16557_v52 = vld [vmem:[%s19595_s27 + $0x184] ss:$16 sps:$4 sm:$0xff]   ;;  %v16561_v54 = vld [vmem:[%s19595_s27 + $0x180] ss:$16 sps:$4 sm:$0xff]   ;;  %v16568_v59 = vld [vmem:[%s19595_s27 + $0x1a8] ss:$16 sps:$4 sm:$0xff]   ;;  %v19684_v6 = vcombine.low %v691_v47, %v695_v48 }
 0x126   : > { %2590 = vmatprep.subr.bf16.mxu0 %v16515_v21  ;;  %2802 = vmatprep.subr.bf16.mxu1 %v16517_v22  ;;  %v16563_v56 = vld [vmem:[%s19595_s27 + $0x1a4] ss:$16 sps:$4 sm:$0xff]   ;;  %v16567_v58 = vld [vmem:[%s19595_s27 + $0x1a0] ss:$16 sps:$4 sm:$0xff]   ;;  %v16571_v61 = vld [vmem:[%s19595_s27 + $0x1cc] ss:$16 sps:$4 sm:$0xff]  }
 0x127   : > { %2612 = vmatprep.mubr.bf16.mxu0 %v19662_v51  ;;  %2824 = vmatprep.mubr.bf16.mxu1 %v19662_v51  ;;  %v16569_v60 = vld [vmem:[%s19595_s27 + $0x1c4] ss:$16 sps:$4 sm:$0xff]   ;;  %v16573_v62 = vld [vmem:[%s19595_s27 + $0x1c0] ss:$16 sps:$4 sm:$0xff]   ;;  %v16574_v63 = vld [vmem:[%s19595_s27 + $0x1c8] ss:$16 sps:$4 sm:$0xff]  }
 0x128   : > { %v16575_v0 = vld [vmem:[%s19595_s27 + $0x1e4] ss:$16 sps:$4 sm:$0xff]   ;;  %v16577_v1 = vld [vmem:[%s19595_s27 + $0x1ec] ss:$16 sps:$4 sm:$0xff]   ;;  %v16579_v2 = vld [vmem:[%s19595_s27 + $0x1e0] ss:$16 sps:$4 sm:$0xff]  }
 0x129   : > { %2591 = vmatpush1.bf16.msra.mxu0 %v16519_v23  ;;  %2803 = vmatpush1.bf16.msra.mxu1 %v16520_v24  ;;  %v16580_v3 = vld [vmem:[%s19595_s27 + $0x1e8] ss:$16 sps:$4 sm:$0xff]   ;;  %v16583_v4 = vld [vmem:[%s19595_s27 + $0x204] ss:$16 sps:$4 sm:$0xff]   ;;  %v16586_v5 = vld [vmem:[%s19595_s27 + $0x20c] ss:$16 sps:$4 sm:$0xff]  }
 0x12a   : > { %2592 = vmatprep.subr.bf16.mxu0 %v16521_v25  ;;  %2804 = vmatprep.subr.bf16.mxu1 %v16523_v26  ;;  %v16581_v7 = vld [vmem:[%s19595_s27 + $0x200] ss:$16 sps:$4 sm:$0xff]   ;;  %v16584_v8 = vld [vmem:[%s19595_s27 + $0x208] ss:$16 sps:$4 sm:$0xff]   ;;  %v16589_v9 = vld [vmem:[%s19595_s27 + $0x224] ss:$16 sps:$4 sm:$0xff]  }
 0x12b   : > { %v16592_v10 = vld [vmem:[%s19595_s27 + $0x22c] ss:$16 sps:$4 sm:$0xff]   ;;  %v16587_v11 = vld [vmem:[%s19595_s27 + $0x220] ss:$16 sps:$4 sm:$0xff]   ;;  %v16590_v12 = vld [vmem:[%s19595_s27 + $0x228] ss:$16 sps:$4 sm:$0xff]  }
 0x12c   : > { %v16595_v13 = vld [vmem:[%s19595_s27 + $0x244] ss:$16 sps:$4 sm:$0xff]   ;;  %v16598_v14 = vld [vmem:[%s19595_s27 + $0x24c] ss:$16 sps:$4 sm:$0xff]   ;;  %v16593_v15 = vld [vmem:[%s19595_s27 + $0x240] ss:$16 sps:$4 sm:$0xff]  }
 0x12d   : > { %2593 = vmatpush1.bf16.msra.mxu0 %v16525_v27  ;;  %2805 = vmatpush1.bf16.msra.mxu1 %v16526_v28  ;;  %v16596_v16 = vld [vmem:[%s19595_s27 + $0x248] ss:$16 sps:$4 sm:$0xff]   ;;  %v16601_v17 = vld [vmem:[%s19595_s27 + $0x264] ss:$16 sps:$4 sm:$0xff]   ;;  %v16604_v18 = vld [vmem:[%s19595_s27 + $0x26c] ss:$16 sps:$4 sm:$0xff]  }
 0x12e   : > { %2594 = vmatprep.subr.bf16.mxu0 %v16527_v29  ;;  %2806 = vmatprep.subr.bf16.mxu1 %v16529_v30  ;;  %v16599_v19 = vld [vmem:[%s19595_s27 + $0x260] ss:$16 sps:$4 sm:$0xff]   ;;  %v16602_v20 = vld [vmem:[%s19595_s27 + $0x268] ss:$16 sps:$4 sm:$0xff]   ;;  %v16607_v21 = vld [vmem:[%s19595_s27 + $0x284] ss:$16 sps:$4 sm:$0xff]  }
 0x12f   : > { %v16610_v22 = vld [vmem:[%s19595_s27 + $0x28c] ss:$16 sps:$4 sm:$0xff]   ;;  %v16605_v23 = vld [vmem:[%s19595_s27 + $0x280] ss:$16 sps:$4 sm:$0xff]   ;;  %v16608_v24 = vld [vmem:[%s19595_s27 + $0x288] ss:$16 sps:$4 sm:$0xff]  }
 0x130   : > { %v16613_v25 = vld [vmem:[%s19595_s27 + $0x2a4] ss:$16 sps:$4 sm:$0xff]   ;;  %v16616_v26 = vld [vmem:[%s19595_s27 + $0x2ac] ss:$16 sps:$4 sm:$0xff]   ;;  %v16611_v30 = vld [vmem:[%s19595_s27 + $0x2a0] ss:$16 sps:$4 sm:$0xff]  }
 0x131   : > { %2595 = vmatpush1.bf16.msra.mxu0 %v16531_v31  ;;  %2807 = vmatpush1.bf16.msra.mxu1 %v16532_v32  ;;  %v699_v27 = vld [vmem:[#allocation4 + $0x40] sm:$0xff]  ;;  %v16614_v31 = vld [vmem:[%s19595_s27 + $0x2a8] ss:$16 sps:$4 sm:$0xff]  }
 0x132   : > { %2596 = vmatprep.subr.bf16.mxu0 %v16533_v33  ;;  %2808 = vmatprep.subr.bf16.mxu1 %v16535_v34  ;;  %v703_v28 = vld [vmem:[#allocation4 + $0x60] sm:$0xff]  ;;  %v16622_v34 = vld [vmem:[%s19595_s27 + $0x2cc] ss:$16 sps:$4 sm:$0xff]   ;;  %v16632_v47 = vld [vmem:[%s19595_s27 + $0x308] ss:$16 sps:$4 sm:$0xff]  }
 0x133   : > { %v19708_v29 = vcombine.high %v699_v27, %v703_v28  ;;  %v19712_v32 = vcombine.low %v699_v27, %v703_v28  ;;  %v16619_v33 = vld [vmem:[%s19595_s27 + $0x2c4] ss:$16 sps:$4 sm:$0xff]   ;;  %v16694_v27 = vld [vmem:[%s19595_s27 + $0x44c] ss:$16 sps:$4 sm:$0xff]  }
 0x134   : > { %v16637_v48 = vld [vmem:[%s19595_s27 + $0x324] ss:$16 sps:$4 sm:$0xff]  }
 0x135   : > { %2597 = vmatpush1.bf16.msra.mxu0 %v16537_v35  ;;  %2809 = vmatpush1.bf16.msra.mxu1 %v16538_v36  ;;  %v19718_v35 = vld [vmem:[#allocation4 + $0x8] sm:$0xff]  ;;  %v19788_v28 = vld [vmem:[#allocation4 + $0x10] sm:$0xff] }
 0x136   : > { %2598 = vmatprep.subr.bf16.mxu0 %v16539_v37  ;;  %2810 = vmatprep.subr.bf16.mxu1 %v16541_v38  ;;  %v19722_v36 = vld [vmem:[#allocation4 + $0x28] sm:$0xff]  ;;  %v16617_v37 = vld [vmem:[%s19595_s27 + $0x2c0] ss:$16 sps:$4 sm:$0xff]  }
 0x137   : > { %v16620_v38 = vld [vmem:[%s19595_s27 + $0x2c8] ss:$16 sps:$4 sm:$0xff]  }
 0x139   : > { %2599 = vmatpush1.bf16.msra.mxu0 %v16543_v39  ;;  %2811 = vmatpush1.bf16.msra.mxu1 %v16544_v40  ;;  %v19728_v39 = vcombine.high %v19718_v35, %v19722_v36  ;;  %v16625_v40 = vld [vmem:[%s19595_s27 + $0x2e4] ss:$16 sps:$4 sm:$0xff]  }
 0x13a   : > { %2600 = vmatprep.subr.bf16.mxu0 %v16545_v41  ;;  %2812 = vmatprep.subr.bf16.mxu1 %v16547_v42  ;;  %v16628_v41 = vld [vmem:[%s19595_s27 + $0x2ec] ss:$16 sps:$4 sm:$0xff]   ;;  %v16623_v42 = vld [vmem:[%s19595_s27 + $0x2e0] ss:$16 sps:$4 sm:$0xff]  }
 0x13d   : > { %2601 = vmatpush1.bf16.msra.mxu0 %v16549_v43  ;;  %2813 = vmatpush1.bf16.msra.mxu1 %v16550_v44  ;;  %v16626_v43 = vld [vmem:[%s19595_s27 + $0x2e8] ss:$16 sps:$4 sm:$0xff]   ;;  %v16631_v44 = vld [vmem:[%s19595_s27 + $0x304] ss:$16 sps:$4 sm:$0xff]  }
 0x13e   : > { %2602 = vmatprep.subr.bf16.mxu0 %v16551_v45  ;;  %2814 = vmatprep.subr.bf16.mxu1 %v16553_v46  ;;  %v16634_v45 = vld [vmem:[%s19595_s27 + $0x30c] ss:$16 sps:$4 sm:$0xff]   ;;  %v16629_v46 = vld [vmem:[%s19595_s27 + $0x300] ss:$16 sps:$4 sm:$0xff]  }
 0x141   : > { %2603 = vmatpush1.bf16.msra.mxu0 %v16555_v49  ;;  %2815 = vmatpush1.bf16.msra.mxu1 %v16556_v50  ;;  %v16640_v49 = vld [vmem:[%s19595_s27 + $0x32c] ss:$16 sps:$4 sm:$0xff]   ;;  %v16635_v50 = vld [vmem:[%s19595_s27 + $0x320] ss:$16 sps:$4 sm:$0xff]  }
 0x142   : > { %2604 = vmatprep.subr.bf16.mxu0 %v16557_v52  ;;  %2816 = vmatprep.subr.bf16.mxu1 %v16559_v53  ;;  %v16638_v52 = vld [vmem:[%s19595_s27 + $0x328] ss:$16 sps:$4 sm:$0xff]   ;;  %v16643_v53 = vld [vmem:[%s19595_s27 + $0x344] ss:$16 sps:$4 sm:$0xff]  }
 0x145   : > { %2605 = vmatpush1.bf16.msra.mxu0 %v16561_v54  ;;  %2817 = vmatpush1.bf16.msra.mxu1 %v16562_v55  ;;  %v16646_v54 = vld [vmem:[%s19595_s27 + $0x34c] ss:$16 sps:$4 sm:$0xff]   ;;  %v16641_v55 = vld [vmem:[%s19595_s27 + $0x340] ss:$16 sps:$4 sm:$0xff]  }
 0x146   : > { %2606 = vmatprep.subr.bf16.mxu0 %v16563_v56  ;;  %2818 = vmatprep.subr.bf16.mxu1 %v16565_v57  ;;  %v16644_v56 = vld [vmem:[%s19595_s27 + $0x348] ss:$16 sps:$4 sm:$0xff]   ;;  %v16649_v57 = vld [vmem:[%s19595_s27 + $0x364] ss:$16 sps:$4 sm:$0xff]  }
 0x149   : > { %2607 = vmatpush1.bf16.msra.mxu0 %v16567_v58  ;;  %2819 = vmatpush1.bf16.msra.mxu1 %v16568_v59  ;;  %v16652_v58 = vld [vmem:[%s19595_s27 + $0x36c] ss:$16 sps:$4 sm:$0xff]   ;;  %v16647_v59 = vld [vmem:[%s19595_s27 + $0x360] ss:$16 sps:$4 sm:$0xff]  }
 0x14a   : > { %2608 = vmatprep.subr.bf16.mxu0 %v16569_v60  ;;  %2820 = vmatprep.subr.bf16.mxu1 %v16571_v61  ;;  %v16650_v60 = vld [vmem:[%s19595_s27 + $0x368] ss:$16 sps:$4 sm:$0xff]   ;;  %v16655_v61 = vld [vmem:[%s19595_s27 + $0x384] ss:$16 sps:$4 sm:$0xff]  }
 0x14d   : > { %2609 = vmatpush1.bf16.msra.mxu0 %v16573_v62  ;;  %2821 = vmatpush1.bf16.msra.mxu1 %v16574_v63  ;;  %v16658_v62 = vld [vmem:[%s19595_s27 + $0x38c] ss:$16 sps:$4 sm:$0xff]   ;;  %v16653_v63 = vld [vmem:[%s19595_s27 + $0x380] ss:$16 sps:$4 sm:$0xff]  }
 0x14e   : > { %2610 = vmatprep.subr.bf16.mxu0 %v16575_v0  ;;  %2822 = vmatprep.subr.bf16.mxu1 %v16577_v1  ;;  %v16656_v0 = vld [vmem:[%s19595_s27 + $0x388] ss:$16 sps:$4 sm:$0xff]   ;;  %v16661_v1 = vld [vmem:[%s19595_s27 + $0x3a4] ss:$16 sps:$4 sm:$0xff]  }
 0x151   : > { %2611 = vmatpush1.bf16.msra.mxu0 %v16579_v2  ;;  %2823 = vmatpush1.bf16.msra.mxu1 %v16580_v3  ;;  %v16664_v2 = vld [vmem:[%s19595_s27 + $0x3ac] ss:$16 sps:$4 sm:$0xff]   ;;  %v16659_v3 = vld [vmem:[%s19595_s27 + $0x3a0] ss:$16 sps:$4 sm:$0xff]  }
 0x152   : > { %2633 = vmatprep.subr.bf16.mxu0 %v16583_v4  ;;  %2845 = vmatprep.subr.bf16.mxu1 %v16586_v5  ;;  %v16662_v4 = vld [vmem:[%s19595_s27 + $0x3a8] ss:$16 sps:$4 sm:$0xff]   ;;  %v16667_v5 = vld [vmem:[%s19595_s27 + $0x3c4] ss:$16 sps:$4 sm:$0xff]  }
 0x154   : > { %2613 = vmatmul.mubr.bf16.vlgmr.msra.gmra.mrb[0].mxu0 %v19684_v6  ;;  %2825 = vmatmul.mubr.bf16.vlgmr.msra.gmra.mrb[0].mxu1 %v19684_v6 }
 0x155   : > { %2634 = vmatpush1.bf16.msra.mxu0 %v16581_v7  ;;  %2846 = vmatpush1.bf16.msra.mxu1 %v16584_v8  ;;  %v16670_v7 = vld [vmem:[%s19595_s27 + $0x3cc] ss:$16 sps:$4 sm:$0xff]   ;;  %v16665_v8 = vld [vmem:[%s19595_s27 + $0x3c0] ss:$16 sps:$4 sm:$0xff]  }
 0x156   : > { %2635 = vmatprep.subr.bf16.mxu0 %v16589_v9  ;;  %2847 = vmatprep.subr.bf16.mxu1 %v16592_v10  ;;  %v16668_v9 = vld [vmem:[%s19595_s27 + $0x3c8] ss:$16 sps:$4 sm:$0xff]   ;;  %v16673_v10 = vld [vmem:[%s19595_s27 + $0x3e4] ss:$16 sps:$4 sm:$0xff]  }
 0x157   : > { %2622 = vmatprep.mubr.bf16.mxu0 %v19708_v29  ;;  %2834 = vmatprep.mubr.bf16.mxu1 %v19708_v29 }
 0x159   : > { %2636 = vmatpush1.bf16.msra.mxu0 %v16587_v11  ;;  %2848 = vmatpush1.bf16.msra.mxu1 %v16590_v12  ;;  %v16676_v11 = vld [vmem:[%s19595_s27 + $0x3ec] ss:$16 sps:$4 sm:$0xff]   ;;  %v16671_v12 = vld [vmem:[%s19595_s27 + $0x3e0] ss:$16 sps:$4 sm:$0xff]  }
 0x15a   : > { %2637 = vmatprep.subr.bf16.mxu0 %v16595_v13  ;;  %2849 = vmatprep.subr.bf16.mxu1 %v16598_v14  ;;  %v16674_v13 = vld [vmem:[%s19595_s27 + $0x3e8] ss:$16 sps:$4 sm:$0xff]   ;;  %v16679_v14 = vld [vmem:[%s19595_s27 + $0x404] ss:$16 sps:$4 sm:$0xff]  }
 0x15c   : > { %2623 = vmatmul.mubr.bf16.gmra.mrb[4].mxu0 %v19712_v32  ;;  %2835 = vmatmul.mubr.bf16.gmra.mrb[4].mxu1 %v19712_v32 }
 0x15d   : > { %2638 = vmatpush1.bf16.msra.mxu0 %v16593_v15  ;;  %2850 = vmatpush1.bf16.msra.mxu1 %v16596_v16  ;;  %v16682_v15 = vld [vmem:[%s19595_s27 + $0x40c] ss:$16 sps:$4 sm:$0xff]   ;;  %v16677_v16 = vld [vmem:[%s19595_s27 + $0x400] ss:$16 sps:$4 sm:$0xff]  }
 0x15e   : > { %2639 = vmatprep.subr.bf16.mxu0 %v16601_v17  ;;  %2851 = vmatprep.subr.bf16.mxu1 %v16604_v18  ;;  %v16680_v17 = vld [vmem:[%s19595_s27 + $0x408] ss:$16 sps:$4 sm:$0xff]   ;;  %v19774_v18 = vcombine.low %v19718_v35, %v19722_v36  ;;  %v16697_v35 = vld [vmem:[%s19595_s27 + $0x464] ss:$16 sps:$4 sm:$0xff]   ;;  %v16700_v36 = vld [vmem:[%s19595_s27 + $0x46c] ss:$16 sps:$4 sm:$0xff]  }
 0x15f   : > { %2665 = vmatprep.mubr.bf16.mxu0 %v19728_v39  ;;  %2877 = vmatprep.mubr.bf16.mxu1 %v19728_v39 }
 0x161   : > { %2640 = vmatpush1.bf16.msra.mxu0 %v16599_v19  ;;  %2852 = vmatpush1.bf16.msra.mxu1 %v16602_v20  ;;  %v700_v19 = vld [vmem:[#allocation4 + $0x48] sm:$0xff] }
 0x162   : > { %2641 = vmatprep.subr.bf16.mxu0 %v16607_v21  ;;  %2853 = vmatprep.subr.bf16.mxu1 %v16610_v22  ;;  %v704_v20 = vld [vmem:[#allocation4 + $0x68] sm:$0xff]  ;;  %v16685_v21 = vld [vmem:[%s19595_s27 + $0x424] ss:$16 sps:$4 sm:$0xff]  }
 0x163   : > { %v16688_v22 = vld [vmem:[%s19595_s27 + $0x42c] ss:$16 sps:$4 sm:$0xff]  }
 0x165   : > { %2642 = vmatpush1.bf16.msra.mxu0 %v16605_v23  ;;  %2854 = vmatpush1.bf16.msra.mxu1 %v16608_v24  ;;  %v19778_v23 = vcombine.high %v700_v19, %v704_v20  ;;  %v16683_v24 = vld [vmem:[%s19595_s27 + $0x420] ss:$16 sps:$4 sm:$0xff]  }
 0x166   : > { %2643 = vmatprep.subr.bf16.mxu0 %v16613_v25  ;;  %2855 = vmatprep.subr.bf16.mxu1 %v16616_v26  ;;  %v16686_v25 = vld [vmem:[%s19595_s27 + $0x428] ss:$16 sps:$4 sm:$0xff]   ;;  %v16691_v26 = vld [vmem:[%s19595_s27 + $0x444] ss:$16 sps:$4 sm:$0xff]  }
 0x169   : > { %2644 = vmatpush1.bf16.msra.mxu0 %v16611_v30  ;;  %2856 = vmatpush1.bf16.msra.mxu1 %v16614_v31  ;;  %v19790_v30 = vcombine.low %v700_v19, %v704_v20  ;;  %v19792_v31 = vld [vmem:[#allocation4 + $0x30] sm:$0xff]  ;;  %v16758_v19 = vld [vmem:[%s19595_s27 + $0x5a8] ss:$16 sps:$4 sm:$0xff]  }
 0x16a   : > { %2645 = vmatprep.subr.bf16.mxu0 %v16619_v33  ;;  %2857 = vmatprep.subr.bf16.mxu1 %v16622_v34  ;;  %v16689_v33 = vld [vmem:[%s19595_s27 + $0x440] ss:$16 sps:$4 sm:$0xff]   ;;  %v16692_v34 = vld [vmem:[%s19595_s27 + $0x448] ss:$16 sps:$4 sm:$0xff]   ;;  %v16763_v20 = vld [vmem:[%s19595_s27 + $0x5c4] ss:$16 sps:$4 sm:$0xff]  }
 0x16d   : > { %2646 = vmatpush1.bf16.msra.mxu0 %v16617_v37  ;;  %2858 = vmatpush1.bf16.msra.mxu1 %v16620_v38  ;;  %v19800_v37 = vcombine.high %v19788_v28, %v19792_v31  ;;  %v16695_v38 = vld [vmem:[%s19595_s27 + $0x460] ss:$16 sps:$4 sm:$0xff]  }
 0x16e   : > { %2647 = vmatprep.subr.bf16.mxu0 %v16625_v40  ;;  %2859 = vmatprep.subr.bf16.mxu1 %v16628_v41  ;;  %v16698_v40 = vld [vmem:[%s19595_s27 + $0x468] ss:$16 sps:$4 sm:$0xff]   ;;  %v16703_v41 = vld [vmem:[%s19595_s27 + $0x484] ss:$16 sps:$4 sm:$0xff]  }
 0x171   : > { %2648 = vmatpush1.bf16.msra.mxu0 %v16623_v42  ;;  %2860 = vmatpush1.bf16.msra.mxu1 %v16626_v43  ;;  %v16706_v42 = vld [vmem:[%s19595_s27 + $0x48c] ss:$16 sps:$4 sm:$0xff]   ;;  %v16701_v43 = vld [vmem:[%s19595_s27 + $0x480] ss:$16 sps:$4 sm:$0xff]  }
 0x172   : > { %2649 = vmatprep.subr.bf16.mxu0 %v16631_v44  ;;  %2861 = vmatprep.subr.bf16.mxu1 %v16634_v45  ;;  %v16704_v44 = vld [vmem:[%s19595_s27 + $0x488] ss:$16 sps:$4 sm:$0xff]   ;;  %v16709_v45 = vld [vmem:[%s19595_s27 + $0x4a4] ss:$16 sps:$4 sm:$0xff]  }
 0x175   : > { %2650 = vmatpush1.bf16.msra.mxu0 %v16629_v46  ;;  %2862 = vmatpush1.bf16.msra.mxu1 %v16632_v47  ;;  %v16712_v46 = vld [vmem:[%s19595_s27 + $0x4ac] ss:$16 sps:$4 sm:$0xff]   ;;  %v16707_v47 = vld [vmem:[%s19595_s27 + $0x4a0] ss:$16 sps:$4 sm:$0xff]  }
 0x176   : > { %2651 = vmatprep.subr.bf16.mxu0 %v16637_v48  ;;  %2863 = vmatprep.subr.bf16.mxu1 %v16640_v49  ;;  %v16710_v48 = vld [vmem:[%s19595_s27 + $0x4a8] ss:$16 sps:$4 sm:$0xff]   ;;  %v16715_v49 = vld [vmem:[%s19595_s27 + $0x4c4] ss:$16 sps:$4 sm:$0xff]  }
 0x179   : > { %2652 = vmatpush1.bf16.msra.mxu0 %v16635_v50  ;;  %2864 = vmatpush1.bf16.msra.mxu1 %v16638_v52  ;;  %v16718_v50 = vld [vmem:[%s19595_s27 + $0x4cc] ss:$16 sps:$4 sm:$0xff]   ;;  %v16713_v52 = vld [vmem:[%s19595_s27 + $0x4c0] ss:$16 sps:$4 sm:$0xff]  }
 0x17a   : > { %2653 = vmatprep.subr.bf16.mxu0 %v16643_v53  ;;  %2865 = vmatprep.subr.bf16.mxu1 %v16646_v54  ;;  %v16716_v53 = vld [vmem:[%s19595_s27 + $0x4c8] ss:$16 sps:$4 sm:$0xff]   ;;  %v16721_v54 = vld [vmem:[%s19595_s27 + $0x4e4] ss:$16 sps:$4 sm:$0xff]  }
 0x17d   : > { %2654 = vmatpush1.bf16.msra.mxu0 %v16641_v55  ;;  %2866 = vmatpush1.bf16.msra.mxu1 %v16644_v56  ;;  %v16724_v55 = vld [vmem:[%s19595_s27 + $0x4ec] ss:$16 sps:$4 sm:$0xff]   ;;  %v16719_v56 = vld [vmem:[%s19595_s27 + $0x4e0] ss:$16 sps:$4 sm:$0xff]  }
 0x17e   : > { %2655 = vmatprep.subr.bf16.mxu0 %v16649_v57  ;;  %2867 = vmatprep.subr.bf16.mxu1 %v16652_v58  ;;  %v16722_v57 = vld [vmem:[%s19595_s27 + $0x4e8] ss:$16 sps:$4 sm:$0xff]   ;;  %v16727_v58 = vld [vmem:[%s19595_s27 + $0x504] ss:$16 sps:$4 sm:$0xff]  }
 0x181   : > { %2656 = vmatpush1.bf16.msra.mxu0 %v16647_v59  ;;  %2868 = vmatpush1.bf16.msra.mxu1 %v16650_v60  ;;  %v16730_v59 = vld [vmem:[%s19595_s27 + $0x50c] ss:$16 sps:$4 sm:$0xff]   ;;  %v16725_v60 = vld [vmem:[%s19595_s27 + $0x500] ss:$16 sps:$4 sm:$0xff]  }
 0x182   : > { %2657 = vmatprep.subr.bf16.mxu0 %v16655_v61  ;;  %2869 = vmatprep.subr.bf16.mxu1 %v16658_v62  ;;  %v16728_v61 = vld [vmem:[%s19595_s27 + $0x508] ss:$16 sps:$4 sm:$0xff]   ;;  %v16733_v62 = vld [vmem:[%s19595_s27 + $0x524] ss:$16 sps:$4 sm:$0xff]  }
 0x185   : > { %2658 = vmatpush1.bf16.msra.mxu0 %v16653_v63  ;;  %2870 = vmatpush1.bf16.msra.mxu1 %v16656_v0  ;;  %v16736_v63 = vld [vmem:[%s19595_s27 + $0x52c] ss:$16 sps:$4 sm:$0xff]   ;;  %v16731_v0 = vld [vmem:[%s19595_s27 + $0x520] ss:$16 sps:$4 sm:$0xff]  }
 0x186   : > { %2659 = vmatprep.subr.bf16.mxu0 %v16661_v1  ;;  %2871 = vmatprep.subr.bf16.mxu1 %v16664_v2  ;;  %v16734_v1 = vld [vmem:[%s19595_s27 + $0x528] ss:$16 sps:$4 sm:$0xff]   ;;  %v16739_v2 = vld [vmem:[%s19595_s27 + $0x544] ss:$16 sps:$4 sm:$0xff]  }
 0x189   : > { %2660 = vmatpush1.bf16.msra.mxu0 %v16659_v3  ;;  %2872 = vmatpush1.bf16.msra.mxu1 %v16662_v4  ;;  %v16742_v3 = vld [vmem:[%s19595_s27 + $0x54c] ss:$16 sps:$4 sm:$0xff]   ;;  %v16737_v4 = vld [vmem:[%s19595_s27 + $0x540] ss:$16 sps:$4 sm:$0xff]  }
 0x18a   : > { %2661 = vmatprep.subr.bf16.mxu0 %v16667_v5  ;;  %2873 = vmatprep.subr.bf16.mxu1 %v16670_v7  ;;  %v16740_v5 = vld [vmem:[%s19595_s27 + $0x548] ss:$16 sps:$4 sm:$0xff]   ;;  %v16745_v7 = vld [vmem:[%s19595_s27 + $0x564] ss:$16 sps:$4 sm:$0xff]  }
 0x18d   : > { %2662 = vmatpush1.bf16.msra.mxu0 %v16665_v8  ;;  %2874 = vmatpush1.bf16.msra.mxu1 %v16668_v9  ;;  %v16748_v8 = vld [vmem:[%s19595_s27 + $0x56c] ss:$16 sps:$4 sm:$0xff]   ;;  %v16743_v9 = vld [vmem:[%s19595_s27 + $0x560] ss:$16 sps:$4 sm:$0xff]  }
 0x18e   : > { %2663 = vmatprep.subr.bf16.mxu0 %v16673_v10  ;;  %2875 = vmatprep.subr.bf16.mxu1 %v16676_v11  ;;  %v16746_v10 = vld [vmem:[%s19595_s27 + $0x568] ss:$16 sps:$4 sm:$0xff]   ;;  %v16751_v11 = vld [vmem:[%s19595_s27 + $0x584] ss:$16 sps:$4 sm:$0xff]  }
 0x191   : > { %2664 = vmatpush1.bf16.msra.mxu0 %v16671_v12  ;;  %2876 = vmatpush1.bf16.msra.mxu1 %v16674_v13  ;;  %v16754_v12 = vld [vmem:[%s19595_s27 + $0x58c] ss:$16 sps:$4 sm:$0xff]   ;;  %v16749_v13 = vld [vmem:[%s19595_s27 + $0x580] ss:$16 sps:$4 sm:$0xff]  }
 0x192   : > { %2686 = vmatprep.subr.bf16.mxu0 %v16679_v14  ;;  %2898 = vmatprep.subr.bf16.mxu1 %v16682_v15  ;;  %v16752_v14 = vld [vmem:[%s19595_s27 + $0x588] ss:$16 sps:$4 sm:$0xff]   ;;  %v16757_v15 = vld [vmem:[%s19595_s27 + $0x5a4] ss:$16 sps:$4 sm:$0xff]  }
 0x194   : > { %2666 = vmatmul.mubr.bf16.vlgmr.msra.gmra.mrb[0].mxu0 %v19774_v18  ;;  %2878 = vmatmul.mubr.bf16.vlgmr.msra.gmra.mrb[0].mxu1 %v19774_v18 }
 0x195   : > { %2687 = vmatpush1.bf16.msra.mxu0 %v16677_v16  ;;  %2899 = vmatpush1.bf16.msra.mxu1 %v16680_v17  ;;  %v16760_v16 = vld [vmem:[%s19595_s27 + $0x5ac] ss:$16 sps:$4 sm:$0xff]   ;;  %v16755_v17 = vld [vmem:[%s19595_s27 + $0x5a0] ss:$16 sps:$4 sm:$0xff]  }
 0x196   : > { %2688 = vmatprep.subr.bf16.mxu0 %v16685_v21  ;;  %2900 = vmatprep.subr.bf16.mxu1 %v16688_v22  ;;  %v16766_v21 = vld [vmem:[%s19595_s27 + $0x5cc] ss:$16 sps:$4 sm:$0xff]   ;;  %v16761_v22 = vld [vmem:[%s19595_s27 + $0x5c0] ss:$16 sps:$4 sm:$0xff]  }
 0x197   : > { %2675 = vmatprep.mubr.bf16.mxu0 %v19778_v23  ;;  %2887 = vmatprep.mubr.bf16.mxu1 %v19778_v23 }
 0x199   : > { %2689 = vmatpush1.bf16.msra.mxu0 %v16683_v24  ;;  %2901 = vmatpush1.bf16.msra.mxu1 %v16686_v25  ;;  %v16764_v24 = vld [vmem:[%s19595_s27 + $0x5c8] ss:$16 sps:$4 sm:$0xff]   ;;  %v16769_v25 = vld [vmem:[%s19595_s27 + $0x5e4] ss:$16 sps:$4 sm:$0xff]  }
 0x19a   : > { %2690 = vmatprep.subr.bf16.mxu0 %v16691_v26  ;;  %2902 = vmatprep.subr.bf16.mxu1 %v16694_v27  ;;  %v16772_v26 = vld [vmem:[%s19595_s27 + $0x5ec] ss:$16 sps:$4 sm:$0xff]   ;;  %v16767_v27 = vld [vmem:[%s19595_s27 + $0x5e0] ss:$16 sps:$4 sm:$0xff]  }
 0x19c   : > { %2676 = vmatmul.mubr.bf16.gmra.mrb[4].mxu0 %v19790_v30  ;;  %2888 = vmatmul.mubr.bf16.gmra.mrb[4].mxu1 %v19790_v30 }
 0x19d   : > { %2691 = vmatpush1.bf16.msra.mxu0 %v16689_v33  ;;  %2903 = vmatpush1.bf16.msra.mxu1 %v16692_v34  ;;  %v16770_v33 = vld [vmem:[%s19595_s27 + $0x5e8] ss:$16 sps:$4 sm:$0xff]   ;;  %v16775_v34 = vld [vmem:[%s19595_s27 + $0x604] ss:$16 sps:$4 sm:$0xff]  }
 0x19e   : > { %2692 = vmatprep.subr.bf16.mxu0 %v16697_v35  ;;  %2904 = vmatprep.subr.bf16.mxu1 %v16700_v36  ;;  %v16778_v35 = vld [vmem:[%s19595_s27 + $0x60c] ss:$16 sps:$4 sm:$0xff]   ;;  %v16773_v36 = vld [vmem:[%s19595_s27 + $0x600] ss:$16 sps:$4 sm:$0xff]  }
 0x19f   : > { %2718 = vmatprep.mubr.bf16.mxu0 %v19800_v37  ;;  %2930 = vmatprep.mubr.bf16.mxu1 %v19800_v37 }
 0x1a1   : > { %2693 = vmatpush1.bf16.msra.mxu0 %v16695_v38  ;;  %2905 = vmatpush1.bf16.msra.mxu1 %v16698_v40  ;;  %v16776_v38 = vld [vmem:[%s19595_s27 + $0x608] ss:$16 sps:$4 sm:$0xff]   ;;  %v19862_v40 = vcombine.low %v19788_v28, %v19792_v31  ;;  %v16779_v28 = vld [vmem:[%s19595_s27 + $0x620] ss:$16 sps:$4 sm:$0xff]  }
 0x1a2   : > { %2694 = vmatprep.subr.bf16.mxu0 %v16703_v41  ;;  %2906 = vmatprep.subr.bf16.mxu1 %v16706_v42  ;;  %v701_v41 = vld [vmem:[#allocation4 + $0x50] sm:$0xff]  ;;  %v16782_v31 = vld [vmem:[%s19595_s27 + $0x628] ss:$16 sps:$4 sm:$0xff]  }
 0x1a3   : > { %v705_v42 = vld [vmem:[#allocation4 + $0x70] sm:$0xff] }
 0x1a5   : > { %2695 = vmatpush1.bf16.msra.mxu0 %v16701_v43  ;;  %2907 = vmatpush1.bf16.msra.mxu1 %v16704_v44  ;;  %v16781_v43 = vld [vmem:[%s19595_s27 + $0x624] ss:$16 sps:$4 sm:$0xff]   ;;  %v16784_v44 = vld [vmem:[%s19595_s27 + $0x62c] ss:$16 sps:$4 sm:$0xff]  }
 0x1a6   : > { %2696 = vmatprep.subr.bf16.mxu0 %v16709_v45  ;;  %2908 = vmatprep.subr.bf16.mxu1 %v16712_v46  ;;  %v19866_v45 = vcombine.high %v701_v41, %v705_v42  ;;  %v16787_v46 = vld [vmem:[%s19595_s27 + $0x644] ss:$16 sps:$4 sm:$0xff]  }
 0x1a9   : > { %2697 = vmatpush1.bf16.msra.mxu0 %v16707_v47  ;;  %2909 = vmatpush1.bf16.msra.mxu1 %v16710_v48  ;;  %v16790_v47 = vld [vmem:[%s19595_s27 + $0x64c] ss:$16 sps:$4 sm:$0xff]   ;;  %v16785_v48 = vld [vmem:[%s19595_s27 + $0x640] ss:$16 sps:$4 sm:$0xff]  }
 0x1aa   : > { %2698 = vmatprep.subr.bf16.mxu0 %v16715_v49  ;;  %2910 = vmatprep.subr.bf16.mxu1 %v16718_v50  ;;  %v16788_v49 = vld [vmem:[%s19595_s27 + $0x648] ss:$16 sps:$4 sm:$0xff]   ;;  %v19878_v50 = vcombine.low %v701_v41, %v705_v42  ;;  %v16853_v42 = vld [vmem:[%s19595_s27 + $0x7a4] ss:$16 sps:$4 sm:$0xff]  }
 0x1ab   : > { %v16848_v41 = vld [vmem:[%s19595_s27 + $0x788] ss:$16 sps:$4 sm:$0xff]  }
 0x1ad   : > { %2699 = vmatpush1.bf16.msra.mxu0 %v16713_v52  ;;  %2911 = vmatpush1.bf16.msra.mxu1 %v16716_v53  ;;  %v19880_v52 = vld [vmem:[#allocation4 + $0x18] sm:$0xff] }
 0x1ae   : > { %2700 = vmatprep.subr.bf16.mxu0 %v16721_v54  ;;  %2912 = vmatprep.subr.bf16.mxu1 %v16724_v55  ;;  %v19882_v53 = vld [vmem:[#allocation4 + $0x38] sm:$0xff]  ;;  %v16793_v54 = vld [vmem:[%s19595_s27 + $0x664] ss:$16 sps:$4 sm:$0xff]  }
 0x1af   : > { %v16796_v55 = vld [vmem:[%s19595_s27 + $0x66c] ss:$16 sps:$4 sm:$0xff]  }
 0x1b1   : > { %2701 = vmatpush1.bf16.msra.mxu0 %v16719_v56  ;;  %2913 = vmatpush1.bf16.msra.mxu1 %v16722_v57  ;;  %v19888_v56 = vcombine.high %v19880_v52, %v19882_v53  ;;  %v16791_v57 = vld [vmem:[%s19595_s27 + $0x660] ss:$16 sps:$4 sm:$0xff]  }
 0x1b2   : > { %2702 = vmatprep.subr.bf16.mxu0 %v16727_v58  ;;  %2914 = vmatprep.subr.bf16.mxu1 %v16730_v59  ;;  %v16794_v58 = vld [vmem:[%s19595_s27 + $0x668] ss:$16 sps:$4 sm:$0xff]   ;;  %v16799_v59 = vld [vmem:[%s19595_s27 + $0x684] ss:$16 sps:$4 sm:$0xff]  }
 0x1b5   : > { %2703 = vmatpush1.bf16.msra.mxu0 %v16725_v60  ;;  %2915 = vmatpush1.bf16.msra.mxu1 %v16728_v61  ;;  %v16802_v60 = vld [vmem:[%s19595_s27 + $0x68c] ss:$16 sps:$4 sm:$0xff]   ;;  %v16797_v61 = vld [vmem:[%s19595_s27 + $0x680] ss:$16 sps:$4 sm:$0xff]  }
 0x1b6   : > { %2704 = vmatprep.subr.bf16.mxu0 %v16733_v62  ;;  %2916 = vmatprep.subr.bf16.mxu1 %v16736_v63  ;;  %v16800_v62 = vld [vmem:[%s19595_s27 + $0x688] ss:$16 sps:$4 sm:$0xff]   ;;  %v16805_v63 = vld [vmem:[%s19595_s27 + $0x6a4] ss:$16 sps:$4 sm:$0xff]  }
 0x1b9   : > { %2705 = vmatpush1.bf16.msra.mxu0 %v16731_v0  ;;  %2917 = vmatpush1.bf16.msra.mxu1 %v16734_v1  ;;  %v16808_v0 = vld [vmem:[%s19595_s27 + $0x6ac] ss:$16 sps:$4 sm:$0xff]   ;;  %v16803_v1 = vld [vmem:[%s19595_s27 + $0x6a0] ss:$16 sps:$4 sm:$0xff]  }
 0x1ba   : > { %2706 = vmatprep.subr.bf16.mxu0 %v16739_v2  ;;  %2918 = vmatprep.subr.bf16.mxu1 %v16742_v3  ;;  %v16806_v2 = vld [vmem:[%s19595_s27 + $0x6a8] ss:$16 sps:$4 sm:$0xff]   ;;  %v16811_v3 = vld [vmem:[%s19595_s27 + $0x6c4] ss:$16 sps:$4 sm:$0xff]  }
 0x1bd   : > { %2707 = vmatpush1.bf16.msra.mxu0 %v16737_v4  ;;  %2919 = vmatpush1.bf16.msra.mxu1 %v16740_v5  ;;  %v16814_v4 = vld [vmem:[%s19595_s27 + $0x6cc] ss:$16 sps:$4 sm:$0xff]   ;;  %v16809_v5 = vld [vmem:[%s19595_s27 + $0x6c0] ss:$16 sps:$4 sm:$0xff]  }
 0x1be   : > { %2708 = vmatprep.subr.bf16.mxu0 %v16745_v7  ;;  %2920 = vmatprep.subr.bf16.mxu1 %v16748_v8  ;;  %v16812_v7 = vld [vmem:[%s19595_s27 + $0x6c8] ss:$16 sps:$4 sm:$0xff]   ;;  %v16817_v8 = vld [vmem:[%s19595_s27 + $0x6e4] ss:$16 sps:$4 sm:$0xff]  }
 0x1c1   : > { %2709 = vmatpush1.bf16.msra.mxu0 %v16743_v9  ;;  %2921 = vmatpush1.bf16.msra.mxu1 %v16746_v10  ;;  %v16820_v9 = vld [vmem:[%s19595_s27 + $0x6ec] ss:$16 sps:$4 sm:$0xff]   ;;  %v16815_v10 = vld [vmem:[%s19595_s27 + $0x6e0] ss:$16 sps:$4 sm:$0xff]  }
 0x1c2   : > { %2710 = vmatprep.subr.bf16.mxu0 %v16751_v11  ;;  %2922 = vmatprep.subr.bf16.mxu1 %v16754_v12  ;;  %v16818_v11 = vld [vmem:[%s19595_s27 + $0x6e8] ss:$16 sps:$4 sm:$0xff]   ;;  %v16823_v12 = vld [vmem:[%s19595_s27 + $0x704] ss:$16 sps:$4 sm:$0xff]  }
 0x1c5   : > { %2711 = vmatpush1.bf16.msra.mxu0 %v16749_v13  ;;  %2923 = vmatpush1.bf16.msra.mxu1 %v16752_v14  ;;  %v16826_v13 = vld [vmem:[%s19595_s27 + $0x70c] ss:$16 sps:$4 sm:$0xff]   ;;  %v16821_v14 = vld [vmem:[%s19595_s27 + $0x700] ss:$16 sps:$4 sm:$0xff]  }
 0x1c6   : > { %2712 = vmatprep.subr.bf16.mxu0 %v16757_v15  ;;  %2924 = vmatprep.subr.bf16.mxu1 %v16760_v16  ;;  %v16824_v15 = vld [vmem:[%s19595_s27 + $0x708] ss:$16 sps:$4 sm:$0xff]   ;;  %v16829_v16 = vld [vmem:[%s19595_s27 + $0x724] ss:$16 sps:$4 sm:$0xff]  }
 0x1c9   : > { %2713 = vmatpush1.bf16.msra.mxu0 %v16755_v17  ;;  %2925 = vmatpush1.bf16.msra.mxu1 %v16758_v19  ;;  %v16832_v17 = vld [vmem:[%s19595_s27 + $0x72c] ss:$16 sps:$4 sm:$0xff]   ;;  %v16827_v19 = vld [vmem:[%s19595_s27 + $0x720] ss:$16 sps:$4 sm:$0xff]  }
 0x1ca   : > { %2714 = vmatprep.subr.bf16.mxu0 %v16763_v20  ;;  %2926 = vmatprep.subr.bf16.mxu1 %v16766_v21  ;;  %v16830_v20 = vld [vmem:[%s19595_s27 + $0x728] ss:$16 sps:$4 sm:$0xff]   ;;  %v16835_v21 = vld [vmem:[%s19595_s27 + $0x744] ss:$16 sps:$4 sm:$0xff]  }
 0x1cd   : > { %2715 = vmatpush1.bf16.msra.mxu0 %v16761_v22  ;;  %2927 = vmatpush1.bf16.msra.mxu1 %v16764_v24  ;;  %v16838_v22 = vld [vmem:[%s19595_s27 + $0x74c] ss:$16 sps:$4 sm:$0xff]   ;;  %v16833_v24 = vld [vmem:[%s19595_s27 + $0x740] ss:$16 sps:$4 sm:$0xff]  }
 0x1ce   : > { %2716 = vmatprep.subr.bf16.mxu0 %v16769_v25  ;;  %2928 = vmatprep.subr.bf16.mxu1 %v16772_v26  ;;  %v16836_v25 = vld [vmem:[%s19595_s27 + $0x748] ss:$16 sps:$4 sm:$0xff]   ;;  %v16841_v26 = vld [vmem:[%s19595_s27 + $0x764] ss:$16 sps:$4 sm:$0xff]  }
 0x1d1   : > { %2717 = vmatpush1.bf16.msra.mxu0 %v16767_v27  ;;  %2929 = vmatpush1.bf16.msra.mxu1 %v16770_v33  ;;  %v16844_v27 = vld [vmem:[%s19595_s27 + $0x76c] ss:$16 sps:$4 sm:$0xff]   ;;  %v16839_v33 = vld [vmem:[%s19595_s27 + $0x760] ss:$16 sps:$4 sm:$0xff]  }
 0x1d2   : > { %2739 = vmatprep.subr.bf16.mxu0 %v16775_v34  ;;  %2951 = vmatprep.subr.bf16.mxu1 %v16778_v35  ;;  %v16842_v34 = vld [vmem:[%s19595_s27 + $0x768] ss:$16 sps:$4 sm:$0xff]   ;;  %v16847_v35 = vld [vmem:[%s19595_s27 + $0x784] ss:$16 sps:$4 sm:$0xff]  }
 0x1d4   : > { %2719 = vmatmul.mubr.bf16.vlgmr.msra.gmra.mrb[0].mxu0 %v19862_v40  ;;  %2931 = vmatmul.mubr.bf16.vlgmr.msra.gmra.mrb[0].mxu1 %v19862_v40 }
 0x1d5   : > { %2740 = vmatpush1.bf16.msra.mxu0 %v16773_v36  ;;  %2952 = vmatpush1.bf16.msra.mxu1 %v16776_v38  ;;  %v16850_v36 = vld [vmem:[%s19595_s27 + $0x78c] ss:$16 sps:$4 sm:$0xff]   ;;  %v16845_v38 = vld [vmem:[%s19595_s27 + $0x780] ss:$16 sps:$4 sm:$0xff]  }
 0x1d6   : > { %2741 = vmatprep.subr.bf16.mxu0 %v16781_v43  ;;  %2953 = vmatprep.subr.bf16.mxu1 %v16784_v44  ;;  %v16856_v43 = vld [vmem:[%s19595_s27 + $0x7ac] ss:$16 sps:$4 sm:$0xff]   ;;  %v16851_v44 = vld [vmem:[%s19595_s27 + $0x7a0] ss:$16 sps:$4 sm:$0xff]  }
 0x1d7   : > { %2728 = vmatprep.mubr.bf16.mxu0 %v19866_v45  ;;  %2940 = vmatprep.mubr.bf16.mxu1 %v19866_v45 }
 0x1d9   : > { %2742 = vmatpush1.bf16.msra.mxu0 %v16779_v28  ;;  %2954 = vmatpush1.bf16.msra.mxu1 %v16782_v31  ;;  %v16854_v28 = vld [vmem:[%s19595_s27 + $0x7a8] ss:$16 sps:$4 sm:$0xff]   ;;  %v16859_v31 = vld [vmem:[%s19595_s27 + $0x7c4] ss:$16 sps:$4 sm:$0xff]  }
 0x1da   : > { %2743 = vmatprep.subr.bf16.mxu0 %v16787_v46  ;;  %2955 = vmatprep.subr.bf16.mxu1 %v16790_v47  ;;  %v16862_v46 = vld [vmem:[%s19595_s27 + $0x7cc] ss:$16 sps:$4 sm:$0xff]   ;;  %v16857_v47 = vld [vmem:[%s19595_s27 + $0x7c0] ss:$16 sps:$4 sm:$0xff]  }
 0x1dc   : > { %2729 = vmatmul.mubr.bf16.gmra.mrb[4].mxu0 %v19878_v50  ;;  %2941 = vmatmul.mubr.bf16.gmra.mrb[4].mxu1 %v19878_v50 }
 0x1dd   : > { %2744 = vmatpush1.bf16.msra.mxu0 %v16785_v48  ;;  %2956 = vmatpush1.bf16.msra.mxu1 %v16788_v49  ;;  %v16860_v48 = vld [vmem:[%s19595_s27 + $0x7c8] ss:$16 sps:$4 sm:$0xff]   ;;  %v16865_v49 = vld [vmem:[%s19595_s27 + $0x7e4] ss:$16 sps:$4 sm:$0xff]  }
 0x1de   : > { %2745 = vmatprep.subr.bf16.mxu0 %v16793_v54  ;;  %2957 = vmatprep.subr.bf16.mxu1 %v16796_v55  ;;  %v16868_v54 = vld [vmem:[%s19595_s27 + $0x7ec] ss:$16 sps:$4 sm:$0xff]   ;;  %v16863_v55 = vld [vmem:[%s19595_s27 + $0x7e0] ss:$16 sps:$4 sm:$0xff]  }
 0x1df   : > { %2771 = vmatprep.mubr.bf16.mxu0 %v19888_v56  ;;  %2983 = vmatprep.mubr.bf16.mxu1 %v19888_v56 }
 0x1e1   : > { %2746 = vmatpush1.bf16.msra.mxu0 %v16791_v57  ;;  %2958 = vmatpush1.bf16.msra.mxu1 %v16794_v58  ;;  %v16866_v57 = vld [vmem:[%s19595_s27 + $0x7e8] ss:$16 sps:$4 sm:$0xff]   ;;  %v16871_v58 = vld [vmem:[%s19595_s27 + $0x804] ss:$16 sps:$4 sm:$0xff]  }
 0x1e2   : > { %2747 = vmatprep.subr.bf16.mxu0 %v16799_v59  ;;  %2959 = vmatprep.subr.bf16.mxu1 %v16802_v60  ;;  %v16874_v59 = vld [vmem:[%s19595_s27 + $0x80c] ss:$16 sps:$4 sm:$0xff]   ;;  %v16869_v60 = vld [vmem:[%s19595_s27 + $0x800] ss:$16 sps:$4 sm:$0xff]  }
 0x1e5   : > { %2748 = vmatpush1.bf16.msra.mxu0 %v16797_v61  ;;  %2960 = vmatpush1.bf16.msra.mxu1 %v16800_v62  ;;  %v16872_v61 = vld [vmem:[%s19595_s27 + $0x808] ss:$16 sps:$4 sm:$0xff]   ;;  %v19950_v62 = vcombine.low %v19880_v52, %v19882_v53  ;;  %v16875_v52 = vld [vmem:[%s19595_s27 + $0x820] ss:$16 sps:$4 sm:$0xff]  }
 0x1e6   : > { %2749 = vmatprep.subr.bf16.mxu0 %v16805_v63  ;;  %2961 = vmatprep.subr.bf16.mxu1 %v16808_v0  ;;  %v702_v63 = vld [vmem:[#allocation4 + $0x58] sm:$0xff] }
 0x1e7   : > { %v706_v0 = vld [vmem:[#allocation4 + $0x78] sm:$0xff] }
 0x1e8   : > { %v16878_v53 = vld [vmem:[%s19595_s27 + $0x828] ss:$16 sps:$4 sm:$0xff]  }
 0x1e9   : > { %2750 = vmatpush1.bf16.msra.mxu0 %v16803_v1  ;;  %2962 = vmatpush1.bf16.msra.mxu1 %v16806_v2  ;;  %v16877_v1 = vld [vmem:[%s19595_s27 + $0x824] ss:$16 sps:$4 sm:$0xff]   ;;  %v16880_v2 = vld [vmem:[%s19595_s27 + $0x82c] ss:$16 sps:$4 sm:$0xff]  }
 0x1ea   : > { %2751 = vmatprep.subr.bf16.mxu0 %v16811_v3  ;;  %2963 = vmatprep.subr.bf16.mxu1 %v16814_v4  ;;  %v19954_v3 = vcombine.high %v702_v63, %v706_v0  ;;  %v16883_v4 = vld [vmem:[%s19595_s27 + $0x844] ss:$16 sps:$4 sm:$0xff]  }
 0x1ed   : > { %2752 = vmatpush1.bf16.msra.mxu0 %v16809_v5  ;;  %2964 = vmatpush1.bf16.msra.mxu1 %v16812_v7  ;;  %v16886_v5 = vld [vmem:[%s19595_s27 + $0x84c] ss:$16 sps:$4 sm:$0xff]   ;;  %v19964_v7 = vcombine.low %v702_v63, %v706_v0  ;;  %v16941_v63 = vld [vmem:[%s19595_s27 + $0x980] ss:$16 sps:$4 sm:$0xff]   ;;  %v16944_v0 = vld [vmem:[%s19595_s27 + $0x988] ss:$16 sps:$4 sm:$0xff]  }
 0x1ee   : > { %2753 = vmatprep.subr.bf16.mxu0 %v16817_v8  ;;  %2965 = vmatprep.subr.bf16.mxu1 %v16820_v9  ;;  %v16881_v8 = vld [vmem:[%s19595_s27 + $0x840] ss:$16 sps:$4 sm:$0xff]   ;;  %v16884_v9 = vld [vmem:[%s19595_s27 + $0x848] ss:$16 sps:$4 sm:$0xff]  }
 0x1f1   : > { %2754 = vmatpush1.bf16.msra.mxu0 %v16815_v10  ;;  %2966 = vmatpush1.bf16.msra.mxu1 %v16818_v11  ;;  %v16889_v10 = vld [vmem:[%s19595_s27 + $0x864] ss:$16 sps:$4 sm:$0xff]   ;;  %v16892_v11 = vld [vmem:[%s19595_s27 + $0x86c] ss:$16 sps:$4 sm:$0xff]  }
 0x1f2   : > { %2755 = vmatprep.subr.bf16.mxu0 %v16823_v12  ;;  %2967 = vmatprep.subr.bf16.mxu1 %v16826_v13  ;;  %v16887_v12 = vld [vmem:[%s19595_s27 + $0x860] ss:$16 sps:$4 sm:$0xff]   ;;  %v16890_v13 = vld [vmem:[%s19595_s27 + $0x868] ss:$16 sps:$4 sm:$0xff]  }
 0x1f5   : > { %2756 = vmatpush1.bf16.msra.mxu0 %v16821_v14  ;;  %2968 = vmatpush1.bf16.msra.mxu1 %v16824_v15  ;;  %v16895_v14 = vld [vmem:[%s19595_s27 + $0x884] ss:$16 sps:$4 sm:$0xff]   ;;  %v16898_v15 = vld [vmem:[%s19595_s27 + $0x88c] ss:$16 sps:$4 sm:$0xff]  }
 0x1f6   : > { %2757 = vmatprep.subr.bf16.mxu0 %v16829_v16  ;;  %2969 = vmatprep.subr.bf16.mxu1 %v16832_v17  ;;  %v16893_v16 = vld [vmem:[%s19595_s27 + $0x880] ss:$16 sps:$4 sm:$0xff]   ;;  %v16896_v17 = vld [vmem:[%s19595_s27 + $0x888] ss:$16 sps:$4 sm:$0xff]  }
 0x1f9   : > { %2758 = vmatpush1.bf16.msra.mxu0 %v16827_v19  ;;  %2970 = vmatpush1.bf16.msra.mxu1 %v16830_v20  ;;  %v16901_v19 = vld [vmem:[%s19595_s27 + $0x8a4] ss:$16 sps:$4 sm:$0xff]   ;;  %v16904_v20 = vld [vmem:[%s19595_s27 + $0x8ac] ss:$16 sps:$4 sm:$0xff]  }
 0x1fa   : > { %2759 = vmatprep.subr.bf16.mxu0 %v16835_v21  ;;  %2971 = vmatprep.subr.bf16.mxu1 %v16838_v22  ;;  %v16899_v21 = vld [vmem:[%s19595_s27 + $0x8a0] ss:$16 sps:$4 sm:$0xff]   ;;  %v16902_v22 = vld [vmem:[%s19595_s27 + $0x8a8] ss:$16 sps:$4 sm:$0xff]  }
 0x1fd   : > { %2760 = vmatpush1.bf16.msra.mxu0 %v16833_v24  ;;  %2972 = vmatpush1.bf16.msra.mxu1 %v16836_v25  ;;  %v16907_v24 = vld [vmem:[%s19595_s27 + $0x8c4] ss:$16 sps:$4 sm:$0xff]   ;;  %v16910_v25 = vld [vmem:[%s19595_s27 + $0x8cc] ss:$16 sps:$4 sm:$0xff]  }
 0x1fe   : > { %2761 = vmatprep.subr.bf16.mxu0 %v16841_v26  ;;  %2973 = vmatprep.subr.bf16.mxu1 %v16844_v27  ;;  %v16905_v26 = vld [vmem:[%s19595_s27 + $0x8c0] ss:$16 sps:$4 sm:$0xff]   ;;  %v16908_v27 = vld [vmem:[%s19595_s27 + $0x8c8] ss:$16 sps:$4 sm:$0xff]  }
 0x201   : > { %2762 = vmatpush1.bf16.msra.mxu0 %v16839_v33  ;;  %2974 = vmatpush1.bf16.msra.mxu1 %v16842_v34  ;;  %v16913_v33 = vld [vmem:[%s19595_s27 + $0x8e4] ss:$16 sps:$4 sm:$0xff]   ;;  %v16916_v34 = vld [vmem:[%s19595_s27 + $0x8ec] ss:$16 sps:$4 sm:$0xff]  }
 0x202   : > { %2763 = vmatprep.subr.bf16.mxu0 %v16847_v35  ;;  %2975 = vmatprep.subr.bf16.mxu1 %v16850_v36  ;;  %v16911_v35 = vld [vmem:[%s19595_s27 + $0x8e0] ss:$16 sps:$4 sm:$0xff]   ;;  %v16914_v36 = vld [vmem:[%s19595_s27 + $0x8e8] ss:$16 sps:$4 sm:$0xff]  }
 0x205   : > { %2764 = vmatpush1.bf16.msra.mxu0 %v16845_v38  ;;  %2976 = vmatpush1.bf16.msra.mxu1 %v16848_v41  ;;  %v16919_v38 = vld [vmem:[%s19595_s27 + $0x904] ss:$16 sps:$4 sm:$0xff]   ;;  %v16922_v41 = vld [vmem:[%s19595_s27 + $0x90c] ss:$16 sps:$4 sm:$0xff]  }
 0x206   : > { %2765 = vmatprep.subr.bf16.mxu0 %v16853_v42  ;;  %2977 = vmatprep.subr.bf16.mxu1 %v16856_v43  ;;  %v16917_v42 = vld [vmem:[%s19595_s27 + $0x900] ss:$16 sps:$4 sm:$0xff]   ;;  %v16920_v43 = vld [vmem:[%s19595_s27 + $0x908] ss:$16 sps:$4 sm:$0xff]  }
 0x209   : > { %2766 = vmatpush1.bf16.msra.mxu0 %v16851_v44  ;;  %2978 = vmatpush1.bf16.msra.mxu1 %v16854_v28  ;;  %v16925_v44 = vld [vmem:[%s19595_s27 + $0x924] ss:$16 sps:$4 sm:$0xff]   ;;  %v16928_v28 = vld [vmem:[%s19595_s27 + $0x92c] ss:$16 sps:$4 sm:$0xff]  }
 0x20a   : > { %2767 = vmatprep.subr.bf16.mxu0 %v16859_v31  ;;  %2979 = vmatprep.subr.bf16.mxu1 %v16862_v46  ;;  %v16923_v31 = vld [vmem:[%s19595_s27 + $0x920] ss:$16 sps:$4 sm:$0xff]   ;;  %v16926_v46 = vld [vmem:[%s19595_s27 + $0x928] ss:$16 sps:$4 sm:$0xff]  }
 0x20d   : > { %2768 = vmatpush1.bf16.msra.mxu0 %v16857_v47  ;;  %2980 = vmatpush1.bf16.msra.mxu1 %v16860_v48  ;;  %v16931_v47 = vld [vmem:[%s19595_s27 + $0x944] ss:$16 sps:$4 sm:$0xff]   ;;  %v16934_v48 = vld [vmem:[%s19595_s27 + $0x94c] ss:$16 sps:$4 sm:$0xff]  }
 0x20e   : > { %2769 = vmatprep.subr.bf16.mxu0 %v16865_v49  ;;  %2981 = vmatprep.subr.bf16.mxu1 %v16868_v54  ;;  %v16929_v49 = vld [vmem:[%s19595_s27 + $0x940] ss:$16 sps:$4 sm:$0xff]   ;;  %v16932_v54 = vld [vmem:[%s19595_s27 + $0x948] ss:$16 sps:$4 sm:$0xff]  }
 0x211   : > { %2770 = vmatpush1.bf16.msra.mxu0 %v16863_v55  ;;  %2982 = vmatpush1.bf16.msra.mxu1 %v16866_v57  ;;  %v16937_v55 = vld [vmem:[%s19595_s27 + $0x964] ss:$16 sps:$4 sm:$0xff]   ;;  %v16940_v57 = vld [vmem:[%s19595_s27 + $0x96c] ss:$16 sps:$4 sm:$0xff]  }
 0x212   : > { %4333 = vmatprep.subr.bf16.mxu0 %v16871_v58  ;;  %4545 = vmatprep.subr.bf16.mxu1 %v16874_v59  ;;  %v16935_v58 = vld [vmem:[%s19595_s27 + $0x960] ss:$16 sps:$4 sm:$0xff]   ;;  %v16938_v59 = vld [vmem:[%s19595_s27 + $0x968] ss:$16 sps:$4 sm:$0xff]  }
 0x214   : > { %2772 = vmatmul.mubr.bf16.vlgmr.msra.gmra.mrb[0].mxu0 %v19950_v62  ;;  %2984 = vmatmul.mubr.bf16.vlgmr.msra.gmra.mrb[0].mxu1 %v19950_v62 }
 0x215   : > { %4334 = vmatpush1.bf16.msra.mxu0 %v16869_v60  ;;  %4546 = vmatpush1.bf16.msra.mxu1 %v16872_v61  ;;  %v16943_v60 = vld [vmem:[%s19595_s27 + $0x984] ss:$16 sps:$4 sm:$0xff]   ;;  %v16946_v61 = vld [vmem:[%s19595_s27 + $0x98c] ss:$16 sps:$4 sm:$0xff]  }
 0x216   : > { %4335 = vmatprep.subr.bf16.mxu0 %v16877_v1  ;;  %4547 = vmatprep.subr.bf16.mxu1 %v16880_v2  ;;  %v16949_v1 = vld [vmem:[%s19595_s27 + $0x9a4] ss:$16 sps:$4 sm:$0xff]   ;;  %v16952_v2 = vld [vmem:[%s19595_s27 + $0x9ac] ss:$16 sps:$4 sm:$0xff]  }
 0x217   : > { %2781 = vmatprep.mubr.bf16.mxu0 %v19954_v3  ;;  %2993 = vmatprep.mubr.bf16.mxu1 %v19954_v3 }
 0x219   : > { %4336 = vmatpush1.bf16.msra.mxu0 %v16875_v52  ;;  %4548 = vmatpush1.bf16.msra.mxu1 %v16878_v53  ;;  %v16947_v52 = vld [vmem:[%s19595_s27 + $0x9a0] ss:$16 sps:$4 sm:$0xff]   ;;  %v16950_v53 = vld [vmem:[%s19595_s27 + $0x9a8] ss:$16 sps:$4 sm:$0xff]  }
 0x21a   : > { %4337 = vmatprep.subr.bf16.mxu0 %v16883_v4  ;;  %4549 = vmatprep.subr.bf16.mxu1 %v16886_v5  ;;  %v16955_v4 = vld [vmem:[%s19595_s27 + $0x9c4] ss:$16 sps:$4 sm:$0xff]   ;;  %v16958_v5 = vld [vmem:[%s19595_s27 + $0x9cc] ss:$16 sps:$4 sm:$0xff]  }
 0x21c   : > { %2782 = vmatmul.mubr.bf16.gmra.mrb[4].mxu0 %v19964_v7  ;;  %2994 = vmatmul.mubr.bf16.gmra.mrb[4].mxu1 %v19964_v7 }
 0x21d   : > { %4338 = vmatpush1.bf16.msra.mxu0 %v16881_v8  ;;  %4550 = vmatpush1.bf16.msra.mxu1 %v16884_v9  ;;  %v16953_v8 = vld [vmem:[%s19595_s27 + $0x9c0] ss:$16 sps:$4 sm:$0xff]   ;;  %v16956_v9 = vld [vmem:[%s19595_s27 + $0x9c8] ss:$16 sps:$4 sm:$0xff]  }
 0x21e   : > { %4339 = vmatprep.subr.bf16.mxu0 %v16889_v10  ;;  %4551 = vmatprep.subr.bf16.mxu1 %v16892_v11  ;;  %v16961_v10 = vld [vmem:[%s19595_s27 + $0x9e4] ss:$16 sps:$4 sm:$0xff]   ;;  %v16964_v11 = vld [vmem:[%s19595_s27 + $0x9ec] ss:$16 sps:$4 sm:$0xff]  }
 0x21f   : > { %4365 = vmatprep.mubr.bf16.mxu0 %v19662_v51  ;;  %4577 = vmatprep.mubr.bf16.mxu1 %v19662_v51 }
 0x221   : > { %4340 = vmatpush1.bf16.msra.mxu0 %v16887_v12  ;;  %4552 = vmatpush1.bf16.msra.mxu1 %v16890_v13  ;;  %v16959_v12 = vld [vmem:[%s19595_s27 + $0x9e0] ss:$16 sps:$4 sm:$0xff]   ;;  %v16962_v13 = vld [vmem:[%s19595_s27 + $0x9e8] ss:$16 sps:$4 sm:$0xff]  }
 0x222   : > { %4341 = vmatprep.subr.bf16.mxu0 %v16895_v14  ;;  %4553 = vmatprep.subr.bf16.mxu1 %v16898_v15  ;;  %v16967_v14 = vld [vmem:[%s19595_s27 + $0xa04] ss:$16 sps:$4 sm:$0xff]   ;;  %v16970_v15 = vld [vmem:[%s19595_s27 + $0xa0c] ss:$16 sps:$4 sm:$0xff]  }
 0x225   : > { %4342 = vmatpush1.bf16.msra.mxu0 %v16893_v16  ;;  %4554 = vmatpush1.bf16.msra.mxu1 %v16896_v17  ;;  %v16965_v16 = vld [vmem:[%s19595_s27 + $0xa00] ss:$16 sps:$4 sm:$0xff]   ;;  %v16968_v17 = vld [vmem:[%s19595_s27 + $0xa08] ss:$16 sps:$4 sm:$0xff]  }
 0x226   : > { %4343 = vmatprep.subr.bf16.mxu0 %v16901_v19  ;;  %4555 = vmatprep.subr.bf16.mxu1 %v16904_v20  ;;  %v16973_v19 = vld [vmem:[%s19595_s27 + $0xa24] ss:$16 sps:$4 sm:$0xff]   ;;  %v16976_v20 = vld [vmem:[%s19595_s27 + $0xa2c] ss:$16 sps:$4 sm:$0xff]  }
 0x229   : > { %4344 = vmatpush1.bf16.msra.mxu0 %v16899_v21  ;;  %4556 = vmatpush1.bf16.msra.mxu1 %v16902_v22  ;;  %v16971_v21 = vld [vmem:[%s19595_s27 + $0xa20] ss:$16 sps:$4 sm:$0xff]   ;;  %v16974_v22 = vld [vmem:[%s19595_s27 + $0xa28] ss:$16 sps:$4 sm:$0xff]  }
 0x22a   : > { %4345 = vmatprep.subr.bf16.mxu0 %v16907_v24  ;;  %4557 = vmatprep.subr.bf16.mxu1 %v16910_v25  ;;  %v16979_v24 = vld [vmem:[%s19595_s27 + $0xa44] ss:$16 sps:$4 sm:$0xff]   ;;  %v16982_v25 = vld [vmem:[%s19595_s27 + $0xa4c] ss:$16 sps:$4 sm:$0xff]  }
 0x22d   : > { %4346 = vmatpush1.bf16.msra.mxu0 %v16905_v26  ;;  %4558 = vmatpush1.bf16.msra.mxu1 %v16908_v27  ;;  %v16977_v26 = vld [vmem:[%s19595_s27 + $0xa40] ss:$16 sps:$4 sm:$0xff]   ;;  %v16980_v27 = vld [vmem:[%s19595_s27 + $0xa48] ss:$16 sps:$4 sm:$0xff]  }
 0x22e   : > { %4347 = vmatprep.subr.bf16.mxu0 %v16913_v33  ;;  %4559 = vmatprep.subr.bf16.mxu1 %v16916_v34  ;;  %v16985_v33 = vld [vmem:[%s19595_s27 + $0xa64] ss:$16 sps:$4 sm:$0xff]   ;;  %v16988_v34 = vld [vmem:[%s19595_s27 + $0xa6c] ss:$16 sps:$4 sm:$0xff]  }
 0x231   : > { %4348 = vmatpush1.bf16.msra.mxu0 %v16911_v35  ;;  %4560 = vmatpush1.bf16.msra.mxu1 %v16914_v36  ;;  %v16983_v35 = vld [vmem:[%s19595_s27 + $0xa60] ss:$16 sps:$4 sm:$0xff]   ;;  %v16986_v36 = vld [vmem:[%s19595_s27 + $0xa68] ss:$16 sps:$4 sm:$0xff]  }
 0x232   : > { %4349 = vmatprep.subr.bf16.mxu0 %v16919_v38  ;;  %4561 = vmatprep.subr.bf16.mxu1 %v16922_v41  ;;  %v16991_v38 = vld [vmem:[%s19595_s27 + $0xa84] ss:$16 sps:$4 sm:$0xff]   ;;  %v16994_v41 = vld [vmem:[%s19595_s27 + $0xa8c] ss:$16 sps:$4 sm:$0xff]  }
 0x235   : > { %4350 = vmatpush1.bf16.msra.mxu0 %v16917_v42  ;;  %4562 = vmatpush1.bf16.msra.mxu1 %v16920_v43  ;;  %v16989_v42 = vld [vmem:[%s19595_s27 + $0xa80] ss:$16 sps:$4 sm:$0xff]   ;;  %v16992_v43 = vld [vmem:[%s19595_s27 + $0xa88] ss:$16 sps:$4 sm:$0xff]  }
 0x236   : > { %4351 = vmatprep.subr.bf16.mxu0 %v16925_v44  ;;  %4563 = vmatprep.subr.bf16.mxu1 %v16928_v28  ;;  %v16997_v44 = vld [vmem:[%s19595_s27 + $0xaa4] ss:$16 sps:$4 sm:$0xff]   ;;  %v17000_v28 = vld [vmem:[%s19595_s27 + $0xaac] ss:$16 sps:$4 sm:$0xff]  }
 0x239   : > { %4352 = vmatpush1.bf16.msra.mxu0 %v16923_v31  ;;  %4564 = vmatpush1.bf16.msra.mxu1 %v16926_v46  ;;  %v16995_v31 = vld [vmem:[%s19595_s27 + $0xaa0] ss:$16 sps:$4 sm:$0xff]   ;;  %v16998_v46 = vld [vmem:[%s19595_s27 + $0xaa8] ss:$16 sps:$4 sm:$0xff]  }
 0x23a   : > { %4353 = vmatprep.subr.bf16.mxu0 %v16931_v47  ;;  %4565 = vmatprep.subr.bf16.mxu1 %v16934_v48  ;;  %v17003_v47 = vld [vmem:[%s19595_s27 + $0xac4] ss:$16 sps:$4 sm:$0xff]   ;;  %v17006_v48 = vld [vmem:[%s19595_s27 + $0xacc] ss:$16 sps:$4 sm:$0xff]  }
 0x23d   : > { %4354 = vmatpush1.bf16.msra.mxu0 %v16929_v49  ;;  %4566 = vmatpush1.bf16.msra.mxu1 %v16932_v54  ;;  %v17001_v49 = vld [vmem:[%s19595_s27 + $0xac0] ss:$16 sps:$4 sm:$0xff]   ;;  %v17004_v54 = vld [vmem:[%s19595_s27 + $0xac8] ss:$16 sps:$4 sm:$0xff]  }
 0x23e   : > { %4355 = vmatprep.subr.bf16.mxu0 %v16937_v55  ;;  %4567 = vmatprep.subr.bf16.mxu1 %v16940_v57  ;;  %v17009_v55 = vld [vmem:[%s19595_s27 + $0xae4] ss:$16 sps:$4 sm:$0xff]   ;;  %v17012_v57 = vld [vmem:[%s19595_s27 + $0xaec] ss:$16 sps:$4 sm:$0xff]  }
 0x241   : > { %4356 = vmatpush1.bf16.msra.mxu0 %v16935_v58  ;;  %4568 = vmatpush1.bf16.msra.mxu1 %v16938_v59  ;;  %v17007_v58 = vld [vmem:[%s19595_s27 + $0xae0] ss:$16 sps:$4 sm:$0xff]   ;;  %v17010_v59 = vld [vmem:[%s19595_s27 + $0xae8] ss:$16 sps:$4 sm:$0xff]  }
 0x242   : > { %4357 = vmatprep.subr.bf16.mxu0 %v16943_v60  ;;  %4569 = vmatprep.subr.bf16.mxu1 %v16946_v61  ;;  %v17015_v60 = vld [vmem:[%s19595_s27 + $0xb04] ss:$16 sps:$4 sm:$0xff]   ;;  %v17018_v61 = vld [vmem:[%s19595_s27 + $0xb0c] ss:$16 sps:$4 sm:$0xff]  }
 0x245   : > { %4358 = vmatpush1.bf16.msra.mxu0 %v16941_v63  ;;  %4570 = vmatpush1.bf16.msra.mxu1 %v16944_v0  ;;  %v17013_v63 = vld [vmem:[%s19595_s27 + $0xb00] ss:$16 sps:$4 sm:$0xff]   ;;  %v17016_v0 = vld [vmem:[%s19595_s27 + $0xb08] ss:$16 sps:$4 sm:$0xff]  }
 0x246   : > { %4359 = vmatprep.subr.bf16.mxu0 %v16949_v1  ;;  %4571 = vmatprep.subr.bf16.mxu1 %v16952_v2  ;;  %v17021_v1 = vld [vmem:[%s19595_s27 + $0xb24] ss:$16 sps:$4 sm:$0xff]   ;;  %v17024_v2 = vld [vmem:[%s19595_s27 + $0xb2c] ss:$16 sps:$4 sm:$0xff]  }
 0x249   : > { %4360 = vmatpush1.bf16.msra.mxu0 %v16947_v52  ;;  %4572 = vmatpush1.bf16.msra.mxu1 %v16950_v53  ;;  %v17019_v52 = vld [vmem:[%s19595_s27 + $0xb20] ss:$16 sps:$4 sm:$0xff]   ;;  %v17022_v53 = vld [vmem:[%s19595_s27 + $0xb28] ss:$16 sps:$4 sm:$0xff]  }
 0x24a   : > { %4361 = vmatprep.subr.bf16.mxu0 %v16955_v4  ;;  %4573 = vmatprep.subr.bf16.mxu1 %v16958_v5  ;;  %v17027_v4 = vld [vmem:[%s19595_s27 + $0xb44] ss:$16 sps:$4 sm:$0xff]   ;;  %v17030_v5 = vld [vmem:[%s19595_s27 + $0xb4c] ss:$16 sps:$4 sm:$0xff]  }
 0x24d   : > { %4362 = vmatpush1.bf16.msra.mxu0 %v16953_v8  ;;  %4574 = vmatpush1.bf16.msra.mxu1 %v16956_v9  ;;  %v17025_v8 = vld [vmem:[%s19595_s27 + $0xb40] ss:$16 sps:$4 sm:$0xff]   ;;  %v17028_v9 = vld [vmem:[%s19595_s27 + $0xb48] ss:$16 sps:$4 sm:$0xff]  }
 0x24e   : > { %4363 = vmatprep.subr.bf16.mxu0 %v16961_v10  ;;  %4575 = vmatprep.subr.bf16.mxu1 %v16964_v11  ;;  %v17033_v10 = vld [vmem:[%s19595_s27 + $0xb64] ss:$16 sps:$4 sm:$0xff]   ;;  %v17036_v11 = vld [vmem:[%s19595_s27 + $0xb6c] ss:$16 sps:$4 sm:$0xff]  }
 0x251   : > { %4364 = vmatpush1.bf16.msra.mxu0 %v16959_v12  ;;  %4576 = vmatpush1.bf16.msra.mxu1 %v16962_v13  ;;  %v17031_v12 = vld [vmem:[%s19595_s27 + $0xb60] ss:$16 sps:$4 sm:$0xff]   ;;  %v17034_v13 = vld [vmem:[%s19595_s27 + $0xb68] ss:$16 sps:$4 sm:$0xff]  }
 0x252   : > { %4386 = vmatprep.subr.bf16.mxu0 %v16967_v14  ;;  %4598 = vmatprep.subr.bf16.mxu1 %v16970_v15  ;;  %v17039_v14 = vld [vmem:[%s19595_s27 + $0xb84] ss:$16 sps:$4 sm:$0xff]   ;;  %v17042_v15 = vld [vmem:[%s19595_s27 + $0xb8c] ss:$16 sps:$4 sm:$0xff]  }
 0x254   : > { %4366 = vmatmul.mubr.bf16.vlgmr.msra.gmra.mrb[8].mxu0 %v19684_v6  ;;  %4578 = vmatmul.mubr.bf16.vlgmr.msra.gmra.mrb[8].mxu1 %v19684_v6 }
 0x255   : > { %4387 = vmatpush1.bf16.msra.mxu0 %v16965_v16  ;;  %4599 = vmatpush1.bf16.msra.mxu1 %v16968_v17  ;;  %v17037_v16 = vld [vmem:[%s19595_s27 + $0xb80] ss:$16 sps:$4 sm:$0xff]   ;;  %v17040_v17 = vld [vmem:[%s19595_s27 + $0xb88] ss:$16 sps:$4 sm:$0xff]  }
 0x256   : > { %4388 = vmatprep.subr.bf16.mxu0 %v16973_v19  ;;  %4600 = vmatprep.subr.bf16.mxu1 %v16976_v20  ;;  %v17045_v19 = vld [vmem:[%s19595_s27 + $0xba4] ss:$16 sps:$4 sm:$0xff]   ;;  %v17048_v20 = vld [vmem:[%s19595_s27 + $0xbac] ss:$16 sps:$4 sm:$0xff]  }
 0x257   : > { %4375 = vmatprep.mubr.bf16.mxu0 %v19708_v29  ;;  %4587 = vmatprep.mubr.bf16.mxu1 %v19708_v29 }
 0x259   : > { %4389 = vmatpush1.bf16.msra.mxu0 %v16971_v21  ;;  %4601 = vmatpush1.bf16.msra.mxu1 %v16974_v22  ;;  %v17043_v21 = vld [vmem:[%s19595_s27 + $0xba0] ss:$16 sps:$4 sm:$0xff]   ;;  %v17046_v22 = vld [vmem:[%s19595_s27 + $0xba8] ss:$16 sps:$4 sm:$0xff]  }
 0x25a   : > { %4390 = vmatprep.subr.bf16.mxu0 %v16979_v24  ;;  %4602 = vmatprep.subr.bf16.mxu1 %v16982_v25  ;;  %v17051_v24 = vld [vmem:[%s19595_s27 + $0xbc4] ss:$16 sps:$4 sm:$0xff]   ;;  %v17054_v25 = vld [vmem:[%s19595_s27 + $0xbcc] ss:$16 sps:$4 sm:$0xff]  }
 0x25c   : > { %4376 = vmatmul.mubr.bf16.gmra.mrb[12].mxu0 %v19712_v32  ;;  %4588 = vmatmul.mubr.bf16.gmra.mrb[12].mxu1 %v19712_v32 }
 0x25d   : > { %4391 = vmatpush1.bf16.msra.mxu0 %v16977_v26  ;;  %4603 = vmatpush1.bf16.msra.mxu1 %v16980_v27  ;;  %v17049_v26 = vld [vmem:[%s19595_s27 + $0xbc0] ss:$16 sps:$4 sm:$0xff]   ;;  %v17052_v27 = vld [vmem:[%s19595_s27 + $0xbc8] ss:$16 sps:$4 sm:$0xff]  }
 0x25e   : > { %4392 = vmatprep.subr.bf16.mxu0 %v16985_v33  ;;  %4604 = vmatprep.subr.bf16.mxu1 %v16988_v34  ;;  %v17057_v33 = vld [vmem:[%s19595_s27 + $0xbe4] ss:$16 sps:$4 sm:$0xff]   ;;  %v17060_v34 = vld [vmem:[%s19595_s27 + $0xbec] ss:$16 sps:$4 sm:$0xff]  }
 0x25f   : > { %4418 = vmatprep.mubr.bf16.mxu0 %v19728_v39  ;;  %4630 = vmatprep.mubr.bf16.mxu1 %v19728_v39 }
 0x261   : > { %4393 = vmatpush1.bf16.msra.mxu0 %v16983_v35  ;;  %4605 = vmatpush1.bf16.msra.mxu1 %v16986_v36  ;;  %v17055_v35 = vld [vmem:[%s19595_s27 + $0xbe0] ss:$16 sps:$4 sm:$0xff]   ;;  %v17058_v36 = vld [vmem:[%s19595_s27 + $0xbe8] ss:$16 sps:$4 sm:$0xff]  }
 0x262   : > { %4394 = vmatprep.subr.bf16.mxu0 %v16991_v38  ;;  %4606 = vmatprep.subr.bf16.mxu1 %v16994_v41  ;;  %v17063_v38 = vld [vmem:[%s19595_s27 + $0xc04] ss:$16 sps:$4 sm:$0xff]   ;;  %v17066_v41 = vld [vmem:[%s19595_s27 + $0xc0c] ss:$16 sps:$4 sm:$0xff]  }
 0x265   : > { %4395 = vmatpush1.bf16.msra.mxu0 %v16989_v42  ;;  %4607 = vmatpush1.bf16.msra.mxu1 %v16992_v43  ;;  %v17061_v42 = vld [vmem:[%s19595_s27 + $0xc00] ss:$16 sps:$4 sm:$0xff]   ;;  %v17064_v43 = vld [vmem:[%s19595_s27 + $0xc08] ss:$16 sps:$4 sm:$0xff]  }
 0x266   : > { %4396 = vmatprep.subr.bf16.mxu0 %v16997_v44  ;;  %4608 = vmatprep.subr.bf16.mxu1 %v17000_v28  ;;  %v17069_v44 = vld [vmem:[%s19595_s27 + $0xc24] ss:$16 sps:$4 sm:$0xff]   ;;  %v17072_v28 = vld [vmem:[%s19595_s27 + $0xc2c] ss:$16 sps:$4 sm:$0xff]  }
 0x269   : > { %4397 = vmatpush1.bf16.msra.mxu0 %v16995_v31  ;;  %4609 = vmatpush1.bf16.msra.mxu1 %v16998_v46  ;;  %v17067_v31 = vld [vmem:[%s19595_s27 + $0xc20] ss:$16 sps:$4 sm:$0xff]   ;;  %v17070_v46 = vld [vmem:[%s19595_s27 + $0xc28] ss:$16 sps:$4 sm:$0xff]  }
 0x26a   : > { %4398 = vmatprep.subr.bf16.mxu0 %v17003_v47  ;;  %4610 = vmatprep.subr.bf16.mxu1 %v17006_v48  ;;  %v17075_v47 = vld [vmem:[%s19595_s27 + $0xc44] ss:$16 sps:$4 sm:$0xff]   ;;  %v17078_v48 = vld [vmem:[%s19595_s27 + $0xc4c] ss:$16 sps:$4 sm:$0xff]  }
 0x26d   : > { %4399 = vmatpush1.bf16.msra.mxu0 %v17001_v49  ;;  %4611 = vmatpush1.bf16.msra.mxu1 %v17004_v54  ;;  %v17073_v49 = vld [vmem:[%s19595_s27 + $0xc40] ss:$16 sps:$4 sm:$0xff]   ;;  %v17076_v54 = vld [vmem:[%s19595_s27 + $0xc48] ss:$16 sps:$4 sm:$0xff]  }
 0x26e   : > { %4400 = vmatprep.subr.bf16.mxu0 %v17009_v55  ;;  %4612 = vmatprep.subr.bf16.mxu1 %v17012_v57  ;;  %v17081_v55 = vld [vmem:[%s19595_s27 + $0xc64] ss:$16 sps:$4 sm:$0xff]   ;;  %v17084_v57 = vld [vmem:[%s19595_s27 + $0xc6c] ss:$16 sps:$4 sm:$0xff]  }
 0x271   : > { %4401 = vmatpush1.bf16.msra.mxu0 %v17007_v58  ;;  %4613 = vmatpush1.bf16.msra.mxu1 %v17010_v59  ;;  %v17079_v58 = vld [vmem:[%s19595_s27 + $0xc60] ss:$16 sps:$4 sm:$0xff]   ;;  %v17082_v59 = vld [vmem:[%s19595_s27 + $0xc68] ss:$16 sps:$4 sm:$0xff]  }
 0x272   : > { %4402 = vmatprep.subr.bf16.mxu0 %v17015_v60  ;;  %4614 = vmatprep.subr.bf16.mxu1 %v17018_v61  ;;  %v17087_v60 = vld [vmem:[%s19595_s27 + $0xc84] ss:$16 sps:$4 sm:$0xff]   ;;  %v17090_v61 = vld [vmem:[%s19595_s27 + $0xc8c] ss:$16 sps:$4 sm:$0xff]  }
 0x275   : > { %4403 = vmatpush1.bf16.msra.mxu0 %v17013_v63  ;;  %4615 = vmatpush1.bf16.msra.mxu1 %v17016_v0  ;;  %v17085_v63 = vld [vmem:[%s19595_s27 + $0xc80] ss:$16 sps:$4 sm:$0xff]   ;;  %v17088_v0 = vld [vmem:[%s19595_s27 + $0xc88] ss:$16 sps:$4 sm:$0xff]  }
 0x276   : > { %4404 = vmatprep.subr.bf16.mxu0 %v17021_v1  ;;  %4616 = vmatprep.subr.bf16.mxu1 %v17024_v2  ;;  %v17093_v1 = vld [vmem:[%s19595_s27 + $0xca4] ss:$16 sps:$4 sm:$0xff]   ;;  %v17096_v2 = vld [vmem:[%s19595_s27 + $0xcac] ss:$16 sps:$4 sm:$0xff]  }
 0x279   : > { %4405 = vmatpush1.bf16.msra.mxu0 %v17019_v52  ;;  %4617 = vmatpush1.bf16.msra.mxu1 %v17022_v53  ;;  %v17091_v52 = vld [vmem:[%s19595_s27 + $0xca0] ss:$16 sps:$4 sm:$0xff]   ;;  %v17094_v53 = vld [vmem:[%s19595_s27 + $0xca8] ss:$16 sps:$4 sm:$0xff]  }
 0x27a   : > { %4406 = vmatprep.subr.bf16.mxu0 %v17027_v4  ;;  %4618 = vmatprep.subr.bf16.mxu1 %v17030_v5  ;;  %v17099_v4 = vld [vmem:[%s19595_s27 + $0xcc4] ss:$16 sps:$4 sm:$0xff]   ;;  %v17102_v5 = vld [vmem:[%s19595_s27 + $0xccc] ss:$16 sps:$4 sm:$0xff]  }
 0x27d   : > { %4407 = vmatpush1.bf16.msra.mxu0 %v17025_v8  ;;  %4619 = vmatpush1.bf16.msra.mxu1 %v17028_v9  ;;  %v17097_v8 = vld [vmem:[%s19595_s27 + $0xcc0] ss:$16 sps:$4 sm:$0xff]   ;;  %v17100_v9 = vld [vmem:[%s19595_s27 + $0xcc8] ss:$16 sps:$4 sm:$0xff]  }
 0x27e   : > { %4408 = vmatprep.subr.bf16.mxu0 %v17033_v10  ;;  %4620 = vmatprep.subr.bf16.mxu1 %v17036_v11  ;;  %v17105_v10 = vld [vmem:[%s19595_s27 + $0xce4] ss:$16 sps:$4 sm:$0xff]   ;;  %v17108_v11 = vld [vmem:[%s19595_s27 + $0xcec] ss:$16 sps:$4 sm:$0xff]  }
 0x281   : > { %4409 = vmatpush1.bf16.msra.mxu0 %v17031_v12  ;;  %4621 = vmatpush1.bf16.msra.mxu1 %v17034_v13  ;;  %v17103_v12 = vld [vmem:[%s19595_s27 + $0xce0] ss:$16 sps:$4 sm:$0xff]   ;;  %v17106_v13 = vld [vmem:[%s19595_s27 + $0xce8] ss:$16 sps:$4 sm:$0xff]  }
 0x282   : > { %4410 = vmatprep.subr.bf16.mxu0 %v17039_v14  ;;  %4622 = vmatprep.subr.bf16.mxu1 %v17042_v15  ;;  %v17111_v14 = vld [vmem:[%s19595_s27 + $0xd04] ss:$16 sps:$4 sm:$0xff]   ;;  %v17114_v15 = vld [vmem:[%s19595_s27 + $0xd0c] ss:$16 sps:$4 sm:$0xff]  }
 0x285   : > { %4411 = vmatpush1.bf16.msra.mxu0 %v17037_v16  ;;  %4623 = vmatpush1.bf16.msra.mxu1 %v17040_v17  ;;  %v17109_v16 = vld [vmem:[%s19595_s27 + $0xd00] ss:$16 sps:$4 sm:$0xff]   ;;  %v17112_v17 = vld [vmem:[%s19595_s27 + $0xd08] ss:$16 sps:$4 sm:$0xff]  }
 0x286   : > { %4412 = vmatprep.subr.bf16.mxu0 %v17045_v19  ;;  %4624 = vmatprep.subr.bf16.mxu1 %v17048_v20  ;;  %v17117_v19 = vld [vmem:[%s19595_s27 + $0xd24] ss:$16 sps:$4 sm:$0xff]   ;;  %v17120_v20 = vld [vmem:[%s19595_s27 + $0xd2c] ss:$16 sps:$4 sm:$0xff]  }
 0x289   : > { %4413 = vmatpush1.bf16.msra.mxu0 %v17043_v21  ;;  %4625 = vmatpush1.bf16.msra.mxu1 %v17046_v22  ;;  %v17115_v21 = vld [vmem:[%s19595_s27 + $0xd20] ss:$16 sps:$4 sm:$0xff]   ;;  %v17118_v22 = vld [vmem:[%s19595_s27 + $0xd28] ss:$16 sps:$4 sm:$0xff]  }
 0x28a   : > { %4414 = vmatprep.subr.bf16.mxu0 %v17051_v24  ;;  %4626 = vmatprep.subr.bf16.mxu1 %v17054_v25  ;;  %v17123_v24 = vld [vmem:[%s19595_s27 + $0xd44] ss:$16 sps:$4 sm:$0xff]   ;;  %v17126_v25 = vld [vmem:[%s19595_s27 + $0xd4c] ss:$16 sps:$4 sm:$0xff]  }
 0x28d   : > { %4415 = vmatpush1.bf16.msra.mxu0 %v17049_v26  ;;  %4627 = vmatpush1.bf16.msra.mxu1 %v17052_v27  ;;  %v17121_v26 = vld [vmem:[%s19595_s27 + $0xd40] ss:$16 sps:$4 sm:$0xff]   ;;  %v17124_v27 = vld [vmem:[%s19595_s27 + $0xd48] ss:$16 sps:$4 sm:$0xff]  }
 0x28e   : > { %4416 = vmatprep.subr.bf16.mxu0 %v17057_v33  ;;  %4628 = vmatprep.subr.bf16.mxu1 %v17060_v34  ;;  %v17129_v33 = vld [vmem:[%s19595_s27 + $0xd64] ss:$16 sps:$4 sm:$0xff]   ;;  %v17132_v34 = vld [vmem:[%s19595_s27 + $0xd6c] ss:$16 sps:$4 sm:$0xff]  }
 0x291   : > { %4417 = vmatpush1.bf16.msra.mxu0 %v17055_v35  ;;  %4629 = vmatpush1.bf16.msra.mxu1 %v17058_v36  ;;  %v17127_v35 = vld [vmem:[%s19595_s27 + $0xd60] ss:$16 sps:$4 sm:$0xff]   ;;  %v17130_v36 = vld [vmem:[%s19595_s27 + $0xd68] ss:$16 sps:$4 sm:$0xff]  }
 0x292   : > { %4439 = vmatprep.subr.bf16.mxu0 %v17063_v38  ;;  %4651 = vmatprep.subr.bf16.mxu1 %v17066_v41  ;;  %v17135_v38 = vld [vmem:[%s19595_s27 + $0xd84] ss:$16 sps:$4 sm:$0xff]   ;;  %v17138_v41 = vld [vmem:[%s19595_s27 + $0xd8c] ss:$16 sps:$4 sm:$0xff]  }
 0x294   : > { %4419 = vmatmul.mubr.bf16.vlgmr.msra.gmra.mrb[8].mxu0 %v19774_v18  ;;  %4631 = vmatmul.mubr.bf16.vlgmr.msra.gmra.mrb[8].mxu1 %v19774_v18 }
 0x295   : > { %4440 = vmatpush1.bf16.msra.mxu0 %v17061_v42  ;;  %4652 = vmatpush1.bf16.msra.mxu1 %v17064_v43  ;;  %v17133_v42 = vld [vmem:[%s19595_s27 + $0xd80] ss:$16 sps:$4 sm:$0xff]   ;;  %v17136_v43 = vld [vmem:[%s19595_s27 + $0xd88] ss:$16 sps:$4 sm:$0xff]  }
 0x296   : > { %4441 = vmatprep.subr.bf16.mxu0 %v17069_v44  ;;  %4653 = vmatprep.subr.bf16.mxu1 %v17072_v28  ;;  %v17141_v44 = vld [vmem:[%s19595_s27 + $0xda4] ss:$16 sps:$4 sm:$0xff]   ;;  %v17144_v28 = vld [vmem:[%s19595_s27 + $0xdac] ss:$16 sps:$4 sm:$0xff]  }
 0x297   : > { %4428 = vmatprep.mubr.bf16.mxu0 %v19778_v23  ;;  %4640 = vmatprep.mubr.bf16.mxu1 %v19778_v23 }
 0x299   : > { %4442 = vmatpush1.bf16.msra.mxu0 %v17067_v31  ;;  %4654 = vmatpush1.bf16.msra.mxu1 %v17070_v46  ;;  %v17139_v31 = vld [vmem:[%s19595_s27 + $0xda0] ss:$16 sps:$4 sm:$0xff]   ;;  %v17142_v46 = vld [vmem:[%s19595_s27 + $0xda8] ss:$16 sps:$4 sm:$0xff]  }
 0x29a   : > { %4443 = vmatprep.subr.bf16.mxu0 %v17075_v47  ;;  %4655 = vmatprep.subr.bf16.mxu1 %v17078_v48  ;;  %v17147_v47 = vld [vmem:[%s19595_s27 + $0xdc4] ss:$16 sps:$4 sm:$0xff]   ;;  %v17150_v48 = vld [vmem:[%s19595_s27 + $0xdcc] ss:$16 sps:$4 sm:$0xff]  }
 0x29c   : > { %4429 = vmatmul.mubr.bf16.gmra.mrb[12].mxu0 %v19790_v30  ;;  %4641 = vmatmul.mubr.bf16.gmra.mrb[12].mxu1 %v19790_v30 }
 0x29d   : > { %4444 = vmatpush1.bf16.msra.mxu0 %v17073_v49  ;;  %4656 = vmatpush1.bf16.msra.mxu1 %v17076_v54  ;;  %v17145_v49 = vld [vmem:[%s19595_s27 + $0xdc0] ss:$16 sps:$4 sm:$0xff]   ;;  %v17148_v54 = vld [vmem:[%s19595_s27 + $0xdc8] ss:$16 sps:$4 sm:$0xff]  }
 0x29e   : > { %4445 = vmatprep.subr.bf16.mxu0 %v17081_v55  ;;  %4657 = vmatprep.subr.bf16.mxu1 %v17084_v57  ;;  %v17153_v55 = vld [vmem:[%s19595_s27 + $0xde4] ss:$16 sps:$4 sm:$0xff]   ;;  %v17156_v57 = vld [vmem:[%s19595_s27 + $0xdec] ss:$16 sps:$4 sm:$0xff]  }
 0x29f   : > { %4471 = vmatprep.mubr.bf16.mxu0 %v19800_v37  ;;  %4683 = vmatprep.mubr.bf16.mxu1 %v19800_v37 }
 0x2a1   : > { %4446 = vmatpush1.bf16.msra.mxu0 %v17079_v58  ;;  %4658 = vmatpush1.bf16.msra.mxu1 %v17082_v59  ;;  %v17151_v58 = vld [vmem:[%s19595_s27 + $0xde0] ss:$16 sps:$4 sm:$0xff]   ;;  %v17154_v59 = vld [vmem:[%s19595_s27 + $0xde8] ss:$16 sps:$4 sm:$0xff]  }
 0x2a2   : > { %4447 = vmatprep.subr.bf16.mxu0 %v17087_v60  ;;  %4659 = vmatprep.subr.bf16.mxu1 %v17090_v61  ;;  %v17159_v60 = vld [vmem:[%s19595_s27 + $0xe04] ss:$16 sps:$4 sm:$0xff]   ;;  %v17162_v61 = vld [vmem:[%s19595_s27 + $0xe0c] ss:$16 sps:$4 sm:$0xff]  }
 0x2a5   : > { %4448 = vmatpush1.bf16.msra.mxu0 %v17085_v63  ;;  %4660 = vmatpush1.bf16.msra.mxu1 %v17088_v0  ;;  %v17157_v63 = vld [vmem:[%s19595_s27 + $0xe00] ss:$16 sps:$4 sm:$0xff]   ;;  %v17160_v0 = vld [vmem:[%s19595_s27 + $0xe08] ss:$16 sps:$4 sm:$0xff]  }
 0x2a6   : > { %4449 = vmatprep.subr.bf16.mxu0 %v17093_v1  ;;  %4661 = vmatprep.subr.bf16.mxu1 %v17096_v2  ;;  %v17165_v1 = vld [vmem:[%s19595_s27 + $0xe24] ss:$16 sps:$4 sm:$0xff]   ;;  %v17168_v2 = vld [vmem:[%s19595_s27 + $0xe2c] ss:$16 sps:$4 sm:$0xff]  }
 0x2a9   : > { %4450 = vmatpush1.bf16.msra.mxu0 %v17091_v52  ;;  %4662 = vmatpush1.bf16.msra.mxu1 %v17094_v53  ;;  %v17163_v52 = vld [vmem:[%s19595_s27 + $0xe20] ss:$16 sps:$4 sm:$0xff]   ;;  %v17166_v53 = vld [vmem:[%s19595_s27 + $0xe28] ss:$16 sps:$4 sm:$0xff]  }
 0x2aa   : > { %4451 = vmatprep.subr.bf16.mxu0 %v17099_v4  ;;  %4663 = vmatprep.subr.bf16.mxu1 %v17102_v5  ;;  %v17171_v4 = vld [vmem:[%s19595_s27 + $0xe44] ss:$16 sps:$4 sm:$0xff]   ;;  %v17174_v5 = vld [vmem:[%s19595_s27 + $0xe4c] ss:$16 sps:$4 sm:$0xff]  }
 0x2ad   : > { %4452 = vmatpush1.bf16.msra.mxu0 %v17097_v8  ;;  %4664 = vmatpush1.bf16.msra.mxu1 %v17100_v9  ;;  %v17169_v8 = vld [vmem:[%s19595_s27 + $0xe40] ss:$16 sps:$4 sm:$0xff]   ;;  %v17172_v9 = vld [vmem:[%s19595_s27 + $0xe48] ss:$16 sps:$4 sm:$0xff]  }
 0x2ae   : > { %4453 = vmatprep.subr.bf16.mxu0 %v17105_v10  ;;  %4665 = vmatprep.subr.bf16.mxu1 %v17108_v11  ;;  %v17177_v10 = vld [vmem:[%s19595_s27 + $0xe64] ss:$16 sps:$4 sm:$0xff]   ;;  %v17180_v11 = vld [vmem:[%s19595_s27 + $0xe6c] ss:$16 sps:$4 sm:$0xff]  }
 0x2b1   : > { %4454 = vmatpush1.bf16.msra.mxu0 %v17103_v12  ;;  %4666 = vmatpush1.bf16.msra.mxu1 %v17106_v13  ;;  %v17175_v12 = vld [vmem:[%s19595_s27 + $0xe60] ss:$16 sps:$4 sm:$0xff]   ;;  %v17178_v13 = vld [vmem:[%s19595_s27 + $0xe68] ss:$16 sps:$4 sm:$0xff]  }
 0x2b2   : > { %4455 = vmatprep.subr.bf16.mxu0 %v17111_v14  ;;  %4667 = vmatprep.subr.bf16.mxu1 %v17114_v15  ;;  %v17183_v14 = vld [vmem:[%s19595_s27 + $0xe84] ss:$16 sps:$4 sm:$0xff]   ;;  %v17186_v15 = vld [vmem:[%s19595_s27 + $0xe8c] ss:$16 sps:$4 sm:$0xff]  }
 0x2b5   : > { %4456 = vmatpush1.bf16.msra.mxu0 %v17109_v16  ;;  %4668 = vmatpush1.bf16.msra.mxu1 %v17112_v17  ;;  %v614_v16 = vlaneseq  ;;  %v17181_v17 = vld [vmem:[%s19595_s27 + $0xe80] ss:$16 sps:$4 sm:$0xff]  }
 0x2b6   : > { %4457 = vmatprep.subr.bf16.mxu0 %v17117_v19  ;;  %4669 = vmatprep.subr.bf16.mxu1 %v17120_v20  ;;  %v17184_v19 = vld [vmem:[%s19595_s27 + $0xe88] ss:$16 sps:$4 sm:$0xff]   ;;  %v17189_v20 = vld [vmem:[%s19595_s27 + $0xea4] ss:$16 sps:$4 sm:$0xff]  }
 0x2b9   : > { %4458 = vmatpush1.bf16.msra.mxu0 %v17115_v21  ;;  %4670 = vmatpush1.bf16.msra.mxu1 %v17118_v22  ;;  %v17192_v21 = vld [vmem:[%s19595_s27 + $0xeac] ss:$16 sps:$4 sm:$0xff]   ;;  %v20198_v22 = vshrl.u32 %v614_v16, 7 }
 0x2ba   : > { %4459 = vmatprep.subr.bf16.mxu0 %v17123_v24  ;;  %4671 = vmatprep.subr.bf16.mxu1 %v17126_v25  ;;  %v17187_v24 = vld [vmem:[%s19595_s27 + $0xea0] ss:$16 sps:$4 sm:$0xff]   ;;  %v17190_v25 = vld [vmem:[%s19595_s27 + $0xea8] ss:$16 sps:$4 sm:$0xff]  }
 0x2bb   : > { %vm3020_vm0 = vcmp.lt.s32.totalorder %v20198_v22, 1  ;;  %vm6734_vm3 = vcmp.lt.s32.totalorder %v20198_v22, 7 }
 0x2bd   : > { %4460 = vmatpush1.bf16.msra.mxu0 %v17121_v26  ;;  %4672 = vmatpush1.bf16.msra.mxu1 %v17124_v27  ;;  %v17195_v26 = vld [vmem:[%s19595_s27 + $0xec4] ss:$16 sps:$4 sm:$0xff]   ;;  %v17198_v27 = vld [vmem:[%s19595_s27 + $0xecc] ss:$16 sps:$4 sm:$0xff]  }
 0x2be   : > { %4461 = vmatprep.subr.bf16.mxu0 %v17129_v33  ;;  %4673 = vmatprep.subr.bf16.mxu1 %v17132_v34 }
 0x2c1   : > { %4462 = vmatpush1.bf16.msra.mxu0 %v17127_v35  ;;  %4674 = vmatpush1.bf16.msra.mxu1 %v17130_v36  ;;  %v17193_v35 = vld [vmem:[%s19595_s27 + $0xec0] ss:$16 sps:$4 sm:$0xff]  }
 0x2c2   : > { %4463 = vmatprep.subr.bf16.mxu0 %v17135_v38  ;;  %4675 = vmatprep.subr.bf16.mxu1 %v17138_v41  ;;  %v17196_v41 = vld [vmem:[%s19595_s27 + $0xec8] ss:$16 sps:$4 sm:$0xff]  }
 0x2c5   : > { %4464 = vmatpush1.bf16.msra.mxu0 %v17133_v42  ;;  %4676 = vmatpush1.bf16.msra.mxu1 %v17136_v43 }
 0x2c6   : > { %4465 = vmatprep.subr.bf16.mxu0 %v17141_v44  ;;  %4677 = vmatprep.subr.bf16.mxu1 %v17144_v28  ;;  %v17201_v44 = vld [vmem:[%s19595_s27 + $0xee4] ss:$16 sps:$4 sm:$0xff]   ;;  %v17204_v28 = vld [vmem:[%s19595_s27 + $0xeec] ss:$16 sps:$4 sm:$0xff]  }
 0x2c9   : > { %4466 = vmatpush1.bf16.msra.mxu0 %v17139_v31  ;;  %4678 = vmatpush1.bf16.msra.mxu1 %v17142_v46 }
 0x2ca   : > { %4467 = vmatprep.subr.bf16.mxu0 %v17147_v47  ;;  %4679 = vmatprep.subr.bf16.mxu1 %v17150_v48 }
 0x2cd   : > { %4468 = vmatpush1.bf16.msra.mxu0 %v17145_v49  ;;  %4680 = vmatpush1.bf16.msra.mxu1 %v17148_v54 }
 0x2ce   : > { %4469 = vmatprep.subr.bf16.mxu0 %v17153_v55  ;;  %4681 = vmatprep.subr.bf16.mxu1 %v17156_v57 }
 0x2d1   : > { %4470 = vmatpush1.bf16.msra.mxu0 %v17151_v58  ;;  %4682 = vmatpush1.bf16.msra.mxu1 %v17154_v59 }
 0x2d2   : > { %4492 = vmatprep.subr.bf16.mxu0 %v17159_v60  ;;  %4704 = vmatprep.subr.bf16.mxu1 %v17162_v61 }
 0x2d4   : > { %4472 = vmatmul.mubr.bf16.vlgmr.msra.gmra.mrb[8].mxu0 %v19862_v40  ;;  %4684 = vmatmul.mubr.bf16.vlgmr.msra.gmra.mrb[8].mxu1 %v19862_v40 }
 0x2d5   : > { %4493 = vmatpush1.bf16.msra.mxu0 %v17157_v63  ;;  %4705 = vmatpush1.bf16.msra.mxu1 %v17160_v0  ;;  %v17199_v63 = vld [vmem:[%s19595_s27 + $0xee0] ss:$16 sps:$4 sm:$0xff]   ;;  %v17202_v0 = vld [vmem:[%s19595_s27 + $0xee8] ss:$16 sps:$4 sm:$0xff]  }
 0x2d6   : > { %4494 = vmatprep.subr.bf16.mxu0 %v17165_v1  ;;  %4706 = vmatprep.subr.bf16.mxu1 %v17168_v2 }
 0x2d7   : > { %4481 = vmatprep.mubr.bf16.mxu0 %v19866_v45  ;;  %4693 = vmatprep.mubr.bf16.mxu1 %v19866_v45 }
 0x2d9   : > { %4495 = vmatpush1.bf16.msra.mxu0 %v17163_v52  ;;  %4707 = vmatpush1.bf16.msra.mxu1 %v17166_v53  ;;  %v17207_v52 = vld [vmem:[%s19595_s27 + $0xf04] ss:$16 sps:$4 sm:$0xff]   ;;  %v17210_v53 = vld [vmem:[%s19595_s27 + $0xf0c] ss:$16 sps:$4 sm:$0xff]  }
 0x2da   : > { %4496 = vmatprep.subr.bf16.mxu0 %v17171_v4  ;;  %4708 = vmatprep.subr.bf16.mxu1 %v17174_v5 }
 0x2dc   : > { %4482 = vmatmul.mubr.bf16.gmra.mrb[12].mxu0 %v19878_v50  ;;  %4694 = vmatmul.mubr.bf16.gmra.mrb[12].mxu1 %v19878_v50 }
 0x2dd   : > { %4497 = vmatpush1.bf16.msra.mxu0 %v17169_v8  ;;  %4709 = vmatpush1.bf16.msra.mxu1 %v17172_v9  ;;  %v17205_v8 = vld [vmem:[%s19595_s27 + $0xf00] ss:$16 sps:$4 sm:$0xff]  }
 0x2de   : > { %4498 = vmatprep.subr.bf16.mxu0 %v17177_v10  ;;  %4710 = vmatprep.subr.bf16.mxu1 %v17180_v11 }
 0x2df   : > { %4524 = vmatprep.mubr.bf16.mxu0 %v19888_v56  ;;  %4736 = vmatprep.mubr.bf16.mxu1 %v19888_v56 }
 0x2e1   : > { %4499 = vmatpush1.bf16.msra.mxu0 %v17175_v12  ;;  %4711 = vmatpush1.bf16.msra.mxu1 %v17178_v13  ;;  %v17208_v13 = vld [vmem:[%s19595_s27 + $0xf08] ss:$16 sps:$4 sm:$0xff]  }
 0x2e2   : > { %4500 = vmatprep.subr.bf16.mxu0 %v17183_v14  ;;  %4712 = vmatprep.subr.bf16.mxu1 %v17186_v15 }
 0x2e5   : > { %4501 = vmatpush1.bf16.msra.mxu0 %v17181_v17  ;;  %4713 = vmatpush1.bf16.msra.mxu1 %v17184_v19  ;;  %v17213_v19 = vld [vmem:[%s19595_s27 + $0xf24] ss:$16 sps:$4 sm:$0xff]  }
 0x2e6   : > { %4502 = vmatprep.subr.bf16.mxu0 %v17189_v20  ;;  %4714 = vmatprep.subr.bf16.mxu1 %v17192_v21 }
 0x2e7   : > { %v20204_v33 = vpop.f32.mrb[0].mxu0  ;;  %v20206_v34 = vpop.f32.mrb[0].mxu1 }
 0x2e8   : > { %v20209_v36 = vpop.f32.mrb[1].mxu0  ;;  %v20211_v38 = vpop.f32.mrb[1].mxu1  ;;  %v3004_v31 = vrot.slane %v20204_v33, 7  ;;  %v3006_v46 = vrot.slane %v20206_v34, 7 }
 0x2e9   : > { %v2777_v42 = vpop.f32.mrb[2].mxu0  ;;  %v2989_v43 = vpop.f32.mrb[2].mxu1  ;;  %4503 = vmatpush1.bf16.msra.mxu0 %v17187_v24  ;;  %4715 = vmatpush1.bf16.msra.mxu1 %v17190_v25  ;;  %v3005_v55 = vrot.slane %v20209_v36, 7  ;;  %v3007_v57 = vrot.slane %v20211_v38, 7 }
 0x2ea   : > { %v3008_v47 = vrot.slane %v2777_v42, 7  ;;  %v3010_v48 = vrot.slane %v2989_v43, 7  ;;  %v2779_v49 = vpop.f32.mrb[3].mxu0  ;;  %v2991_v54 = vpop.f32.mrb[3].mxu1  ;;  %4504 = vmatprep.subr.bf16.mxu0 %v17195_v26  ;;  %4716 = vmatprep.subr.bf16.mxu1 %v17198_v27  ;;  %v17216_v26 = vld [vmem:[%s19595_s27 + $0xf2c] ss:$16 sps:$4 sm:$0xff]  }
 0x2eb   : > { %v3009_v58 = vrot.slane %v2779_v49, 7  ;;  %v3011_v59 = vrot.slane %v2991_v54, 7  ;;  %v17211_v43 = vld [vmem:[%s19595_s27 + $0xf20] ss:$16 sps:$4 sm:$0xff]  }
 0x2ec   : > { %v20223_v60 = vsel %vm3020_vm0, %v3004_v31, %v3008_v47  ;;  %v20227_v61 = vsel %vm3020_vm0, %v3006_v46, %v3010_v48 }
 0x2ed   : > { %4505 = vmatpush1.bf16.msra.mxu0 %v17193_v35  ;;  %4717 = vmatpush1.bf16.msra.mxu1 %v17196_v41  ;;  %v20233_v1 = vsel %vm3020_vm0, %v3005_v55, %v3009_v58  ;;  %v20237_v2 = vsel %vm3020_vm0, %v3007_v57, %v3011_v59 }
 0x2ee   : > { %4506 = vmatprep.subr.bf16.mxu0 %v17201_v44  ;;  %4718 = vmatprep.subr.bf16.mxu1 %v17204_v28  ;;  %v17214_v44 = vld [vmem:[%s19595_s27 + $0xf28] ss:$16 sps:$4 sm:$0xff]  }
 0x2ef   : > { %v2783_v4 = vpop.f32.mrb[4].mxu0  ;;  %v2995_v5 = vpop.f32.mrb[4].mxu1 }
 0x2f0   : > { %v3012_v9 = vrot.slane %v2783_v4, 7  ;;  %v3014_v10 = vrot.slane %v2995_v5, 7  ;;  %v2785_v11 = vpop.f32.mrb[5].mxu0  ;;  %v2997_v12 = vpop.f32.mrb[5].mxu1  ;;  %v17234_v4 = vld [vmem:[%s19595_s27 + $0xf8c] ss:$16 sps:$4 sm:$0xff]  }
 0x2f1   : > { %v3013_v14 = vrot.slane %v2785_v11, 7  ;;  %v3015_v15 = vrot.slane %v2997_v12, 7  ;;  %v2787_v16 = vpop.f32.mrb[6].mxu0  ;;  %v2999_v17 = vpop.f32.mrb[6].mxu1  ;;  %4507 = vmatpush1.bf16.msra.mxu0 %v17199_v63  ;;  %4719 = vmatpush1.bf16.msra.mxu1 %v17202_v0  ;;  %v17228_v63 = vld [vmem:[%s19595_s27 + $0xf6c] ss:$16 sps:$4 sm:$0xff]  }
 0x2f2   : > { %v3016_v20 = vrot.slane %v2787_v16, 7  ;;  %v3018_v21 = vrot.slane %v2999_v17, 7  ;;  %v2789_v24 = vpop.f32.mrb[7].mxu0  ;;  %v3001_v25 = vpop.f32.mrb[7].mxu1  ;;  %4508 = vmatprep.subr.bf16.mxu0 %v17207_v52  ;;  %4720 = vmatprep.subr.bf16.mxu1 %v17210_v53  ;;  %v20247_v27 = vsel %vm3020_vm0, %v3008_v47, %v3012_v9  ;;  %v20251_v33 = vsel %vm3020_vm0, %v3010_v48, %v3014_v10  ;;  %v17223_v0 = vld [vmem:[%s19595_s27 + $0xf60] ss:$16 sps:$4 sm:$0xff]  }
 0x2f3   : > { %v3017_v34 = vrot.slane %v2789_v24, 7  ;;  %v3019_v35 = vrot.slane %v3001_v25, 7  ;;  %v20263_v41 = vsel %vm3020_vm0, %v3009_v58, %v3013_v14  ;;  %v20267_v42 = vsel %vm3020_vm0, %v3011_v59, %v3015_v15  ;;  %v17220_v58 = vld [vmem:[%s19595_s27 + $0xf48] ss:$16 sps:$4 sm:$0xff]   ;;  %v17225_v59 = vld [vmem:[%s19595_s27 + $0xf64] ss:$16 sps:$4 sm:$0xff]  }
 0x2f4   : > { %v20255_v36 = vsel %vm3020_vm0, %v3016_v20, %v3004_v31  ;;  %v20259_v38 = vsel %vm3020_vm0, %v3018_v21, %v3006_v46  ;;  %v17219_v31 = vld [vmem:[%s19595_s27 + $0xf44] ss:$16 sps:$4 sm:$0xff]   ;;  %v17222_v46 = vld [vmem:[%s19595_s27 + $0xf4c] ss:$16 sps:$4 sm:$0xff]   ;;  %v20283_v48 = vsel %vm3020_vm0, %v3012_v9, %v3016_v20  ;;  %v20287_v49 = vsel %vm3020_vm0, %v3014_v10, %v3018_v21  ;;  %v17226_v52 = vld [vmem:[%s19595_s27 + $0xf68] ss:$16 sps:$4 sm:$0xff]  }
 0x2f5   : > { %4509 = vmatpush1.bf16.msra.mxu0 %v17205_v8  ;;  %4721 = vmatpush1.bf16.msra.mxu1 %v17208_v13  ;;  %v20273_v28 = vsel %vm3020_vm0, %v3017_v34, %v3005_v55  ;;  %v20279_v47 = vsel %vm3020_vm0, %v3019_v35, %v3007_v57  ;;  %v20291_v54 = vsel %vm3020_vm0, %v3013_v14, %v3017_v34  ;;  %v17217_v57 = vld [vmem:[%s19595_s27 + $0xf40] ss:$16 sps:$4 sm:$0xff]   ;;  %v17231_v53 = vld [vmem:[%s19595_s27 + $0xf84] ss:$16 sps:$4 sm:$0xff]   ;;  %v17232_v8 = vld [vmem:[%s19595_s27 + $0xf88] ss:$16 sps:$4 sm:$0xff]  }
 0x2f6   : > { %4510 = vmatprep.subr.bf16.mxu0 %v17213_v19  ;;  %4722 = vmatprep.subr.bf16.mxu1 %v17216_v26  ;;  %v20295_v55 = vsel %vm3020_vm0, %v3015_v15, %v3019_v35  ;;  %v17229_v5 = vld [vmem:[%s19595_s27 + $0xf80] ss:$16 sps:$4 sm:$0xff]   ;;  %v17237_v9 = vld [vmem:[%s19595_s27 + $0xfa4] ss:$16 sps:$4 sm:$0xff]   ;;  %v17240_v10 = vld [vmem:[%s19595_s27 + $0xfac] ss:$16 sps:$4 sm:$0xff]  }
 0x2f7   : > { %v17235_v11 = vld [vmem:[%s19595_s27 + $0xfa0] ss:$16 sps:$4 sm:$0xff]   ;;  %v17238_v12 = vld [vmem:[%s19595_s27 + $0xfa8] ss:$16 sps:$4 sm:$0xff]   ;;  %v17243_v13 = vld [vmem:[%s19595_s27 + $0xfc4] ss:$16 sps:$4 sm:$0xff]  }
 0x2f8   : > { %v17246_v14 = vld [vmem:[%s19595_s27 + $0xfcc] ss:$16 sps:$4 sm:$0xff]   ;;  %v17241_v15 = vld [vmem:[%s19595_s27 + $0xfc0] ss:$16 sps:$4 sm:$0xff]   ;;  %v17244_v16 = vld [vmem:[%s19595_s27 + $0xfc8] ss:$16 sps:$4 sm:$0xff]  }
 0x2f9   : > { %4511 = vmatpush1.bf16.msra.mxu0 %v17211_v43  ;;  %4723 = vmatpush1.bf16.msra.mxu1 %v17214_v44  ;;  %v17249_v17 = vld [vmem:[%s19595_s27 + $0xfe4] ss:$16 sps:$4 sm:$0xff]   ;;  %v17252_v19 = vld [vmem:[%s19595_s27 + $0xfec] ss:$16 sps:$4 sm:$0xff]   ;;  %v17247_v20 = vld [vmem:[%s19595_s27 + $0xfe0] ss:$16 sps:$4 sm:$0xff]  }
 0x2fa   : > { %4512 = vmatprep.subr.bf16.mxu0 %v17219_v31  ;;  %4724 = vmatprep.subr.bf16.mxu1 %v17222_v46  ;;  %v17250_v21 = vld [vmem:[%s19595_s27 + $0xfe8] ss:$16 sps:$4 sm:$0xff]   ;;  %v17255_v24 = vld [vmem:[%s19595_s27 + $0x1004] ss:$16 sps:$4 sm:$0xff]   ;;  %v17258_v25 = vld [vmem:[%s19595_s27 + $0x100c] ss:$16 sps:$4 sm:$0xff]  }
 0x2fb   : > { %v17253_v26 = vld [vmem:[%s19595_s27 + $0x1000] ss:$16 sps:$4 sm:$0xff]   ;;  %v17256_v34 = vld [vmem:[%s19595_s27 + $0x1008] ss:$16 sps:$4 sm:$0xff]   ;;  %v17261_v35 = vld [vmem:[%s19595_s27 + $0x1024] ss:$16 sps:$4 sm:$0xff]  }
 0x2fc   : > { %v17264_v43 = vld [vmem:[%s19595_s27 + $0x102c] ss:$16 sps:$4 sm:$0xff]   ;;  %v17259_v44 = vld [vmem:[%s19595_s27 + $0x1020] ss:$16 sps:$4 sm:$0xff]   ;;  %v17262_v31 = vld [vmem:[%s19595_s27 + $0x1028] ss:$16 sps:$4 sm:$0xff]  }
 0x2fd   : > { %4513 = vmatpush1.bf16.msra.mxu0 %v17217_v57  ;;  %4725 = vmatpush1.bf16.msra.mxu1 %v17220_v58  ;;  %v17267_v46 = vld [vmem:[%s19595_s27 + $0x1044] ss:$16 sps:$4 sm:$0xff]   ;;  %v17270_v57 = vld [vmem:[%s19595_s27 + $0x104c] ss:$16 sps:$4 sm:$0xff]   ;;  %v17265_v58 = vld [vmem:[%s19595_s27 + $0x1040] ss:$16 sps:$4 sm:$0xff]  }
 0x2fe   : > { %4514 = vmatprep.subr.bf16.mxu0 %v17225_v59  ;;  %4726 = vmatprep.subr.bf16.mxu1 %v17228_v63  ;;  %v17268_v59 = vld [vmem:[%s19595_s27 + $0x1048] ss:$16 sps:$4 sm:$0xff]   ;;  %v17273_v63 = vld [vmem:[%s19595_s27 + $0x1064] ss:$16 sps:$4 sm:$0xff]  }
 0x301   : > { %4515 = vmatpush1.bf16.msra.mxu0 %v17223_v0  ;;  %4727 = vmatpush1.bf16.msra.mxu1 %v17226_v52  ;;  %v17276_v0 = vld [vmem:[%s19595_s27 + $0x106c] ss:$16 sps:$4 sm:$0xff]   ;;  %v17271_v52 = vld [vmem:[%s19595_s27 + $0x1060] ss:$16 sps:$4 sm:$0xff]  }
 0x302   : > { %4516 = vmatprep.subr.bf16.mxu0 %v17231_v53  ;;  %4728 = vmatprep.subr.bf16.mxu1 %v17234_v4  ;;  %v17274_v53 = vld [vmem:[%s19595_s27 + $0x1068] ss:$16 sps:$4 sm:$0xff]   ;;  %v17279_v4 = vld [vmem:[%s19595_s27 + $0x1084] ss:$16 sps:$4 sm:$0xff]  }
 0x305   : > { %4517 = vmatpush1.bf16.msra.mxu0 %v17229_v5  ;;  %4729 = vmatpush1.bf16.msra.mxu1 %v17232_v8  ;;  %v17282_v5 = vld [vmem:[%s19595_s27 + $0x108c] ss:$16 sps:$4 sm:$0xff]   ;;  %v17277_v8 = vld [vmem:[%s19595_s27 + $0x1080] ss:$16 sps:$4 sm:$0xff]  }
 0x306   : > { %4518 = vmatprep.subr.bf16.mxu0 %v17237_v9  ;;  %4730 = vmatprep.subr.bf16.mxu1 %v17240_v10  ;;  %v17280_v9 = vld [vmem:[%s19595_s27 + $0x1088] ss:$16 sps:$4 sm:$0xff]   ;;  %v17285_v10 = vld [vmem:[%s19595_s27 + $0x10a4] ss:$16 sps:$4 sm:$0xff]  }
 0x309   : > { %4519 = vmatpush1.bf16.msra.mxu0 %v17235_v11  ;;  %4731 = vmatpush1.bf16.msra.mxu1 %v17238_v12  ;;  %v17288_v11 = vld [vmem:[%s19595_s27 + $0x10ac] ss:$16 sps:$4 sm:$0xff]   ;;  %v17283_v12 = vld [vmem:[%s19595_s27 + $0x10a0] ss:$16 sps:$4 sm:$0xff]  }
 0x30a   : > { %4520 = vmatprep.subr.bf16.mxu0 %v17243_v13  ;;  %4732 = vmatprep.subr.bf16.mxu1 %v17246_v14  ;;  %v17286_v13 = vld [vmem:[%s19595_s27 + $0x10a8] ss:$16 sps:$4 sm:$0xff]   ;;  %v17294_v14 = vld [vmem:[%s19595_s27 + $0x10cc] ss:$16 sps:$4 sm:$0xff]  }
 0x30d   : > { %4521 = vmatpush1.bf16.msra.mxu0 %v17241_v15  ;;  %4733 = vmatpush1.bf16.msra.mxu1 %v17244_v16  ;;  %v17289_v15 = vld [vmem:[%s19595_s27 + $0x10c0] ss:$16 sps:$4 sm:$0xff]   ;;  %v17292_v16 = vld [vmem:[%s19595_s27 + $0x10c8] ss:$16 sps:$4 sm:$0xff]  }
 0x30e   : > { %4522 = vmatprep.subr.bf16.mxu0 %v17249_v17  ;;  %4734 = vmatprep.subr.bf16.mxu1 %v17252_v19  ;;  %v17297_v17 = vld [vmem:[%s19595_s27 + $0x10e4] ss:$16 sps:$4 sm:$0xff]   ;;  %v17300_v19 = vld [vmem:[%s19595_s27 + $0x10ec] ss:$16 sps:$4 sm:$0xff]  }
 0x311   : > { %4523 = vmatpush1.bf16.msra.mxu0 %v17247_v20  ;;  %4735 = vmatpush1.bf16.msra.mxu1 %v17250_v21  ;;  %v17295_v20 = vld [vmem:[%s19595_s27 + $0x10e0] ss:$16 sps:$4 sm:$0xff]   ;;  %v17298_v21 = vld [vmem:[%s19595_s27 + $0x10e8] ss:$16 sps:$4 sm:$0xff]  }
 0x312   : > { %6294 = vmatprep.subr.bf16.mxu0 %v17255_v24  ;;  %6506 = vmatprep.subr.bf16.mxu1 %v17258_v25  ;;  %v17303_v24 = vld [vmem:[%s19595_s27 + $0x1104] ss:$16 sps:$4 sm:$0xff]   ;;  %v17306_v25 = vld [vmem:[%s19595_s27 + $0x110c] ss:$16 sps:$4 sm:$0xff]  }
 0x314   : > { %4525 = vmatmul.mubr.bf16.vlgmr.msra.gmra.mrb[8].mxu0 %v19950_v62  ;;  %4737 = vmatmul.mubr.bf16.vlgmr.msra.gmra.mrb[8].mxu1 %v19950_v62 }
 0x315   : > { %6295 = vmatpush1.bf16.msra.mxu0 %v17253_v26  ;;  %6507 = vmatpush1.bf16.msra.mxu1 %v17256_v34  ;;  %v17301_v26 = vld [vmem:[%s19595_s27 + $0x1100] ss:$16 sps:$4 sm:$0xff]   ;;  %v17304_v34 = vld [vmem:[%s19595_s27 + $0x1108] ss:$16 sps:$4 sm:$0xff]  }
 0x316   : > { %6296 = vmatprep.subr.bf16.mxu0 %v17261_v35  ;;  %6508 = vmatprep.subr.bf16.mxu1 %v17264_v43  ;;  %v17309_v35 = vld [vmem:[%s19595_s27 + $0x1124] ss:$16 sps:$4 sm:$0xff]   ;;  %v17312_v43 = vld [vmem:[%s19595_s27 + $0x112c] ss:$16 sps:$4 sm:$0xff]  }
 0x317   : > { %4534 = vmatprep.mubr.bf16.mxu0 %v19954_v3  ;;  %4746 = vmatprep.mubr.bf16.mxu1 %v19954_v3 }
 0x319   : > { %6297 = vmatpush1.bf16.msra.mxu0 %v17259_v44  ;;  %6509 = vmatpush1.bf16.msra.mxu1 %v17262_v31  ;;  %v17307_v44 = vld [vmem:[%s19595_s27 + $0x1120] ss:$16 sps:$4 sm:$0xff]   ;;  %v17310_v31 = vld [vmem:[%s19595_s27 + $0x1128] ss:$16 sps:$4 sm:$0xff]  }
 0x31a   : > { %6298 = vmatprep.subr.bf16.mxu0 %v17267_v46  ;;  %6510 = vmatprep.subr.bf16.mxu1 %v17270_v57  ;;  %v17315_v46 = vld [vmem:[%s19595_s27 + $0x1144] ss:$16 sps:$4 sm:$0xff]   ;;  %v17318_v57 = vld [vmem:[%s19595_s27 + $0x114c] ss:$16 sps:$4 sm:$0xff]  }
 0x31c   : > { %4535 = vmatmul.mubr.bf16.gmra.mrb[12].mxu0 %v19964_v7  ;;  %4747 = vmatmul.mubr.bf16.gmra.mrb[12].mxu1 %v19964_v7 }
 0x31d   : > { %6299 = vmatpush1.bf16.msra.mxu0 %v17265_v58  ;;  %6511 = vmatpush1.bf16.msra.mxu1 %v17268_v59  ;;  %v17313_v58 = vld [vmem:[%s19595_s27 + $0x1140] ss:$16 sps:$4 sm:$0xff]   ;;  %v17316_v59 = vld [vmem:[%s19595_s27 + $0x1148] ss:$16 sps:$4 sm:$0xff]  }
 0x31e   : > { %6300 = vmatprep.subr.bf16.mxu0 %v17273_v63  ;;  %6512 = vmatprep.subr.bf16.mxu1 %v17276_v0  ;;  %v17321_v63 = vld [vmem:[%s19595_s27 + $0x1164] ss:$16 sps:$4 sm:$0xff]   ;;  %v17324_v0 = vld [vmem:[%s19595_s27 + $0x116c] ss:$16 sps:$4 sm:$0xff]  }
 0x31f   : > { %6326 = vmatprep.mubr.bf16.mxu0 %v19662_v51  ;;  %6538 = vmatprep.mubr.bf16.mxu1 %v19662_v51  ;;  %v17291_v51 = vld [vmem:[%s19595_s27 + $0x10c4] ss:$16 sps:$4 sm:$0xff]  }
 0x321   : > { %6301 = vmatpush1.bf16.msra.mxu0 %v17271_v52  ;;  %6513 = vmatpush1.bf16.msra.mxu1 %v17274_v53  ;;  %v17319_v52 = vld [vmem:[%s19595_s27 + $0x1160] ss:$16 sps:$4 sm:$0xff]   ;;  %v17322_v53 = vld [vmem:[%s19595_s27 + $0x1168] ss:$16 sps:$4 sm:$0xff]  }
 0x322   : > { %6302 = vmatprep.subr.bf16.mxu0 %v17279_v4  ;;  %6514 = vmatprep.subr.bf16.mxu1 %v17282_v5  ;;  %v17327_v4 = vld [vmem:[%s19595_s27 + $0x1184] ss:$16 sps:$4 sm:$0xff]   ;;  %v17330_v5 = vld [vmem:[%s19595_s27 + $0x118c] ss:$16 sps:$4 sm:$0xff]  }
 0x325   : > { %6303 = vmatpush1.bf16.msra.mxu0 %v17277_v8  ;;  %6515 = vmatpush1.bf16.msra.mxu1 %v17280_v9  ;;  %v17325_v8 = vld [vmem:[%s19595_s27 + $0x1180] ss:$16 sps:$4 sm:$0xff]   ;;  %v17328_v9 = vld [vmem:[%s19595_s27 + $0x1188] ss:$16 sps:$4 sm:$0xff]  }
 0x326   : > { %6304 = vmatprep.subr.bf16.mxu0 %v17285_v10  ;;  %6516 = vmatprep.subr.bf16.mxu1 %v17288_v11  ;;  %v17333_v10 = vld [vmem:[%s19595_s27 + $0x11a4] ss:$16 sps:$4 sm:$0xff]   ;;  %v17336_v11 = vld [vmem:[%s19595_s27 + $0x11ac] ss:$16 sps:$4 sm:$0xff]  }
 0x329   : > { %6305 = vmatpush1.bf16.msra.mxu0 %v17283_v12  ;;  %6517 = vmatpush1.bf16.msra.mxu1 %v17286_v13  ;;  %v17331_v12 = vld [vmem:[%s19595_s27 + $0x11a0] ss:$16 sps:$4 sm:$0xff]   ;;  %v17334_v13 = vld [vmem:[%s19595_s27 + $0x11a8] ss:$16 sps:$4 sm:$0xff]  }
 0x32a   : > { %6306 = vmatprep.subr.bf16.mxu0 %v17291_v51  ;;  %6518 = vmatprep.subr.bf16.mxu1 %v17294_v14  ;;  %v17339_v51 = vld [vmem:[%s19595_s27 + $0x11c4] ss:$16 sps:$4 sm:$0xff]   ;;  %v17342_v14 = vld [vmem:[%s19595_s27 + $0x11cc] ss:$16 sps:$4 sm:$0xff]  }
 0x32d   : > { %6307 = vmatpush1.bf16.msra.mxu0 %v17289_v15  ;;  %6519 = vmatpush1.bf16.msra.mxu1 %v17292_v16  ;;  %v17337_v15 = vld [vmem:[%s19595_s27 + $0x11c0] ss:$16 sps:$4 sm:$0xff]   ;;  %v17340_v16 = vld [vmem:[%s19595_s27 + $0x11c8] ss:$16 sps:$4 sm:$0xff]  }
 0x32e   : > { %6308 = vmatprep.subr.bf16.mxu0 %v17297_v17  ;;  %6520 = vmatprep.subr.bf16.mxu1 %v17300_v19  ;;  %v17345_v17 = vld [vmem:[%s19595_s27 + $0x11e4] ss:$16 sps:$4 sm:$0xff]   ;;  %v17348_v19 = vld [vmem:[%s19595_s27 + $0x11ec] ss:$16 sps:$4 sm:$0xff]  }
 0x331   : > { %6309 = vmatpush1.bf16.msra.mxu0 %v17295_v20  ;;  %6521 = vmatpush1.bf16.msra.mxu1 %v17298_v21  ;;  %v17343_v20 = vld [vmem:[%s19595_s27 + $0x11e0] ss:$16 sps:$4 sm:$0xff]   ;;  %v17346_v21 = vld [vmem:[%s19595_s27 + $0x11e8] ss:$16 sps:$4 sm:$0xff]  }
 0x332   : > { %6310 = vmatprep.subr.bf16.mxu0 %v17303_v24  ;;  %6522 = vmatprep.subr.bf16.mxu1 %v17306_v25  ;;  %v17351_v24 = vld [vmem:[%s19595_s27 + $0x1204] ss:$16 sps:$4 sm:$0xff]   ;;  %v17354_v25 = vld [vmem:[%s19595_s27 + $0x120c] ss:$16 sps:$4 sm:$0xff]  }
 0x335   : > { %6311 = vmatpush1.bf16.msra.mxu0 %v17301_v26  ;;  %6523 = vmatpush1.bf16.msra.mxu1 %v17304_v34  ;;  %v17349_v26 = vld [vmem:[%s19595_s27 + $0x1200] ss:$16 sps:$4 sm:$0xff]   ;;  %v17352_v34 = vld [vmem:[%s19595_s27 + $0x1208] ss:$16 sps:$4 sm:$0xff]  }
 0x336   : > { %6312 = vmatprep.subr.bf16.mxu0 %v17309_v35  ;;  %6524 = vmatprep.subr.bf16.mxu1 %v17312_v43  ;;  %v17357_v35 = vld [vmem:[%s19595_s27 + $0x1224] ss:$16 sps:$4 sm:$0xff]   ;;  %v17360_v43 = vld [vmem:[%s19595_s27 + $0x122c] ss:$16 sps:$4 sm:$0xff]  }
 0x339   : > { %6313 = vmatpush1.bf16.msra.mxu0 %v17307_v44  ;;  %6525 = vmatpush1.bf16.msra.mxu1 %v17310_v31  ;;  %v17355_v44 = vld [vmem:[%s19595_s27 + $0x1220] ss:$16 sps:$4 sm:$0xff]   ;;  %v17358_v31 = vld [vmem:[%s19595_s27 + $0x1228] ss:$16 sps:$4 sm:$0xff]  }
 0x33a   : > { %6314 = vmatprep.subr.bf16.mxu0 %v17315_v46  ;;  %6526 = vmatprep.subr.bf16.mxu1 %v17318_v57  ;;  %v17363_v46 = vld [vmem:[%s19595_s27 + $0x1244] ss:$16 sps:$4 sm:$0xff]   ;;  %v17366_v57 = vld [vmem:[%s19595_s27 + $0x124c] ss:$16 sps:$4 sm:$0xff]  }
 0x33d   : > { %6315 = vmatpush1.bf16.msra.mxu0 %v17313_v58  ;;  %6527 = vmatpush1.bf16.msra.mxu1 %v17316_v59  ;;  %v17364_v58 = vld [vmem:[%s19595_s27 + $0x1248] ss:$16 sps:$4 sm:$0xff]   ;;  %v17369_v59 = vld [vmem:[%s19595_s27 + $0x1264] ss:$16 sps:$4 sm:$0xff]  }
 0x33e   : > { %6316 = vmatprep.subr.bf16.mxu0 %v17321_v63  ;;  %6528 = vmatprep.subr.bf16.mxu1 %v17324_v0  ;;  %v17372_v63 = vld [vmem:[%s19595_s27 + $0x126c] ss:$16 sps:$4 sm:$0xff]   ;;  %v17370_v0 = vld [vmem:[%s19595_s27 + $0x1268] ss:$16 sps:$4 sm:$0xff]  }
 0x341   : > { %6317 = vmatpush1.bf16.msra.mxu0 %v17319_v52  ;;  %6529 = vmatpush1.bf16.msra.mxu1 %v17322_v53  ;;  %v17375_v52 = vld [vmem:[%s19595_s27 + $0x1284] ss:$16 sps:$4 sm:$0xff]   ;;  %v17378_v53 = vld [vmem:[%s19595_s27 + $0x128c] ss:$16 sps:$4 sm:$0xff]  }
 0x342   : > { %6318 = vmatprep.subr.bf16.mxu0 %v17327_v4  ;;  %6530 = vmatprep.subr.bf16.mxu1 %v17330_v5  ;;  %v17376_v4 = vld [vmem:[%s19595_s27 + $0x1288] ss:$16 sps:$4 sm:$0xff]   ;;  %v17381_v5 = vld [vmem:[%s19595_s27 + $0x12a4] ss:$16 sps:$4 sm:$0xff]  }
 0x345   : > { %6319 = vmatpush1.bf16.msra.mxu0 %v17325_v8  ;;  %6531 = vmatpush1.bf16.msra.mxu1 %v17328_v9  ;;  %v17384_v8 = vld [vmem:[%s19595_s27 + $0x12ac] ss:$16 sps:$4 sm:$0xff]   ;;  %v17379_v9 = vld [vmem:[%s19595_s27 + $0x12a0] ss:$16 sps:$4 sm:$0xff]  }
 0x346   : > { %6320 = vmatprep.subr.bf16.mxu0 %v17333_v10  ;;  %6532 = vmatprep.subr.bf16.mxu1 %v17336_v11  ;;  %v17382_v10 = vld [vmem:[%s19595_s27 + $0x12a8] ss:$16 sps:$4 sm:$0xff]   ;;  %v17390_v11 = vld [vmem:[%s19595_s27 + $0x12cc] ss:$16 sps:$4 sm:$0xff]  }
 0x349   : > { %6321 = vmatpush1.bf16.msra.mxu0 %v17331_v12  ;;  %6533 = vmatpush1.bf16.msra.mxu1 %v17334_v13  ;;  %v17385_v12 = vld [vmem:[%s19595_s27 + $0x12c0] ss:$16 sps:$4 sm:$0xff]   ;;  %v17388_v13 = vld [vmem:[%s19595_s27 + $0x12c8] ss:$16 sps:$4 sm:$0xff]  }
 0x34a   : > { %6322 = vmatprep.subr.bf16.mxu0 %v17339_v51  ;;  %6534 = vmatprep.subr.bf16.mxu1 %v17342_v14  ;;  %v17393_v51 = vld [vmem:[%s19595_s27 + $0x12e4] ss:$16 sps:$4 sm:$0xff]   ;;  %v17396_v14 = vld [vmem:[%s19595_s27 + $0x12ec] ss:$16 sps:$4 sm:$0xff]  }
 0x34d   : > { %6323 = vmatpush1.bf16.msra.mxu0 %v17337_v15  ;;  %6535 = vmatpush1.bf16.msra.mxu1 %v17340_v16  ;;  %v17391_v15 = vld [vmem:[%s19595_s27 + $0x12e0] ss:$16 sps:$4 sm:$0xff]   ;;  %v17394_v16 = vld [vmem:[%s19595_s27 + $0x12e8] ss:$16 sps:$4 sm:$0xff]  }
 0x34e   : > { %6324 = vmatprep.subr.bf16.mxu0 %v17345_v17  ;;  %6536 = vmatprep.subr.bf16.mxu1 %v17348_v19  ;;  %v17399_v17 = vld [vmem:[%s19595_s27 + $0x1304] ss:$16 sps:$4 sm:$0xff]   ;;  %v17402_v19 = vld [vmem:[%s19595_s27 + $0x130c] ss:$16 sps:$4 sm:$0xff]  }
 0x351   : > { %6325 = vmatpush1.bf16.msra.mxu0 %v17343_v20  ;;  %6537 = vmatpush1.bf16.msra.mxu1 %v17346_v21  ;;  %v17397_v20 = vld [vmem:[%s19595_s27 + $0x1300] ss:$16 sps:$4 sm:$0xff]   ;;  %v17400_v21 = vld [vmem:[%s19595_s27 + $0x1308] ss:$16 sps:$4 sm:$0xff]  }
 0x352   : > { %6347 = vmatprep.subr.bf16.mxu0 %v17351_v24  ;;  %6559 = vmatprep.subr.bf16.mxu1 %v17354_v25  ;;  %v17405_v24 = vld [vmem:[%s19595_s27 + $0x1324] ss:$16 sps:$4 sm:$0xff]   ;;  %v17408_v25 = vld [vmem:[%s19595_s27 + $0x132c] ss:$16 sps:$4 sm:$0xff]  }
 0x354   : > { %6327 = vmatmul.mubr.bf16.vlgmr.msra.gmra.mrb[16].mxu0 %v19684_v6  ;;  %6539 = vmatmul.mubr.bf16.vlgmr.msra.gmra.mrb[16].mxu1 %v19684_v6  ;;  %v17361_v6 = vld [vmem:[%s19595_s27 + $0x1240] ss:$16 sps:$4 sm:$0xff]  }
 0x355   : > { %6348 = vmatpush1.bf16.msra.mxu0 %v17349_v26  ;;  %6560 = vmatpush1.bf16.msra.mxu1 %v17352_v34  ;;  %v17403_v26 = vld [vmem:[%s19595_s27 + $0x1320] ss:$16 sps:$4 sm:$0xff]   ;;  %v17406_v34 = vld [vmem:[%s19595_s27 + $0x1328] ss:$16 sps:$4 sm:$0xff]  }
 0x356   : > { %6349 = vmatprep.subr.bf16.mxu0 %v17357_v35  ;;  %6561 = vmatprep.subr.bf16.mxu1 %v17360_v43  ;;  %v17411_v35 = vld [vmem:[%s19595_s27 + $0x1344] ss:$16 sps:$4 sm:$0xff]   ;;  %v17414_v43 = vld [vmem:[%s19595_s27 + $0x134c] ss:$16 sps:$4 sm:$0xff]  }
 0x357   : > { %6336 = vmatprep.mubr.bf16.mxu0 %v19708_v29  ;;  %6548 = vmatprep.mubr.bf16.mxu1 %v19708_v29  ;;  %v17367_v29 = vld [vmem:[%s19595_s27 + $0x1260] ss:$16 sps:$4 sm:$0xff]  }
 0x359   : > { %6350 = vmatpush1.bf16.msra.mxu0 %v17355_v44  ;;  %6562 = vmatpush1.bf16.msra.mxu1 %v17358_v31  ;;  %v17409_v44 = vld [vmem:[%s19595_s27 + $0x1340] ss:$16 sps:$4 sm:$0xff]   ;;  %v17412_v31 = vld [vmem:[%s19595_s27 + $0x1348] ss:$16 sps:$4 sm:$0xff]  }
 0x35a   : > { %6351 = vmatprep.subr.bf16.mxu0 %v17363_v46  ;;  %6563 = vmatprep.subr.bf16.mxu1 %v17366_v57  ;;  %v17417_v46 = vld [vmem:[%s19595_s27 + $0x1364] ss:$16 sps:$4 sm:$0xff]   ;;  %v17420_v57 = vld [vmem:[%s19595_s27 + $0x136c] ss:$16 sps:$4 sm:$0xff]  }
 0x35c   : > { %6337 = vmatmul.mubr.bf16.gmra.mrb[20].mxu0 %v19712_v32  ;;  %6549 = vmatmul.mubr.bf16.gmra.mrb[20].mxu1 %v19712_v32  ;;  %v17373_v32 = vld [vmem:[%s19595_s27 + $0x1280] ss:$16 sps:$4 sm:$0xff]  }
 0x35d   : > { %6352 = vmatpush1.bf16.msra.mxu0 %v17361_v6  ;;  %6564 = vmatpush1.bf16.msra.mxu1 %v17364_v58  ;;  %v17415_v6 = vld [vmem:[%s19595_s27 + $0x1360] ss:$16 sps:$4 sm:$0xff]   ;;  %v17418_v58 = vld [vmem:[%s19595_s27 + $0x1368] ss:$16 sps:$4 sm:$0xff]  }
 0x35e   : > { %6353 = vmatprep.subr.bf16.mxu0 %v17369_v59  ;;  %6565 = vmatprep.subr.bf16.mxu1 %v17372_v63  ;;  %v17423_v59 = vld [vmem:[%s19595_s27 + $0x1384] ss:$16 sps:$4 sm:$0xff]   ;;  %v17426_v63 = vld [vmem:[%s19595_s27 + $0x138c] ss:$16 sps:$4 sm:$0xff]  }
 0x35f   : > { %6379 = vmatprep.mubr.bf16.mxu0 %v19728_v39  ;;  %6591 = vmatprep.mubr.bf16.mxu1 %v19728_v39  ;;  %v17387_v39 = vld [vmem:[%s19595_s27 + $0x12c4] ss:$16 sps:$4 sm:$0xff]  }
 0x361   : > { %6354 = vmatpush1.bf16.msra.mxu0 %v17367_v29  ;;  %6566 = vmatpush1.bf16.msra.mxu1 %v17370_v0  ;;  %v17421_v29 = vld [vmem:[%s19595_s27 + $0x1380] ss:$16 sps:$4 sm:$0xff]   ;;  %v17424_v0 = vld [vmem:[%s19595_s27 + $0x1388] ss:$16 sps:$4 sm:$0xff]  }
 0x362   : > { %6355 = vmatprep.subr.bf16.mxu0 %v17375_v52  ;;  %6567 = vmatprep.subr.bf16.mxu1 %v17378_v53  ;;  %v17429_v52 = vld [vmem:[%s19595_s27 + $0x13a4] ss:$16 sps:$4 sm:$0xff]   ;;  %v17432_v53 = vld [vmem:[%s19595_s27 + $0x13ac] ss:$16 sps:$4 sm:$0xff]  }
 0x365   : > { %6356 = vmatpush1.bf16.msra.mxu0 %v17373_v32  ;;  %6568 = vmatpush1.bf16.msra.mxu1 %v17376_v4  ;;  %v17427_v32 = vld [vmem:[%s19595_s27 + $0x13a0] ss:$16 sps:$4 sm:$0xff]   ;;  %v17430_v4 = vld [vmem:[%s19595_s27 + $0x13a8] ss:$16 sps:$4 sm:$0xff]  }
 0x366   : > { %6357 = vmatprep.subr.bf16.mxu0 %v17381_v5  ;;  %6569 = vmatprep.subr.bf16.mxu1 %v17384_v8  ;;  %v17435_v5 = vld [vmem:[%s19595_s27 + $0x13c4] ss:$16 sps:$4 sm:$0xff]   ;;  %v17438_v8 = vld [vmem:[%s19595_s27 + $0x13cc] ss:$16 sps:$4 sm:$0xff]  }
 0x369   : > { %6358 = vmatpush1.bf16.msra.mxu0 %v17379_v9  ;;  %6570 = vmatpush1.bf16.msra.mxu1 %v17382_v10  ;;  %v17433_v9 = vld [vmem:[%s19595_s27 + $0x13c0] ss:$16 sps:$4 sm:$0xff]   ;;  %v17436_v10 = vld [vmem:[%s19595_s27 + $0x13c8] ss:$16 sps:$4 sm:$0xff]  }
 0x36a   : > { %6359 = vmatprep.subr.bf16.mxu0 %v17387_v39  ;;  %6571 = vmatprep.subr.bf16.mxu1 %v17390_v11  ;;  %v17441_v39 = vld [vmem:[%s19595_s27 + $0x13e4] ss:$16 sps:$4 sm:$0xff]   ;;  %v17444_v11 = vld [vmem:[%s19595_s27 + $0x13ec] ss:$16 sps:$4 sm:$0xff]  }
 0x36d   : > { %6360 = vmatpush1.bf16.msra.mxu0 %v17385_v12  ;;  %6572 = vmatpush1.bf16.msra.mxu1 %v17388_v13  ;;  %v17439_v12 = vld [vmem:[%s19595_s27 + $0x13e0] ss:$16 sps:$4 sm:$0xff]   ;;  %v17442_v13 = vld [vmem:[%s19595_s27 + $0x13e8] ss:$16 sps:$4 sm:$0xff]  }
 0x36e   : > { %6361 = vmatprep.subr.bf16.mxu0 %v17393_v51  ;;  %6573 = vmatprep.subr.bf16.mxu1 %v17396_v14  ;;  %v17447_v51 = vld [vmem:[%s19595_s27 + $0x1404] ss:$16 sps:$4 sm:$0xff]   ;;  %v17450_v14 = vld [vmem:[%s19595_s27 + $0x140c] ss:$16 sps:$4 sm:$0xff]  }
 0x371   : > { %6362 = vmatpush1.bf16.msra.mxu0 %v17391_v15  ;;  %6574 = vmatpush1.bf16.msra.mxu1 %v17394_v16  ;;  %v17445_v15 = vld [vmem:[%s19595_s27 + $0x1400] ss:$16 sps:$4 sm:$0xff]   ;;  %v17448_v16 = vld [vmem:[%s19595_s27 + $0x1408] ss:$16 sps:$4 sm:$0xff]  }
 0x372   : > { %6363 = vmatprep.subr.bf16.mxu0 %v17399_v17  ;;  %6575 = vmatprep.subr.bf16.mxu1 %v17402_v19  ;;  %v17453_v17 = vld [vmem:[%s19595_s27 + $0x1424] ss:$16 sps:$4 sm:$0xff]   ;;  %v17456_v19 = vld [vmem:[%s19595_s27 + $0x142c] ss:$16 sps:$4 sm:$0xff]  }
 0x375   : > { %6364 = vmatpush1.bf16.msra.mxu0 %v17397_v20  ;;  %6576 = vmatpush1.bf16.msra.mxu1 %v17400_v21  ;;  %v17451_v20 = vld [vmem:[%s19595_s27 + $0x1420] ss:$16 sps:$4 sm:$0xff]   ;;  %v17454_v21 = vld [vmem:[%s19595_s27 + $0x1428] ss:$16 sps:$4 sm:$0xff]  }
 0x376   : > { %6365 = vmatprep.subr.bf16.mxu0 %v17405_v24  ;;  %6577 = vmatprep.subr.bf16.mxu1 %v17408_v25  ;;  %v17459_v24 = vld [vmem:[%s19595_s27 + $0x1444] ss:$16 sps:$4 sm:$0xff]   ;;  %v17462_v25 = vld [vmem:[%s19595_s27 + $0x144c] ss:$16 sps:$4 sm:$0xff]  }
 0x379   : > { %6366 = vmatpush1.bf16.msra.mxu0 %v17403_v26  ;;  %6578 = vmatpush1.bf16.msra.mxu1 %v17406_v34  ;;  %v17460_v26 = vld [vmem:[%s19595_s27 + $0x1448] ss:$16 sps:$4 sm:$0xff]   ;;  %v17465_v34 = vld [vmem:[%s19595_s27 + $0x1464] ss:$16 sps:$4 sm:$0xff]  }
 0x37a   : > { %6367 = vmatprep.subr.bf16.mxu0 %v17411_v35  ;;  %6579 = vmatprep.subr.bf16.mxu1 %v17414_v43  ;;  %v17468_v35 = vld [vmem:[%s19595_s27 + $0x146c] ss:$16 sps:$4 sm:$0xff]   ;;  %v17466_v43 = vld [vmem:[%s19595_s27 + $0x1468] ss:$16 sps:$4 sm:$0xff]  }
 0x37d   : > { %6368 = vmatpush1.bf16.msra.mxu0 %v17409_v44  ;;  %6580 = vmatpush1.bf16.msra.mxu1 %v17412_v31  ;;  %v17471_v44 = vld [vmem:[%s19595_s27 + $0x1484] ss:$16 sps:$4 sm:$0xff]   ;;  %v17474_v31 = vld [vmem:[%s19595_s27 + $0x148c] ss:$16 sps:$4 sm:$0xff]  }
 0x37e   : > { %6369 = vmatprep.subr.bf16.mxu0 %v17417_v46  ;;  %6581 = vmatprep.subr.bf16.mxu1 %v17420_v57  ;;  %v17472_v46 = vld [vmem:[%s19595_s27 + $0x1488] ss:$16 sps:$4 sm:$0xff]   ;;  %v17477_v57 = vld [vmem:[%s19595_s27 + $0x14a4] ss:$16 sps:$4 sm:$0xff]  }
 0x381   : > { %6370 = vmatpush1.bf16.msra.mxu0 %v17415_v6  ;;  %6582 = vmatpush1.bf16.msra.mxu1 %v17418_v58  ;;  %v17480_v6 = vld [vmem:[%s19595_s27 + $0x14ac] ss:$16 sps:$4 sm:$0xff]   ;;  %v17475_v58 = vld [vmem:[%s19595_s27 + $0x14a0] ss:$16 sps:$4 sm:$0xff]  }
 0x382   : > { %6371 = vmatprep.subr.bf16.mxu0 %v17423_v59  ;;  %6583 = vmatprep.subr.bf16.mxu1 %v17426_v63  ;;  %v17478_v59 = vld [vmem:[%s19595_s27 + $0x14a8] ss:$16 sps:$4 sm:$0xff]   ;;  %v17486_v63 = vld [vmem:[%s19595_s27 + $0x14cc] ss:$16 sps:$4 sm:$0xff]  }
 0x385   : > { %6372 = vmatpush1.bf16.msra.mxu0 %v17421_v29  ;;  %6584 = vmatpush1.bf16.msra.mxu1 %v17424_v0  ;;  %v17481_v29 = vld [vmem:[%s19595_s27 + $0x14c0] ss:$16 sps:$4 sm:$0xff]   ;;  %v17484_v0 = vld [vmem:[%s19595_s27 + $0x14c8] ss:$16 sps:$4 sm:$0xff]  }
 0x386   : > { %6373 = vmatprep.subr.bf16.mxu0 %v17429_v52  ;;  %6585 = vmatprep.subr.bf16.mxu1 %v17432_v53  ;;  %v17489_v52 = vld [vmem:[%s19595_s27 + $0x14e4] ss:$16 sps:$4 sm:$0xff]   ;;  %v17492_v53 = vld [vmem:[%s19595_s27 + $0x14ec] ss:$16 sps:$4 sm:$0xff]  }
 0x389   : > { %6374 = vmatpush1.bf16.msra.mxu0 %v17427_v32  ;;  %6586 = vmatpush1.bf16.msra.mxu1 %v17430_v4  ;;  %v17487_v32 = vld [vmem:[%s19595_s27 + $0x14e0] ss:$16 sps:$4 sm:$0xff]   ;;  %v17490_v4 = vld [vmem:[%s19595_s27 + $0x14e8] ss:$16 sps:$4 sm:$0xff]  }
 0x38a   : > { %6375 = vmatprep.subr.bf16.mxu0 %v17435_v5  ;;  %6587 = vmatprep.subr.bf16.mxu1 %v17438_v8  ;;  %v17495_v5 = vld [vmem:[%s19595_s27 + $0x1504] ss:$16 sps:$4 sm:$0xff]   ;;  %v17498_v8 = vld [vmem:[%s19595_s27 + $0x150c] ss:$16 sps:$4 sm:$0xff]  }
 0x38d   : > { %6376 = vmatpush1.bf16.msra.mxu0 %v17433_v9  ;;  %6588 = vmatpush1.bf16.msra.mxu1 %v17436_v10  ;;  %v17493_v9 = vld [vmem:[%s19595_s27 + $0x1500] ss:$16 sps:$4 sm:$0xff]   ;;  %v17496_v10 = vld [vmem:[%s19595_s27 + $0x1508] ss:$16 sps:$4 sm:$0xff]  }
 0x38e   : > { %6377 = vmatprep.subr.bf16.mxu0 %v17441_v39  ;;  %6589 = vmatprep.subr.bf16.mxu1 %v17444_v11  ;;  %v17501_v39 = vld [vmem:[%s19595_s27 + $0x1524] ss:$16 sps:$4 sm:$0xff]   ;;  %v17504_v11 = vld [vmem:[%s19595_s27 + $0x152c] ss:$16 sps:$4 sm:$0xff]  }
 0x391   : > { %6378 = vmatpush1.bf16.msra.mxu0 %v17439_v12  ;;  %6590 = vmatpush1.bf16.msra.mxu1 %v17442_v13  ;;  %v17499_v12 = vld [vmem:[%s19595_s27 + $0x1520] ss:$16 sps:$4 sm:$0xff]   ;;  %v17502_v13 = vld [vmem:[%s19595_s27 + $0x1528] ss:$16 sps:$4 sm:$0xff]  }
 0x392   : > { %6400 = vmatprep.subr.bf16.mxu0 %v17447_v51  ;;  %6612 = vmatprep.subr.bf16.mxu1 %v17450_v14  ;;  %v17507_v51 = vld [vmem:[%s19595_s27 + $0x1544] ss:$16 sps:$4 sm:$0xff]   ;;  %v17510_v14 = vld [vmem:[%s19595_s27 + $0x154c] ss:$16 sps:$4 sm:$0xff]  }
 0x394   : > { %6380 = vmatmul.mubr.bf16.vlgmr.msra.gmra.mrb[16].mxu0 %v19774_v18  ;;  %6592 = vmatmul.mubr.bf16.vlgmr.msra.gmra.mrb[16].mxu1 %v19774_v18  ;;  %v17457_v18 = vld [vmem:[%s19595_s27 + $0x1440] ss:$16 sps:$4 sm:$0xff]  }
 0x395   : > { %6401 = vmatpush1.bf16.msra.mxu0 %v17445_v15  ;;  %6613 = vmatpush1.bf16.msra.mxu1 %v17448_v16  ;;  %v17505_v15 = vld [vmem:[%s19595_s27 + $0x1540] ss:$16 sps:$4 sm:$0xff]   ;;  %v17508_v16 = vld [vmem:[%s19595_s27 + $0x1548] ss:$16 sps:$4 sm:$0xff]  }
 0x396   : > { %6402 = vmatprep.subr.bf16.mxu0 %v17453_v17  ;;  %6614 = vmatprep.subr.bf16.mxu1 %v17456_v19  ;;  %v17513_v17 = vld [vmem:[%s19595_s27 + $0x1564] ss:$16 sps:$4 sm:$0xff]   ;;  %v17516_v19 = vld [vmem:[%s19595_s27 + $0x156c] ss:$16 sps:$4 sm:$0xff]  }
 0x397   : > { %6389 = vmatprep.mubr.bf16.mxu0 %v19778_v23  ;;  %6601 = vmatprep.mubr.bf16.mxu1 %v19778_v23  ;;  %v17463_v23 = vld [vmem:[%s19595_s27 + $0x1460] ss:$16 sps:$4 sm:$0xff]  }
 0x399   : > { %6403 = vmatpush1.bf16.msra.mxu0 %v17451_v20  ;;  %6615 = vmatpush1.bf16.msra.mxu1 %v17454_v21  ;;  %v17511_v20 = vld [vmem:[%s19595_s27 + $0x1560] ss:$16 sps:$4 sm:$0xff]   ;;  %v17514_v21 = vld [vmem:[%s19595_s27 + $0x1568] ss:$16 sps:$4 sm:$0xff]  }
 0x39a   : > { %6404 = vmatprep.subr.bf16.mxu0 %v17459_v24  ;;  %6616 = vmatprep.subr.bf16.mxu1 %v17462_v25  ;;  %v17519_v24 = vld [vmem:[%s19595_s27 + $0x1584] ss:$16 sps:$4 sm:$0xff]   ;;  %v17522_v25 = vld [vmem:[%s19595_s27 + $0x158c] ss:$16 sps:$4 sm:$0xff]  }
 0x39c   : > { %6390 = vmatmul.mubr.bf16.gmra.mrb[20].mxu0 %v19790_v30  ;;  %6602 = vmatmul.mubr.bf16.gmra.mrb[20].mxu1 %v19790_v30  ;;  %v17469_v30 = vld [vmem:[%s19595_s27 + $0x1480] ss:$16 sps:$4 sm:$0xff]  }
 0x39d   : > { %6405 = vmatpush1.bf16.msra.mxu0 %v17457_v18  ;;  %6617 = vmatpush1.bf16.msra.mxu1 %v17460_v26  ;;  %v17517_v18 = vld [vmem:[%s19595_s27 + $0x1580] ss:$16 sps:$4 sm:$0xff]   ;;  %v17520_v26 = vld [vmem:[%s19595_s27 + $0x1588] ss:$16 sps:$4 sm:$0xff]  }
 0x39e   : > { %6406 = vmatprep.subr.bf16.mxu0 %v17465_v34  ;;  %6618 = vmatprep.subr.bf16.mxu1 %v17468_v35  ;;  %v17525_v34 = vld [vmem:[%s19595_s27 + $0x15a4] ss:$16 sps:$4 sm:$0xff]   ;;  %v17528_v35 = vld [vmem:[%s19595_s27 + $0x15ac] ss:$16 sps:$4 sm:$0xff]  }
 0x39f   : > { %6432 = vmatprep.mubr.bf16.mxu0 %v19800_v37  ;;  %6644 = vmatprep.mubr.bf16.mxu1 %v19800_v37  ;;  %v17483_v37 = vld [vmem:[%s19595_s27 + $0x14c4] ss:$16 sps:$4 sm:$0xff]  }
 0x3a1   : > { %6407 = vmatpush1.bf16.msra.mxu0 %v17463_v23  ;;  %6619 = vmatpush1.bf16.msra.mxu1 %v17466_v43  ;;  %v17523_v23 = vld [vmem:[%s19595_s27 + $0x15a0] ss:$16 sps:$4 sm:$0xff]   ;;  %v17526_v43 = vld [vmem:[%s19595_s27 + $0x15a8] ss:$16 sps:$4 sm:$0xff]  }
 0x3a2   : > { %6408 = vmatprep.subr.bf16.mxu0 %v17471_v44  ;;  %6620 = vmatprep.subr.bf16.mxu1 %v17474_v31  ;;  %v17531_v44 = vld [vmem:[%s19595_s27 + $0x15c4] ss:$16 sps:$4 sm:$0xff]   ;;  %v17534_v31 = vld [vmem:[%s19595_s27 + $0x15cc] ss:$16 sps:$4 sm:$0xff]  }
 0x3a5   : > { %6409 = vmatpush1.bf16.msra.mxu0 %v17469_v30  ;;  %6621 = vmatpush1.bf16.msra.mxu1 %v17472_v46  ;;  %v17529_v30 = vld [vmem:[%s19595_s27 + $0x15c0] ss:$16 sps:$4 sm:$0xff]   ;;  %v17532_v46 = vld [vmem:[%s19595_s27 + $0x15c8] ss:$16 sps:$4 sm:$0xff]  }
 0x3a6   : > { %6410 = vmatprep.subr.bf16.mxu0 %v17477_v57  ;;  %6622 = vmatprep.subr.bf16.mxu1 %v17480_v6  ;;  %v17537_v57 = vld [vmem:[%s19595_s27 + $0x15e4] ss:$16 sps:$4 sm:$0xff]   ;;  %v17540_v6 = vld [vmem:[%s19595_s27 + $0x15ec] ss:$16 sps:$4 sm:$0xff]  }
 0x3a9   : > { %6411 = vmatpush1.bf16.msra.mxu0 %v17475_v58  ;;  %6623 = vmatpush1.bf16.msra.mxu1 %v17478_v59  ;;  %v17535_v58 = vld [vmem:[%s19595_s27 + $0x15e0] ss:$16 sps:$4 sm:$0xff]   ;;  %v17538_v59 = vld [vmem:[%s19595_s27 + $0x15e8] ss:$16 sps:$4 sm:$0xff]  }
 0x3aa   : > { %6412 = vmatprep.subr.bf16.mxu0 %v17483_v37  ;;  %6624 = vmatprep.subr.bf16.mxu1 %v17486_v63  ;;  %v17543_v37 = vld [vmem:[%s19595_s27 + $0x1604] ss:$16 sps:$4 sm:$0xff]   ;;  %v17546_v63 = vld [vmem:[%s19595_s27 + $0x160c] ss:$16 sps:$4 sm:$0xff]  }
 0x3ad   : > { %6413 = vmatpush1.bf16.msra.mxu0 %v17481_v29  ;;  %6625 = vmatpush1.bf16.msra.mxu1 %v17484_v0  ;;  %v17541_v29 = vld [vmem:[%s19595_s27 + $0x1600] ss:$16 sps:$4 sm:$0xff]   ;;  %v17544_v0 = vld [vmem:[%s19595_s27 + $0x1608] ss:$16 sps:$4 sm:$0xff]  }
 0x3ae   : > { %6414 = vmatprep.subr.bf16.mxu0 %v17489_v52  ;;  %6626 = vmatprep.subr.bf16.mxu1 %v17492_v53  ;;  %v17549_v52 = vld [vmem:[%s19595_s27 + $0x1624] ss:$16 sps:$4 sm:$0xff]   ;;  %v17552_v53 = vld [vmem:[%s19595_s27 + $0x162c] ss:$16 sps:$4 sm:$0xff]  }
 0x3b1   : > { %6415 = vmatpush1.bf16.msra.mxu0 %v17487_v32  ;;  %6627 = vmatpush1.bf16.msra.mxu1 %v17490_v4  ;;  %v17547_v32 = vld [vmem:[%s19595_s27 + $0x1620] ss:$16 sps:$4 sm:$0xff]   ;;  %v17550_v4 = vld [vmem:[%s19595_s27 + $0x1628] ss:$16 sps:$4 sm:$0xff]  }
 0x3b2   : > { %6416 = vmatprep.subr.bf16.mxu0 %v17495_v5  ;;  %6628 = vmatprep.subr.bf16.mxu1 %v17498_v8  ;;  %v17555_v5 = vld [vmem:[%s19595_s27 + $0x1644] ss:$16 sps:$4 sm:$0xff]   ;;  %v17558_v8 = vld [vmem:[%s19595_s27 + $0x164c] ss:$16 sps:$4 sm:$0xff]  }
 0x3b5   : > { %6417 = vmatpush1.bf16.msra.mxu0 %v17493_v9  ;;  %6629 = vmatpush1.bf16.msra.mxu1 %v17496_v10  ;;  %v17556_v9 = vld [vmem:[%s19595_s27 + $0x1648] ss:$16 sps:$4 sm:$0xff]   ;;  %v17561_v10 = vld [vmem:[%s19595_s27 + $0x1664] ss:$16 sps:$4 sm:$0xff]  }
 0x3b6   : > { %6418 = vmatprep.subr.bf16.mxu0 %v17501_v39  ;;  %6630 = vmatprep.subr.bf16.mxu1 %v17504_v11  ;;  %v17564_v39 = vld [vmem:[%s19595_s27 + $0x166c] ss:$16 sps:$4 sm:$0xff]   ;;  %v623_v11 = vand.u32 15, %v20198_v22 }
 0x3b8   : > { %vm667_vm1 = vcmp.ne.s32.totalorder %v623_v11, 0 }
 0x3b9   : > { %6419 = vmatpush1.bf16.msra.mxu0 %v17499_v12  ;;  %6631 = vmatpush1.bf16.msra.mxu1 %v17502_v13  ;;  %v17562_v12 = vld [vmem:[%s19595_s27 + $0x1668] ss:$16 sps:$4 sm:$0xff]   ;;  %v17567_v13 = vld [vmem:[%s19595_s27 + $0x1684] ss:$16 sps:$4 sm:$0xff]  }
 0x3ba   : > { %6420 = vmatprep.subr.bf16.mxu0 %v17507_v51  ;;  %6632 = vmatprep.subr.bf16.mxu1 %v17510_v14  ;;  %v17570_v51 = vld [vmem:[%s19595_s27 + $0x168c] ss:$16 sps:$4 sm:$0xff]   ;;  %v17565_v14 = vld [vmem:[%s19595_s27 + $0x1680] ss:$16 sps:$4 sm:$0xff]  }
 0x3bd   : > { %6421 = vmatpush1.bf16.msra.mxu0 %v17505_v15  ;;  %6633 = vmatpush1.bf16.msra.mxu1 %v17508_v16  ;;  %v17568_v15 = vld [vmem:[%s19595_s27 + $0x1688] ss:$16 sps:$4 sm:$0xff]   ;;  %v17573_v16 = vld [vmem:[%s19595_s27 + $0x16a4] ss:$16 sps:$4 sm:$0xff]  }
 0x3be   : > { %6422 = vmatprep.subr.bf16.mxu0 %v17513_v17  ;;  %6634 = vmatprep.subr.bf16.mxu1 %v17516_v19  ;;  %v17576_v17 = vld [vmem:[%s19595_s27 + $0x16ac] ss:$16 sps:$4 sm:$0xff]   ;;  %v19200_v19 = vmov 0.0  }
 0x3c1   : > { %6423 = vmatpush1.bf16.msra.mxu0 %v17511_v20  ;;  %6635 = vmatpush1.bf16.msra.mxu1 %v17514_v21  ;;  %v20568_v20 = vsel %vm667_vm1, 1.0, %v19200_v19  ;;  %v17571_v21 = vld [vmem:[%s19595_s27 + $0x16a0] ss:$16 sps:$4 sm:$0xff]  }
 0x3c2   : > { %6424 = vmatprep.subr.bf16.mxu0 %v17519_v24  ;;  %6636 = vmatprep.subr.bf16.mxu1 %v17522_v25  ;;  %v17574_v24 = vld [vmem:[%s19595_s27 + $0x16a8] ss:$16 sps:$4 sm:$0xff]   ;;  %v3037_v25 = vmul.f32 %v20568_v20, %v20255_v36 }
 0x3c5   : > { %6425 = vmatpush1.bf16.msra.mxu0 %v17517_v18  ;;  %6637 = vmatpush1.bf16.msra.mxu1 %v17520_v26  ;;  %v3039_v18 = vmul.f32 %v20568_v20, %v20259_v38  ;;  %v17579_v26 = vld [vmem:[%s19595_s27 + $0x16c4] ss:$16 sps:$4 sm:$0xff]  }
 0x3c6   : > { %6426 = vmatprep.subr.bf16.mxu0 %v17525_v34  ;;  %6638 = vmatprep.subr.bf16.mxu1 %v17528_v35  ;;  %v17582_v34 = vld [vmem:[%s19595_s27 + $0x16cc] ss:$16 sps:$4 sm:$0xff]  }
 0x3c9   : > { %6427 = vmatpush1.bf16.msra.mxu0 %v17523_v23  ;;  %6639 = vmatpush1.bf16.msra.mxu1 %v17526_v43  ;;  %v3038_v43 = vmul.f32 %v20568_v20, %v20273_v28 }
 0x3ca   : > { %6428 = vmatprep.subr.bf16.mxu0 %v17531_v44  ;;  %6640 = vmatprep.subr.bf16.mxu1 %v17534_v31  ;;  %v3040_v44 = vmul.f32 %v20568_v20, %v20279_v47  ;;  %v17577_v47 = vld [vmem:[%s19595_s27 + $0x16c0] ss:$16 sps:$4 sm:$0xff]  }
 0x3cd   : > { %6429 = vmatpush1.bf16.msra.mxu0 %v17529_v30  ;;  %6641 = vmatpush1.bf16.msra.mxu1 %v17532_v46  ;;  %v17613_v46 = vld [vmem:[%s19595_s27 + $0x1780] ss:$16 sps:$4 sm:$0xff]  }
 0x3ce   : > { %6430 = vmatprep.subr.bf16.mxu0 %v17537_v57  ;;  %6642 = vmatprep.subr.bf16.mxu1 %v17540_v6 }
 0x3d1   : > { %6431 = vmatpush1.bf16.msra.mxu0 %v17535_v58  ;;  %6643 = vmatpush1.bf16.msra.mxu1 %v17538_v59  ;;  %v17580_v59 = vld [vmem:[%s19595_s27 + $0x16c8] ss:$16 sps:$4 sm:$0xff]  }
 0x3d2   : > { %6453 = vmatprep.subr.bf16.mxu0 %v17543_v37  ;;  %6665 = vmatprep.subr.bf16.mxu1 %v17546_v63 }
 0x3d4   : > { %6433 = vmatmul.mubr.bf16.vlgmr.msra.gmra.mrb[16].mxu0 %v19862_v40  ;;  %6645 = vmatmul.mubr.bf16.vlgmr.msra.gmra.mrb[16].mxu1 %v19862_v40  ;;  %v17553_v40 = vld [vmem:[%s19595_s27 + $0x1640] ss:$16 sps:$4 sm:$0xff]  }
 0x3d5   : > { %6454 = vmatpush1.bf16.msra.mxu0 %v17541_v29  ;;  %6666 = vmatpush1.bf16.msra.mxu1 %v17544_v0 }
 0x3d6   : > { %6455 = vmatprep.subr.bf16.mxu0 %v17549_v52  ;;  %6667 = vmatprep.subr.bf16.mxu1 %v17552_v53  ;;  %v17585_v52 = vld [vmem:[%s19595_s27 + $0x16e4] ss:$16 sps:$4 sm:$0xff]   ;;  %v17588_v53 = vld [vmem:[%s19595_s27 + $0x16ec] ss:$16 sps:$4 sm:$0xff]  }
 0x3d7   : > { %6442 = vmatprep.mubr.bf16.mxu0 %v19866_v45  ;;  %6654 = vmatprep.mubr.bf16.mxu1 %v19866_v45  ;;  %v17559_v45 = vld [vmem:[%s19595_s27 + $0x1660] ss:$16 sps:$4 sm:$0xff]  }
 0x3d9   : > { %6456 = vmatpush1.bf16.msra.mxu0 %v17547_v32  ;;  %6668 = vmatpush1.bf16.msra.mxu1 %v17550_v4 }
 0x3da   : > { %6457 = vmatprep.subr.bf16.mxu0 %v17555_v5  ;;  %6669 = vmatprep.subr.bf16.mxu1 %v17558_v8  ;;  %v17586_v5 = vld [vmem:[%s19595_s27 + $0x16e8] ss:$16 sps:$4 sm:$0xff]  }
 0x3dc   : > { %6443 = vmatmul.mubr.bf16.gmra.mrb[20].mxu0 %v19878_v50  ;;  %6655 = vmatmul.mubr.bf16.gmra.mrb[20].mxu1 %v19878_v50  ;;  %v617_v50 = vadd.s32 16, %v20198_v22 }
 0x3dd   : > { %6458 = vmatpush1.bf16.msra.mxu0 %v17553_v40  ;;  %6670 = vmatpush1.bf16.msra.mxu1 %v17556_v9 }
 0x3de   : > { %6459 = vmatprep.subr.bf16.mxu0 %v17561_v10  ;;  %6671 = vmatprep.subr.bf16.mxu1 %v17564_v39 }
 0x3df   : > { %6485 = vmatprep.mubr.bf16.mxu0 %v19888_v56  ;;  %6697 = vmatprep.mubr.bf16.mxu1 %v19888_v56  ;;  %v637_v56 = vand.u32 15, %v617_v50 }
 0x3e1   : > { %6460 = vmatpush1.bf16.msra.mxu0 %v17559_v45  ;;  %6672 = vmatpush1.bf16.msra.mxu1 %v17562_v12  ;;  %vm20586_vm2 = vcmp.ne.s32.totalorder %v637_v56, 0 }
 0x3e2   : > { %6461 = vmatprep.subr.bf16.mxu0 %v17567_v13  ;;  %6673 = vmatprep.subr.bf16.mxu1 %v17570_v51 }
 0x3e5   : > { %6462 = vmatpush1.bf16.msra.mxu0 %v17565_v14  ;;  %6674 = vmatpush1.bf16.msra.mxu1 %v17568_v15 }
 0x3e6   : > { %6463 = vmatprep.subr.bf16.mxu0 %v17573_v16  ;;  %6675 = vmatprep.subr.bf16.mxu1 %v17576_v17 }
 0x3e7   : > { %v4526_v35 = vpop.f32.mrb[8].mxu0  ;;  %v4738_v23 = vpop.f32.mrb[8].mxu1 }
 0x3e8   : > { %v20582_v31 = vadd.f32 %v4526_v35, %v3037_v25  ;;  %v20584_v36 = vadd.f32 %v4738_v23, %v3039_v18  ;;  %v4528_v30 = vpop.f32.mrb[9].mxu0  ;;  %v4740_v38 = vpop.f32.mrb[9].mxu1  ;;  %v17598_v18 = vld [vmem:[%s19595_s27 + $0x1728] ss:$16 sps:$4 sm:$0xff]   ;;  %v17612_v23 = vld [vmem:[%s19595_s27 + $0x176c] ss:$16 sps:$4 sm:$0xff]  }
 0x3e9   : > { %v20590_v57 = vadd.f32 %v4528_v30, %v3038_v43  ;;  %v20592_v6 = vadd.f32 %v4740_v38, %v3040_v44  ;;  %v4530_v28 = vpop.f32.mrb[10].mxu0  ;;  %v4742_v58 = vpop.f32.mrb[10].mxu1  ;;  %6464 = vmatpush1.bf16.msra.mxu0 %v17571_v21  ;;  %6676 = vmatpush1.bf16.msra.mxu1 %v17574_v24  ;;  %v17597_v21 = vld [vmem:[%s19595_s27 + $0x1724] ss:$16 sps:$4 sm:$0xff]   ;;  %v17600_v24 = vld [vmem:[%s19595_s27 + $0x172c] ss:$16 sps:$4 sm:$0xff]  }
 0x3ea   : > { %v20597_v37 = vadd.f32 %v4530_v28, %v20223_v60  ;;  %v20600_v63 = vadd.f32 %v4742_v58, %v20227_v61  ;;  %v4532_v29 = vpop.f32.mrb[11].mxu0  ;;  %v4744_v0 = vpop.f32.mrb[11].mxu1  ;;  %6465 = vmatprep.subr.bf16.mxu0 %v17579_v26  ;;  %6677 = vmatprep.subr.bf16.mxu1 %v17582_v34  ;;  %v20613_v60 = vsel %vm20586_vm2, 1.0, %v19200_v19  ;;  %v17583_v61 = vld [vmem:[%s19595_s27 + $0x16e0] ss:$16 sps:$4 sm:$0xff]  }
 0x3eb   : > { %v20605_v32 = vadd.f32 %v4532_v29, %v20233_v1  ;;  %v20608_v4 = vadd.f32 %v4744_v0, %v20237_v2  ;;  %v3045_v8 = vmul.f32 %v20613_v60, %v20247_v27  ;;  %v3047_v40 = vmul.f32 %v20613_v60, %v20251_v33  ;;  %v17591_v1 = vld [vmem:[%s19595_s27 + $0x1704] ss:$16 sps:$4 sm:$0xff]   ;;  %v17594_v2 = vld [vmem:[%s19595_s27 + $0x170c] ss:$16 sps:$4 sm:$0xff]   ;;  %v17604_v35 = vld [vmem:[%s19595_s27 + $0x1748] ss:$16 sps:$4 sm:$0xff]  }
 0x3ec   : > { %v3046_v39 = vmul.f32 %v20613_v60, %v20263_v41  ;;  %v3048_v11 = vmul.f32 %v20613_v60, %v20267_v42  ;;  %v17589_v41 = vld [vmem:[%s19595_s27 + $0x1700] ss:$16 sps:$4 sm:$0xff]   ;;  %v17592_v42 = vld [vmem:[%s19595_s27 + $0x1708] ss:$16 sps:$4 sm:$0xff]   ;;  %v17603_v26 = vld [vmem:[%s19595_s27 + $0x1744] ss:$16 sps:$4 sm:$0xff]  }
 0x3ed   : > { %6466 = vmatpush1.bf16.msra.mxu0 %v17577_v47  ;;  %6678 = vmatpush1.bf16.msra.mxu1 %v17580_v59  ;;  %v17606_v34 = vld [vmem:[%s19595_s27 + $0x174c] ss:$16 sps:$4 sm:$0xff]   ;;  %v17607_v43 = vld [vmem:[%s19595_s27 + $0x1760] ss:$16 sps:$4 sm:$0xff]   ;;  %v17610_v44 = vld [vmem:[%s19595_s27 + $0x1768] ss:$16 sps:$4 sm:$0xff]  }
 0x3ee   : > { %6467 = vmatprep.subr.bf16.mxu0 %v17585_v52  ;;  %6679 = vmatprep.subr.bf16.mxu1 %v17588_v53  ;;  %v17615_v30 = vld [vmem:[%s19595_s27 + $0x1784] ss:$16 sps:$4 sm:$0xff]   ;;  %v17618_v38 = vld [vmem:[%s19595_s27 + $0x178c] ss:$16 sps:$4 sm:$0xff]   ;;  %v17616_v28 = vld [vmem:[%s19595_s27 + $0x1788] ss:$16 sps:$4 sm:$0xff]  }
 0x3ef   : > { %v4536_v9 = vpop.f32.mrb[12].mxu0  ;;  %v4748_v10 = vpop.f32.mrb[12].mxu1  ;;  %v17621_v58 = vld [vmem:[%s19595_s27 + $0x17a4] ss:$16 sps:$4 sm:$0xff]   ;;  %v17624_v47 = vld [vmem:[%s19595_s27 + $0x17ac] ss:$16 sps:$4 sm:$0xff]  }
 0x3f0   : > { %v20627_v45 = vadd.f32 %v4536_v9, %v3045_v8  ;;  %v20629_v27 = vadd.f32 %v4748_v10, %v3047_v40  ;;  %v4538_v12 = vpop.f32.mrb[13].mxu0  ;;  %v4750_v33 = vpop.f32.mrb[13].mxu1  ;;  %v17619_v59 = vld [vmem:[%s19595_s27 + $0x17a0] ss:$16 sps:$4 sm:$0xff]   ;;  %v17622_v29 = vld [vmem:[%s19595_s27 + $0x17a8] ss:$16 sps:$4 sm:$0xff]  }
 0x3f1   : > { %v20631_v13 = vadd.f32 %v4538_v12, %v3046_v39  ;;  %v20633_v51 = vadd.f32 %v4750_v33, %v3048_v11  ;;  %v4540_v50 = vpop.f32.mrb[14].mxu0  ;;  %v4752_v14 = vpop.f32.mrb[14].mxu1  ;;  %6468 = vmatpush1.bf16.msra.mxu0 %v17583_v61  ;;  %6680 = vmatpush1.bf16.msra.mxu1 %v17586_v5  ;;  %v17627_v0 = vld [vmem:[%s19595_s27 + $0x17c4] ss:$16 sps:$4 sm:$0xff]   ;;  %v17630_v52 = vld [vmem:[%s19595_s27 + $0x17cc] ss:$16 sps:$4 sm:$0xff]  }
 0x3f2   : > { %v20638_v15 = vadd.f32 %v4540_v50, %v20283_v48  ;;  %v20641_v16 = vadd.f32 %v4752_v14, %v20287_v49  ;;  %v4542_v17 = vpop.f32.mrb[15].mxu0  ;;  %v4754_v56 = vpop.f32.mrb[15].mxu1  ;;  %6469 = vmatprep.subr.bf16.mxu0 %v17591_v1  ;;  %6681 = vmatprep.subr.bf16.mxu1 %v17594_v2  ;;  %v17595_v49 = vld [vmem:[%s19595_s27 + $0x1720] ss:$16 sps:$4 sm:$0xff]   ;;  %v17628_v61 = vld [vmem:[%s19595_s27 + $0x17c8] ss:$16 sps:$4 sm:$0xff]  }
 0x3f3   : > { %v20646_v25 = vadd.f32 %v4542_v17, %v20291_v54  ;;  %v20649_v48 = vadd.f32 %v4754_v56, %v20295_v55  ;;  %v17601_v54 = vld [vmem:[%s19595_s27 + $0x1740] ss:$16 sps:$4 sm:$0xff]   ;;  %v17609_v55 = vld [vmem:[%s19595_s27 + $0x1764] ss:$16 sps:$4 sm:$0xff]   ;;  %v17636_v8 = vld [vmem:[%s19595_s27 + $0x17ec] ss:$16 sps:$4 sm:$0xff]  }
 0x3f4   : > { %v17625_v53 = vld [vmem:[%s19595_s27 + $0x17c0] ss:$16 sps:$4 sm:$0xff]   ;;  %v17633_v5 = vld [vmem:[%s19595_s27 + $0x17e4] ss:$16 sps:$4 sm:$0xff]   ;;  %v17634_v1 = vld [vmem:[%s19595_s27 + $0x17e8] ss:$16 sps:$4 sm:$0xff]  }
 0x3f5   : > { %6470 = vmatpush1.bf16.msra.mxu0 %v17589_v41  ;;  %6682 = vmatpush1.bf16.msra.mxu1 %v17592_v42  ;;  %v17631_v40 = vld [vmem:[%s19595_s27 + $0x17e0] ss:$16 sps:$4 sm:$0xff]   ;;  %v616_v2 = vadd.s32 8, %v20198_v22  ;;  %v618_v9 = vadd.s32 24, %v20198_v22  ;;  %v20686_v10 = vsub.s32 0, %v20198_v22  ;;  %v20689_v39 = vsub.s32 2, %v20198_v22 }
 0x3f6   : > { %6471 = vmatprep.subr.bf16.mxu0 %v17597_v21  ;;  %6683 = vmatprep.subr.bf16.mxu1 %v17600_v24  ;;  %v20695_v11 = vsub.s32 3, %v20198_v22 }
 0x3f7   : > { %v630_v14 = vand.u32 15, %v616_v2  ;;  %v644_v41 = vand.u32 15, %v618_v9 }
 0x3f9   : > { %6472 = vmatpush1.bf16.msra.mxu0 %v17595_v49  ;;  %6684 = vmatpush1.bf16.msra.mxu1 %v17598_v18  ;;  %vm680_vm4 = vcmp.ne.s32.totalorder %v630_v14, 15  ;;  %vm682_vm5 = vcmp.ne.s32.totalorder %v644_v41, 15 }
 0x3fa   : > { %6473 = vmatprep.subr.bf16.mxu0 %v17603_v26  ;;  %6685 = vmatprep.subr.bf16.mxu1 %v17606_v34 }
 0x3fd   : > { %6474 = vmatpush1.bf16.msra.mxu0 %v17601_v54  ;;  %6686 = vmatpush1.bf16.msra.mxu1 %v17604_v35 }
 0x3fe   : > { %6475 = vmatprep.subr.bf16.mxu0 %v17609_v55  ;;  %6687 = vmatprep.subr.bf16.mxu1 %v17612_v23 }
 0x401   : > { %6476 = vmatpush1.bf16.msra.mxu0 %v17607_v43  ;;  %6688 = vmatpush1.bf16.msra.mxu1 %v17610_v44 }
 0x402   : > { %6477 = vmatprep.subr.bf16.mxu0 %v17615_v30  ;;  %6689 = vmatprep.subr.bf16.mxu1 %v17618_v38 }
 0x405   : > { %6478 = vmatpush1.bf16.msra.mxu0 %v17613_v46  ;;  %6690 = vmatpush1.bf16.msra.mxu1 %v17616_v28 }
 0x406   : > { %6479 = vmatprep.subr.bf16.mxu0 %v17621_v58  ;;  %6691 = vmatprep.subr.bf16.mxu1 %v17624_v47 }
 0x409   : > { %6480 = vmatpush1.bf16.msra.mxu0 %v17619_v59  ;;  %6692 = vmatpush1.bf16.msra.mxu1 %v17622_v29 }
 0x40a   : > { %6481 = vmatprep.subr.bf16.mxu0 %v17627_v0  ;;  %6693 = vmatprep.subr.bf16.mxu1 %v17630_v52 }
 0x40d   : > { %6482 = vmatpush1.bf16.msra.mxu0 %v17625_v53  ;;  %6694 = vmatpush1.bf16.msra.mxu1 %v17628_v61 }
 0x40e   : > { %6483 = vmatprep.subr.bf16.mxu0 %v17633_v5  ;;  %6695 = vmatprep.subr.bf16.mxu1 %v17636_v8  ;;  %v20757_v5 = vsel %vm682_vm5, 1.0, %v19200_v19 }
 0x411   : > { %6484 = vmatpush1.bf16.msra.mxu0 %v17631_v40  ;;  %6696 = vmatpush1.bf16.msra.mxu1 %v17634_v1 }
 0x414   : > { %6486 = vmatmul.mubr.bf16.vlgmr.msra.gmra.mrb[16].mxu0 %v19950_v62  ;;  %6698 = vmatmul.mubr.bf16.vlgmr.msra.gmra.mrb[16].mxu1 %v19950_v62  ;;  %v20692_v62 = vsub.s32 1, %v20198_v22 }
 0x415   : > { %6495 = vmatprep.mubr.bf16.mxu0 %v19954_v3  ;;  %6707 = vmatprep.mubr.bf16.mxu1 %v19954_v3  ;;  %v6783_v3 = vld [vmem:[%s19597_s16] sm:$0xf] }
 0x416   : > { %v20708_v17 = vrot.slane %v6783_v3, %v20686_v10  ;;  %v20711_v21 = vrot.slane %v6783_v3, %v20689_v39  ;;  %v20714_v24 = vrot.slane %v6783_v3, %v20692_v62  ;;  %v20717_v49 = vrot.slane %v6783_v3, %v20695_v11 }
 0x41c   : > { %6496 = vmatmul.mubr.bf16.gmra.mrb[20].mxu0 %v19964_v7  ;;  %6708 = vmatmul.mubr.bf16.gmra.mrb[20].mxu1 %v19964_v7 }
 0x4e7   : > { %v20698_v12 = vpop.f32.mrb[16].mxu0  ;;  %v20700_v7 = vpop.f32.mrb[16].mxu1 }
 0x4e8   : > { %v20702_v33 = vpop.f32.mrb[17].mxu0  ;;  %v20704_v50 = vpop.f32.mrb[17].mxu1  ;;  %v6718_v18 = vrot.slane %v20698_v12, 1  ;;  %v6720_v26 = vrot.slane %v20700_v7, 1 }
 0x4e9   : > { %v6491_v42 = vpop.f32.mrb[18].mxu0  ;;  %v6703_v56 = vpop.f32.mrb[18].mxu1  ;;  %v6719_v23 = vrot.slane %v20702_v33, 1  ;;  %v6721_v43 = vrot.slane %v20704_v50, 1 }
 0x4ea   : > { %v6722_v34 = vrot.slane %v6491_v42, 1  ;;  %v6724_v54 = vrot.slane %v6703_v56, 1  ;;  %v20721_v35 = vpop.f32.mrb[19].mxu0  ;;  %v20723_v55 = vpop.f32.mrb[19].mxu1 }
 0x4eb   : > { %v6723_v44 = vrot.slane %v20721_v35, 1  ;;  %v6725_v30 = vrot.slane %v20723_v55, 1 }
 0x4ec   : > { %v6743_v38 = vsel %vm6734_vm3, %v6718_v18, %v6722_v34  ;;  %v6745_v46 = vsel %vm6734_vm3, %v6720_v26, %v6724_v54 }
 0x4ed   : > { %v6767_v28 = vadd.f32 %v20582_v31, %v6743_v38  ;;  %v6769_v58 = vadd.f32 %v20584_v36, %v6745_v46  ;;  %v6744_v47 = vsel %vm6734_vm3, %v6719_v23, %v6723_v44  ;;  %v6746_v59 = vsel %vm6734_vm3, %v6721_v43, %v6725_v30 }
 0x4ee   : > { %v6768_v29 = vadd.f32 %v20590_v57, %v6744_v47  ;;  %v6770_v0 = vadd.f32 %v20592_v6, %v6746_v59  ;;  %v20752_v36 = vsel %vm680_vm4, 1.0, %v19200_v19 }
 0x4ef   : > { %v6805_v52 = vadd.f32 %v20708_v17, %v6767_v28  ;;  %v6807_v31 = vadd.f32 %v20711_v21, %v6769_v58  ;;  %v6497_v53 = vpop.f32.mrb[20].mxu0  ;;  %v20754_v61 = vpop.f32.mrb[20].mxu1 }
 0x4f0   : > { %v6806_v8 = vadd.f32 %v20714_v24, %v6768_v29  ;;  %v6808_v40 = vadd.f32 %v20717_v49, %v6770_v0  ;;  %v6726_v57 = vrot.slane %v6497_v53, 1  ;;  %v6728_v6 = vrot.slane %v20754_v61, 1  ;;  %v20762_v1 = vpop.f32.mrb[21].mxu0  ;;  %v20764_v2 = vpop.f32.mrb[21].mxu1 }
 0x4f1   : > { %vm6821_vm6 = vcmp.ge.f32.partialorder %v6805_v52, 0.0  ;;  %v6837_v9 = vmul.f32 0.2, %v6805_v52  ;;  %vm6823_vm7 = vcmp.ge.f32.partialorder %v6807_v31, 0.0  ;;  %v6839_v3 = vmul.f32 0.2, %v6807_v31 }
 0x4f2   : > { %vm6822_vm8 = vcmp.ge.f32.partialorder %v6806_v8, 0.0  ;;  %v6838_v14 = vmul.f32 0.2, %v6806_v8  ;;  %vm6824_vm9 = vcmp.ge.f32.partialorder %v6808_v40, 0.0  ;;  %v6840_v19 = vmul.f32 0.2, %v6808_v40 }
 0x4f3   : > { %v6853_v41 = vsel %vm6821_vm6, %v6805_v52, %v6837_v9  ;;  %v6855_v42 = vsel %vm6823_vm7, %v6807_v31, %v6839_v3  ;;  %v6739_v56 = vsel %vm6734_vm3, %v6722_v34, %v6726_v57  ;;  %v6741_v35 = vsel %vm6734_vm3, %v6724_v54, %v6728_v6  ;;  %v6501_v55 = vpop.f32.mrb[22].mxu0  ;;  %v20772_v38 = vpop.f32.mrb[22].mxu1 }
 0x4f4   : > { %v6869_v46 = vsub.f32 0.0, %v6853_v41  ;;  %v6871_v28 = vsub.f32 0.0, %v6855_v42  ;;  %v6854_v58 = vsel %vm6822_vm8, %v6806_v8, %v6838_v14  ;;  %v6856_v47 = vsel %vm6824_vm9, %v6808_v40, %v6840_v19  ;;  %v20774_v59 = vpop.f32.mrb[23].mxu0  ;;  %v20776_v29 = vpop.f32.mrb[23].mxu1 }
 0x4f5   : > { %v6870_v0 = vsub.f32 0.0, %v6854_v58  ;;  %v6872_v52 = vsub.f32 0.0, %v6856_v47  ;;  %v6755_v34 = vmul.f32 %v20752_v36, %v6739_v56  ;;  %v6757_v31 = vmul.f32 %v20752_v36, %v6741_v35 }
 0x4f6   : > { %v6885_v53 = vmul.f32 1.442695, %v6869_v46  ;;  %v6889_v9 = vmul.f32 1.442695, %v6871_v28  ;;  %v6727_v54 = vrot.slane %v20762_v1, 1  ;;  %v6729_v3 = vrot.slane %v20764_v2, 1 }
 0x4f7   : > { %v6887_v41 = vmul.f32 1.442695, %v6870_v0  ;;  %v6891_v42 = vmul.f32 1.442695, %v6872_v52  ;;  %v6771_v8 = vadd.f32 %v20597_v37, %v6755_v34  ;;  %v6773_v40 = vadd.f32 %v20600_v63, %v6757_v31 }
 0x4f8   : > { %17637 = vpow2.f32 %v6885_v53  ;;  %v6740_v14 = vsel %vm6734_vm3, %v6723_v44, %v6727_v54  ;;  %v6742_v19 = vsel %vm6734_vm3, %v6725_v30, %v6729_v3  ;;  %v6730_v56 = vrot.slane %v6501_v55, 1 }
 0x4f9   : > { %17639 = vpow2.f32 %v6889_v9  ;;  %v6809_v35 = vadd.f32 %v20708_v17, %v6771_v8  ;;  %v6811_v46 = vadd.f32 %v20711_v21, %v6773_v40  ;;  %v6756_v37 = vmul.f32 %v20752_v36, %v6740_v14 }
 0x4fa   : > { %17641 = vpow2.f32 %v6887_v41  ;;  %v6758_v63 = vmul.f32 %v20752_v36, %v6742_v19  ;;  %v6735_v28 = vsel %vm6734_vm3, %v6726_v57, %v6730_v56  ;;  %v6747_v44 = vsel %vm6734_vm3, %v6730_v56, %v6718_v18 }
 0x4fb   : > { %17643 = vpow2.f32 %v6891_v42  ;;  %vm6825_vm10 = vcmp.ge.f32.partialorder %v6809_v35, 0.0  ;;  %v6841_v30 = vmul.f32 0.2, %v6809_v35  ;;  %vm6827_vm11 = vcmp.ge.f32.partialorder %v6811_v46, 0.0 }
 0x4fc   : > { %v6843_v55 = vmul.f32 0.2, %v6811_v46  ;;  %v6772_v58 = vadd.f32 %v20605_v32, %v6756_v37  ;;  %v6774_v47 = vadd.f32 %v20608_v4, %v6758_v63  ;;  %v6763_v0 = vmul.f32 %v20757_v5, %v6747_v44 }
 0x4fd   : > { %v6857_v52 = vsel %vm6825_vm10, %v6809_v35, %v6841_v30  ;;  %v6775_v34 = vadd.f32 %v20627_v45, %v6735_v28  ;;  %v6732_v57 = vrot.slane %v20772_v38, 1  ;;  %v6731_v12 = vrot.slane %v20774_v59, 1 }
 0x4fe   : > { %v6873_v31 = vsub.f32 0.0, %v6857_v52  ;;  %v6859_v18 = vsel %vm6827_vm11, %v6811_v46, %v6843_v55  ;;  %v6810_v53 = vadd.f32 %v20714_v24, %v6772_v58  ;;  %v6812_v9 = vadd.f32 %v20717_v49, %v6774_v47 }
 0x4ff   : > { %v6875_v41 = vsub.f32 0.0, %v6859_v18  ;;  %v6779_v32 = vadd.f32 %v20638_v15, %v6763_v0  ;;  %v6813_v4 = vadd.f32 %v20708_v17, %v6775_v34  ;;  %v6737_v45 = vsel %vm6734_vm3, %v6728_v6, %v6732_v57 }
 0x500   : > { %v6893_v42 = vmul.f32 1.442695, %v6873_v31  ;;  %vm6826_vm12 = vcmp.ge.f32.partialorder %v6810_v53, 0.0  ;;  %v6842_v38 = vmul.f32 0.2, %v6810_v53  ;;  %vm6828_vm13 = vcmp.ge.f32.partialorder %v6812_v9, 0.0 }
 0x501   : > { %v6897_v59 = vmul.f32 1.442695, %v6875_v41  ;;  %v6844_v8 = vmul.f32 0.2, %v6812_v9  ;;  %v6817_v40 = vadd.f32 %v20708_v17, %v6779_v32  ;;  %vm6829_vm14 = vcmp.ge.f32.partialorder %v6813_v4, 0.0 }
 0x502   : > { %v17638_v14 = vpop.eup %17637  ;;  %17645 = vpow2.f32 %v6893_v42  ;;  %v6858_v19 = vsel %vm6826_vm12, %v6810_v53, %v6842_v38  ;;  %v6845_v15 = vmul.f32 0.2, %v6813_v4  ;;  %v6749_v61 = vsel %vm6734_vm3, %v6732_v57, %v6720_v26 }
 0x503   : > { %v17640_v56 = vpop.eup %17639  ;;  %v6917_v6 = vadd.f32 1.0, %v17638_v14  ;;  %17647 = vpow2.f32 %v6897_v59  ;;  %v6874_v35 = vsub.f32 0.0, %v6858_v19  ;;  %v6860_v46 = vsel %vm6828_vm13, %v6812_v9, %v6844_v8  ;;  %v6967_v59 = vld [vmem:[%s19587_s7 + $0x10] sm:$0xff] }
 0x504   : > { %v17642_v37 = vpop.eup %17641  ;;  %v6919_v63 = vadd.f32 1.0, %v17640_v56  ;;  %v6876_v28 = vsub.f32 0.0, %v6860_v46  ;;  %vm6833_vm15 = vcmp.ge.f32.partialorder %v6817_v40, 0.0  ;;  %v6849_v17 = vmul.f32 0.2, %v6817_v40 }
 0x505   : > { %v17644_v44 = vpop.eup %17643  ;;  %17649 = vrcp.f32 %v6917_v6  ;;  %v6918_v30 = vadd.f32 1.0, %v17642_v37  ;;  %v6895_v55 = vmul.f32 1.442695, %v6874_v35  ;;  %v6861_v58 = vsel %vm6829_vm14, %v6813_v4, %v6845_v15  ;;  %v6968_v6 = vld [vmem:[%s19587_s7 + $0x18] sm:$0xff] }
 0x506   : > { %17651 = vrcp.f32 %v6919_v63  ;;  %v6920_v7 = vadd.f32 1.0, %v17644_v44  ;;  %v6899_v47 = vmul.f32 1.442695, %v6876_v28  ;;  %v6865_v26 = vsel %vm6833_vm15, %v6817_v40, %v6849_v17 }
 0x507   : > { %17653 = vrcp.f32 %v6918_v30  ;;  %v6877_v0 = vsub.f32 0.0, %v6861_v58  ;;  %v6881_v52 = vsub.f32 0.0, %v6865_v26  ;;  %v6765_v34 = vmul.f32 %v20757_v5, %v6749_v61 }
 0x508   : > { %17655 = vrcp.f32 %v6920_v7  ;;  %v6777_v57 = vadd.f32 %v20629_v27, %v6737_v45  ;;  %v6736_v31 = vsel %vm6734_vm3, %v6727_v54, %v6731_v12  ;;  %v6748_v18 = vsel %vm6734_vm3, %v6731_v12, %v6719_v23  ;;  %v6965_v45 = vld [vmem:[%s19587_s7] sm:$0xff] }
 0x509   : > { %17657 = vpow2.f32 %v6895_v55  ;;  %v6901_v53 = vmul.f32 1.442695, %v6877_v0  ;;  %v6909_v9 = vmul.f32 1.442695, %v6881_v52  ;;  %v6781_v41 = vadd.f32 %v20641_v16, %v6765_v34 }
 0x50a   : > { %17659 = vpow2.f32 %v6899_v47  ;;  %v6815_v32 = vadd.f32 %v20711_v21, %v6777_v57  ;;  %v6764_v27 = vmul.f32 %v20757_v5, %v6748_v18  ;;  %v6776_v1 = vadd.f32 %v20631_v13, %v6736_v31 }
 0x50b   : > { %17661 = vpow2.f32 %v6901_v53  ;;  %v6819_v33 = vadd.f32 %v20711_v21, %v6781_v41  ;;  %v6733_v54 = vrot.slane %v20776_v29, 1  ;;  %v6969_v41 = vld [vmem:[%s19587_s7 + $0x20] sm:$0xff] }
 0x50c   : > { %v17646_v23 = vpop.eup %17645  ;;  %17663 = vpow2.f32 %v6909_v9  ;;  %vm6831_vm1 = vcmp.ge.f32.partialorder %v6815_v32, 0.0  ;;  %v6847_v12 = vmul.f32 0.2, %v6815_v32  ;;  %v6780_v16 = vadd.f32 %v20646_v25, %v6764_v27  ;;  %v6966_v25 = vld [vmem:[%s19587_s7 + $0x8] sm:$0xff] }
 0x50d   : > { %v17648_v4 = vpop.eup %17647  ;;  %v6921_v42 = vadd.f32 1.0, %v17646_v23  ;;  %vm6835_vm2 = vcmp.ge.f32.partialorder %v6819_v33, 0.0  ;;  %v6851_v38 = vmul.f32 0.2, %v6819_v33  ;;  %v6814_v13 = vadd.f32 %v20714_v24, %v6776_v1  ;;  %v6971_v1 = vld [vmem:[%s19587_s7 + $0x30] sm:$0xff] }
 0x50e   : > { %v6923_v8 = vadd.f32 1.0, %v17648_v4  ;;  %v6863_v21 = vsel %vm6831_vm1, %v6815_v32, %v6847_v12  ;;  %v6818_v29 = vadd.f32 %v20714_v24, %v6780_v16  ;;  %v6738_v40 = vsel %vm6734_vm3, %v6729_v3, %v6733_v54 }
 0x50f   : > { %v17650_v14 = vpop.eup %17649  ;;  %17665 = vrcp.f32 %v6921_v42  ;;  %v6867_v19 = vsel %vm6835_vm2, %v6819_v33, %v6851_v38  ;;  %v6879_v15 = vsub.f32 0.0, %v6863_v21  ;;  %vm6830_vm4 = vcmp.ge.f32.partialorder %v6814_v13, 0.0 }
 0x510   : > { %v17652_v61 = vpop.eup %17651  ;;  %v20848_v56 = vmul.f32 %v17650_v14, %v6965_v45  ;;  %17667 = vrcp.f32 %v6923_v8  ;;  %v6883_v35 = vsub.f32 0.0, %v6867_v19  ;;  %vm6834_vm5 = vcmp.ge.f32.partialorder %v6818_v29, 0.0  ;;  %v6973_v19 = vld [vmem:[%s19587_s7 + $0x40] sm:$0xff] }
 0x511   : > { %v17654_v24 = vpop.eup %17653  ;;  %v20851_v46 = vmul.f32 %v17652_v61, %v6967_v59  ;;  %v6905_v2 = vmul.f32 1.442695, %v6879_v15  ;;  %v6846_v37 = vmul.f32 0.2, %v6814_v13  ;;  %v6850_v3 = vmul.f32 0.2, %v6818_v29 }
 0x512   : > { %v17656_v63 = vpop.eup %17655  ;;  %6997 = vst [vmem:[%s20855_s29] sm:$0xff] %v20848_v56  ;;  %v20859_v28 = vmul.f32 %v17654_v24, %v6966_v25  ;;  %v6913_v17 = vmul.f32 1.442695, %v6883_v35  ;;  %v6750_v44 = vsel %vm6734_vm3, %v6733_v54, %v6721_v43  ;;  %v6778_v30 = vadd.f32 %v20633_v51, %v6738_v40  ;;  %v6970_v59 = vld [vmem:[%s19587_s7 + $0x28] sm:$0xff]  ;;  %v6972_v40 = vld [vmem:[%s19587_s7 + $0x38] sm:$0xff]  ;;  %v6977_v35 = vld [vmem:[%s19587_s7 + $0x60] sm:$0xff] }
 0x513   : > { %v17658_v55 = vpop.eup %17657  ;;  %6999 = vst [vmem:[%s20855_s29 + $0x10] sm:$0xff] %v20851_v46  ;;  %v20868_v58 = vmul.f32 %v17656_v63, %v6968_v6  ;;  %17669 = vpow2.f32 %v6905_v2  ;;  %v6862_v7 = vsel %vm6830_vm4, %v6814_v13, %v6846_v37  ;;  %v6866_v47 = vsel %vm6834_vm5, %v6818_v29, %v6850_v3 }
 0x514   : > { %v17660_v26 = vpop.eup %17659  ;;  %6998 = vst [vmem:[%s20855_s29 + $0x8] sm:$0xff] %v20859_v28  ;;  %v6922_v50 = vadd.f32 1.0, %v17658_v55  ;;  %17671 = vpow2.f32 %v6913_v17  ;;  %v6878_v0 = vsub.f32 0.0, %v6862_v7  ;;  %v6882_v43 = vsub.f32 0.0, %v6866_v47  ;;  %v6975_v7 = vld [vmem:[%s19587_s7 + $0x50] sm:$0xff] }
 0x515   : > { %v17662_v51 = vpop.eup %17661  ;;  %7000 = vst [vmem:[%s20855_s29 + $0x18] sm:$0xff] %v20868_v58  ;;  %v6924_v52 = vadd.f32 1.0, %v17660_v26  ;;  %v6766_v34 = vmul.f32 %v20757_v5, %v6750_v44  ;;  %v6816_v57 = vadd.f32 %v20717_v49, %v6778_v30  ;;  %v6979_v47 = vld [vmem:[%s19587_s7 + $0x70] sm:$0xff] }
 0x516   : > { %v17664_v31 = vpop.eup %17663  ;;  %17673 = vrcp.f32 %v6922_v50  ;;  %v6925_v18 = vadd.f32 1.0, %v17662_v51  ;;  %v6903_v53 = vmul.f32 1.442695, %v6878_v0  ;;  %v6911_v9 = vmul.f32 1.442695, %v6882_v43 }
 0x517   : > { %17675 = vrcp.f32 %v6924_v52  ;;  %v6929_v32 = vadd.f32 1.0, %v17664_v31  ;;  %v6782_v27 = vadd.f32 %v20649_v48, %v6766_v34  ;;  %vm6832_vm6 = vcmp.ge.f32.partialorder %v6816_v57, 0.0  ;;  %v6974_v31 = vld [vmem:[%s19587_s7 + $0x48] sm:$0xff] }
 0x518   : > { %17677 = vrcp.f32 %v6925_v18  ;;  %v6848_v33 = vmul.f32 0.2, %v6816_v57  ;;  %v6978_v18 = vld [vmem:[%s19587_s7 + $0x68] sm:$0xff] }
 0x519   : > { %v17666_v54 = vpop.eup %17665  ;;  %17679 = vrcp.f32 %v6929_v32  ;;  %v6820_v23 = vadd.f32 %v20717_v49, %v6782_v27  ;;  %v6976_v27 = vld [vmem:[%s19587_s7 + $0x58] sm:$0xff] }
 0x51a   : > { %v17668_v12 = vpop.eup %17667  ;;  %v20882_v16 = vmul.f32 %v17666_v54, %v6969_v41  ;;  %17681 = vpow2.f32 %v6903_v53  ;;  %v6864_v4 = vsel %vm6832_vm6, %v6816_v57, %v6848_v33 }
 0x51b   : > { %v20884_v45 = vmul.f32 %v17668_v12, %v6971_v1  ;;  %17683 = vpow2.f32 %v6911_v9  ;;  %vm6836_vm7 = vcmp.ge.f32.partialorder %v6820_v23, 0.0  ;;  %v6852_v48 = vmul.f32 0.2, %v6820_v23  ;;  %v6980_v1 = vld [vmem:[%s19587_s7 + $0x78] sm:$0xff] }
 0x51c   : > { %7001 = vst [vmem:[%s20855_s29 + $0x20] sm:$0xff] %v20882_v16  ;;  %v6880_v42 = vsub.f32 0.0, %v6864_v4  ;;  %v19201_v4 = vmov (!%p22130_p12), 0.0  }
 0x51d   : > { %v17670_v38 = vpop.eup %17669  ;;  %7003 = vst [vmem:[%s20855_s29 + $0x30] sm:$0xff] %v20884_v45  ;;  %v6868_v49 = vsel %vm6836_vm7, %v6820_v23, %v6852_v48  ;;  %7017 = vst [vmem:[#allocation2] sm:$0xff] (!%p22130_p12), %v19201_v4 }
 0x51e   : > { %v17672_v13 = vpop.eup %17671  ;;  %v6927_v8 = vadd.f32 1.0, %v17670_v38  ;;  %v6884_v21 = vsub.f32 0.0, %v6868_v49  ;;  %v6907_v29 = vmul.f32 1.442695, %v6880_v42  ;;  %7018 = vst [vmem:[#allocation2 + $0x8] sm:$0xff] (!%p22130_p12), %v19201_v4  ;;  %7019 = vst [vmem:[#allocation2 + $0x10] sm:$0xff] (!%p22130_p12), %v19201_v4 }
 0x51f   : > { %v6931_v14 = vadd.f32 1.0, %v17672_v13  ;;  %7020 = vst [vmem:[#allocation2 + $0x18] sm:$0xff] (!%p22130_p12), %v19201_v4  ;;  %7021 = vst [vmem:[#allocation2 + $0x20] sm:$0xff] (!%p22130_p12), %v19201_v4 }
 0x520   : > { %v17674_v25 = vpop.eup %17673  ;;  %17685 = vrcp.f32 %v6927_v8  ;;  %v6915_v15 = vmul.f32 1.442695, %v6884_v21  ;;  %7022 = vst [vmem:[#allocation2 + $0x28] sm:$0xff] (!%p22130_p12), %v19201_v4  ;;  %7023 = vst [vmem:[#allocation2 + $0x30] sm:$0xff] (!%p22130_p12), %v19201_v4 }
 0x521   : > { %v17676_v61 = vpop.eup %17675  ;;  %v20893_v6 = vmul.f32 %v17674_v25, %v6970_v59  ;;  %17687 = vrcp.f32 %v6931_v14  ;;  %7024 = vst [vmem:[#allocation2 + $0x38] sm:$0xff] (!%p22130_p12), %v19201_v4  ;;  %7025 = vst [vmem:[#allocation2 + $0x40] sm:$0xff] (!%p22130_p12), %v19201_v4 }
 0x522   : > { %v17678_v24 = vpop.eup %17677  ;;  %v20896_v2 = vmul.f32 %v17676_v61, %v6972_v40  ;;  %17689 = vpow2.f32 %v6907_v29  ;;  %7026 = vst [vmem:[#allocation2 + $0x48] sm:$0xff] (!%p22130_p12), %v19201_v4  ;;  %7027 = vst [vmem:[#allocation2 + $0x50] sm:$0xff] (!%p22130_p12), %v19201_v4 }
 0x523   : > { %v17680_v37 = vpop.eup %17679  ;;  %7002 = vst [vmem:[%s20855_s29 + $0x28] sm:$0xff] %v20893_v6  ;;  %v20900_v3 = vmul.f32 %v17678_v24, %v6973_v19  ;;  %17691 = vpow2.f32 %v6915_v15  ;;  %7028 = vst [vmem:[#allocation2 + $0x58] sm:$0xff] (!%p22130_p12), %v19201_v4 }
 0x524   : > { %v17682_v63 = vpop.eup %17681  ;;  %7004 = vst [vmem:[%s20855_s29 + $0x38] sm:$0xff] %v20896_v2  ;;  %v20904_v17 = vmul.f32 %v17680_v37, %v6977_v35  ;;  %7029 = vst [vmem:[#allocation2 + $0x60] sm:$0xff] (!%p22130_p12), %v19201_v4 }
 0x525   : > { %v17684_v44 = vpop.eup %17683  ;;  %7005 = vst [vmem:[%s20855_s29 + $0x40] sm:$0xff] %v20900_v3  ;;  %v6926_v30 = vadd.f32 1.0, %v17682_v63  ;;  %7030 = vst [vmem:[#allocation2 + $0x68] sm:$0xff] (!%p22130_p12), %v19201_v4 }
 0x526   : > { %7009 = vst [vmem:[%s20855_s29 + $0x60] sm:$0xff] %v20904_v17  ;;  %v6930_v55 = vadd.f32 1.0, %v17684_v44  ;;  %7031 = vst [vmem:[#allocation2 + $0x70] sm:$0xff] (!%p22130_p12), %v19201_v4 }
 0x527   : > { %17693 = vrcp.f32 %v6926_v30  ;;  %7032 = vst [vmem:[#allocation2 + $0x78] sm:$0xff] (!%p22130_p12), %v19201_v4 }
 0x528   : > { %17695 = vrcp.f32 %v6930_v55 }
 0x52a   : > { %v17686_v26 = vpop.eup %17685 }
 0x52b   : > { %v17688_v50 = vpop.eup %17687  ;;  %v20912_v0 = vmul.f32 %v17686_v26, %v6975_v7 }
 0x52c   : > { %v17690_v43 = vpop.eup %17689  ;;  %v20914_v51 = vmul.f32 %v17688_v50, %v6979_v47 }
 0x52d   : > { %v17692_v52 = vpop.eup %17691  ;;  %7007 = vst [vmem:[%s20855_s29 + $0x50] sm:$0xff] %v20912_v0  ;;  %v6928_v34 = vadd.f32 1.0, %v17690_v43 }
 0x52e   : > { %7011 = vst [vmem:[%s20855_s29 + $0x70] sm:$0xff] %v20914_v51  ;;  %v6932_v57 = vadd.f32 1.0, %v17692_v52 }
 0x52f   : > { %17697 = vrcp.f32 %v6928_v34 }
 0x530   : > { %17699 = vrcp.f32 %v6932_v57 }
 0x531   : > { %v17694_v53 = vpop.eup %17693 }
 0x532   : > { %v17696_v9 = vpop.eup %17695  ;;  %v20922_v41 = vmul.f32 %v17694_v53, %v6974_v31 }
 0x533   : > { %v20924_v32 = vmul.f32 %v17696_v9, %v6978_v18 }
 0x534   : > { %7006 = vst [vmem:[%s20855_s29 + $0x48] sm:$0xff] %v20922_v41 }
 0x535   : > { %7010 = vst [vmem:[%s20855_s29 + $0x68] sm:$0xff] %v20924_v32 }
 0x537   : > { %7016 = sbr.rel (%p22130_p12) target bundleno = 1342 (0x53e), region = 100 }
 0x539   : > { %v17698_v33 = vpop.eup %17697 }
 0x53a   : > { %v17700_v54 = vpop.eup %17699  ;;  %v20932_v23 = vmul.f32 %v17698_v33, %v6976_v27 }
 0x53b   : > { %v20934_v12 = vmul.f32 %v17700_v54, %v6980_v1 }
 0x53c   : > { %7008 = vst [vmem:[%s20855_s29 + $0x58] sm:$0xff] %v20932_v23 }
 0x53d   : > { %7012 = vst [vmem:[%s20855_s29 + $0x78] sm:$0xff] %v20934_v12 }
 0x53e PF: > { %v17701_v48 = vld [vmem:[%s19604_s26 + $0x4] ss:$16 sps:$4 sm:$0xff]   ;;  %v20945_v42 = vpack.c.bf16 %v20893_v6, %v20859_v28  ;;  %v17703_v38 = vld [vmem:[%s19604_s26 + $0xc] ss:$16 sps:$4 sm:$0xff]   ;;  %v17705_v49 = vld [vmem:[%s19604_s26] ss:$16 sps:$4 sm:$0xff]  }
 0x53f   : > { %7954 = vmatprep.subr.bf16.mxu0 %v17701_v48  ;;  %v17706_v13 = vld [vmem:[%s19604_s26 + $0x8] ss:$16 sps:$4 sm:$0xff]   ;;  %8060 = vmatprep.subr.bf16.mxu1 %v17703_v38  ;;  %v17707_v59 = vld [vmem:[%s19604_s26 + $0x24] ss:$16 sps:$4 sm:$0xff]   ;;  %v17709_v28 = vld [vmem:[%s19604_s26 + $0x2c] ss:$16 sps:$4 sm:$0xff]  }
 0x540   : > { %7986 = vmatprep.mubr.bf16.mxu0 %v20945_v42  ;;  %8092 = vmatprep.mubr.bf16.mxu1 %v20945_v42  ;;  %v17711_v8 = vld [vmem:[%s19604_s26 + $0x20] ss:$16 sps:$4 sm:$0xff]   ;;  %v17712_v21 = vld [vmem:[%s19604_s26 + $0x28] ss:$16 sps:$4 sm:$0xff]   ;;  %v17713_v29 = vld [vmem:[%s19604_s26 + $0x44] ss:$16 sps:$4 sm:$0xff]  }
 0x541   : > { %7955 = vmatpush1.bf16.msra.mxu0 %v17705_v49  ;;  %8061 = vmatpush1.bf16.msra.mxu1 %v17706_v13  ;;  %v17715_v40 = vld [vmem:[%s19604_s26 + $0x4c] ss:$16 sps:$4 sm:$0xff]   ;;  %v17717_v14 = vld [vmem:[%s19604_s26 + $0x40] ss:$16 sps:$4 sm:$0xff]   ;;  %v17718_v25 = vld [vmem:[%s19604_s26 + $0x48] ss:$16 sps:$4 sm:$0xff]  }
 0x542   : > { %7956 = vmatprep.subr.bf16.mxu0 %v17707_v59  ;;  %8062 = vmatprep.subr.bf16.mxu1 %v17709_v28  ;;  %v17719_v19 = vld [vmem:[%s19604_s26 + $0x64] ss:$16 sps:$4 sm:$0xff]   ;;  %v17721_v15 = vld [vmem:[%s19604_s26 + $0x6c] ss:$16 sps:$4 sm:$0xff]   ;;  %v17723_v61 = vld [vmem:[%s19604_s26 + $0x60] ss:$16 sps:$4 sm:$0xff]  }
 0x543   : > { %v17724_v6 = vld [vmem:[%s19604_s26 + $0x68] ss:$16 sps:$4 sm:$0xff]   ;;  %v17725_v35 = vld [vmem:[%s19604_s26 + $0x84] ss:$16 sps:$4 sm:$0xff]   ;;  %v17727_v24 = vld [vmem:[%s19604_s26 + $0x8c] ss:$16 sps:$4 sm:$0xff]  }
 0x544   : > { %v17729_v37 = vld [vmem:[%s19604_s26 + $0x80] ss:$16 sps:$4 sm:$0xff]   ;;  %v17730_v63 = vld [vmem:[%s19604_s26 + $0x88] ss:$16 sps:$4 sm:$0xff]   ;;  %v17731_v44 = vld [vmem:[%s19604_s26 + $0xa4] ss:$16 sps:$4 sm:$0xff]  }
 0x545   : > { %7957 = vmatpush1.bf16.msra.mxu0 %v17711_v8  ;;  %8063 = vmatpush1.bf16.msra.mxu1 %v17712_v21  ;;  %v17733_v30 = vld [vmem:[%s19604_s26 + $0xac] ss:$16 sps:$4 sm:$0xff]   ;;  %v17735_v55 = vld [vmem:[%s19604_s26 + $0xa0] ss:$16 sps:$4 sm:$0xff]   ;;  %v17736_v7 = vld [vmem:[%s19604_s26 + $0xa8] ss:$16 sps:$4 sm:$0xff]  }
 0x546   : > { %7958 = vmatprep.subr.bf16.mxu0 %v17713_v29  ;;  %8064 = vmatprep.subr.bf16.mxu1 %v17715_v40  ;;  %v17737_v47 = vld [vmem:[%s19604_s26 + $0xc4] ss:$16 sps:$4 sm:$0xff]   ;;  %v17739_v26 = vld [vmem:[%s19604_s26 + $0xcc] ss:$16 sps:$4 sm:$0xff]   ;;  %v17741_v50 = vld [vmem:[%s19604_s26 + $0xc0] ss:$16 sps:$4 sm:$0xff]  }
 0x547   : > { %v17742_v43 = vld [vmem:[%s19604_s26 + $0xc8] ss:$16 sps:$4 sm:$0xff]   ;;  %v17743_v52 = vld [vmem:[%s19604_s26 + $0xe4] ss:$16 sps:$4 sm:$0xff]   ;;  %v17745_v34 = vld [vmem:[%s19604_s26 + $0xec] ss:$16 sps:$4 sm:$0xff]  }
 0x548   : > { %v17747_v57 = vld [vmem:[%s19604_s26 + $0xe0] ss:$16 sps:$4 sm:$0xff]   ;;  %v17748_v31 = vld [vmem:[%s19604_s26 + $0xe8] ss:$16 sps:$4 sm:$0xff]   ;;  %v17749_v18 = vld [vmem:[%s19604_s26 + $0x104] ss:$16 sps:$4 sm:$0xff]  }
 0x549   : > { %7959 = vmatpush1.bf16.msra.mxu0 %v17717_v14  ;;  %8065 = vmatpush1.bf16.msra.mxu1 %v17718_v25  ;;  %v17751_v53 = vld [vmem:[%s19604_s26 + $0x10c] ss:$16 sps:$4 sm:$0xff]   ;;  %v17753_v9 = vld [vmem:[%s19604_s26 + $0x100] ss:$16 sps:$4 sm:$0xff]   ;;  %v17754_v27 = vld [vmem:[%s19604_s26 + $0x108] ss:$16 sps:$4 sm:$0xff]  }
 0x54a   : > { %7960 = vmatprep.subr.bf16.mxu0 %v17719_v19  ;;  %8066 = vmatprep.subr.bf16.mxu1 %v17721_v15  ;;  %v17755_v1 = vld [vmem:[%s19604_s26 + $0x124] ss:$16 sps:$4 sm:$0xff]   ;;  %v17757_v33 = vld [vmem:[%s19604_s26 + $0x12c] ss:$16 sps:$4 sm:$0xff]   ;;  %v17759_v54 = vld [vmem:[%s19604_s26 + $0x120] ss:$16 sps:$4 sm:$0xff]  }
 0x54b   : > { %v17760_v4 = vld [vmem:[%s19604_s26 + $0x128] ss:$16 sps:$4 sm:$0xff]   ;;  %v17761_v48 = vld [vmem:[%s19604_s26 + $0x144] ss:$16 sps:$4 sm:$0xff]   ;;  %v17763_v38 = vld [vmem:[%s19604_s26 + $0x14c] ss:$16 sps:$4 sm:$0xff]  }
 0x54c   : > { %v17765_v49 = vld [vmem:[%s19604_s26 + $0x140] ss:$16 sps:$4 sm:$0xff]   ;;  %v17766_v13 = vld [vmem:[%s19604_s26 + $0x148] ss:$16 sps:$4 sm:$0xff]   ;;  %v17767_v59 = vld [vmem:[%s19604_s26 + $0x164] ss:$16 sps:$4 sm:$0xff]  }
 0x54d   : > { %7961 = vmatpush1.bf16.msra.mxu0 %v17723_v61  ;;  %8067 = vmatpush1.bf16.msra.mxu1 %v17724_v6  ;;  %v17769_v28 = vld [vmem:[%s19604_s26 + $0x16c] ss:$16 sps:$4 sm:$0xff]   ;;  %v17771_v8 = vld [vmem:[%s19604_s26 + $0x160] ss:$16 sps:$4 sm:$0xff]   ;;  %v17772_v21 = vld [vmem:[%s19604_s26 + $0x168] ss:$16 sps:$4 sm:$0xff]  }
 0x54e   : > { %7962 = vmatprep.subr.bf16.mxu0 %v17725_v35  ;;  %8068 = vmatprep.subr.bf16.mxu1 %v17727_v24  ;;  %v17773_v29 = vld [vmem:[%s19604_s26 + $0x184] ss:$16 sps:$4 sm:$0xff]   ;;  %v17775_v40 = vld [vmem:[%s19604_s26 + $0x18c] ss:$16 sps:$4 sm:$0xff]   ;;  %v17777_v14 = vld [vmem:[%s19604_s26 + $0x180] ss:$16 sps:$4 sm:$0xff]  }
 0x54f   : > { %v17778_v25 = vld [vmem:[%s19604_s26 + $0x188] ss:$16 sps:$4 sm:$0xff]   ;;  %v17779_v19 = vld [vmem:[%s19604_s26 + $0x1a4] ss:$16 sps:$4 sm:$0xff]   ;;  %v17781_v15 = vld [vmem:[%s19604_s26 + $0x1ac] ss:$16 sps:$4 sm:$0xff]  }
 0x550   : > { %v17783_v61 = vld [vmem:[%s19604_s26 + $0x1a0] ss:$16 sps:$4 sm:$0xff]   ;;  %v17784_v6 = vld [vmem:[%s19604_s26 + $0x1a8] ss:$16 sps:$4 sm:$0xff]   ;;  %v17785_v35 = vld [vmem:[%s19604_s26 + $0x1c4] ss:$16 sps:$4 sm:$0xff]  }
 0x551   : > { %7963 = vmatpush1.bf16.msra.mxu0 %v17729_v37  ;;  %8069 = vmatpush1.bf16.msra.mxu1 %v17730_v63  ;;  %v17787_v24 = vld [vmem:[%s19604_s26 + $0x1cc] ss:$16 sps:$4 sm:$0xff]   ;;  %v17789_v37 = vld [vmem:[%s19604_s26 + $0x1c0] ss:$16 sps:$4 sm:$0xff]   ;;  %v17790_v63 = vld [vmem:[%s19604_s26 + $0x1c8] ss:$16 sps:$4 sm:$0xff]  }
 0x552   : > { %7964 = vmatprep.subr.bf16.mxu0 %v17731_v44  ;;  %8070 = vmatprep.subr.bf16.mxu1 %v17733_v30  ;;  %v17791_v44 = vld [vmem:[%s19604_s26 + $0x1e4] ss:$16 sps:$4 sm:$0xff]   ;;  %v17793_v30 = vld [vmem:[%s19604_s26 + $0x1ec] ss:$16 sps:$4 sm:$0xff]   ;;  %p15671_p3 = scmp.ne.s32.totalorder %s19290_s9, 1 }
 0x555   : > { %7965 = vmatpush1.bf16.msra.mxu0 %v17735_v55  ;;  %8071 = vmatpush1.bf16.msra.mxu1 %v17736_v7  ;;  %v17795_v55 = vld [vmem:[%s19604_s26 + $0x1e0] ss:$16 sps:$4 sm:$0xff]   ;;  %v17796_v7 = vld [vmem:[%s19604_s26 + $0x1e8] ss:$16 sps:$4 sm:$0xff]  }
 0x556   : > { %7966 = vmatprep.subr.bf16.mxu0 %v17737_v47  ;;  %8072 = vmatprep.subr.bf16.mxu1 %v17739_v26  ;;  %v17799_v47 = vld [vmem:[%s19604_s26 + $0x204] ss:$16 sps:$4 sm:$0xff]   ;;  %v17802_v26 = vld [vmem:[%s19604_s26 + $0x20c] ss:$16 sps:$4 sm:$0xff]  }
 0x559   : > { %7967 = vmatpush1.bf16.msra.mxu0 %v17741_v50  ;;  %8073 = vmatpush1.bf16.msra.mxu1 %v17742_v43  ;;  %v17797_v50 = vld [vmem:[%s19604_s26 + $0x200] ss:$16 sps:$4 sm:$0xff]   ;;  %v17800_v43 = vld [vmem:[%s19604_s26 + $0x208] ss:$16 sps:$4 sm:$0xff]  }
 0x55a   : > { %7968 = vmatprep.subr.bf16.mxu0 %v17743_v52  ;;  %8074 = vmatprep.subr.bf16.mxu1 %v17745_v34  ;;  %v21018_v52 = vpack.c.bf16 %v20882_v16, %v20848_v56  ;;  %v17805_v34 = vld [vmem:[%s19604_s26 + $0x224] ss:$16 sps:$4 sm:$0xff]   ;;  %v17803_v56 = vld [vmem:[%s19604_s26 + $0x220] ss:$16 sps:$4 sm:$0xff]   ;;  %v17806_v16 = vld [vmem:[%s19604_s26 + $0x228] ss:$16 sps:$4 sm:$0xff]  }
 0x55d   : > { %7969 = vmatpush1.bf16.msra.mxu0 %v17747_v57  ;;  %8075 = vmatpush1.bf16.msra.mxu1 %v17748_v31  ;;  %v17808_v57 = vld [vmem:[%s19604_s26 + $0x22c] ss:$16 sps:$4 sm:$0xff]   ;;  %v21024_v31 = vpack.c.bf16 %v20924_v32, %v20922_v41  ;;  %v17809_v41 = vld [vmem:[%s19604_s26 + $0x240] ss:$16 sps:$4 sm:$0xff]   ;;  %v17812_v32 = vld [vmem:[%s19604_s26 + $0x248] ss:$16 sps:$4 sm:$0xff]  }
 0x55e   : > { %7970 = vmatprep.subr.bf16.mxu0 %v17749_v18  ;;  %8076 = vmatprep.subr.bf16.mxu1 %v17751_v53  ;;  %v17811_v18 = vld [vmem:[%s19604_s26 + $0x244] ss:$16 sps:$4 sm:$0xff]   ;;  %v17814_v53 = vld [vmem:[%s19604_s26 + $0x24c] ss:$16 sps:$4 sm:$0xff]  }
 0x561   : > { %7971 = vmatpush1.bf16.msra.mxu0 %v17753_v9  ;;  %8077 = vmatpush1.bf16.msra.mxu1 %v17754_v27  ;;  %v21038_v9 = vpack.c.bf16 %v20904_v17, %v20900_v3  ;;  %v17817_v27 = vld [vmem:[%s19604_s26 + $0x264] ss:$16 sps:$4 sm:$0xff]   ;;  %v17826_v17 = vld [vmem:[%s19604_s26 + $0x28c] ss:$16 sps:$4 sm:$0xff]  }
 0x562   : > { %7972 = vmatprep.subr.bf16.mxu0 %v17755_v1  ;;  %8078 = vmatprep.subr.bf16.mxu1 %v17757_v33  ;;  %v17820_v1 = vld [vmem:[%s19604_s26 + $0x26c] ss:$16 sps:$4 sm:$0xff]   ;;  %v21044_v33 = vpack.c.bf16 %v20896_v2, %v20868_v58  ;;  %v17823_v3 = vld [vmem:[%s19604_s26 + $0x284] ss:$16 sps:$4 sm:$0xff]   ;;  %v17821_v58 = vld [vmem:[%s19604_s26 + $0x280] ss:$16 sps:$4 sm:$0xff]  }
 0x563   : > { %v17824_v2 = vld [vmem:[%s19604_s26 + $0x288] ss:$16 sps:$4 sm:$0xff]  }
 0x565   : > { %7973 = vmatpush1.bf16.msra.mxu0 %v17759_v54  ;;  %8079 = vmatpush1.bf16.msra.mxu1 %v17760_v4  ;;  %v17815_v54 = vld [vmem:[%s19604_s26 + $0x260] ss:$16 sps:$4 sm:$0xff]   ;;  %v17818_v4 = vld [vmem:[%s19604_s26 + $0x268] ss:$16 sps:$4 sm:$0xff]  }
 0x566   : > { %7974 = vmatprep.subr.bf16.mxu0 %v17761_v48  ;;  %8080 = vmatprep.subr.bf16.mxu1 %v17763_v38  ;;  %v17829_v48 = vld [vmem:[%s19604_s26 + $0x2a4] ss:$16 sps:$4 sm:$0xff]   ;;  %v17832_v38 = vld [vmem:[%s19604_s26 + $0x2ac] ss:$16 sps:$4 sm:$0xff]  }
 0x569   : > { %7975 = vmatpush1.bf16.msra.mxu0 %v17765_v49  ;;  %8081 = vmatpush1.bf16.msra.mxu1 %v17766_v13  ;;  %v17827_v49 = vld [vmem:[%s19604_s26 + $0x2a0] ss:$16 sps:$4 sm:$0xff]   ;;  %v17830_v13 = vld [vmem:[%s19604_s26 + $0x2a8] ss:$16 sps:$4 sm:$0xff]  }
 0x56a   : > { %7976 = vmatprep.subr.bf16.mxu0 %v17767_v59  ;;  %8082 = vmatprep.subr.bf16.mxu1 %v17769_v28  ;;  %v17835_v59 = vld [vmem:[%s19604_s26 + $0x2c4] ss:$16 sps:$4 sm:$0xff]   ;;  %v17838_v28 = vld [vmem:[%s19604_s26 + $0x2cc] ss:$16 sps:$4 sm:$0xff]  }
 0x56d   : > { %7977 = vmatpush1.bf16.msra.mxu0 %v17771_v8  ;;  %8083 = vmatpush1.bf16.msra.mxu1 %v17772_v21  ;;  %v17833_v8 = vld [vmem:[%s19604_s26 + $0x2c0] ss:$16 sps:$4 sm:$0xff]   ;;  %v17836_v21 = vld [vmem:[%s19604_s26 + $0x2c8] ss:$16 sps:$4 sm:$0xff]  }
 0x56e   : > { %7978 = vmatprep.subr.bf16.mxu0 %v17773_v29  ;;  %8084 = vmatprep.subr.bf16.mxu1 %v17775_v40  ;;  %v17841_v29 = vld [vmem:[%s19604_s26 + $0x2e4] ss:$16 sps:$4 sm:$0xff]   ;;  %v17844_v40 = vld [vmem:[%s19604_s26 + $0x2ec] ss:$16 sps:$4 sm:$0xff]  }
 0x571   : > { %7979 = vmatpush1.bf16.msra.mxu0 %v17777_v14  ;;  %8085 = vmatpush1.bf16.msra.mxu1 %v17778_v25  ;;  %v17839_v14 = vld [vmem:[%s19604_s26 + $0x2e0] ss:$16 sps:$4 sm:$0xff]   ;;  %v17842_v25 = vld [vmem:[%s19604_s26 + $0x2e8] ss:$16 sps:$4 sm:$0xff]  }
 0x572   : > { %7980 = vmatprep.subr.bf16.mxu0 %v17779_v19  ;;  %8086 = vmatprep.subr.bf16.mxu1 %v17781_v15  ;;  %v17847_v19 = vld [vmem:[%s19604_s26 + $0x304] ss:$16 sps:$4 sm:$0xff]   ;;  %v17850_v15 = vld [vmem:[%s19604_s26 + $0x30c] ss:$16 sps:$4 sm:$0xff]  }
 0x575   : > { %7981 = vmatpush1.bf16.msra.mxu0 %v17783_v61  ;;  %8087 = vmatpush1.bf16.msra.mxu1 %v17784_v6  ;;  %v17845_v61 = vld [vmem:[%s19604_s26 + $0x300] ss:$16 sps:$4 sm:$0xff]   ;;  %v17848_v6 = vld [vmem:[%s19604_s26 + $0x308] ss:$16 sps:$4 sm:$0xff]  }
 0x576   : > { %7982 = vmatprep.subr.bf16.mxu0 %v17785_v35  ;;  %8088 = vmatprep.subr.bf16.mxu1 %v17787_v24  ;;  %v17853_v35 = vld [vmem:[%s19604_s26 + $0x324] ss:$16 sps:$4 sm:$0xff]   ;;  %v17856_v24 = vld [vmem:[%s19604_s26 + $0x32c] ss:$16 sps:$4 sm:$0xff]  }
 0x579   : > { %7983 = vmatpush1.bf16.msra.mxu0 %v17789_v37  ;;  %8089 = vmatpush1.bf16.msra.mxu1 %v17790_v63  ;;  %v17851_v37 = vld [vmem:[%s19604_s26 + $0x320] ss:$16 sps:$4 sm:$0xff]   ;;  %v17854_v63 = vld [vmem:[%s19604_s26 + $0x328] ss:$16 sps:$4 sm:$0xff]  }
 0x57a   : > { %7984 = vmatprep.subr.bf16.mxu0 %v17791_v44  ;;  %8090 = vmatprep.subr.bf16.mxu1 %v17793_v30  ;;  %v17859_v44 = vld [vmem:[%s19604_s26 + $0x344] ss:$16 sps:$4 sm:$0xff]   ;;  %v17862_v30 = vld [vmem:[%s19604_s26 + $0x34c] ss:$16 sps:$4 sm:$0xff]  }
 0x57d   : > { %7985 = vmatpush1.bf16.msra.mxu0 %v17795_v55  ;;  %8091 = vmatpush1.bf16.msra.mxu1 %v17796_v7  ;;  %v17857_v55 = vld [vmem:[%s19604_s26 + $0x340] ss:$16 sps:$4 sm:$0xff]   ;;  %v17860_v7 = vld [vmem:[%s19604_s26 + $0x348] ss:$16 sps:$4 sm:$0xff]  }
 0x57e   : > { %8007 = vmatprep.subr.bf16.mxu0 %v17799_v47  ;;  %8113 = vmatprep.subr.bf16.mxu1 %v17802_v26  ;;  %v17865_v47 = vld [vmem:[%s19604_s26 + $0x364] ss:$16 sps:$4 sm:$0xff]   ;;  %v17868_v26 = vld [vmem:[%s19604_s26 + $0x36c] ss:$16 sps:$4 sm:$0xff]  }
 0x580   : > { %7987 = vmatmul.mubr.bf16.vlgmr.msra.gmra.mrb[24].mxu0 %v21018_v52  ;;  %8093 = vmatmul.mubr.bf16.vlgmr.msra.gmra.mrb[24].mxu1 %v21018_v52 }
 0x581   : > { %8008 = vmatpush1.bf16.msra.mxu0 %v17797_v50  ;;  %8114 = vmatpush1.bf16.msra.mxu1 %v17800_v43  ;;  %v17863_v50 = vld [vmem:[%s19604_s26 + $0x360] ss:$16 sps:$4 sm:$0xff]   ;;  %v17866_v43 = vld [vmem:[%s19604_s26 + $0x368] ss:$16 sps:$4 sm:$0xff]  }
 0x582   : > { %8009 = vmatprep.subr.bf16.mxu0 %v17805_v34  ;;  %8115 = vmatprep.subr.bf16.mxu1 %v17808_v57  ;;  %v17871_v34 = vld [vmem:[%s19604_s26 + $0x384] ss:$16 sps:$4 sm:$0xff]   ;;  %v17874_v57 = vld [vmem:[%s19604_s26 + $0x38c] ss:$16 sps:$4 sm:$0xff]  }
 0x583   : > { %7996 = vmatprep.mubr.bf16.mxu0 %v21024_v31  ;;  %8102 = vmatprep.mubr.bf16.mxu1 %v21024_v31 }
 0x585   : > { %8010 = vmatpush1.bf16.msra.mxu0 %v17803_v56  ;;  %8116 = vmatpush1.bf16.msra.mxu1 %v17806_v16  ;;  %v17869_v56 = vld [vmem:[%s19604_s26 + $0x380] ss:$16 sps:$4 sm:$0xff]   ;;  %v17872_v16 = vld [vmem:[%s19604_s26 + $0x388] ss:$16 sps:$4 sm:$0xff]  }
 0x586   : > { %8011 = vmatprep.subr.bf16.mxu0 %v17811_v18  ;;  %8117 = vmatprep.subr.bf16.mxu1 %v17814_v53  ;;  %v17877_v18 = vld [vmem:[%s19604_s26 + $0x3a4] ss:$16 sps:$4 sm:$0xff]   ;;  %v17880_v53 = vld [vmem:[%s19604_s26 + $0x3ac] ss:$16 sps:$4 sm:$0xff]  }
 0x588   : > { %7997 = vmatmul.mubr.bf16.gmra.mrb[28].mxu0 %v21038_v9  ;;  %8103 = vmatmul.mubr.bf16.gmra.mrb[28].mxu1 %v21038_v9 }
 0x589   : > { %8012 = vmatpush1.bf16.msra.mxu0 %v17809_v41  ;;  %8118 = vmatpush1.bf16.msra.mxu1 %v17812_v32  ;;  %v17875_v41 = vld [vmem:[%s19604_s26 + $0x3a0] ss:$16 sps:$4 sm:$0xff]   ;;  %v17878_v32 = vld [vmem:[%s19604_s26 + $0x3a8] ss:$16 sps:$4 sm:$0xff]  }
 0x58a   : > { %8013 = vmatprep.subr.bf16.mxu0 %v17817_v27  ;;  %8119 = vmatprep.subr.bf16.mxu1 %v17820_v1  ;;  %v17883_v27 = vld [vmem:[%s19604_s26 + $0x3c4] ss:$16 sps:$4 sm:$0xff]   ;;  %v17886_v1 = vld [vmem:[%s19604_s26 + $0x3cc] ss:$16 sps:$4 sm:$0xff]  }
 0x58b   : > { %8039 = vmatprep.mubr.bf16.mxu0 %v21044_v33  ;;  %8145 = vmatprep.mubr.bf16.mxu1 %v21044_v33 }
 0x58d   : > { %8014 = vmatpush1.bf16.msra.mxu0 %v17815_v54  ;;  %8120 = vmatpush1.bf16.msra.mxu1 %v17818_v4  ;;  %v17881_v54 = vld [vmem:[%s19604_s26 + $0x3c0] ss:$16 sps:$4 sm:$0xff]   ;;  %v17884_v4 = vld [vmem:[%s19604_s26 + $0x3c8] ss:$16 sps:$4 sm:$0xff]  }
 0x58e   : > { %8015 = vmatprep.subr.bf16.mxu0 %v17823_v3  ;;  %8121 = vmatprep.subr.bf16.mxu1 %v17826_v17  ;;  %v17889_v3 = vld [vmem:[%s19604_s26 + $0x3e4] ss:$16 sps:$4 sm:$0xff]   ;;  %v17892_v17 = vld [vmem:[%s19604_s26 + $0x3ec] ss:$16 sps:$4 sm:$0xff]  }
 0x591   : > { %8016 = vmatpush1.bf16.msra.mxu0 %v17821_v58  ;;  %8122 = vmatpush1.bf16.msra.mxu1 %v17824_v2  ;;  %v17887_v58 = vld [vmem:[%s19604_s26 + $0x3e0] ss:$16 sps:$4 sm:$0xff]   ;;  %v17890_v2 = vld [vmem:[%s19604_s26 + $0x3e8] ss:$16 sps:$4 sm:$0xff]  }
 0x592   : > { %8017 = vmatprep.subr.bf16.mxu0 %v17829_v48  ;;  %8123 = vmatprep.subr.bf16.mxu1 %v17832_v38  ;;  %v17895_v48 = vld [vmem:[%s19604_s26 + $0x404] ss:$16 sps:$4 sm:$0xff]   ;;  %v17898_v38 = vld [vmem:[%s19604_s26 + $0x40c] ss:$16 sps:$4 sm:$0xff]  }
 0x595   : > { %8018 = vmatpush1.bf16.msra.mxu0 %v17827_v49  ;;  %8124 = vmatpush1.bf16.msra.mxu1 %v17830_v13  ;;  %v21104_v49 = vpack.c.bf16 %v20884_v45, %v20851_v46  ;;  %v17893_v13 = vld [vmem:[%s19604_s26 + $0x400] ss:$16 sps:$4 sm:$0xff]   ;;  %v17902_v45 = vld [vmem:[%s19604_s26 + $0x428] ss:$16 sps:$4 sm:$0xff]  }
 0x596   : > { %8019 = vmatprep.subr.bf16.mxu0 %v17835_v59  ;;  %8125 = vmatprep.subr.bf16.mxu1 %v17838_v28  ;;  %v17896_v59 = vld [vmem:[%s19604_s26 + $0x408] ss:$16 sps:$4 sm:$0xff]   ;;  %v17901_v28 = vld [vmem:[%s19604_s26 + $0x424] ss:$16 sps:$4 sm:$0xff]   ;;  %v17899_v46 = vld [vmem:[%s19604_s26 + $0x420] ss:$16 sps:$4 sm:$0xff]  }
 0x599   : > { %8020 = vmatpush1.bf16.msra.mxu0 %v17833_v8  ;;  %8126 = vmatpush1.bf16.msra.mxu1 %v17836_v21  ;;  %v17904_v8 = vld [vmem:[%s19604_s26 + $0x42c] ss:$16 sps:$4 sm:$0xff]   ;;  %v21112_v21 = vpack.c.bf16 %v20934_v12, %v20932_v23  ;;  %v21124_v23 = vpack.c.bf16 %v20914_v51, %v20912_v0  ;;  %v17905_v12 = vld [vmem:[%s19604_s26 + $0x440] ss:$16 sps:$4 sm:$0xff]   ;;  %v17919_v0 = vld [vmem:[%s19604_s26 + $0x484] ss:$16 sps:$4 sm:$0xff]  }
 0x59a   : > { %8021 = vmatprep.subr.bf16.mxu0 %v17841_v29  ;;  %8127 = vmatprep.subr.bf16.mxu1 %v17844_v40  ;;  %v17907_v29 = vld [vmem:[%s19604_s26 + $0x444] ss:$16 sps:$4 sm:$0xff]   ;;  %v17910_v40 = vld [vmem:[%s19604_s26 + $0x44c] ss:$16 sps:$4 sm:$0xff]  }
 0x59b   : > { %v17922_v51 = vld [vmem:[%s19604_s26 + $0x48c] ss:$16 sps:$4 sm:$0xff]  }
 0x59d   : > { %8022 = vmatpush1.bf16.msra.mxu0 %v17839_v14  ;;  %8128 = vmatpush1.bf16.msra.mxu1 %v17842_v25  ;;  %v17908_v14 = vld [vmem:[%s19604_s26 + $0x448] ss:$16 sps:$4 sm:$0xff]   ;;  %v17913_v25 = vld [vmem:[%s19604_s26 + $0x464] ss:$16 sps:$4 sm:$0xff]  }
 0x59e   : > { %8023 = vmatprep.subr.bf16.mxu0 %v17847_v19  ;;  %8129 = vmatprep.subr.bf16.mxu1 %v17850_v15  ;;  %v17916_v19 = vld [vmem:[%s19604_s26 + $0x46c] ss:$16 sps:$4 sm:$0xff]   ;;  %v17911_v15 = vld [vmem:[%s19604_s26 + $0x460] ss:$16 sps:$4 sm:$0xff]  }
 0x5a1   : > { %8024 = vmatpush1.bf16.msra.mxu0 %v17845_v61  ;;  %8130 = vmatpush1.bf16.msra.mxu1 %v17848_v6  ;;  %v17914_v61 = vld [vmem:[%s19604_s26 + $0x468] ss:$16 sps:$4 sm:$0xff]   ;;  %v17917_v6 = vld [vmem:[%s19604_s26 + $0x480] ss:$16 sps:$4 sm:$0xff]  }
 0x5a2   : > { %8025 = vmatprep.subr.bf16.mxu0 %v17853_v35  ;;  %8131 = vmatprep.subr.bf16.mxu1 %v17856_v24  ;;  %v17920_v35 = vld [vmem:[%s19604_s26 + $0x488] ss:$16 sps:$4 sm:$0xff]   ;;  %v17925_v24 = vld [vmem:[%s19604_s26 + $0x4a4] ss:$16 sps:$4 sm:$0xff]  }
 0x5a5   : > { %8026 = vmatpush1.bf16.msra.mxu0 %v17851_v37  ;;  %8132 = vmatpush1.bf16.msra.mxu1 %v17854_v63  ;;  %v17928_v37 = vld [vmem:[%s19604_s26 + $0x4ac] ss:$16 sps:$4 sm:$0xff]   ;;  %v17923_v63 = vld [vmem:[%s19604_s26 + $0x4a0] ss:$16 sps:$4 sm:$0xff]  }
 0x5a6   : > { %8027 = vmatprep.subr.bf16.mxu0 %v17859_v44  ;;  %8133 = vmatprep.subr.bf16.mxu1 %v17862_v30  ;;  %v17926_v44 = vld [vmem:[%s19604_s26 + $0x4a8] ss:$16 sps:$4 sm:$0xff]   ;;  %v17931_v30 = vld [vmem:[%s19604_s26 + $0x4c4] ss:$16 sps:$4 sm:$0xff]  }
 0x5a9   : > { %8028 = vmatpush1.bf16.msra.mxu0 %v17857_v55  ;;  %8134 = vmatpush1.bf16.msra.mxu1 %v17860_v7  ;;  %v17934_v55 = vld [vmem:[%s19604_s26 + $0x4cc] ss:$16 sps:$4 sm:$0xff]   ;;  %v17929_v7 = vld [vmem:[%s19604_s26 + $0x4c0] ss:$16 sps:$4 sm:$0xff]  }
 0x5aa   : > { %8029 = vmatprep.subr.bf16.mxu0 %v17865_v47  ;;  %8135 = vmatprep.subr.bf16.mxu1 %v17868_v26  ;;  %v17932_v47 = vld [vmem:[%s19604_s26 + $0x4c8] ss:$16 sps:$4 sm:$0xff]   ;;  %v17937_v26 = vld [vmem:[%s19604_s26 + $0x4e4] ss:$16 sps:$4 sm:$0xff]  }
 0x5ad   : > { %8030 = vmatpush1.bf16.msra.mxu0 %v17863_v50  ;;  %8136 = vmatpush1.bf16.msra.mxu1 %v17866_v43  ;;  %v17940_v50 = vld [vmem:[%s19604_s26 + $0x4ec] ss:$16 sps:$4 sm:$0xff]   ;;  %v17935_v43 = vld [vmem:[%s19604_s26 + $0x4e0] ss:$16 sps:$4 sm:$0xff]  }
 0x5ae   : > { %8031 = vmatprep.subr.bf16.mxu0 %v17871_v34  ;;  %8137 = vmatprep.subr.bf16.mxu1 %v17874_v57  ;;  %v17938_v34 = vld [vmem:[%s19604_s26 + $0x4e8] ss:$16 sps:$4 sm:$0xff]   ;;  %v17943_v57 = vld [vmem:[%s19604_s26 + $0x504] ss:$16 sps:$4 sm:$0xff]  }
 0x5b1   : > { %8032 = vmatpush1.bf16.msra.mxu0 %v17869_v56  ;;  %8138 = vmatpush1.bf16.msra.mxu1 %v17872_v16  ;;  %v17946_v56 = vld [vmem:[%s19604_s26 + $0x50c] ss:$16 sps:$4 sm:$0xff]   ;;  %v17941_v16 = vld [vmem:[%s19604_s26 + $0x500] ss:$16 sps:$4 sm:$0xff]  }
 0x5b2   : > { %8033 = vmatprep.subr.bf16.mxu0 %v17877_v18  ;;  %8139 = vmatprep.subr.bf16.mxu1 %v17880_v53  ;;  %v17944_v18 = vld [vmem:[%s19604_s26 + $0x508] ss:$16 sps:$4 sm:$0xff]   ;;  %v17949_v53 = vld [vmem:[%s19604_s26 + $0x524] ss:$16 sps:$4 sm:$0xff]  }
 0x5b5   : > { %8034 = vmatpush1.bf16.msra.mxu0 %v17875_v41  ;;  %8140 = vmatpush1.bf16.msra.mxu1 %v17878_v32  ;;  %v17952_v41 = vld [vmem:[%s19604_s26 + $0x52c] ss:$16 sps:$4 sm:$0xff]   ;;  %v17947_v32 = vld [vmem:[%s19604_s26 + $0x520] ss:$16 sps:$4 sm:$0xff]  }
 0x5b6   : > { %8035 = vmatprep.subr.bf16.mxu0 %v17883_v27  ;;  %8141 = vmatprep.subr.bf16.mxu1 %v17886_v1  ;;  %v17950_v27 = vld [vmem:[%s19604_s26 + $0x528] ss:$16 sps:$4 sm:$0xff]   ;;  %v17955_v1 = vld [vmem:[%s19604_s26 + $0x544] ss:$16 sps:$4 sm:$0xff]  }
 0x5b9   : > { %8036 = vmatpush1.bf16.msra.mxu0 %v17881_v54  ;;  %8142 = vmatpush1.bf16.msra.mxu1 %v17884_v4  ;;  %v17958_v54 = vld [vmem:[%s19604_s26 + $0x54c] ss:$16 sps:$4 sm:$0xff]   ;;  %v17953_v4 = vld [vmem:[%s19604_s26 + $0x540] ss:$16 sps:$4 sm:$0xff]  }
 0x5ba   : > { %8037 = vmatprep.subr.bf16.mxu0 %v17889_v3  ;;  %8143 = vmatprep.subr.bf16.mxu1 %v17892_v17  ;;  %v17956_v3 = vld [vmem:[%s19604_s26 + $0x548] ss:$16 sps:$4 sm:$0xff]   ;;  %v17961_v17 = vld [vmem:[%s19604_s26 + $0x564] ss:$16 sps:$4 sm:$0xff]  }
 0x5bd   : > { %8038 = vmatpush1.bf16.msra.mxu0 %v17887_v58  ;;  %8144 = vmatpush1.bf16.msra.mxu1 %v17890_v2  ;;  %v17964_v58 = vld [vmem:[%s19604_s26 + $0x56c] ss:$16 sps:$4 sm:$0xff]   ;;  %v17959_v2 = vld [vmem:[%s19604_s26 + $0x560] ss:$16 sps:$4 sm:$0xff]  }
 0x5be   : > { %8854 = vmatprep.subr.bf16.mxu0 %v17895_v48  ;;  %8960 = vmatprep.subr.bf16.mxu1 %v17898_v38  ;;  %v17962_v48 = vld [vmem:[%s19604_s26 + $0x568] ss:$16 sps:$4 sm:$0xff]   ;;  %v17967_v38 = vld [vmem:[%s19604_s26 + $0x584] ss:$16 sps:$4 sm:$0xff]  }
 0x5c0   : > { %8040 = vmatmul.mubr.bf16.vlgmr.msra.gmra.mrb[24].mxu0 %v21104_v49  ;;  %8146 = vmatmul.mubr.bf16.vlgmr.msra.gmra.mrb[24].mxu1 %v21104_v49 }
 0x5c1   : > { %8855 = vmatpush1.bf16.msra.mxu0 %v17893_v13  ;;  %8961 = vmatpush1.bf16.msra.mxu1 %v17896_v59  ;;  %v17970_v13 = vld [vmem:[%s19604_s26 + $0x58c] ss:$16 sps:$4 sm:$0xff]   ;;  %v17965_v59 = vld [vmem:[%s19604_s26 + $0x580] ss:$16 sps:$4 sm:$0xff]  }
 0x5c2   : > { %8856 = vmatprep.subr.bf16.mxu0 %v17901_v28  ;;  %8962 = vmatprep.subr.bf16.mxu1 %v17904_v8  ;;  %v17968_v28 = vld [vmem:[%s19604_s26 + $0x588] ss:$16 sps:$4 sm:$0xff]   ;;  %v17973_v8 = vld [vmem:[%s19604_s26 + $0x5a4] ss:$16 sps:$4 sm:$0xff]  }
 0x5c3   : > { %8049 = vmatprep.mubr.bf16.mxu0 %v21112_v21  ;;  %8155 = vmatprep.mubr.bf16.mxu1 %v21112_v21 }
 0x5c5   : > { %8857 = vmatpush1.bf16.msra.mxu0 %v17899_v46  ;;  %8963 = vmatpush1.bf16.msra.mxu1 %v17902_v45  ;;  %v17976_v46 = vld [vmem:[%s19604_s26 + $0x5ac] ss:$16 sps:$4 sm:$0xff]   ;;  %v17971_v45 = vld [vmem:[%s19604_s26 + $0x5a0] ss:$16 sps:$4 sm:$0xff]  }
 0x5c6   : > { %8858 = vmatprep.subr.bf16.mxu0 %v17907_v29  ;;  %8964 = vmatprep.subr.bf16.mxu1 %v17910_v40  ;;  %v17974_v29 = vld [vmem:[%s19604_s26 + $0x5a8] ss:$16 sps:$4 sm:$0xff]   ;;  %v17979_v40 = vld [vmem:[%s19604_s26 + $0x5c4] ss:$16 sps:$4 sm:$0xff]  }
 0x5c8   : > { %8050 = vmatmul.mubr.bf16.gmra.mrb[28].mxu0 %v21124_v23  ;;  %8156 = vmatmul.mubr.bf16.gmra.mrb[28].mxu1 %v21124_v23 }
 0x5c9   : > { %8859 = vmatpush1.bf16.msra.mxu0 %v17905_v12  ;;  %8965 = vmatpush1.bf16.msra.mxu1 %v17908_v14  ;;  %v17982_v12 = vld [vmem:[%s19604_s26 + $0x5cc] ss:$16 sps:$4 sm:$0xff]   ;;  %v17977_v14 = vld [vmem:[%s19604_s26 + $0x5c0] ss:$16 sps:$4 sm:$0xff]  }
 0x5ca   : > { %8860 = vmatprep.subr.bf16.mxu0 %v17913_v25  ;;  %8966 = vmatprep.subr.bf16.mxu1 %v17916_v19  ;;  %v17980_v25 = vld [vmem:[%s19604_s26 + $0x5c8] ss:$16 sps:$4 sm:$0xff]   ;;  %v17985_v19 = vld [vmem:[%s19604_s26 + $0x5e4] ss:$16 sps:$4 sm:$0xff]  }
 0x5cb   : > { %8886 = vmatprep.mubr.bf16.mxu0 %v20945_v42  ;;  %8992 = vmatprep.mubr.bf16.mxu1 %v20945_v42 }
 0x5cd   : > { %8861 = vmatpush1.bf16.msra.mxu0 %v17911_v15  ;;  %8967 = vmatpush1.bf16.msra.mxu1 %v17914_v61  ;;  %v17988_v15 = vld [vmem:[%s19604_s26 + $0x5ec] ss:$16 sps:$4 sm:$0xff]   ;;  %v17983_v61 = vld [vmem:[%s19604_s26 + $0x5e0] ss:$16 sps:$4 sm:$0xff]  }
 0x5ce   : > { %8862 = vmatprep.subr.bf16.mxu0 %v17919_v0  ;;  %8968 = vmatprep.subr.bf16.mxu1 %v17922_v51  ;;  %v17986_v0 = vld [vmem:[%s19604_s26 + $0x5e8] ss:$16 sps:$4 sm:$0xff]   ;;  %v17991_v51 = vld [vmem:[%s19604_s26 + $0x604] ss:$16 sps:$4 sm:$0xff]  }
 0x5d1   : > { %8863 = vmatpush1.bf16.msra.mxu0 %v17917_v6  ;;  %8969 = vmatpush1.bf16.msra.mxu1 %v17920_v35  ;;  %v17994_v6 = vld [vmem:[%s19604_s26 + $0x60c] ss:$16 sps:$4 sm:$0xff]   ;;  %v17989_v35 = vld [vmem:[%s19604_s26 + $0x600] ss:$16 sps:$4 sm:$0xff]  }
 0x5d2   : > { %8864 = vmatprep.subr.bf16.mxu0 %v17925_v24  ;;  %8970 = vmatprep.subr.bf16.mxu1 %v17928_v37  ;;  %v17992_v24 = vld [vmem:[%s19604_s26 + $0x608] ss:$16 sps:$4 sm:$0xff]   ;;  %v17997_v37 = vld [vmem:[%s19604_s26 + $0x624] ss:$16 sps:$4 sm:$0xff]  }
 0x5d5   : > { %8865 = vmatpush1.bf16.msra.mxu0 %v17923_v63  ;;  %8971 = vmatpush1.bf16.msra.mxu1 %v17926_v44  ;;  %v18000_v63 = vld [vmem:[%s19604_s26 + $0x62c] ss:$16 sps:$4 sm:$0xff]   ;;  %v17995_v44 = vld [vmem:[%s19604_s26 + $0x620] ss:$16 sps:$4 sm:$0xff]  }
 0x5d6   : > { %8866 = vmatprep.subr.bf16.mxu0 %v17931_v30  ;;  %8972 = vmatprep.subr.bf16.mxu1 %v17934_v55  ;;  %v17998_v30 = vld [vmem:[%s19604_s26 + $0x628] ss:$16 sps:$4 sm:$0xff]   ;;  %v18003_v55 = vld [vmem:[%s19604_s26 + $0x644] ss:$16 sps:$4 sm:$0xff]  }
 0x5d9   : > { %8867 = vmatpush1.bf16.msra.mxu0 %v17929_v7  ;;  %8973 = vmatpush1.bf16.msra.mxu1 %v17932_v47  ;;  %v18006_v7 = vld [vmem:[%s19604_s26 + $0x64c] ss:$16 sps:$4 sm:$0xff]   ;;  %v18001_v47 = vld [vmem:[%s19604_s26 + $0x640] ss:$16 sps:$4 sm:$0xff]  }
 0x5da   : > { %8868 = vmatprep.subr.bf16.mxu0 %v17937_v26  ;;  %8974 = vmatprep.subr.bf16.mxu1 %v17940_v50  ;;  %v18004_v26 = vld [vmem:[%s19604_s26 + $0x648] ss:$16 sps:$4 sm:$0xff]   ;;  %v18009_v50 = vld [vmem:[%s19604_s26 + $0x664] ss:$16 sps:$4 sm:$0xff]  }
 0x5dd   : > { %8869 = vmatpush1.bf16.msra.mxu0 %v17935_v43  ;;  %8975 = vmatpush1.bf16.msra.mxu1 %v17938_v34  ;;  %v18012_v43 = vld [vmem:[%s19604_s26 + $0x66c] ss:$16 sps:$4 sm:$0xff]   ;;  %v18007_v34 = vld [vmem:[%s19604_s26 + $0x660] ss:$16 sps:$4 sm:$0xff]  }
 0x5de   : > { %8870 = vmatprep.subr.bf16.mxu0 %v17943_v57  ;;  %8976 = vmatprep.subr.bf16.mxu1 %v17946_v56  ;;  %v18010_v57 = vld [vmem:[%s19604_s26 + $0x668] ss:$16 sps:$4 sm:$0xff]   ;;  %v18015_v56 = vld [vmem:[%s19604_s26 + $0x684] ss:$16 sps:$4 sm:$0xff]  }
 0x5e1   : > { %8871 = vmatpush1.bf16.msra.mxu0 %v17941_v16  ;;  %8977 = vmatpush1.bf16.msra.mxu1 %v17944_v18  ;;  %v18018_v16 = vld [vmem:[%s19604_s26 + $0x68c] ss:$16 sps:$4 sm:$0xff]   ;;  %v18013_v18 = vld [vmem:[%s19604_s26 + $0x680] ss:$16 sps:$4 sm:$0xff]  }
 0x5e2   : > { %8872 = vmatprep.subr.bf16.mxu0 %v17949_v53  ;;  %8978 = vmatprep.subr.bf16.mxu1 %v17952_v41  ;;  %v18016_v53 = vld [vmem:[%s19604_s26 + $0x688] ss:$16 sps:$4 sm:$0xff]   ;;  %v18021_v41 = vld [vmem:[%s19604_s26 + $0x6a4] ss:$16 sps:$4 sm:$0xff]  }
 0x5e5   : > { %8873 = vmatpush1.bf16.msra.mxu0 %v17947_v32  ;;  %8979 = vmatpush1.bf16.msra.mxu1 %v17950_v27  ;;  %v18024_v32 = vld [vmem:[%s19604_s26 + $0x6ac] ss:$16 sps:$4 sm:$0xff]   ;;  %v18019_v27 = vld [vmem:[%s19604_s26 + $0x6a0] ss:$16 sps:$4 sm:$0xff]  }
 0x5e6   : > { %8874 = vmatprep.subr.bf16.mxu0 %v17955_v1  ;;  %8980 = vmatprep.subr.bf16.mxu1 %v17958_v54  ;;  %v18022_v1 = vld [vmem:[%s19604_s26 + $0x6a8] ss:$16 sps:$4 sm:$0xff]   ;;  %v18027_v54 = vld [vmem:[%s19604_s26 + $0x6c4] ss:$16 sps:$4 sm:$0xff]  }
 0x5e9   : > { %8875 = vmatpush1.bf16.msra.mxu0 %v17953_v4  ;;  %8981 = vmatpush1.bf16.msra.mxu1 %v17956_v3  ;;  %v18030_v4 = vld [vmem:[%s19604_s26 + $0x6cc] ss:$16 sps:$4 sm:$0xff]   ;;  %v18025_v3 = vld [vmem:[%s19604_s26 + $0x6c0] ss:$16 sps:$4 sm:$0xff]  }
 0x5ea   : > { %8876 = vmatprep.subr.bf16.mxu0 %v17961_v17  ;;  %8982 = vmatprep.subr.bf16.mxu1 %v17964_v58  ;;  %v18028_v17 = vld [vmem:[%s19604_s26 + $0x6c8] ss:$16 sps:$4 sm:$0xff]   ;;  %v18033_v58 = vld [vmem:[%s19604_s26 + $0x6e4] ss:$16 sps:$4 sm:$0xff]  }
 0x5ed   : > { %8877 = vmatpush1.bf16.msra.mxu0 %v17959_v2  ;;  %8983 = vmatpush1.bf16.msra.mxu1 %v17962_v48  ;;  %v18036_v2 = vld [vmem:[%s19604_s26 + $0x6ec] ss:$16 sps:$4 sm:$0xff]   ;;  %v18031_v48 = vld [vmem:[%s19604_s26 + $0x6e0] ss:$16 sps:$4 sm:$0xff]  }
 0x5ee   : > { %8878 = vmatprep.subr.bf16.mxu0 %v17967_v38  ;;  %8984 = vmatprep.subr.bf16.mxu1 %v17970_v13  ;;  %v18034_v38 = vld [vmem:[%s19604_s26 + $0x6e8] ss:$16 sps:$4 sm:$0xff]   ;;  %v18039_v13 = vld [vmem:[%s19604_s26 + $0x704] ss:$16 sps:$4 sm:$0xff]  }
 0x5f1   : > { %8879 = vmatpush1.bf16.msra.mxu0 %v17965_v59  ;;  %8985 = vmatpush1.bf16.msra.mxu1 %v17968_v28  ;;  %v18042_v59 = vld [vmem:[%s19604_s26 + $0x70c] ss:$16 sps:$4 sm:$0xff]   ;;  %v18037_v28 = vld [vmem:[%s19604_s26 + $0x700] ss:$16 sps:$4 sm:$0xff]  }
 0x5f2   : > { %8880 = vmatprep.subr.bf16.mxu0 %v17973_v8  ;;  %8986 = vmatprep.subr.bf16.mxu1 %v17976_v46  ;;  %v18040_v8 = vld [vmem:[%s19604_s26 + $0x708] ss:$16 sps:$4 sm:$0xff]   ;;  %v18045_v46 = vld [vmem:[%s19604_s26 + $0x724] ss:$16 sps:$4 sm:$0xff]  }
 0x5f5   : > { %8881 = vmatpush1.bf16.msra.mxu0 %v17971_v45  ;;  %8987 = vmatpush1.bf16.msra.mxu1 %v17974_v29  ;;  %v18048_v45 = vld [vmem:[%s19604_s26 + $0x72c] ss:$16 sps:$4 sm:$0xff]   ;;  %v18043_v29 = vld [vmem:[%s19604_s26 + $0x720] ss:$16 sps:$4 sm:$0xff]  }
 0x5f6   : > { %8882 = vmatprep.subr.bf16.mxu0 %v17979_v40  ;;  %8988 = vmatprep.subr.bf16.mxu1 %v17982_v12  ;;  %v18046_v40 = vld [vmem:[%s19604_s26 + $0x728] ss:$16 sps:$4 sm:$0xff]   ;;  %v18051_v12 = vld [vmem:[%s19604_s26 + $0x744] ss:$16 sps:$4 sm:$0xff]  }
 0x5f9   : > { %8883 = vmatpush1.bf16.msra.mxu0 %v17977_v14  ;;  %8989 = vmatpush1.bf16.msra.mxu1 %v17980_v25  ;;  %v18054_v14 = vld [vmem:[%s19604_s26 + $0x74c] ss:$16 sps:$4 sm:$0xff]   ;;  %v18049_v25 = vld [vmem:[%s19604_s26 + $0x740] ss:$16 sps:$4 sm:$0xff]  }
 0x5fa   : > { %8884 = vmatprep.subr.bf16.mxu0 %v17985_v19  ;;  %8990 = vmatprep.subr.bf16.mxu1 %v17988_v15  ;;  %v18052_v19 = vld [vmem:[%s19604_s26 + $0x748] ss:$16 sps:$4 sm:$0xff]   ;;  %v18057_v15 = vld [vmem:[%s19604_s26 + $0x764] ss:$16 sps:$4 sm:$0xff]  }
 0x5fd   : > { %8885 = vmatpush1.bf16.msra.mxu0 %v17983_v61  ;;  %8991 = vmatpush1.bf16.msra.mxu1 %v17986_v0  ;;  %v18060_v61 = vld [vmem:[%s19604_s26 + $0x76c] ss:$16 sps:$4 sm:$0xff]   ;;  %v18055_v0 = vld [vmem:[%s19604_s26 + $0x760] ss:$16 sps:$4 sm:$0xff]  }
 0x5fe   : > { %8907 = vmatprep.subr.bf16.mxu0 %v17991_v51  ;;  %9013 = vmatprep.subr.bf16.mxu1 %v17994_v6  ;;  %v18058_v51 = vld [vmem:[%s19604_s26 + $0x768] ss:$16 sps:$4 sm:$0xff]   ;;  %v18063_v6 = vld [vmem:[%s19604_s26 + $0x784] ss:$16 sps:$4 sm:$0xff]  }
 0x600   : > { %8887 = vmatmul.mubr.bf16.vlgmr.msra.gmra.mrb[32].mxu0 %v21018_v52  ;;  %8993 = vmatmul.mubr.bf16.vlgmr.msra.gmra.mrb[32].mxu1 %v21018_v52 }
 0x601   : > { %8908 = vmatpush1.bf16.msra.mxu0 %v17989_v35  ;;  %9014 = vmatpush1.bf16.msra.mxu1 %v17992_v24  ;;  %v18066_v35 = vld [vmem:[%s19604_s26 + $0x78c] ss:$16 sps:$4 sm:$0xff]   ;;  %v18061_v24 = vld [vmem:[%s19604_s26 + $0x780] ss:$16 sps:$4 sm:$0xff]  }
 0x602   : > { %8909 = vmatprep.subr.bf16.mxu0 %v17997_v37  ;;  %9015 = vmatprep.subr.bf16.mxu1 %v18000_v63  ;;  %v18064_v37 = vld [vmem:[%s19604_s26 + $0x788] ss:$16 sps:$4 sm:$0xff]   ;;  %v18069_v63 = vld [vmem:[%s19604_s26 + $0x7a4] ss:$16 sps:$4 sm:$0xff]  }
 0x603   : > { %8896 = vmatprep.mubr.bf16.mxu0 %v21024_v31  ;;  %9002 = vmatprep.mubr.bf16.mxu1 %v21024_v31 }
 0x605   : > { %8910 = vmatpush1.bf16.msra.mxu0 %v17995_v44  ;;  %9016 = vmatpush1.bf16.msra.mxu1 %v17998_v30  ;;  %v18072_v44 = vld [vmem:[%s19604_s26 + $0x7ac] ss:$16 sps:$4 sm:$0xff]   ;;  %v18067_v30 = vld [vmem:[%s19604_s26 + $0x7a0] ss:$16 sps:$4 sm:$0xff]  }
 0x606   : > { %8911 = vmatprep.subr.bf16.mxu0 %v18003_v55  ;;  %9017 = vmatprep.subr.bf16.mxu1 %v18006_v7  ;;  %v18070_v55 = vld [vmem:[%s19604_s26 + $0x7a8] ss:$16 sps:$4 sm:$0xff]   ;;  %v18075_v7 = vld [vmem:[%s19604_s26 + $0x7c4] ss:$16 sps:$4 sm:$0xff]  }
 0x608   : > { %8897 = vmatmul.mubr.bf16.gmra.mrb[36].mxu0 %v21038_v9  ;;  %9003 = vmatmul.mubr.bf16.gmra.mrb[36].mxu1 %v21038_v9 }
 0x609   : > { %8912 = vmatpush1.bf16.msra.mxu0 %v18001_v47  ;;  %9018 = vmatpush1.bf16.msra.mxu1 %v18004_v26  ;;  %v18078_v47 = vld [vmem:[%s19604_s26 + $0x7cc] ss:$16 sps:$4 sm:$0xff]   ;;  %v18073_v26 = vld [vmem:[%s19604_s26 + $0x7c0] ss:$16 sps:$4 sm:$0xff]  }
 0x60a   : > { %8913 = vmatprep.subr.bf16.mxu0 %v18009_v50  ;;  %9019 = vmatprep.subr.bf16.mxu1 %v18012_v43  ;;  %v18076_v50 = vld [vmem:[%s19604_s26 + $0x7c8] ss:$16 sps:$4 sm:$0xff]   ;;  %v18081_v43 = vld [vmem:[%s19604_s26 + $0x7e4] ss:$16 sps:$4 sm:$0xff]  }
 0x60b   : > { %8939 = vmatprep.mubr.bf16.mxu0 %v21044_v33  ;;  %9045 = vmatprep.mubr.bf16.mxu1 %v21044_v33 }
 0x60d   : > { %8914 = vmatpush1.bf16.msra.mxu0 %v18007_v34  ;;  %9020 = vmatpush1.bf16.msra.mxu1 %v18010_v57  ;;  %v18084_v34 = vld [vmem:[%s19604_s26 + $0x7ec] ss:$16 sps:$4 sm:$0xff]   ;;  %v18079_v57 = vld [vmem:[%s19604_s26 + $0x7e0] ss:$16 sps:$4 sm:$0xff]  }
 0x60e   : > { %8915 = vmatprep.subr.bf16.mxu0 %v18015_v56  ;;  %9021 = vmatprep.subr.bf16.mxu1 %v18018_v16  ;;  %v18082_v56 = vld [vmem:[%s19604_s26 + $0x7e8] ss:$16 sps:$4 sm:$0xff]   ;;  %v18087_v16 = vld [vmem:[%s19604_s26 + $0x804] ss:$16 sps:$4 sm:$0xff]  }
 0x611   : > { %8916 = vmatpush1.bf16.msra.mxu0 %v18013_v18  ;;  %9022 = vmatpush1.bf16.msra.mxu1 %v18016_v53  ;;  %v18090_v18 = vld [vmem:[%s19604_s26 + $0x80c] ss:$16 sps:$4 sm:$0xff]   ;;  %v18085_v53 = vld [vmem:[%s19604_s26 + $0x800] ss:$16 sps:$4 sm:$0xff]  }
 0x612   : > { %8917 = vmatprep.subr.bf16.mxu0 %v18021_v41  ;;  %9023 = vmatprep.subr.bf16.mxu1 %v18024_v32  ;;  %v18088_v41 = vld [vmem:[%s19604_s26 + $0x808] ss:$16 sps:$4 sm:$0xff]   ;;  %v18093_v32 = vld [vmem:[%s19604_s26 + $0x824] ss:$16 sps:$4 sm:$0xff]  }
 0x615   : > { %8918 = vmatpush1.bf16.msra.mxu0 %v18019_v27  ;;  %9024 = vmatpush1.bf16.msra.mxu1 %v18022_v1  ;;  %v18096_v27 = vld [vmem:[%s19604_s26 + $0x82c] ss:$16 sps:$4 sm:$0xff]   ;;  %v18091_v1 = vld [vmem:[%s19604_s26 + $0x820] ss:$16 sps:$4 sm:$0xff]  }
 0x616   : > { %8919 = vmatprep.subr.bf16.mxu0 %v18027_v54  ;;  %9025 = vmatprep.subr.bf16.mxu1 %v18030_v4  ;;  %v18094_v54 = vld [vmem:[%s19604_s26 + $0x828] ss:$16 sps:$4 sm:$0xff]   ;;  %v18099_v4 = vld [vmem:[%s19604_s26 + $0x844] ss:$16 sps:$4 sm:$0xff]  }
 0x619   : > { %8920 = vmatpush1.bf16.msra.mxu0 %v18025_v3  ;;  %9026 = vmatpush1.bf16.msra.mxu1 %v18028_v17  ;;  %v18102_v3 = vld [vmem:[%s19604_s26 + $0x84c] ss:$16 sps:$4 sm:$0xff]   ;;  %v18097_v17 = vld [vmem:[%s19604_s26 + $0x840] ss:$16 sps:$4 sm:$0xff]  }
 0x61a   : > { %8921 = vmatprep.subr.bf16.mxu0 %v18033_v58  ;;  %9027 = vmatprep.subr.bf16.mxu1 %v18036_v2  ;;  %v18100_v58 = vld [vmem:[%s19604_s26 + $0x848] ss:$16 sps:$4 sm:$0xff]   ;;  %v18105_v2 = vld [vmem:[%s19604_s26 + $0x864] ss:$16 sps:$4 sm:$0xff]  }
 0x61d   : > { %8922 = vmatpush1.bf16.msra.mxu0 %v18031_v48  ;;  %9028 = vmatpush1.bf16.msra.mxu1 %v18034_v38  ;;  %v18108_v48 = vld [vmem:[%s19604_s26 + $0x86c] ss:$16 sps:$4 sm:$0xff]   ;;  %v18103_v38 = vld [vmem:[%s19604_s26 + $0x860] ss:$16 sps:$4 sm:$0xff]  }
 0x61e   : > { %8923 = vmatprep.subr.bf16.mxu0 %v18039_v13  ;;  %9029 = vmatprep.subr.bf16.mxu1 %v18042_v59  ;;  %v18106_v13 = vld [vmem:[%s19604_s26 + $0x868] ss:$16 sps:$4 sm:$0xff]   ;;  %v18111_v59 = vld [vmem:[%s19604_s26 + $0x884] ss:$16 sps:$4 sm:$0xff]  }
 0x621   : > { %8924 = vmatpush1.bf16.msra.mxu0 %v18037_v28  ;;  %9030 = vmatpush1.bf16.msra.mxu1 %v18040_v8  ;;  %v18114_v28 = vld [vmem:[%s19604_s26 + $0x88c] ss:$16 sps:$4 sm:$0xff]   ;;  %v18109_v8 = vld [vmem:[%s19604_s26 + $0x880] ss:$16 sps:$4 sm:$0xff]  }
 0x622   : > { %8925 = vmatprep.subr.bf16.mxu0 %v18045_v46  ;;  %9031 = vmatprep.subr.bf16.mxu1 %v18048_v45  ;;  %v18112_v46 = vld [vmem:[%s19604_s26 + $0x888] ss:$16 sps:$4 sm:$0xff]   ;;  %v18117_v45 = vld [vmem:[%s19604_s26 + $0x8a4] ss:$16 sps:$4 sm:$0xff]  }
 0x625   : > { %8926 = vmatpush1.bf16.msra.mxu0 %v18043_v29  ;;  %9032 = vmatpush1.bf16.msra.mxu1 %v18046_v40  ;;  %v18120_v29 = vld [vmem:[%s19604_s26 + $0x8ac] ss:$16 sps:$4 sm:$0xff]   ;;  %v18115_v40 = vld [vmem:[%s19604_s26 + $0x8a0] ss:$16 sps:$4 sm:$0xff]  }
 0x626   : > { %8927 = vmatprep.subr.bf16.mxu0 %v18051_v12  ;;  %9033 = vmatprep.subr.bf16.mxu1 %v18054_v14  ;;  %v18118_v12 = vld [vmem:[%s19604_s26 + $0x8a8] ss:$16 sps:$4 sm:$0xff]   ;;  %v18126_v14 = vld [vmem:[%s19604_s26 + $0x8cc] ss:$16 sps:$4 sm:$0xff]  }
 0x629   : > { %8928 = vmatpush1.bf16.msra.mxu0 %v18049_v25  ;;  %9034 = vmatpush1.bf16.msra.mxu1 %v18052_v19  ;;  %v18121_v25 = vld [vmem:[%s19604_s26 + $0x8c0] ss:$16 sps:$4 sm:$0xff]   ;;  %v18124_v19 = vld [vmem:[%s19604_s26 + $0x8c8] ss:$16 sps:$4 sm:$0xff]  }
 0x62a   : > { %8929 = vmatprep.subr.bf16.mxu0 %v18057_v15  ;;  %9035 = vmatprep.subr.bf16.mxu1 %v18060_v61  ;;  %v18129_v15 = vld [vmem:[%s19604_s26 + $0x8e4] ss:$16 sps:$4 sm:$0xff]   ;;  %v18132_v61 = vld [vmem:[%s19604_s26 + $0x8ec] ss:$16 sps:$4 sm:$0xff]  }
 0x62d   : > { %8930 = vmatpush1.bf16.msra.mxu0 %v18055_v0  ;;  %9036 = vmatpush1.bf16.msra.mxu1 %v18058_v51  ;;  %v18127_v0 = vld [vmem:[%s19604_s26 + $0x8e0] ss:$16 sps:$4 sm:$0xff]   ;;  %v18130_v51 = vld [vmem:[%s19604_s26 + $0x8e8] ss:$16 sps:$4 sm:$0xff]  }
 0x62e   : > { %8931 = vmatprep.subr.bf16.mxu0 %v18063_v6  ;;  %9037 = vmatprep.subr.bf16.mxu1 %v18066_v35  ;;  %v18135_v6 = vld [vmem:[%s19604_s26 + $0x904] ss:$16 sps:$4 sm:$0xff]   ;;  %v18138_v35 = vld [vmem:[%s19604_s26 + $0x90c] ss:$16 sps:$4 sm:$0xff]  }
 0x631   : > { %8932 = vmatpush1.bf16.msra.mxu0 %v18061_v24  ;;  %9038 = vmatpush1.bf16.msra.mxu1 %v18064_v37  ;;  %v18133_v24 = vld [vmem:[%s19604_s26 + $0x900] ss:$16 sps:$4 sm:$0xff]   ;;  %v18136_v37 = vld [vmem:[%s19604_s26 + $0x908] ss:$16 sps:$4 sm:$0xff]  }
 0x632   : > { %8933 = vmatprep.subr.bf16.mxu0 %v18069_v63  ;;  %9039 = vmatprep.subr.bf16.mxu1 %v18072_v44  ;;  %v18141_v63 = vld [vmem:[%s19604_s26 + $0x924] ss:$16 sps:$4 sm:$0xff]   ;;  %v18144_v44 = vld [vmem:[%s19604_s26 + $0x92c] ss:$16 sps:$4 sm:$0xff]  }
 0x635   : > { %8934 = vmatpush1.bf16.msra.mxu0 %v18067_v30  ;;  %9040 = vmatpush1.bf16.msra.mxu1 %v18070_v55  ;;  %v18139_v30 = vld [vmem:[%s19604_s26 + $0x920] ss:$16 sps:$4 sm:$0xff]   ;;  %v18142_v55 = vld [vmem:[%s19604_s26 + $0x928] ss:$16 sps:$4 sm:$0xff]  }
 0x636   : > { %8935 = vmatprep.subr.bf16.mxu0 %v18075_v7  ;;  %9041 = vmatprep.subr.bf16.mxu1 %v18078_v47  ;;  %v18147_v7 = vld [vmem:[%s19604_s26 + $0x944] ss:$16 sps:$4 sm:$0xff]   ;;  %v18150_v47 = vld [vmem:[%s19604_s26 + $0x94c] ss:$16 sps:$4 sm:$0xff]  }
 0x639   : > { %8936 = vmatpush1.bf16.msra.mxu0 %v18073_v26  ;;  %9042 = vmatpush1.bf16.msra.mxu1 %v18076_v50  ;;  %v18145_v26 = vld [vmem:[%s19604_s26 + $0x940] ss:$16 sps:$4 sm:$0xff]   ;;  %v18148_v50 = vld [vmem:[%s19604_s26 + $0x948] ss:$16 sps:$4 sm:$0xff]  }
 0x63a   : > { %8937 = vmatprep.subr.bf16.mxu0 %v18081_v43  ;;  %9043 = vmatprep.subr.bf16.mxu1 %v18084_v34  ;;  %v18153_v43 = vld [vmem:[%s19604_s26 + $0x964] ss:$16 sps:$4 sm:$0xff]   ;;  %v18156_v34 = vld [vmem:[%s19604_s26 + $0x96c] ss:$16 sps:$4 sm:$0xff]  }
 0x63d   : > { %8938 = vmatpush1.bf16.msra.mxu0 %v18079_v57  ;;  %9044 = vmatpush1.bf16.msra.mxu1 %v18082_v56  ;;  %v18151_v57 = vld [vmem:[%s19604_s26 + $0x960] ss:$16 sps:$4 sm:$0xff]   ;;  %v18154_v56 = vld [vmem:[%s19604_s26 + $0x968] ss:$16 sps:$4 sm:$0xff]  }
 0x63e   : > { %9835 = vmatprep.subr.bf16.mxu0 %v18087_v16  ;;  %9941 = vmatprep.subr.bf16.mxu1 %v18090_v18  ;;  %v18159_v16 = vld [vmem:[%s19604_s26 + $0x984] ss:$16 sps:$4 sm:$0xff]   ;;  %v18162_v18 = vld [vmem:[%s19604_s26 + $0x98c] ss:$16 sps:$4 sm:$0xff]  }
 0x640   : > { %8940 = vmatmul.mubr.bf16.vlgmr.msra.gmra.mrb[32].mxu0 %v21104_v49  ;;  %9046 = vmatmul.mubr.bf16.vlgmr.msra.gmra.mrb[32].mxu1 %v21104_v49 }
 0x641   : > { %9836 = vmatpush1.bf16.msra.mxu0 %v18085_v53  ;;  %9942 = vmatpush1.bf16.msra.mxu1 %v18088_v41  ;;  %v18157_v53 = vld [vmem:[%s19604_s26 + $0x980] ss:$16 sps:$4 sm:$0xff]   ;;  %v18160_v41 = vld [vmem:[%s19604_s26 + $0x988] ss:$16 sps:$4 sm:$0xff]  }
 0x642   : > { %9837 = vmatprep.subr.bf16.mxu0 %v18093_v32  ;;  %9943 = vmatprep.subr.bf16.mxu1 %v18096_v27  ;;  %v18165_v32 = vld [vmem:[%s19604_s26 + $0x9a4] ss:$16 sps:$4 sm:$0xff]   ;;  %v18168_v27 = vld [vmem:[%s19604_s26 + $0x9ac] ss:$16 sps:$4 sm:$0xff]  }
 0x643   : > { %8949 = vmatprep.mubr.bf16.mxu0 %v21112_v21  ;;  %9055 = vmatprep.mubr.bf16.mxu1 %v21112_v21 }
 0x645   : > { %9838 = vmatpush1.bf16.msra.mxu0 %v18091_v1  ;;  %9944 = vmatpush1.bf16.msra.mxu1 %v18094_v54  ;;  %v18163_v1 = vld [vmem:[%s19604_s26 + $0x9a0] ss:$16 sps:$4 sm:$0xff]   ;;  %v18166_v54 = vld [vmem:[%s19604_s26 + $0x9a8] ss:$16 sps:$4 sm:$0xff]  }
 0x646   : > { %9839 = vmatprep.subr.bf16.mxu0 %v18099_v4  ;;  %9945 = vmatprep.subr.bf16.mxu1 %v18102_v3  ;;  %v18171_v4 = vld [vmem:[%s19604_s26 + $0x9c4] ss:$16 sps:$4 sm:$0xff]   ;;  %v18174_v3 = vld [vmem:[%s19604_s26 + $0x9cc] ss:$16 sps:$4 sm:$0xff]  }
 0x648   : > { %8950 = vmatmul.mubr.bf16.gmra.mrb[36].mxu0 %v21124_v23  ;;  %9056 = vmatmul.mubr.bf16.gmra.mrb[36].mxu1 %v21124_v23 }
 0x649   : > { %9840 = vmatpush1.bf16.msra.mxu0 %v18097_v17  ;;  %9946 = vmatpush1.bf16.msra.mxu1 %v18100_v58  ;;  %v18169_v17 = vld [vmem:[%s19604_s26 + $0x9c0] ss:$16 sps:$4 sm:$0xff]   ;;  %v18172_v58 = vld [vmem:[%s19604_s26 + $0x9c8] ss:$16 sps:$4 sm:$0xff]  }
 0x64a   : > { %9841 = vmatprep.subr.bf16.mxu0 %v18105_v2  ;;  %9947 = vmatprep.subr.bf16.mxu1 %v18108_v48  ;;  %v18177_v2 = vld [vmem:[%s19604_s26 + $0x9e4] ss:$16 sps:$4 sm:$0xff]   ;;  %v18180_v48 = vld [vmem:[%s19604_s26 + $0x9ec] ss:$16 sps:$4 sm:$0xff]  }
 0x64b   : > { %9867 = vmatprep.mubr.bf16.mxu0 %v20945_v42  ;;  %9973 = vmatprep.mubr.bf16.mxu1 %v20945_v42  ;;  %v18123_v42 = vld [vmem:[%s19604_s26 + $0x8c4] ss:$16 sps:$4 sm:$0xff]  }
 0x64d   : > { %9842 = vmatpush1.bf16.msra.mxu0 %v18103_v38  ;;  %9948 = vmatpush1.bf16.msra.mxu1 %v18106_v13  ;;  %v18175_v38 = vld [vmem:[%s19604_s26 + $0x9e0] ss:$16 sps:$4 sm:$0xff]   ;;  %v18178_v13 = vld [vmem:[%s19604_s26 + $0x9e8] ss:$16 sps:$4 sm:$0xff]  }
 0x64e   : > { %9843 = vmatprep.subr.bf16.mxu0 %v18111_v59  ;;  %9949 = vmatprep.subr.bf16.mxu1 %v18114_v28  ;;  %v18183_v59 = vld [vmem:[%s19604_s26 + $0xa04] ss:$16 sps:$4 sm:$0xff]   ;;  %v18186_v28 = vld [vmem:[%s19604_s26 + $0xa0c] ss:$16 sps:$4 sm:$0xff]  }
 0x651   : > { %9844 = vmatpush1.bf16.msra.mxu0 %v18109_v8  ;;  %9950 = vmatpush1.bf16.msra.mxu1 %v18112_v46  ;;  %v18181_v8 = vld [vmem:[%s19604_s26 + $0xa00] ss:$16 sps:$4 sm:$0xff]   ;;  %v18184_v46 = vld [vmem:[%s19604_s26 + $0xa08] ss:$16 sps:$4 sm:$0xff]  }
 0x652   : > { %9845 = vmatprep.subr.bf16.mxu0 %v18117_v45  ;;  %9951 = vmatprep.subr.bf16.mxu1 %v18120_v29  ;;  %v18189_v45 = vld [vmem:[%s19604_s26 + $0xa24] ss:$16 sps:$4 sm:$0xff]   ;;  %v18192_v29 = vld [vmem:[%s19604_s26 + $0xa2c] ss:$16 sps:$4 sm:$0xff]  }
 0x655   : > { %9846 = vmatpush1.bf16.msra.mxu0 %v18115_v40  ;;  %9952 = vmatpush1.bf16.msra.mxu1 %v18118_v12  ;;  %v18187_v40 = vld [vmem:[%s19604_s26 + $0xa20] ss:$16 sps:$4 sm:$0xff]   ;;  %v18190_v12 = vld [vmem:[%s19604_s26 + $0xa28] ss:$16 sps:$4 sm:$0xff]  }
 0x656   : > { %9847 = vmatprep.subr.bf16.mxu0 %v18123_v42  ;;  %9953 = vmatprep.subr.bf16.mxu1 %v18126_v14  ;;  %v18195_v42 = vld [vmem:[%s19604_s26 + $0xa44] ss:$16 sps:$4 sm:$0xff]   ;;  %v18198_v14 = vld [vmem:[%s19604_s26 + $0xa4c] ss:$16 sps:$4 sm:$0xff]  }
 0x659   : > { %9848 = vmatpush1.bf16.msra.mxu0 %v18121_v25  ;;  %9954 = vmatpush1.bf16.msra.mxu1 %v18124_v19  ;;  %v18196_v25 = vld [vmem:[%s19604_s26 + $0xa48] ss:$16 sps:$4 sm:$0xff]   ;;  %v18201_v19 = vld [vmem:[%s19604_s26 + $0xa64] ss:$16 sps:$4 sm:$0xff]  }
 0x65a   : > { %9849 = vmatprep.subr.bf16.mxu0 %v18129_v15  ;;  %9955 = vmatprep.subr.bf16.mxu1 %v18132_v61  ;;  %v18204_v15 = vld [vmem:[%s19604_s26 + $0xa6c] ss:$16 sps:$4 sm:$0xff]   ;;  %v18202_v61 = vld [vmem:[%s19604_s26 + $0xa68] ss:$16 sps:$4 sm:$0xff]  }
 0x65d   : > { %9850 = vmatpush1.bf16.msra.mxu0 %v18127_v0  ;;  %9956 = vmatpush1.bf16.msra.mxu1 %v18130_v51  ;;  %v18207_v0 = vld [vmem:[%s19604_s26 + $0xa84] ss:$16 sps:$4 sm:$0xff]   ;;  %v18210_v51 = vld [vmem:[%s19604_s26 + $0xa8c] ss:$16 sps:$4 sm:$0xff]  }
 0x65e   : > { %9851 = vmatprep.subr.bf16.mxu0 %v18135_v6  ;;  %9957 = vmatprep.subr.bf16.mxu1 %v18138_v35  ;;  %v18208_v6 = vld [vmem:[%s19604_s26 + $0xa88] ss:$16 sps:$4 sm:$0xff]   ;;  %v18213_v35 = vld [vmem:[%s19604_s26 + $0xaa4] ss:$16 sps:$4 sm:$0xff]  }
 0x661   : > { %9852 = vmatpush1.bf16.msra.mxu0 %v18133_v24  ;;  %9958 = vmatpush1.bf16.msra.mxu1 %v18136_v37  ;;  %v18216_v24 = vld [vmem:[%s19604_s26 + $0xaac] ss:$16 sps:$4 sm:$0xff]   ;;  %v18211_v37 = vld [vmem:[%s19604_s26 + $0xaa0] ss:$16 sps:$4 sm:$0xff]  }
 0x662   : > { %9853 = vmatprep.subr.bf16.mxu0 %v18141_v63  ;;  %9959 = vmatprep.subr.bf16.mxu1 %v18144_v44  ;;  %v18214_v63 = vld [vmem:[%s19604_s26 + $0xaa8] ss:$16 sps:$4 sm:$0xff]   ;;  %v18222_v44 = vld [vmem:[%s19604_s26 + $0xacc] ss:$16 sps:$4 sm:$0xff]  }
 0x665   : > { %9854 = vmatpush1.bf16.msra.mxu0 %v18139_v30  ;;  %9960 = vmatpush1.bf16.msra.mxu1 %v18142_v55 }
 0x666   : > { %9855 = vmatprep.subr.bf16.mxu0 %v18147_v7  ;;  %9961 = vmatprep.subr.bf16.mxu1 %v18150_v47 }
 0x669   : > { %9856 = vmatpush1.bf16.msra.mxu0 %v18145_v26  ;;  %9962 = vmatpush1.bf16.msra.mxu1 %v18148_v50  ;;  %v18217_v26 = vld [vmem:[%s19604_s26 + $0xac0] ss:$16 sps:$4 sm:$0xff]   ;;  %v18220_v50 = vld [vmem:[%s19604_s26 + $0xac8] ss:$16 sps:$4 sm:$0xff]  }
 0x66a   : > { %9857 = vmatprep.subr.bf16.mxu0 %v18153_v43  ;;  %9963 = vmatprep.subr.bf16.mxu1 %v18156_v34 }
 0x66d   : > { %9858 = vmatpush1.bf16.msra.mxu0 %v18151_v57  ;;  %9964 = vmatpush1.bf16.msra.mxu1 %v18154_v56  ;;  %v18225_v57 = vld [vmem:[%s19604_s26 + $0xae4] ss:$16 sps:$4 sm:$0xff]   ;;  %v18228_v56 = vld [vmem:[%s19604_s26 + $0xaec] ss:$16 sps:$4 sm:$0xff]  }
 0x66e   : > { %9859 = vmatprep.subr.bf16.mxu0 %v18159_v16  ;;  %9965 = vmatprep.subr.bf16.mxu1 %v18162_v18 }
 0x671   : > { %9860 = vmatpush1.bf16.msra.mxu0 %v18157_v53  ;;  %9966 = vmatpush1.bf16.msra.mxu1 %v18160_v41 }
 0x672   : > { %9861 = vmatprep.subr.bf16.mxu0 %v18165_v32  ;;  %9967 = vmatprep.subr.bf16.mxu1 %v18168_v27 }
 0x675   : > { %9862 = vmatpush1.bf16.msra.mxu0 %v18163_v1  ;;  %9968 = vmatpush1.bf16.msra.mxu1 %v18166_v54 }
 0x676   : > { %9863 = vmatprep.subr.bf16.mxu0 %v18171_v4  ;;  %9969 = vmatprep.subr.bf16.mxu1 %v18174_v3 }
 0x679   : > { %9864 = vmatpush1.bf16.msra.mxu0 %v18169_v17  ;;  %9970 = vmatpush1.bf16.msra.mxu1 %v18172_v58 }
 0x67a   : > { %9865 = vmatprep.subr.bf16.mxu0 %v18177_v2  ;;  %9971 = vmatprep.subr.bf16.mxu1 %v18180_v48  ;;  %v18223_v2 = vld [vmem:[%s19604_s26 + $0xae0] ss:$16 sps:$4 sm:$0xff]   ;;  %v18226_v48 = vld [vmem:[%s19604_s26 + $0xae8] ss:$16 sps:$4 sm:$0xff]  }
 0x67d   : > { %9866 = vmatpush1.bf16.msra.mxu0 %v18175_v38  ;;  %9972 = vmatpush1.bf16.msra.mxu1 %v18178_v13 }
 0x67e   : > { %9888 = vmatprep.subr.bf16.mxu0 %v18183_v59  ;;  %9994 = vmatprep.subr.bf16.mxu1 %v18186_v28  ;;  %v18231_v59 = vld [vmem:[%s19604_s26 + $0xb04] ss:$16 sps:$4 sm:$0xff]   ;;  %v18234_v28 = vld [vmem:[%s19604_s26 + $0xb0c] ss:$16 sps:$4 sm:$0xff]  }
 0x680   : > { %9868 = vmatmul.mubr.bf16.vlgmr.msra.gmra.mrb[40].mxu0 %v21018_v52  ;;  %9974 = vmatmul.mubr.bf16.vlgmr.msra.gmra.mrb[40].mxu1 %v21018_v52  ;;  %v18193_v52 = vld [vmem:[%s19604_s26 + $0xa40] ss:$16 sps:$4 sm:$0xff]  }
 0x681   : > { %9889 = vmatpush1.bf16.msra.mxu0 %v18181_v8  ;;  %9995 = vmatpush1.bf16.msra.mxu1 %v18184_v46 }
 0x682   : > { %9890 = vmatprep.subr.bf16.mxu0 %v18189_v45  ;;  %9996 = vmatprep.subr.bf16.mxu1 %v18192_v29  ;;  %v18229_v45 = vld [vmem:[%s19604_s26 + $0xb00] ss:$16 sps:$4 sm:$0xff]  }
 0x683   : > { %9877 = vmatprep.mubr.bf16.mxu0 %v21024_v31  ;;  %9983 = vmatprep.mubr.bf16.mxu1 %v21024_v31  ;;  %v18199_v31 = vld [vmem:[%s19604_s26 + $0xa60] ss:$16 sps:$4 sm:$0xff]  }
 0x685   : > { %9891 = vmatpush1.bf16.msra.mxu0 %v18187_v40  ;;  %9997 = vmatpush1.bf16.msra.mxu1 %v18190_v12 }
 0x686   : > { %9892 = vmatprep.subr.bf16.mxu0 %v18195_v42  ;;  %9998 = vmatprep.subr.bf16.mxu1 %v18198_v14  ;;  %v18232_v14 = vld [vmem:[%s19604_s26 + $0xb08] ss:$16 sps:$4 sm:$0xff]  }
 0x688   : > { %9878 = vmatmul.mubr.bf16.gmra.mrb[44].mxu0 %v21038_v9  ;;  %9984 = vmatmul.mubr.bf16.gmra.mrb[44].mxu1 %v21038_v9  ;;  %v18205_v9 = vld [vmem:[%s19604_s26 + $0xa80] ss:$16 sps:$4 sm:$0xff]  }
 0x689   : > { %9893 = vmatpush1.bf16.msra.mxu0 %v18193_v52  ;;  %9999 = vmatpush1.bf16.msra.mxu1 %v18196_v25 }
 0x68a   : > { %9894 = vmatprep.subr.bf16.mxu0 %v18201_v19  ;;  %10000 = vmatprep.subr.bf16.mxu1 %v18204_v15 }
 0x68b   : > { %9920 = vmatprep.mubr.bf16.mxu0 %v21044_v33  ;;  %10026 = vmatprep.mubr.bf16.mxu1 %v21044_v33  ;;  %v18219_v33 = vld [vmem:[%s19604_s26 + $0xac4] ss:$16 sps:$4 sm:$0xff]  }
 0x68d   : > { %9895 = vmatpush1.bf16.msra.mxu0 %v18199_v31  ;;  %10001 = vmatpush1.bf16.msra.mxu1 %v18202_v61  ;;  %v18237_v31 = vld [vmem:[%s19604_s26 + $0xb24] ss:$16 sps:$4 sm:$0xff]  }
 0x68e   : > { %9896 = vmatprep.subr.bf16.mxu0 %v18207_v0  ;;  %10002 = vmatprep.subr.bf16.mxu1 %v18210_v51 }
 0x691   : > { %9897 = vmatpush1.bf16.msra.mxu0 %v18205_v9  ;;  %10003 = vmatpush1.bf16.msra.mxu1 %v18208_v6 }
 0x692   : > { %9898 = vmatprep.subr.bf16.mxu0 %v18213_v35  ;;  %10004 = vmatprep.subr.bf16.mxu1 %v18216_v24  ;;  %v18240_v24 = vld [vmem:[%s19604_s26 + $0xb2c] ss:$16 sps:$4 sm:$0xff]  }
 0x693   : > { %v21362_v30 = vpop.f32.mrb[24].mxu0  ;;  %v21364_v55 = vpop.f32.mrb[24].mxu1 }
 0x694   : > { %v21366_v7 = vpop.f32.mrb[25].mxu0  ;;  %v21368_v47 = vpop.f32.mrb[25].mxu1  ;;  %v8166_v16 = vrot.slane %v21362_v30, 7  ;;  %v8168_v18 = vrot.slane %v21364_v55, 7 }
 0x695   : > { %v8045_v43 = vpop.f32.mrb[26].mxu0  ;;  %v8151_v34 = vpop.f32.mrb[26].mxu1  ;;  %9899 = vmatpush1.bf16.msra.mxu0 %v18211_v37  ;;  %10005 = vmatpush1.bf16.msra.mxu1 %v18214_v63  ;;  %v8167_v1 = vrot.slane %v21366_v7, 7  ;;  %v8169_v54 = vrot.slane %v21368_v47, 7 }
 0x696   : > { %v8170_v53 = vrot.slane %v8045_v43, 7  ;;  %v8172_v41 = vrot.slane %v8151_v34, 7  ;;  %v8047_v32 = vpop.f32.mrb[27].mxu0  ;;  %v8153_v27 = vpop.f32.mrb[27].mxu1  ;;  %9900 = vmatprep.subr.bf16.mxu0 %v18219_v33  ;;  %10006 = vmatprep.subr.bf16.mxu1 %v18222_v44  ;;  %v18243_v43 = vld [vmem:[%s19604_s26 + $0xb44] ss:$16 sps:$4 sm:$0xff]  }
 0x697   : > { %v8171_v4 = vrot.slane %v8047_v32, 7  ;;  %v8173_v3 = vrot.slane %v8153_v27, 7  ;;  %v18246_v34 = vld [vmem:[%s19604_s26 + $0xb4c] ss:$16 sps:$4 sm:$0xff]   ;;  %v18249_v32 = vld [vmem:[%s19604_s26 + $0xb64] ss:$16 sps:$4 sm:$0xff]  }
 0x698   : > { %v21380_v17 = vsel %vm3020_vm0, %v8166_v16, %v8170_v53  ;;  %v21384_v58 = vsel %vm3020_vm0, %v8168_v18, %v8172_v41  ;;  %v18252_v27 = vld [vmem:[%s19604_s26 + $0xb6c] ss:$16 sps:$4 sm:$0xff]  }
 0x699   : > { %9901 = vmatpush1.bf16.msra.mxu0 %v18217_v26  ;;  %10007 = vmatpush1.bf16.msra.mxu1 %v18220_v50  ;;  %v21390_v38 = vsel %vm3020_vm0, %v8167_v1, %v8171_v4  ;;  %v21394_v13 = vsel %vm3020_vm0, %v8169_v54, %v8173_v3  ;;  %v18235_v26 = vld [vmem:[%s19604_s26 + $0xb20] ss:$16 sps:$4 sm:$0xff]   ;;  %v18238_v50 = vld [vmem:[%s19604_s26 + $0xb28] ss:$16 sps:$4 sm:$0xff]  }
 0x69a   : > { %9902 = vmatprep.subr.bf16.mxu0 %v18225_v57  ;;  %10008 = vmatprep.subr.bf16.mxu1 %v18228_v56 }
 0x69b   : > { %v8051_v8 = vpop.f32.mrb[28].mxu0  ;;  %v8157_v46 = vpop.f32.mrb[28].mxu1 }
 0x69c   : > { %v8174_v29 = vrot.slane %v8051_v8, 7  ;;  %v8176_v40 = vrot.slane %v8157_v46, 7  ;;  %v8053_v12 = vpop.f32.mrb[29].mxu0  ;;  %v8159_v42 = vpop.f32.mrb[29].mxu1  ;;  %v18259_v8 = vld [vmem:[%s19604_s26 + $0xba0] ss:$16 sps:$4 sm:$0xff]  }
 0x69d   : > { %v8175_v52 = vrot.slane %v8053_v12, 7  ;;  %v8177_v25 = vrot.slane %v8159_v42, 7  ;;  %v8055_v19 = vpop.f32.mrb[30].mxu0  ;;  %v8161_v15 = vpop.f32.mrb[30].mxu1  ;;  %9903 = vmatpush1.bf16.msra.mxu0 %v18223_v2  ;;  %10009 = vmatpush1.bf16.msra.mxu1 %v18226_v48  ;;  %v18253_v2 = vld [vmem:[%s19604_s26 + $0xb80] ss:$16 sps:$4 sm:$0xff]  }
 0x69e   : > { %v21403_v61 = vsel %vm3020_vm0, %v8170_v53, %v8174_v29  ;;  %v21407_v0 = vsel %vm3020_vm0, %v8172_v41, %v8176_v40  ;;  %v8178_v51 = vrot.slane %v8055_v19, 7  ;;  %v8180_v9 = vrot.slane %v8161_v15, 7  ;;  %v8057_v6 = vpop.f32.mrb[31].mxu0  ;;  %v8163_v35 = vpop.f32.mrb[31].mxu1  ;;  %9904 = vmatprep.subr.bf16.mxu0 %v18231_v59  ;;  %10010 = vmatprep.subr.bf16.mxu1 %v18234_v28  ;;  %v18241_v53 = vld [vmem:[%s19604_s26 + $0xb40] ss:$16 sps:$4 sm:$0xff]  }
 0x69f   : > { %v21412_v37 = vsel %vm3020_vm0, %v8171_v4, %v8175_v52  ;;  %v21416_v63 = vsel %vm3020_vm0, %v8173_v3, %v8177_v25  ;;  %v8179_v33 = vrot.slane %v8057_v6, 7  ;;  %v8181_v44 = vrot.slane %v8163_v35, 7  ;;  %v18244_v41 = vld [vmem:[%s19604_s26 + $0xb48] ss:$16 sps:$4 sm:$0xff]   ;;  %v18255_v4 = vld [vmem:[%s19604_s26 + $0xb84] ss:$16 sps:$4 sm:$0xff]  }
 0x6a0   : > { %v21420_v30 = vsel %vm3020_vm0, %v8178_v51, %v8166_v16  ;;  %v21424_v55 = vsel %vm3020_vm0, %v8180_v9, %v8168_v18  ;;  %v21440_v57 = vsel %vm3020_vm0, %v8174_v29, %v8178_v51  ;;  %v21444_v56 = vsel %vm3020_vm0, %v8176_v40, %v8180_v9  ;;  %v18258_v3 = vld [vmem:[%s19604_s26 + $0xb8c] ss:$16 sps:$4 sm:$0xff]   ;;  %v18256_v48 = vld [vmem:[%s19604_s26 + $0xb88] ss:$16 sps:$4 sm:$0xff]   ;;  %v18261_v59 = vld [vmem:[%s19604_s26 + $0xba4] ss:$16 sps:$4 sm:$0xff]  }
 0x6a1   : > { %v21428_v7 = vsel %vm3020_vm0, %v8179_v33, %v8167_v1  ;;  %v21432_v47 = vsel %vm3020_vm0, %v8181_v44, %v8169_v54  ;;  %9905 = vmatpush1.bf16.msra.mxu0 %v18229_v45  ;;  %10011 = vmatpush1.bf16.msra.mxu1 %v18232_v14  ;;  %v21448_v16 = vsel %vm3020_vm0, %v8175_v52, %v8179_v33  ;;  %v18247_v1 = vld [vmem:[%s19604_s26 + $0xb60] ss:$16 sps:$4 sm:$0xff]   ;;  %v18250_v54 = vld [vmem:[%s19604_s26 + $0xb68] ss:$16 sps:$4 sm:$0xff]   ;;  %v18264_v28 = vld [vmem:[%s19604_s26 + $0xbac] ss:$16 sps:$4 sm:$0xff]  }
 0x6a2   : > { %9906 = vmatprep.subr.bf16.mxu0 %v18237_v31  ;;  %10012 = vmatprep.subr.bf16.mxu1 %v18240_v24  ;;  %v21452_v18 = vsel %vm3020_vm0, %v8177_v25, %v8181_v44  ;;  %v18262_v46 = vld [vmem:[%s19604_s26 + $0xba8] ss:$16 sps:$4 sm:$0xff]   ;;  %v18267_v45 = vld [vmem:[%s19604_s26 + $0xbc4] ss:$16 sps:$4 sm:$0xff]   ;;  %v18270_v29 = vld [vmem:[%s19604_s26 + $0xbcc] ss:$16 sps:$4 sm:$0xff]   ;;  %v8198_v19 = vmul.f32 %v20568_v20, %v21420_v30  ;;  %v8200_v15 = vmul.f32 %v20568_v20, %v21424_v55 }
 0x6a3   : > { %v18265_v40 = vld [vmem:[%s19604_s26 + $0xbc0] ss:$16 sps:$4 sm:$0xff]   ;;  %v18268_v12 = vld [vmem:[%s19604_s26 + $0xbc8] ss:$16 sps:$4 sm:$0xff]   ;;  %v18273_v42 = vld [vmem:[%s19604_s26 + $0xbe4] ss:$16 sps:$4 sm:$0xff]   ;;  %v8199_v9 = vmul.f32 %v20568_v20, %v21428_v7 }
 0x6a4   : > { %v18276_v14 = vld [vmem:[%s19604_s26 + $0xbec] ss:$16 sps:$4 sm:$0xff]   ;;  %v18271_v52 = vld [vmem:[%s19604_s26 + $0xbe0] ss:$16 sps:$4 sm:$0xff]   ;;  %v18274_v25 = vld [vmem:[%s19604_s26 + $0xbe8] ss:$16 sps:$4 sm:$0xff]  }
 0x6a5   : > { %9907 = vmatpush1.bf16.msra.mxu0 %v18235_v26  ;;  %10013 = vmatpush1.bf16.msra.mxu1 %v18238_v50 }
 0x6a6   : > { %9908 = vmatprep.subr.bf16.mxu0 %v18243_v43  ;;  %10014 = vmatprep.subr.bf16.mxu1 %v18246_v34  ;;  %v8206_v34 = vmul.f32 %v20613_v60, %v21403_v61 }
 0x6a9   : > { %9909 = vmatpush1.bf16.msra.mxu0 %v18241_v53  ;;  %10015 = vmatpush1.bf16.msra.mxu1 %v18244_v41  ;;  %v8208_v53 = vmul.f32 %v20613_v60, %v21407_v0 }
 0x6aa   : > { %9910 = vmatprep.subr.bf16.mxu0 %v18249_v32  ;;  %10016 = vmatprep.subr.bf16.mxu1 %v18252_v27  ;;  %v8209_v32 = vmul.f32 %v20613_v60, %v21416_v63 }
 0x6ad   : > { %9911 = vmatpush1.bf16.msra.mxu0 %v18247_v1  ;;  %10017 = vmatpush1.bf16.msra.mxu1 %v18250_v54 }
 0x6ae   : > { %9912 = vmatprep.subr.bf16.mxu0 %v18255_v4  ;;  %10018 = vmatprep.subr.bf16.mxu1 %v18258_v3 }
 0x6b1   : > { %9913 = vmatpush1.bf16.msra.mxu0 %v18253_v2  ;;  %10019 = vmatpush1.bf16.msra.mxu1 %v18256_v48 }
 0x6b2   : > { %9914 = vmatprep.subr.bf16.mxu0 %v18261_v59  ;;  %10020 = vmatprep.subr.bf16.mxu1 %v18264_v28 }
 0x6b5   : > { %9915 = vmatpush1.bf16.msra.mxu0 %v18259_v8  ;;  %10021 = vmatpush1.bf16.msra.mxu1 %v18262_v46 }
 0x6b6   : > { %9916 = vmatprep.subr.bf16.mxu0 %v18267_v45  ;;  %10022 = vmatprep.subr.bf16.mxu1 %v18270_v29 }
 0x6b9   : > { %9917 = vmatpush1.bf16.msra.mxu0 %v18265_v40  ;;  %10023 = vmatpush1.bf16.msra.mxu1 %v18268_v12 }
 0x6ba   : > { %9918 = vmatprep.subr.bf16.mxu0 %v18273_v42  ;;  %10024 = vmatprep.subr.bf16.mxu1 %v18276_v14 }
 0x6bd   : > { %9919 = vmatpush1.bf16.msra.mxu0 %v18271_v52  ;;  %10025 = vmatpush1.bf16.msra.mxu1 %v18274_v25 }
 0x6c0   : > { %9921 = vmatmul.mubr.bf16.vlgmr.msra.gmra.mrb[40].mxu0 %v21104_v49  ;;  %10027 = vmatmul.mubr.bf16.vlgmr.msra.gmra.mrb[40].mxu1 %v21104_v49  ;;  %v8201_v49 = vmul.f32 %v20568_v20, %v21432_v47 }
 0x6c1   : > { %9930 = vmatprep.mubr.bf16.mxu0 %v21112_v21  ;;  %10036 = vmatprep.mubr.bf16.mxu1 %v21112_v21 }
 0x6c8   : > { %9931 = vmatmul.mubr.bf16.gmra.mrb[44].mxu0 %v21124_v23  ;;  %10037 = vmatmul.mubr.bf16.gmra.mrb[44].mxu1 %v21124_v23 }
 0x713   : > { %v8941_v31 = vpop.f32.mrb[32].mxu0  ;;  %v9047_v51 = vpop.f32.mrb[32].mxu1 }
 0x714   : > { %v16083_v6 = vadd.f32 %v8941_v31, %v8198_v19  ;;  %v16091_v21 = vadd.f32 %v9047_v51, %v8200_v15  ;;  %v8943_v35 = vpop.f32.mrb[33].mxu0  ;;  %v9049_v24 = vpop.f32.mrb[33].mxu1  ;;  %v7033_v15 = vld [vmem:[#allocation2] sm:$0xff]  ;;  %v7035_v51 = vld [vmem:[#allocation2 + $0x10] sm:$0xff] }
 0x715   : > { %v16084_v33 = vadd.f32 %v8943_v35, %v8199_v9  ;;  %v16092_v23 = vadd.f32 %v9049_v24, %v8201_v49  ;;  %v8945_v44 = vpop.f32.mrb[34].mxu0  ;;  %v9051_v26 = vpop.f32.mrb[34].mxu1  ;;  %v7034_v24 = vld [vmem:[#allocation2 + $0x8] sm:$0xff] }
 0x716   : > { %v21491_v30 = vadd.f32 %v8945_v44, %v21380_v17  ;;  %v21494_v55 = vadd.f32 %v9051_v26, %v21384_v58  ;;  %v8947_v50 = vpop.f32.mrb[35].mxu0  ;;  %v9053_v43 = vpop.f32.mrb[35].mxu1  ;;  %v8207_v58 = vmul.f32 %v20613_v60, %v21412_v37  ;;  %v7036_v26 = vld [vmem:[#allocation2 + $0x18] sm:$0xff] }
 0x717   : > { %v21497_v7 = vadd.f32 %v8947_v50, %v21390_v38  ;;  %v21500_v47 = vadd.f32 %v9053_v43, %v21394_v13 }
 0x71b   : > { %v8951_v41 = vpop.f32.mrb[36].mxu0  ;;  %v9057_v17 = vpop.f32.mrb[36].mxu1 }
 0x71c   : > { %v21510_v27 = vadd.f32 %v8951_v41, %v8206_v34  ;;  %v21512_v38 = vadd.f32 %v9057_v17, %v8208_v53  ;;  %v8953_v13 = vpop.f32.mrb[37].mxu0  ;;  %v9059_v1 = vpop.f32.mrb[37].mxu1 }
 0x71d   : > { %v21514_v54 = vadd.f32 %v8953_v13, %v8207_v58  ;;  %v21516_v61 = vadd.f32 %v9059_v1, %v8209_v32  ;;  %v8955_v4 = vpop.f32.mrb[38].mxu0  ;;  %v9061_v0 = vpop.f32.mrb[38].mxu1 }
 0x71e   : > { %v21519_v3 = vadd.f32 %v8955_v4, %v21440_v57  ;;  %v21522_v37 = vadd.f32 %v9061_v0, %v21444_v56  ;;  %v8957_v2 = vpop.f32.mrb[39].mxu0  ;;  %v9063_v63 = vpop.f32.mrb[39].mxu1 }
 0x71f   : > { %v21525_v48 = vadd.f32 %v8957_v2, %v21448_v16  ;;  %v21528_v59 = vadd.f32 %v9063_v63, %v21452_v18 }
 0x793   : > { %v21530_v28 = vpop.f32.mrb[40].mxu0  ;;  %v21532_v8 = vpop.f32.mrb[40].mxu1 }
 0x794   : > { %v21534_v46 = vpop.f32.mrb[41].mxu0  ;;  %v21536_v45 = vpop.f32.mrb[41].mxu1  ;;  %v10047_v56 = vrot.slane %v21530_v28, 1  ;;  %v10049_v40 = vrot.slane %v21532_v8, 1  ;;  %v7047_v8 = vld [vmem:[#allocation2 + $0x70] sm:$0xff] }
 0x795   : > { %v9926_v57 = vpop.f32.mrb[42].mxu0  ;;  %v10032_v29 = vpop.f32.mrb[42].mxu1  ;;  %v10048_v18 = vrot.slane %v21534_v46, 1  ;;  %v10050_v52 = vrot.slane %v21536_v45, 1 }
 0x796   : > { %v10051_v12 = vrot.slane %v9926_v57, 1  ;;  %v10053_v16 = vrot.slane %v10032_v29, 1  ;;  %v9928_v42 = vpop.f32.mrb[43].mxu0  ;;  %v10034_v14 = vpop.f32.mrb[43].mxu1 }
 0x797   : > { %v10052_v25 = vrot.slane %v9928_v42, 1  ;;  %v10054_v19 = vrot.slane %v10034_v14, 1 }
 0x798   : > { %v10071_v31 = vsel %vm6734_vm3, %v10047_v56, %v10051_v12  ;;  %v10073_v9 = vsel %vm6734_vm3, %v10049_v40, %v10053_v16 }
 0x799   : > { %v10095_v49 = vadd.f32 %v16083_v6, %v10071_v31  ;;  %v10097_v35 = vadd.f32 %v16091_v21, %v10073_v9  ;;  %v10072_v44 = vsel %vm6734_vm3, %v10048_v18, %v10052_v25  ;;  %v10074_v50 = vsel %vm6734_vm3, %v10050_v52, %v10054_v19 }
 0x79a   : > { %v10096_v43 = vadd.f32 %v16084_v33, %v10072_v44  ;;  %v10098_v34 = vadd.f32 %v16092_v23, %v10074_v50 }
 0x79b   : > { %v10111_v53 = vadd.f32 %v10095_v49, %v7033_v15  ;;  %v10113_v41 = vadd.f32 %v10097_v35, %v7035_v51  ;;  %v9932_v17 = vpop.f32.mrb[44].mxu0  ;;  %v10038_v58 = vpop.f32.mrb[44].mxu1  ;;  %v7037_v49 = vld [vmem:[#allocation2 + $0x20] sm:$0xff]  ;;  %v7039_v35 = vld [vmem:[#allocation2 + $0x30] sm:$0xff] }
 0x79c   : > { %v10112_v6 = vadd.f32 %v10096_v43, %v7034_v24  ;;  %v10114_v21 = vadd.f32 %v10098_v34, %v7036_v26  ;;  %v10055_v32 = vrot.slane %v9932_v17, 1  ;;  %v10057_v13 = vrot.slane %v10038_v58, 1  ;;  %v9934_v1 = vpop.f32.mrb[45].mxu0  ;;  %v21556_v4 = vpop.f32.mrb[45].mxu1  ;;  %v7041_v24 = vld [vmem:[#allocation2 + $0x40] sm:$0xff]  ;;  %v7038_v43 = vld [vmem:[#allocation2 + $0x28] sm:$0xff] }
 0x79d   : > { %10127 = vst [vmem:[#allocation2] sm:$0xff] %v10111_v53  ;;  %10129 = vst [vmem:[#allocation2 + $0x10] sm:$0xff] %v10113_v41  ;;  %v10056_v0 = vrot.slane %v9934_v1, 1  ;;  %v10058_v2 = vrot.slane %v21556_v4, 1  ;;  %v9936_v63 = vpop.f32.mrb[46].mxu0  ;;  %v10042_v28 = vpop.f32.mrb[46].mxu1 }
 0x79e   : > { %10128 = vst [vmem:[#allocation2 + $0x8] sm:$0xff] %v10112_v6  ;;  %10130 = vst [vmem:[#allocation2 + $0x18] sm:$0xff] %v10114_v21  ;;  %v10067_v33 = vsel %vm6734_vm3, %v10051_v12, %v10055_v32  ;;  %v10069_v23 = vsel %vm6734_vm3, %v10053_v16, %v10057_v13  ;;  %v10059_v57 = vrot.slane %v9936_v63, 1  ;;  %v10061_v29 = vrot.slane %v10042_v28, 1  ;;  %v9938_v42 = vpop.f32.mrb[47].mxu0  ;;  %v10044_v14 = vpop.f32.mrb[47].mxu1 }
 0x79f   : > { %v10083_v15 = vmul.f32 %v20752_v36, %v10067_v33  ;;  %v10085_v31 = vmul.f32 %v20752_v36, %v10069_v23  ;;  %v10068_v51 = vsel %vm6734_vm3, %v10052_v25, %v10056_v0  ;;  %v10070_v9 = vsel %vm6734_vm3, %v10054_v19, %v10058_v2  ;;  %v7040_v34 = vld [vmem:[#allocation2 + $0x38] sm:$0xff]  ;;  %v7045_v58 = vld [vmem:[#allocation2 + $0x60] sm:$0xff]  ;;  %v7043_v1 = vld [vmem:[#allocation2 + $0x50] sm:$0xff] }
 0x7a0   : > { %v10084_v12 = vmul.f32 %v20752_v36, %v10068_v51  ;;  %v10086_v16 = vmul.f32 %v20752_v36, %v10070_v9  ;;  %v10063_v44 = vsel %vm6734_vm3, %v10055_v32, %v10059_v57  ;;  %v10075_v26 = vsel %vm6734_vm3, %v10059_v57, %v10047_v56  ;;  %v7042_v33 = vld [vmem:[#allocation2 + $0x48] sm:$0xff] }
 0x7a1   : > { %v10099_v50 = vadd.f32 %v21491_v30, %v10083_v15  ;;  %v10101_v25 = vadd.f32 %v21494_v55, %v10085_v31  ;;  %v10091_v19 = vmul.f32 %v20757_v5, %v10075_v26  ;;  %v10103_v53 = vadd.f32 %v21510_v27, %v10063_v44  ;;  %v7046_v15 = vld [vmem:[#allocation2 + $0x68] sm:$0xff]  ;;  %v7048_v31 = vld [vmem:[#allocation2 + $0x78] sm:$0xff]  ;;  %v18289_v44 = vld [vmem:[#allocation15 + $0x44] ss:$16 sps:$4 sm:$0xff] (!%p15671_p3)  }
 0x7a2   : > { %v10100_v41 = vadd.f32 %v21497_v7, %v10084_v12  ;;  %v10102_v17 = vadd.f32 %v21500_v47, %v10086_v16  ;;  %v10065_v6 = vsel %vm6734_vm3, %v10057_v13, %v10061_v29  ;;  %v10077_v30 = vsel %vm6734_vm3, %v10061_v29, %v10049_v40  ;;  %v18282_v12 = vld [vmem:[#allocation15 + $0x8] ss:$16 sps:$4 sm:$0xff] (!%p15671_p3)   ;;  %v18287_v16 = vld [vmem:[#allocation15 + $0x20] ss:$16 sps:$4 sm:$0xff] (!%p15671_p3)   ;;  %v18291_v26 = vld [vmem:[#allocation15 + $0x4c] ss:$16 sps:$4 sm:$0xff] (!%p15671_p3)  }
 0x7a3   : > { %v10115_v55 = vadd.f32 %v10099_v50, %v7037_v49  ;;  %v10117_v56 = vadd.f32 %v10101_v25, %v7039_v35  ;;  %v10107_v21 = vadd.f32 %v21519_v3, %v10091_v19  ;;  %v10119_v32 = vadd.f32 %v10103_v53, %v7041_v24  ;;  %v18279_v35 = vld [vmem:[#allocation15 + $0xc] ss:$16 sps:$4 sm:$0xff] (!%p15671_p3)   ;;  %v18288_v24 = vld [vmem:[#allocation15 + $0x28] ss:$16 sps:$4 sm:$0xff] (!%p15671_p3)   ;;  %v18293_v50 = vld [vmem:[#allocation15 + $0x40] ss:$16 sps:$4 sm:$0xff] (!%p15671_p3)  }
 0x7a4   : > { %v10116_v27 = vadd.f32 %v10100_v41, %v7038_v43  ;;  %v10118_v4 = vadd.f32 %v10102_v17, %v7040_v34  ;;  %v10093_v7 = vmul.f32 %v20757_v5, %v10077_v30  ;;  %v10105_v47 = vadd.f32 %v21512_v38, %v10065_v6  ;;  %11260 = vmatprep.subr.bf16.mxu1 (!%p15671_p3), %v18279_v35  ;;  %v18294_v25 = vld [vmem:[#allocation15 + $0x48] ss:$16 sps:$4 sm:$0xff] (!%p15671_p3)   ;;  %v18295_v43 = vld [vmem:[#allocation15 + $0x64] ss:$16 sps:$4 sm:$0xff] (!%p15671_p3)   ;;  %v18297_v34 = vld [vmem:[#allocation15 + $0x6c] ss:$16 sps:$4 sm:$0xff] (!%p15671_p3)  }
 0x7a5   : > { %10131 = vst [vmem:[#allocation2 + $0x20] sm:$0xff] %v10115_v55  ;;  %10133 = vst [vmem:[#allocation2 + $0x30] sm:$0xff] %v10117_v56  ;;  %v10123_v13 = vadd.f32 %v10107_v21, %v7045_v58  ;;  %v10060_v63 = vrot.slane %v9938_v42, 1  ;;  %v10062_v28 = vrot.slane %v10044_v14, 1  ;;  %11261 = vmatpush1.bf16.msra.mxu1 (!%p15671_p3), %v18282_v12  ;;  %v18299_v19 = vld [vmem:[#allocation15 + $0x60] ss:$16 sps:$4 sm:$0xff] (!%p15671_p3)  }
 0x7a6   : > { %10135 = vst [vmem:[#allocation2 + $0x40] sm:$0xff] %v10119_v32  ;;  %10132 = vst [vmem:[#allocation2 + $0x28] sm:$0xff] %v10116_v27  ;;  %v10109_v40 = vadd.f32 %v21522_v37, %v10093_v7  ;;  %v10121_v3 = vadd.f32 %v10105_v47, %v7043_v1  ;;  %v18300_v53 = vld [vmem:[#allocation15 + $0x68] ss:$16 sps:$4 sm:$0xff] (!%p15671_p3)   ;;  %v18301_v41 = vld [vmem:[#allocation15 + $0x84] ss:$16 sps:$4 sm:$0xff] (!%p15671_p3)  }
 0x7a7   : > { %10134 = vst [vmem:[#allocation2 + $0x38] sm:$0xff] %v10118_v4  ;;  %10139 = vst [vmem:[#allocation2 + $0x60] sm:$0xff] %v10123_v13  ;;  %v10064_v23 = vsel %vm6734_vm3, %v10056_v0, %v10060_v63  ;;  %v10076_v38 = vsel %vm6734_vm3, %v10060_v63, %v10048_v18  ;;  %v10066_v57 = vsel %vm6734_vm3, %v10058_v2, %v10062_v28  ;;  %v7044_v0 = vld [vmem:[#allocation2 + $0x58] sm:$0xff]  ;;  %v18307_v30 = vld [vmem:[#allocation15 + $0xa4] ss:$16 sps:$4 sm:$0xff] (!%p15671_p3)  }
 0x7a8   : > { %v10078_v29 = vsel %vm6734_vm3, %v10062_v28, %v10050_v52  ;;  %v10125_v37 = vadd.f32 %v10109_v40, %v7047_v8  ;;  %10137 = vst [vmem:[#allocation2 + $0x50] sm:$0xff] %v10121_v3  ;;  %v10092_v42 = vmul.f32 %v20757_v5, %v10076_v38  ;;  %v10104_v14 = vadd.f32 %v21514_v54, %v10064_v23  ;;  %v18277_v54 = vld [vmem:[#allocation15 + $0x4] ss:$16 sps:$4 sm:$0xff] (!%p15671_p3)   ;;  %v18303_v17 = vld [vmem:[#allocation15 + $0x8c] ss:$16 sps:$4 sm:$0xff] (!%p15671_p3)  }
 0x7a9   : > { %v10094_v46 = vmul.f32 %v20757_v5, %v10078_v29  ;;  %v10106_v18 = vadd.f32 %v21516_v61, %v10066_v57  ;;  %10146 = sbr.rel (%p15671_p3) target bundleno = 2775 (0xad7), region = 104  ;;  %11154 = vmatprep.subr.bf16.mxu0 (!%p15671_p3), %v18277_v54  ;;  %v18281_v61 = vld [vmem:[#allocation15] ss:$16 sps:$4 sm:$0xff] (!%p15671_p3)   ;;  %v18306_v6 = vld [vmem:[#allocation15 + $0x88] ss:$16 sps:$4 sm:$0xff] (!%p15671_p3)  }
 0x7aa   : > { %10141 = vst [vmem:[#allocation2 + $0x70] sm:$0xff] %v10125_v37  ;;  %v10108_v2 = vadd.f32 %v21525_v48, %v10092_v42  ;;  %v10120_v45 = vadd.f32 %v10104_v14, %v7042_v33  ;;  %v18283_v48 = vld [vmem:[#allocation15 + $0x24] ss:$16 sps:$4 sm:$0xff] (!%p15671_p3)   ;;  %11155 = vmatpush1.bf16.msra.mxu0 (!%p15671_p3), %v18281_v61  ;;  %v18305_v58 = vld [vmem:[#allocation15 + $0x80] ss:$16 sps:$4 sm:$0xff] (!%p15671_p3)  }
 0x7ab   : > { %v10110_v51 = vadd.f32 %v21528_v59, %v10094_v46  ;;  %v10122_v52 = vadd.f32 %v10106_v18, %v7044_v0  ;;  %v18285_v59 = vld [vmem:[#allocation15 + $0x2c] ss:$16 sps:$4 sm:$0xff] (!%p15671_p3)   ;;  %11156 = vmatprep.subr.bf16.mxu0 (!%p15671_p3), %v18283_v48  ;;  %v18311_v56 = vld [vmem:[#allocation15 + $0xa0] ss:$16 sps:$4 sm:$0xff] (!%p15671_p3)   ;;  %v18312_v21 = vld [vmem:[#allocation15 + $0xa8] ss:$16 sps:$4 sm:$0xff] (!%p15671_p3)  }
 0x7ac   : > { %v10124_v9 = vadd.f32 %v10108_v2, %v7046_v15  ;;  %10136 = vst [vmem:[#allocation2 + $0x48] sm:$0xff] %v10120_v45  ;;  %11262 = vmatprep.subr.bf16.mxu1 (!%p15671_p3), %v18285_v59  ;;  %v18309_v55 = vld [vmem:[#allocation15 + $0xac] ss:$16 sps:$4 sm:$0xff] (!%p15671_p3)   ;;  %v18313_v32 = vld [vmem:[#allocation15 + $0xc4] ss:$16 sps:$4 sm:$0xff] (!%p15671_p3)  }
 0x7ad   : > { %v10126_v49 = vadd.f32 %v10110_v51, %v7048_v31  ;;  %10138 = vst [vmem:[#allocation2 + $0x58] sm:$0xff] %v10122_v52  ;;  %11263 = vmatpush1.bf16.msra.mxu1 (!%p15671_p3), %v18288_v24  ;;  %v18315_v1 = vld [vmem:[#allocation15 + $0xcc] ss:$16 sps:$4 sm:$0xff] (!%p15671_p3)   ;;  %v18317_v27 = vld [vmem:[#allocation15 + $0xc0] ss:$16 sps:$4 sm:$0xff] (!%p15671_p3)  }
 0x7ae   : > { %10140 = vst [vmem:[#allocation2 + $0x68] sm:$0xff] %v10124_v9  ;;  %11157 = vmatpush1.bf16.msra.mxu0 (!%p15671_p3), %v18287_v16  ;;  %11264 = vmatprep.subr.bf16.mxu1 (!%p15671_p3), %v18291_v26  ;;  %v18318_v4 = vld [vmem:[#allocation15 + $0xc8] ss:$16 sps:$4 sm:$0xff] (!%p15671_p3)   ;;  %v18319_v7 = vld [vmem:[#allocation15 + $0xe4] ss:$16 sps:$4 sm:$0xff] (!%p15671_p3)  }
 0x7af   : > { %10142 = vst [vmem:[#allocation2 + $0x78] sm:$0xff] %v10126_v49  ;;  %11158 = vmatprep.subr.bf16.mxu0 (!%p15671_p3), %v18289_v44  ;;  %v18321_v47 = vld [vmem:[#allocation15 + $0xec] ss:$16 sps:$4 sm:$0xff] (!%p15671_p3)   ;;  %v18323_v13 = vld [vmem:[#allocation15 + $0xe0] ss:$16 sps:$4 sm:$0xff] (!%p15671_p3)  }
 0x7b0   : > { %v18324_v8 = vld [vmem:[#allocation15 + $0xe8] ss:$16 sps:$4 sm:$0xff]   ;;  %v18325_v63 = vld [vmem:[#allocation15 + $0x104] ss:$16 sps:$4 sm:$0xff]   ;;  %v18327_v28 = vld [vmem:[#allocation15 + $0x10c] ss:$16 sps:$4 sm:$0xff]  }
 0x7b1   : > { %11265 = vmatpush1.bf16.msra.mxu1 %v18294_v25  ;;  %v18329_v40 = vld [vmem:[#allocation15 + $0x100] ss:$16 sps:$4 sm:$0xff]   ;;  %v18330_v3 = vld [vmem:[#allocation15 + $0x108] ss:$16 sps:$4 sm:$0xff]   ;;  %v18331_v33 = vld [vmem:[#allocation15 + $0x124] ss:$16 sps:$4 sm:$0xff]  }
 0x7b2   : > { %11159 = vmatpush1.bf16.msra.mxu0 %v18293_v50  ;;  %11266 = vmatprep.subr.bf16.mxu1 %v18297_v34  ;;  %v18333_v23 = vld [vmem:[#allocation15 + $0x12c] ss:$16 sps:$4 sm:$0xff]   ;;  %v18335_v38 = vld [vmem:[#allocation15 + $0x120] ss:$16 sps:$4 sm:$0xff]   ;;  %v18336_v57 = vld [vmem:[#allocation15 + $0x128] ss:$16 sps:$4 sm:$0xff]  }
 0x7b3   : > { %11160 = vmatprep.subr.bf16.mxu0 %v18295_v43  ;;  %v18337_v29 = vld [vmem:[#allocation15 + $0x144] ss:$16 sps:$4 sm:$0xff]   ;;  %v18339_v37 = vld [vmem:[#allocation15 + $0x14c] ss:$16 sps:$4 sm:$0xff]   ;;  %v18341_v42 = vld [vmem:[#allocation15 + $0x140] ss:$16 sps:$4 sm:$0xff]  }
 0x7b4   : > { %v18342_v14 = vld [vmem:[#allocation15 + $0x148] ss:$16 sps:$4 sm:$0xff]   ;;  %v18343_v0 = vld [vmem:[#allocation15 + $0x164] ss:$16 sps:$4 sm:$0xff]   ;;  %v18345_v46 = vld [vmem:[#allocation15 + $0x16c] ss:$16 sps:$4 sm:$0xff]  }
 0x7b5   : > { %11267 = vmatpush1.bf16.msra.mxu1 %v18300_v53  ;;  %v18347_v15 = vld [vmem:[#allocation15 + $0x160] ss:$16 sps:$4 sm:$0xff]   ;;  %v21610_v2 = vld [vmem:[#allocation13] sm:$0xf]  ;;  %v18348_v45 = vld [vmem:[#allocation15 + $0x168] ss:$16 sps:$4 sm:$0xff]  }
 0x7b6   : > { %11161 = vmatpush1.bf16.msra.mxu0 %v18299_v19  ;;  %11268 = vmatprep.subr.bf16.mxu1 %v18303_v17  ;;  %v10148_v31 = vld [vmem:[#allocation2 + $0x8] sm:$0xff]  ;;  %v18349_v51 = vld [vmem:[#allocation15 + $0x184] ss:$16 sps:$4 sm:$0xff]   ;;  %v21614_v52 = vrot.slane %v21610_v2, %v20692_v62  ;;  %v21620_v48 = vrot.slane %v21610_v2, %v20686_v10 }
 0x7b7   : > { %11162 = vmatprep.subr.bf16.mxu0 %v18301_v41  ;;  %v10152_v18 = vld [vmem:[#allocation2 + $0x28] sm:$0xff]  ;;  %v18355_v12 = vld [vmem:[#allocation15 + $0x1a4] ss:$16 sps:$4 sm:$0xff]  }
 0x7b8   : > { %v18351_v9 = vld [vmem:[#allocation15 + $0x18c] ss:$16 sps:$4 sm:$0xff]   ;;  %v18353_v49 = vld [vmem:[#allocation15 + $0x180] ss:$16 sps:$4 sm:$0xff]   ;;  %v18354_v54 = vld [vmem:[#allocation15 + $0x188] ss:$16 sps:$4 sm:$0xff]   ;;  %v10186_v35 = vadd.f32 %v21614_v52, %v10148_v31  ;;  %v10190_v61 = vadd.f32 %v21614_v52, %v10152_v18 }
 0x7b9   : > { %11269 = vmatpush1.bf16.msra.mxu1 %v18306_v6  ;;  %v18357_v24 = vld [vmem:[#allocation15 + $0x1ac] ss:$16 sps:$4 sm:$0xff]   ;;  %v10147_v44 = vld [vmem:[#allocation2] sm:$0xff] }
 0x7ba   : > { %11163 = vmatpush1.bf16.msra.mxu0 %v18305_v58  ;;  %11270 = vmatprep.subr.bf16.mxu1 %v18309_v55  ;;  %vm10202_vm8 = vcmp.ge.f32.partialorder %v10186_v35, 0.0  ;;  %vm10206_vm9 = vcmp.ge.f32.partialorder %v10190_v61, 0.0  ;;  %v10218_v59 = vmul.f32 0.2, %v10186_v35  ;;  %v10222_v16 = vmul.f32 0.2, %v10190_v61 }
 0x7bb   : > { %11164 = vmatprep.subr.bf16.mxu0 %v18307_v30  ;;  %v10151_v26 = vld [vmem:[#allocation2 + $0x20] sm:$0xff]  ;;  %v10185_v41 = vadd.f32 %v21620_v48, %v10147_v44  ;;  %v18363_v58 = vld [vmem:[#allocation15 + $0x1cc] ss:$16 sps:$4 sm:$0xff]  }
 0x7bc   : > { %v10234_v50 = vsel %vm10202_vm8, %v10186_v35, %v10218_v59  ;;  %v10238_v25 = vsel %vm10206_vm9, %v10190_v61, %v10222_v16  ;;  %v18359_v43 = vld [vmem:[#allocation15 + $0x1a0] ss:$16 sps:$4 sm:$0xff]   ;;  %v18360_v19 = vld [vmem:[#allocation15 + $0x1a8] ss:$16 sps:$4 sm:$0xff]   ;;  %v18361_v53 = vld [vmem:[#allocation15 + $0x1c4] ss:$16 sps:$4 sm:$0xff]   ;;  %v10189_v17 = vadd.f32 %v21620_v48, %v10151_v26 }
 0x7bd   : > { %11271 = vmatpush1.bf16.msra.mxu1 %v18312_v21  ;;  %v21622_v34 = vpack.c.bf16 %v10238_v25, %v10234_v50  ;;  %v18365_v6 = vld [vmem:[#allocation15 + $0x1c0] ss:$16 sps:$4 sm:$0xff]   ;;  %v18366_v30 = vld [vmem:[#allocation15 + $0x1c8] ss:$16 sps:$4 sm:$0xff]   ;;  %v18367_v55 = vld [vmem:[#allocation15 + $0x1e4] ss:$16 sps:$4 sm:$0xff]  }
 0x7be   : > { %11165 = vmatpush1.bf16.msra.mxu0 %v18311_v56  ;;  %11272 = vmatprep.subr.bf16.mxu1 %v18315_v1  ;;  %v10217_v56 = vmul.f32 0.2, %v10185_v41  ;;  %v10221_v21 = vmul.f32 0.2, %v10189_v17  ;;  %vm10201_vm10 = vcmp.ge.f32.partialorder %v10185_v41, 0.0  ;;  %vm10205_vm11 = vcmp.ge.f32.partialorder %v10189_v17, 0.0 }
 0x7bf   : > { %11166 = vmatprep.subr.bf16.mxu0 %v18313_v32  ;;  %11186 = vmatprep.mubr.bf16.mxu0 %v21622_v34  ;;  %v18369_v32 = vld [vmem:[#allocation15 + $0x1ec] ss:$16 sps:$4 sm:$0xff]   ;;  %v18371_v1 = vld [vmem:[#allocation15 + $0x1e0] ss:$16 sps:$4 sm:$0xff]   ;;  %v18411_v35 = vld [vmem:[#allocation15 + $0x2c4] ss:$16 sps:$4 sm:$0xff]  }
 0x7c0   : > { %11292 = vmatprep.mubr.bf16.mxu1 %v21622_v34  ;;  %v18402_v31 = vld [vmem:[#allocation15 + $0x28c] ss:$16 sps:$4 sm:$0xff]   ;;  %v18397_v18 = vld [vmem:[#allocation15 + $0x280] ss:$16 sps:$4 sm:$0xff]  }
 0x7c1   : > { %11273 = vmatpush1.bf16.msra.mxu1 %v18318_v4  ;;  %v18375_v4 = vld [vmem:[#allocation15 + $0x204] ss:$16 sps:$4 sm:$0xff]   ;;  %v10156_v61 = vld [vmem:[#allocation2 + $0x48] sm:$0xff] }
 0x7c2   : > { %11167 = vmatpush1.bf16.msra.mxu0 %v18317_v27  ;;  %11274 = vmatprep.subr.bf16.mxu1 %v18321_v47  ;;  %v18372_v27 = vld [vmem:[#allocation15 + $0x1e8] ss:$16 sps:$4 sm:$0xff]   ;;  %v10237_v47 = vsel %vm10205_vm11, %v10189_v17, %v10221_v21  ;;  %v10194_v59 = vadd.f32 %v21614_v52, %v10156_v61  ;;  %v18414_v44 = vld [vmem:[#allocation15 + $0x2cc] ss:$16 sps:$4 sm:$0xff]   ;;  %v18417_v17 = vld [vmem:[#allocation15 + $0x2e4] ss:$16 sps:$4 sm:$0xff]  }
 0x7c3   : > { %11168 = vmatprep.subr.bf16.mxu0 %v18319_v7  ;;  %v10233_v7 = vsel %vm10201_vm10, %v10185_v41, %v10217_v56  ;;  %v10155_v16 = vld [vmem:[#allocation2 + $0x40] sm:$0xff]  ;;  %v18450_v61 = vld [vmem:[#allocation15 + $0x38c] ss:$16 sps:$4 sm:$0xff]  }
 0x7c4   : > { %v10193_v50 = vadd.f32 %v21620_v48, %v10155_v16  ;;  %vm10210_vm12 = vcmp.ge.f32.partialorder %v10194_v59, 0.0  ;;  %v18453_v16 = vld [vmem:[#allocation15 + $0x3a4] ss:$16 sps:$4 sm:$0xff]  }
 0x7c5   : > { %11275 = vmatpush1.bf16.msra.mxu1 %v18324_v8  ;;  %v18373_v8 = vld [vmem:[#allocation15 + $0x200] ss:$16 sps:$4 sm:$0xff]  }
 0x7c6   : > { %11169 = vmatpush1.bf16.msra.mxu0 %v18323_v13  ;;  %11276 = vmatprep.subr.bf16.mxu1 %v18327_v28  ;;  %v18378_v13 = vld [vmem:[#allocation15 + $0x20c] ss:$16 sps:$4 sm:$0xff]   ;;  %v18376_v28 = vld [vmem:[#allocation15 + $0x208] ss:$16 sps:$4 sm:$0xff]   ;;  %vm10209_vm14 = vcmp.ge.f32.partialorder %v10193_v50, 0.0 }
 0x7c7   : > { %11170 = vmatprep.subr.bf16.mxu0 %v18325_v63  ;;  %v21628_v63 = vpack.c.bf16 %v10237_v47, %v10233_v7  ;;  %v18423_v7 = vld [vmem:[#allocation15 + $0x304] ss:$16 sps:$4 sm:$0xff]   ;;  %v10150_v47 = vld [vmem:[#allocation2 + $0x18] sm:$0xff] }
 0x7c9   : > { %11277 = vmatpush1.bf16.msra.mxu1 %v18330_v3  ;;  %v18384_v3 = vld [vmem:[#allocation15 + $0x22c] ss:$16 sps:$4 sm:$0xff]  }
 0x7ca   : > { %11171 = vmatpush1.bf16.msra.mxu0 %v18329_v40  ;;  %11278 = vmatprep.subr.bf16.mxu1 %v18333_v23  ;;  %v18381_v40 = vld [vmem:[#allocation15 + $0x224] ss:$16 sps:$4 sm:$0xff]   ;;  %v18382_v23 = vld [vmem:[#allocation15 + $0x228] ss:$16 sps:$4 sm:$0xff]  }
 0x7cb   : > { %11172 = vmatprep.subr.bf16.mxu0 %v18331_v33  ;;  %v18379_v33 = vld [vmem:[#allocation15 + $0x220] ss:$16 sps:$4 sm:$0xff]  }
 0x7cd   : > { %11279 = vmatpush1.bf16.msra.mxu1 %v18336_v57  ;;  %v18390_v57 = vld [vmem:[#allocation15 + $0x24c] ss:$16 sps:$4 sm:$0xff]  }
 0x7ce   : > { %11173 = vmatpush1.bf16.msra.mxu0 %v18335_v38  ;;  %11280 = vmatprep.subr.bf16.mxu1 %v18339_v37  ;;  %v18387_v38 = vld [vmem:[#allocation15 + $0x244] ss:$16 sps:$4 sm:$0xff]   ;;  %v18388_v37 = vld [vmem:[#allocation15 + $0x248] ss:$16 sps:$4 sm:$0xff]  }
 0x7cf   : > { %11174 = vmatprep.subr.bf16.mxu0 %v18337_v29  ;;  %v18385_v29 = vld [vmem:[#allocation15 + $0x240] ss:$16 sps:$4 sm:$0xff]  }
 0x7d1   : > { %11281 = vmatpush1.bf16.msra.mxu1 %v18342_v14  ;;  %v18396_v14 = vld [vmem:[#allocation15 + $0x26c] ss:$16 sps:$4 sm:$0xff]  }
 0x7d2   : > { %11175 = vmatpush1.bf16.msra.mxu0 %v18341_v42  ;;  %11282 = vmatprep.subr.bf16.mxu1 %v18345_v46  ;;  %v18393_v42 = vld [vmem:[#allocation15 + $0x264] ss:$16 sps:$4 sm:$0xff]   ;;  %v18394_v46 = vld [vmem:[#allocation15 + $0x268] ss:$16 sps:$4 sm:$0xff]  }
 0x7d3   : > { %11176 = vmatprep.subr.bf16.mxu0 %v18343_v0  ;;  %v18391_v0 = vld [vmem:[#allocation15 + $0x260] ss:$16 sps:$4 sm:$0xff]  }
 0x7d5   : > { %11283 = vmatpush1.bf16.msra.mxu1 %v18348_v45  ;;  %v18400_v45 = vld [vmem:[#allocation15 + $0x288] ss:$16 sps:$4 sm:$0xff]  }
 0x7d6   : > { %11177 = vmatpush1.bf16.msra.mxu0 %v18347_v15  ;;  %11284 = vmatprep.subr.bf16.mxu1 %v18351_v9  ;;  %v18399_v15 = vld [vmem:[#allocation15 + $0x284] ss:$16 sps:$4 sm:$0xff]   ;;  %v18408_v9 = vld [vmem:[#allocation15 + $0x2ac] ss:$16 sps:$4 sm:$0xff]  }
 0x7d7   : > { %11178 = vmatprep.subr.bf16.mxu0 %v18349_v51  ;;  %v18405_v51 = vld [vmem:[#allocation15 + $0x2a4] ss:$16 sps:$4 sm:$0xff]  }
 0x7d9   : > { %11285 = vmatpush1.bf16.msra.mxu1 %v18354_v54  ;;  %v18406_v54 = vld [vmem:[#allocation15 + $0x2a8] ss:$16 sps:$4 sm:$0xff]  }
 0x7da   : > { %11179 = vmatpush1.bf16.msra.mxu0 %v18353_v49  ;;  %11286 = vmatprep.subr.bf16.mxu1 %v18357_v24  ;;  %v18403_v49 = vld [vmem:[#allocation15 + $0x2a0] ss:$16 sps:$4 sm:$0xff]  }
 0x7db   : > { %11180 = vmatprep.subr.bf16.mxu0 %v18355_v12  ;;  %v10160_v12 = vld [vmem:[#allocation2 + $0x68] sm:$0xff]  ;;  %v10159_v24 = vld [vmem:[#allocation2 + $0x60] sm:$0xff] }
 0x7dc   : > { %v10198_v26 = vadd.f32 %v21614_v52, %v10160_v12  ;;  %v10197_v25 = vadd.f32 %v21620_v48, %v10159_v24  ;;  %v18420_v52 = vld [vmem:[#allocation15 + $0x2ec] ss:$16 sps:$4 sm:$0xff]   ;;  %v21638_v48 = vrot.slane %v21610_v2, %v20695_v11  ;;  %v18445_v12 = vld [vmem:[#allocation15 + $0x380] ss:$16 sps:$4 sm:$0xff]   ;;  %v10176_v24 = vrot.slane %v21610_v2, %v20689_v39 }
 0x7dd   : > { %11287 = vmatpush1.bf16.msra.mxu1 %v18360_v19  ;;  %v18412_v19 = vld [vmem:[#allocation15 + $0x2c8] ss:$16 sps:$4 sm:$0xff]   ;;  %v18457_v2 = vld [vmem:[#allocation15 + $0x3c0] ss:$16 sps:$4 sm:$0xff]  }
 0x7de   : > { %11181 = vmatpush1.bf16.msra.mxu0 %v18359_v43  ;;  %11288 = vmatprep.subr.bf16.mxu1 %v18363_v58  ;;  %v18409_v43 = vld [vmem:[#allocation15 + $0x2c0] ss:$16 sps:$4 sm:$0xff]   ;;  %vm10214_vm13 = vcmp.ge.f32.partialorder %v10198_v26, 0.0  ;;  %v10230_v41 = vmul.f32 0.2, %v10198_v26  ;;  %vm10213_vm15 = vcmp.ge.f32.partialorder %v10197_v25, 0.0 }
 0x7df   : > { %11182 = vmatprep.subr.bf16.mxu0 %v18361_v53  ;;  %v10226_v53 = vmul.f32 0.2, %v10194_v59 }
 0x7e1   : > { %11289 = vmatpush1.bf16.msra.mxu1 %v18366_v30  ;;  %v10242_v58 = vsel %vm10210_vm12, %v10194_v59, %v10226_v53  ;;  %v10229_v30 = vmul.f32 0.2, %v10197_v25  ;;  %v18448_v59 = vld [vmem:[#allocation15 + $0x388] ss:$16 sps:$4 sm:$0xff]  }
 0x7e2   : > { %11183 = vmatpush1.bf16.msra.mxu0 %v18365_v6  ;;  %11290 = vmatprep.subr.bf16.mxu1 %v18369_v32  ;;  %v10225_v6 = vmul.f32 0.2, %v10193_v50 }
 0x7e3   : > { %11184 = vmatprep.subr.bf16.mxu0 %v18367_v55  ;;  %v10246_v55 = vsel %vm10214_vm13, %v10198_v26, %v10230_v41  ;;  %v10245_v32 = vsel %vm10213_vm15, %v10197_v25, %v10229_v30  ;;  %v10153_v26 = vld [vmem:[#allocation2 + $0x30] sm:$0xff] }
 0x7e4   : > { %v21640_v56 = vpack.c.bf16 %v10246_v55, %v10242_v58  ;;  %v10241_v21 = vsel %vm10209_vm14, %v10193_v50, %v10225_v6  ;;  %v18456_v50 = vld [vmem:[#allocation15 + $0x3ac] ss:$16 sps:$4 sm:$0xff]   ;;  %v18451_v25 = vld [vmem:[#allocation15 + $0x3a0] ss:$16 sps:$4 sm:$0xff]   ;;  %v10191_v41 = vadd.f32 %v10176_v24, %v10153_v26  ;;  %v18460_v30 = vld [vmem:[#allocation15 + $0x3c8] ss:$16 sps:$4 sm:$0xff]  }
 0x7e5   : > { %11291 = vmatpush1.bf16.msra.mxu1 %v18372_v27  ;;  %v18418_v27 = vld [vmem:[#allocation15 + $0x2e8] ss:$16 sps:$4 sm:$0xff]   ;;  %v18462_v6 = vld [vmem:[#allocation15 + $0x3cc] ss:$16 sps:$4 sm:$0xff]  }
 0x7e6   : > { %11185 = vmatpush1.bf16.msra.mxu0 %v18371_v1  ;;  %11313 = vmatprep.subr.bf16.mxu1 %v18378_v13  ;;  %v18415_v1 = vld [vmem:[#allocation15 + $0x2e0] ss:$16 sps:$4 sm:$0xff]   ;;  %vm10207_vm5 = vcmp.ge.f32.partialorder %v10191_v41, 0.0  ;;  %v18492_v26 = vld [vmem:[#allocation15 + $0x46c] ss:$16 sps:$4 sm:$0xff]  }
 0x7e7   : > { %11207 = vmatprep.subr.bf16.mxu0 %v18375_v4  ;;  %v21642_v4 = vpack.c.bf16 %v10245_v32, %v10241_v21  ;;  %v10154_v13 = vld [vmem:[#allocation2 + $0x38] sm:$0xff]  ;;  %v10223_v21 = vmul.f32 0.2, %v10191_v41 }
 0x7e8   : > { %11293 = vmatmul.mubr.bf16.vlgmr.msra.gmra.mrb[0].mxu1 %v21628_v63  ;;  %v10162_v58 = vld [vmem:[#allocation2 + $0x78] sm:$0xff] }
 0x7e9   : > { %11187 = vmatmul.mubr.bf16.vlgmr.msra.gmra.mrb[0].mxu0 %v21628_v63  ;;  %11314 = vmatpush1.bf16.msra.mxu1 %v18376_v28  ;;  %v10188_v28 = vadd.f32 %v21638_v48, %v10150_v47  ;;  %v10161_v47 = vld [vmem:[#allocation2 + $0x70] sm:$0xff] }
 0x7ea   : > { %11208 = vmatpush1.bf16.msra.mxu0 %v18373_v8  ;;  %11315 = vmatprep.subr.bf16.mxu1 %v18384_v3  ;;  %v18426_v8 = vld [vmem:[#allocation15 + $0x30c] ss:$16 sps:$4 sm:$0xff]  }
 0x7eb   : > { %11209 = vmatprep.subr.bf16.mxu0 %v18381_v40  ;;  %v10192_v40 = vadd.f32 %v21638_v48, %v10154_v13  ;;  %11196 = vmatprep.mubr.bf16.mxu0 %v21640_v56  ;;  %vm10204_vm1 = vcmp.ge.f32.partialorder %v10188_v28, 0.0  ;;  %v10220_v3 = vmul.f32 0.2, %v10188_v28  ;;  %v18463_v13 = vld [vmem:[#allocation15 + $0x3e0] ss:$16 sps:$4 sm:$0xff]  }
 0x7ec   : > { %11302 = vmatprep.mubr.bf16.mxu1 %v21640_v56 }
 0x7ed   : > { %11316 = vmatpush1.bf16.msra.mxu1 %v18382_v23  ;;  %vm10208_vm2 = vcmp.ge.f32.partialorder %v10192_v40, 0.0  ;;  %v18421_v23 = vld [vmem:[#allocation15 + $0x300] ss:$16 sps:$4 sm:$0xff]  }
 0x7ee   : > { %11210 = vmatpush1.bf16.msra.mxu0 %v18379_v33  ;;  %11317 = vmatprep.subr.bf16.mxu1 %v18390_v57  ;;  %v10224_v33 = vmul.f32 0.2, %v10192_v40  ;;  %v18429_v57 = vld [vmem:[#allocation15 + $0x324] ss:$16 sps:$4 sm:$0xff]  }
 0x7ef   : > { %11211 = vmatprep.subr.bf16.mxu0 %v18387_v38  ;;  %v18424_v38 = vld [vmem:[#allocation15 + $0x308] ss:$16 sps:$4 sm:$0xff]  }
 0x7f0   : > { %11303 = vmatmul.mubr.bf16.gmra.mrb[4].mxu1 %v21642_v4 }
 0x7f1   : > { %11318 = vmatpush1.bf16.msra.mxu1 %v18388_v37  ;;  %11197 = vmatmul.mubr.bf16.gmra.mrb[4].mxu0 %v21642_v4  ;;  %v10236_v37 = vsel %vm10204_vm1, %v10188_v28, %v10220_v3 }
 0x7f2   : > { %11212 = vmatpush1.bf16.msra.mxu0 %v18385_v29  ;;  %11319 = vmatprep.subr.bf16.mxu1 %v18396_v14  ;;  %v18432_v29 = vld [vmem:[#allocation15 + $0x32c] ss:$16 sps:$4 sm:$0xff]  }
 0x7f3   : > { %11213 = vmatprep.subr.bf16.mxu0 %v18393_v42  ;;  %v10240_v42 = vsel %vm10208_vm2, %v10192_v40, %v10224_v33  ;;  %v10239_v40 = vsel %vm10207_vm5, %v10191_v41, %v10223_v21  ;;  %v18496_v41 = vld [vmem:[#allocation15 + $0x488] ss:$16 sps:$4 sm:$0xff]  }
 0x7f4   : > { %v21650_v14 = vpack.c.bf16 %v10240_v42, %v10236_v37  ;;  %v18472_v42 = vld [vmem:[#allocation15 + $0x408] ss:$16 sps:$4 sm:$0xff]  }
 0x7f5   : > { %11320 = vmatpush1.bf16.msra.mxu1 %v18394_v46  ;;  %v18430_v46 = vld [vmem:[#allocation15 + $0x328] ss:$16 sps:$4 sm:$0xff]  }
 0x7f6   : > { %11214 = vmatpush1.bf16.msra.mxu0 %v18391_v0  ;;  %11321 = vmatprep.subr.bf16.mxu1 %v18402_v31  ;;  %v18427_v0 = vld [vmem:[#allocation15 + $0x320] ss:$16 sps:$4 sm:$0xff]   ;;  %v18438_v31 = vld [vmem:[#allocation15 + $0x34c] ss:$16 sps:$4 sm:$0xff]   ;;  %v18508_v21 = vld [vmem:[#allocation15 + $0x4c8] ss:$16 sps:$4 sm:$0xff]  }
 0x7f7   : > { %11215 = vmatprep.subr.bf16.mxu0 %v18399_v15  ;;  %v18435_v15 = vld [vmem:[#allocation15 + $0x344] ss:$16 sps:$4 sm:$0xff]   ;;  %11239 = vmatprep.mubr.bf16.mxu0 %v21650_v14 }
 0x7f8   : > { %11345 = vmatprep.mubr.bf16.mxu1 %v21650_v14 }
 0x7f9   : > { %11322 = vmatpush1.bf16.msra.mxu1 %v18400_v45  ;;  %v18436_v45 = vld [vmem:[#allocation15 + $0x348] ss:$16 sps:$4 sm:$0xff]  }
 0x7fa   : > { %11216 = vmatpush1.bf16.msra.mxu0 %v18397_v18  ;;  %11323 = vmatprep.subr.bf16.mxu1 %v18408_v9  ;;  %v18433_v18 = vld [vmem:[#allocation15 + $0x340] ss:$16 sps:$4 sm:$0xff]   ;;  %v18444_v9 = vld [vmem:[#allocation15 + $0x36c] ss:$16 sps:$4 sm:$0xff]  }
 0x7fb   : > { %11217 = vmatprep.subr.bf16.mxu0 %v18405_v51  ;;  %v18441_v51 = vld [vmem:[#allocation15 + $0x364] ss:$16 sps:$4 sm:$0xff]  }
 0x7fd   : > { %11324 = vmatpush1.bf16.msra.mxu1 %v18406_v54  ;;  %v18442_v54 = vld [vmem:[#allocation15 + $0x368] ss:$16 sps:$4 sm:$0xff]  }
 0x7fe   : > { %11218 = vmatpush1.bf16.msra.mxu0 %v18403_v49  ;;  %11325 = vmatprep.subr.bf16.mxu1 %v18414_v44  ;;  %v18439_v49 = vld [vmem:[#allocation15 + $0x360] ss:$16 sps:$4 sm:$0xff]  }
 0x7ff   : > { %11219 = vmatprep.subr.bf16.mxu0 %v18411_v35  ;;  %v18447_v35 = vld [vmem:[#allocation15 + $0x384] ss:$16 sps:$4 sm:$0xff]  }
 0x800   : > { %v10149_v44 = vld [vmem:[#allocation2 + $0x10] sm:$0xff] }
 0x801   : > { %11326 = vmatpush1.bf16.msra.mxu1 %v18412_v19  ;;  %v18459_v19 = vld [vmem:[#allocation15 + $0x3c4] ss:$16 sps:$4 sm:$0xff]   ;;  %v10187_v53 = vadd.f32 %v10176_v24, %v10149_v44 }
 0x802   : > { %11220 = vmatpush1.bf16.msra.mxu0 %v18409_v43  ;;  %11327 = vmatprep.subr.bf16.mxu1 %v18420_v52  ;;  %v18454_v43 = vld [vmem:[#allocation15 + $0x3a8] ss:$16 sps:$4 sm:$0xff]   ;;  %v18465_v52 = vld [vmem:[#allocation15 + $0x3e4] ss:$16 sps:$4 sm:$0xff]  }
 0x803   : > { %11221 = vmatprep.subr.bf16.mxu0 %v18417_v17  ;;  %v10158_v17 = vld [vmem:[#allocation2 + $0x58] sm:$0xff]  ;;  %v10219_v55 = vmul.f32 0.2, %v10187_v53  ;;  %vm10203_vm4 = vcmp.ge.f32.partialorder %v10187_v53, 0.0  ;;  %v18489_v44 = vld [vmem:[#allocation15 + $0x464] ss:$16 sps:$4 sm:$0xff]  }
 0x804   : > { %v10196_v32 = vadd.f32 %v21638_v48, %v10158_v17  ;;  %v18501_v17 = vld [vmem:[#allocation15 + $0x4a4] ss:$16 sps:$4 sm:$0xff]  }
 0x805   : > { %11328 = vmatpush1.bf16.msra.mxu1 %v18418_v27  ;;  %v18468_v27 = vld [vmem:[#allocation15 + $0x3ec] ss:$16 sps:$4 sm:$0xff]   ;;  %v10235_v28 = vsel %vm10203_vm4, %v10187_v53, %v10219_v55  ;;  %v18493_v53 = vld [vmem:[#allocation15 + $0x480] ss:$16 sps:$4 sm:$0xff]  }
 0x806   : > { %11222 = vmatpush1.bf16.msra.mxu0 %v18415_v1  ;;  %11329 = vmatprep.subr.bf16.mxu1 %v18426_v8  ;;  %v10200_v1 = vadd.f32 %v21638_v48, %v10162_v58  ;;  %v18466_v8 = vld [vmem:[#allocation15 + $0x3e8] ss:$16 sps:$4 sm:$0xff]   ;;  %v10228_v3 = vmul.f32 0.2, %v10196_v32  ;;  %vm10212_vm6 = vcmp.ge.f32.partialorder %v10196_v32, 0.0  ;;  %v21658_v37 = vpack.c.bf16 %v10239_v40, %v10235_v28 }
 0x807   : > { %11223 = vmatprep.subr.bf16.mxu0 %v18423_v7  ;;  %v10157_v7 = vld [vmem:[#allocation2 + $0x50] sm:$0xff]  ;;  %v18504_v58 = vld [vmem:[#allocation15 + $0x4ac] ss:$16 sps:$4 sm:$0xff]  }
 0x808   : > { %v10232_v33 = vmul.f32 0.2, %v10200_v1  ;;  %vm10216_vm7 = vcmp.ge.f32.partialorder %v10200_v1, 0.0  ;;  %v10195_v48 = vadd.f32 %v10176_v24, %v10157_v7  ;;  %v18505_v55 = vld [vmem:[#allocation15 + $0x4c0] ss:$16 sps:$4 sm:$0xff]  }
 0x809   : > { %11330 = vmatpush1.bf16.msra.mxu1 %v18424_v38  ;;  %v10199_v38 = vadd.f32 %v10176_v24, %v10161_v47  ;;  %v18484_v24 = vld [vmem:[#allocation15 + $0x448] ss:$16 sps:$4 sm:$0xff]   ;;  %v18519_v47 = vld [vmem:[#allocation15 + $0x504] ss:$16 sps:$4 sm:$0xff]  }
 0x80a   : > { %11224 = vmatpush1.bf16.msra.mxu0 %v18421_v23  ;;  %11331 = vmatprep.subr.bf16.mxu1 %v18432_v29  ;;  %v18471_v23 = vld [vmem:[#allocation15 + $0x404] ss:$16 sps:$4 sm:$0xff]   ;;  %v18469_v29 = vld [vmem:[#allocation15 + $0x400] ss:$16 sps:$4 sm:$0xff]   ;;  %vm10211_vm8 = vcmp.ge.f32.partialorder %v10195_v48, 0.0 }
 0x80b   : > { %11225 = vmatprep.subr.bf16.mxu0 %v18429_v57  ;;  %v18474_v57 = vld [vmem:[#allocation15 + $0x40c] ss:$16 sps:$4 sm:$0xff]   ;;  %vm10215_vm9 = vcmp.ge.f32.partialorder %v10199_v38, 0.0  ;;  %v18514_v7 = vld [vmem:[#allocation15 + $0x4e8] ss:$16 sps:$4 sm:$0xff]  }
 0x80c   : > { %v18520_v28 = vld [vmem:[#allocation15 + $0x508] ss:$16 sps:$4 sm:$0xff]   ;;  %v18525_v40 = vld [vmem:[#allocation15 + $0x524] ss:$16 sps:$4 sm:$0xff]  }
 0x80d   : > { %11332 = vmatpush1.bf16.msra.mxu1 %v18430_v46  ;;  %v10244_v46 = vsel %vm10212_vm6, %v10196_v32, %v10228_v3  ;;  %v18513_v32 = vld [vmem:[#allocation15 + $0x4e4] ss:$16 sps:$4 sm:$0xff]   ;;  %v18528_v3 = vld [vmem:[#allocation15 + $0x52c] ss:$16 sps:$4 sm:$0xff]  }
 0x80e   : > { %11226 = vmatpush1.bf16.msra.mxu0 %v18427_v0  ;;  %11333 = vmatprep.subr.bf16.mxu1 %v18438_v31  ;;  %v18477_v0 = vld [vmem:[#allocation15 + $0x424] ss:$16 sps:$4 sm:$0xff]   ;;  %v10227_v31 = vmul.f32 0.2, %v10195_v48 }
 0x80f   : > { %11227 = vmatprep.subr.bf16.mxu0 %v18435_v15  ;;  %v10248_v15 = vsel %vm10216_vm7, %v10200_v1, %v10232_v33  ;;  %v18516_v1 = vld [vmem:[#allocation15 + $0x4ec] ss:$16 sps:$4 sm:$0xff]   ;;  %v18523_v33 = vld [vmem:[#allocation15 + $0x520] ss:$16 sps:$4 sm:$0xff]  }
 0x811   : > { %11334 = vmatpush1.bf16.msra.mxu1 %v18436_v45  ;;  %v18480_v45 = vld [vmem:[#allocation15 + $0x42c] ss:$16 sps:$4 sm:$0xff]  }
 0x812   : > { %11228 = vmatpush1.bf16.msra.mxu0 %v18433_v18  ;;  %11335 = vmatprep.subr.bf16.mxu1 %v18444_v9  ;;  %v10231_v18 = vmul.f32 0.2, %v10199_v38  ;;  %v18475_v9 = vld [vmem:[#allocation15 + $0x420] ss:$16 sps:$4 sm:$0xff]  }
 0x813   : > { %11229 = vmatprep.subr.bf16.mxu0 %v18441_v51  ;;  %v21660_v51 = vpack.c.bf16 %v10248_v15, %v10244_v46  ;;  %v18535_v46 = vld [vmem:[#allocation15 + $0x560] ss:$16 sps:$4 sm:$0xff]   ;;  %v18538_v15 = vld [vmem:[#allocation15 + $0x568] ss:$16 sps:$4 sm:$0xff]  }
 0x815   : > { %11336 = vmatpush1.bf16.msra.mxu1 %v18442_v54  ;;  %v10243_v54 = vsel %vm10211_vm8, %v10195_v48, %v10227_v31  ;;  %v18531_v48 = vld [vmem:[#allocation15 + $0x544] ss:$16 sps:$4 sm:$0xff]  }
 0x816   : > { %11230 = vmatpush1.bf16.msra.mxu0 %v18439_v49  ;;  %11337 = vmatprep.subr.bf16.mxu1 %v18450_v61  ;;  %v18478_v49 = vld [vmem:[#allocation15 + $0x428] ss:$16 sps:$4 sm:$0xff]   ;;  %v18483_v61 = vld [vmem:[#allocation15 + $0x444] ss:$16 sps:$4 sm:$0xff]  }
 0x817   : > { %11231 = vmatprep.subr.bf16.mxu0 %v18447_v35  ;;  %v10247_v35 = vsel %vm10215_vm9, %v10199_v38, %v10231_v18  ;;  %v18534_v38 = vld [vmem:[#allocation15 + $0x54c] ss:$16 sps:$4 sm:$0xff]   ;;  %v18543_v31 = vld [vmem:[#allocation15 + $0x584] ss:$16 sps:$4 sm:$0xff]  }
 0x818   : > { %v18546_v18 = vld [vmem:[#allocation15 + $0x58c] ss:$16 sps:$4 sm:$0xff]  }
 0x819   : > { %11338 = vmatpush1.bf16.msra.mxu1 %v18448_v59  ;;  %v21666_v59 = vpack.c.bf16 %v10247_v35, %v10243_v54  ;;  %v18552_v54 = vld [vmem:[#allocation15 + $0x5ac] ss:$16 sps:$4 sm:$0xff]   ;;  %v18547_v35 = vld [vmem:[#allocation15 + $0x5a0] ss:$16 sps:$4 sm:$0xff]  }
 0x81a   : > { %11232 = vmatpush1.bf16.msra.mxu0 %v18445_v12  ;;  %11339 = vmatprep.subr.bf16.mxu1 %v18456_v50  ;;  %v18486_v12 = vld [vmem:[#allocation15 + $0x44c] ss:$16 sps:$4 sm:$0xff]   ;;  %v18487_v50 = vld [vmem:[#allocation15 + $0x460] ss:$16 sps:$4 sm:$0xff]  }
 0x81b   : > { %11233 = vmatprep.subr.bf16.mxu0 %v18453_v16  ;;  %v18481_v16 = vld [vmem:[#allocation15 + $0x440] ss:$16 sps:$4 sm:$0xff]  }
 0x81d   : > { %11340 = vmatpush1.bf16.msra.mxu1 %v18454_v43  ;;  %v18495_v43 = vld [vmem:[#allocation15 + $0x484] ss:$16 sps:$4 sm:$0xff]  }
 0x81e   : > { %11234 = vmatpush1.bf16.msra.mxu0 %v18451_v25  ;;  %11341 = vmatprep.subr.bf16.mxu1 %v18462_v6  ;;  %v18490_v25 = vld [vmem:[#allocation15 + $0x468] ss:$16 sps:$4 sm:$0xff]   ;;  %v18499_v6 = vld [vmem:[#allocation15 + $0x4a0] ss:$16 sps:$4 sm:$0xff]  }
 0x81f   : > { %11235 = vmatprep.subr.bf16.mxu0 %v18459_v19  ;;  %v18498_v19 = vld [vmem:[#allocation15 + $0x48c] ss:$16 sps:$4 sm:$0xff]  }
 0x821   : > { %11342 = vmatpush1.bf16.msra.mxu1 %v18460_v30  ;;  %v18507_v30 = vld [vmem:[#allocation15 + $0x4c4] ss:$16 sps:$4 sm:$0xff]  }
 0x822   : > { %11236 = vmatpush1.bf16.msra.mxu0 %v18457_v2  ;;  %11343 = vmatprep.subr.bf16.mxu1 %v18468_v27  ;;  %v18502_v2 = vld [vmem:[#allocation15 + $0x4a8] ss:$16 sps:$4 sm:$0xff]   ;;  %v18511_v27 = vld [vmem:[#allocation15 + $0x4e0] ss:$16 sps:$4 sm:$0xff]  }
 0x823   : > { %11237 = vmatprep.subr.bf16.mxu0 %v18465_v52  ;;  %v18510_v52 = vld [vmem:[#allocation15 + $0x4cc] ss:$16 sps:$4 sm:$0xff]  }
 0x825   : > { %11344 = vmatpush1.bf16.msra.mxu1 %v18466_v8  ;;  %v18517_v8 = vld [vmem:[#allocation15 + $0x500] ss:$16 sps:$4 sm:$0xff]  }
 0x826   : > { %11238 = vmatpush1.bf16.msra.mxu0 %v18463_v13  ;;  %12160 = vmatprep.subr.bf16.mxu1 %v18474_v57  ;;  %v18522_v13 = vld [vmem:[#allocation15 + $0x50c] ss:$16 sps:$4 sm:$0xff]   ;;  %v18529_v57 = vld [vmem:[#allocation15 + $0x540] ss:$16 sps:$4 sm:$0xff]  }
 0x827   : > { %12054 = vmatprep.subr.bf16.mxu0 %v18471_v23  ;;  %v18526_v23 = vld [vmem:[#allocation15 + $0x528] ss:$16 sps:$4 sm:$0xff]  }
 0x828   : > { %11346 = vmatmul.mubr.bf16.vlgmr.msra.gmra.mrb[0].mxu1 %v21658_v37 }
 0x829   : > { %11240 = vmatmul.mubr.bf16.vlgmr.msra.gmra.mrb[0].mxu0 %v21658_v37  ;;  %12161 = vmatpush1.bf16.msra.mxu1 %v18472_v42  ;;  %v18537_v42 = vld [vmem:[#allocation15 + $0x564] ss:$16 sps:$4 sm:$0xff]  }
 0x82a   : > { %12055 = vmatpush1.bf16.msra.mxu0 %v18469_v29  ;;  %12162 = vmatprep.subr.bf16.mxu1 %v18480_v45  ;;  %v18532_v29 = vld [vmem:[#allocation15 + $0x548] ss:$16 sps:$4 sm:$0xff]   ;;  %v18541_v45 = vld [vmem:[#allocation15 + $0x580] ss:$16 sps:$4 sm:$0xff]  }
 0x82b   : > { %12056 = vmatprep.subr.bf16.mxu0 %v18477_v0  ;;  %11249 = vmatprep.mubr.bf16.mxu0 %v21660_v51  ;;  %v18540_v0 = vld [vmem:[#allocation15 + $0x56c] ss:$16 sps:$4 sm:$0xff]  }
 0x82c   : > { %11355 = vmatprep.mubr.bf16.mxu1 %v21660_v51 }
 0x82d   : > { %12163 = vmatpush1.bf16.msra.mxu1 %v18478_v49  ;;  %v18549_v49 = vld [vmem:[#allocation15 + $0x5a4] ss:$16 sps:$4 sm:$0xff]  }
 0x82e   : > { %12057 = vmatpush1.bf16.msra.mxu0 %v18475_v9  ;;  %12164 = vmatprep.subr.bf16.mxu1 %v18486_v12  ;;  %v18544_v9 = vld [vmem:[#allocation15 + $0x588] ss:$16 sps:$4 sm:$0xff]   ;;  %v18555_v12 = vld [vmem:[#allocation15 + $0x5c4] ss:$16 sps:$4 sm:$0xff]  }
 0x82f   : > { %12058 = vmatprep.subr.bf16.mxu0 %v18483_v61  ;;  %v18550_v61 = vld [vmem:[#allocation15 + $0x5a8] ss:$16 sps:$4 sm:$0xff]  }
 0x830   : > { %11356 = vmatmul.mubr.bf16.gmra.mrb[4].mxu1 %v21666_v59 }
 0x831   : > { %11250 = vmatmul.mubr.bf16.gmra.mrb[4].mxu0 %v21666_v59  ;;  %12165 = vmatpush1.bf16.msra.mxu1 %v18484_v24  ;;  %v18553_v24 = vld [vmem:[#allocation15 + $0x5c0] ss:$16 sps:$4 sm:$0xff]  }
 0x832   : > { %12059 = vmatpush1.bf16.msra.mxu0 %v18481_v16  ;;  %12166 = vmatprep.subr.bf16.mxu1 %v18492_v26  ;;  %v18558_v16 = vld [vmem:[#allocation15 + $0x5cc] ss:$16 sps:$4 sm:$0xff]   ;;  %v18561_v26 = vld [vmem:[#allocation15 + $0x5e4] ss:$16 sps:$4 sm:$0xff]  }
 0x833   : > { %12060 = vmatprep.subr.bf16.mxu0 %v18489_v44  ;;  %12086 = vmatprep.mubr.bf16.mxu0 %v21622_v34  ;;  %v18556_v44 = vld [vmem:[#allocation15 + $0x5c8] ss:$16 sps:$4 sm:$0xff]  }
 0x834   : > { %12192 = vmatprep.mubr.bf16.mxu1 %v21622_v34 }
 0x835   : > { %12167 = vmatpush1.bf16.msra.mxu1 %v18490_v25  ;;  %v18559_v25 = vld [vmem:[#allocation15 + $0x5e0] ss:$16 sps:$4 sm:$0xff]  }
 0x836   : > { %12061 = vmatpush1.bf16.msra.mxu0 %v18487_v50  ;;  %12168 = vmatprep.subr.bf16.mxu1 %v18498_v19  ;;  %v18564_v50 = vld [vmem:[#allocation15 + $0x5ec] ss:$16 sps:$4 sm:$0xff]   ;;  %v18567_v19 = vld [vmem:[#allocation15 + $0x604] ss:$16 sps:$4 sm:$0xff]  }
 0x837   : > { %12062 = vmatprep.subr.bf16.mxu0 %v18495_v43  ;;  %v18562_v43 = vld [vmem:[#allocation15 + $0x5e8] ss:$16 sps:$4 sm:$0xff]  }
 0x839   : > { %12169 = vmatpush1.bf16.msra.mxu1 %v18496_v41  ;;  %v18565_v41 = vld [vmem:[#allocation15 + $0x600] ss:$16 sps:$4 sm:$0xff]  }
 0x83a   : > { %12063 = vmatpush1.bf16.msra.mxu0 %v18493_v53  ;;  %12170 = vmatprep.subr.bf16.mxu1 %v18504_v58  ;;  %v18570_v53 = vld [vmem:[#allocation15 + $0x60c] ss:$16 sps:$4 sm:$0xff]   ;;  %v18573_v58 = vld [vmem:[#allocation15 + $0x624] ss:$16 sps:$4 sm:$0xff]  }
 0x83b   : > { %12064 = vmatprep.subr.bf16.mxu0 %v18501_v17  ;;  %v18568_v17 = vld [vmem:[#allocation15 + $0x608] ss:$16 sps:$4 sm:$0xff]  }
 0x83d   : > { %12171 = vmatpush1.bf16.msra.mxu1 %v18502_v2  ;;  %v18571_v2 = vld [vmem:[#allocation15 + $0x620] ss:$16 sps:$4 sm:$0xff]  }
 0x83e   : > { %12065 = vmatpush1.bf16.msra.mxu0 %v18499_v6  ;;  %12172 = vmatprep.subr.bf16.mxu1 %v18510_v52  ;;  %v18576_v6 = vld [vmem:[#allocation15 + $0x62c] ss:$16 sps:$4 sm:$0xff]   ;;  %v18579_v52 = vld [vmem:[#allocation15 + $0x644] ss:$16 sps:$4 sm:$0xff]  }
 0x83f   : > { %12066 = vmatprep.subr.bf16.mxu0 %v18507_v30  ;;  %v18574_v30 = vld [vmem:[#allocation15 + $0x628] ss:$16 sps:$4 sm:$0xff]  }
 0x841   : > { %12173 = vmatpush1.bf16.msra.mxu1 %v18508_v21  ;;  %v18577_v21 = vld [vmem:[#allocation15 + $0x640] ss:$16 sps:$4 sm:$0xff]  }
 0x842   : > { %12067 = vmatpush1.bf16.msra.mxu0 %v18505_v55  ;;  %12174 = vmatprep.subr.bf16.mxu1 %v18516_v1  ;;  %v18582_v55 = vld [vmem:[#allocation15 + $0x64c] ss:$16 sps:$4 sm:$0xff]   ;;  %v18585_v1 = vld [vmem:[#allocation15 + $0x664] ss:$16 sps:$4 sm:$0xff]  }
 0x843   : > { %12068 = vmatprep.subr.bf16.mxu0 %v18513_v32  ;;  %v18580_v32 = vld [vmem:[#allocation15 + $0x648] ss:$16 sps:$4 sm:$0xff]  }
 0x845   : > { %12175 = vmatpush1.bf16.msra.mxu1 %v18514_v7  ;;  %v18583_v7 = vld [vmem:[#allocation15 + $0x660] ss:$16 sps:$4 sm:$0xff]  }
 0x846   : > { %12069 = vmatpush1.bf16.msra.mxu0 %v18511_v27  ;;  %12176 = vmatprep.subr.bf16.mxu1 %v18522_v13  ;;  %v18588_v27 = vld [vmem:[#allocation15 + $0x66c] ss:$16 sps:$4 sm:$0xff]   ;;  %v18591_v13 = vld [vmem:[#allocation15 + $0x684] ss:$16 sps:$4 sm:$0xff]  }
 0x847   : > { %12070 = vmatprep.subr.bf16.mxu0 %v18519_v47  ;;  %v18586_v47 = vld [vmem:[#allocation15 + $0x668] ss:$16 sps:$4 sm:$0xff]  }
 0x849   : > { %12177 = vmatpush1.bf16.msra.mxu1 %v18520_v28  ;;  %v18589_v28 = vld [vmem:[#allocation15 + $0x680] ss:$16 sps:$4 sm:$0xff]  }
 0x84a   : > { %12071 = vmatpush1.bf16.msra.mxu0 %v18517_v8  ;;  %12178 = vmatprep.subr.bf16.mxu1 %v18528_v3  ;;  %v18594_v8 = vld [vmem:[#allocation15 + $0x68c] ss:$16 sps:$4 sm:$0xff]   ;;  %v18597_v3 = vld [vmem:[#allocation15 + $0x6a4] ss:$16 sps:$4 sm:$0xff]  }
 0x84b   : > { %12072 = vmatprep.subr.bf16.mxu0 %v18525_v40  ;;  %v18592_v40 = vld [vmem:[#allocation15 + $0x688] ss:$16 sps:$4 sm:$0xff]  }
 0x84d   : > { %12179 = vmatpush1.bf16.msra.mxu1 %v18526_v23  ;;  %v18595_v23 = vld [vmem:[#allocation15 + $0x6a0] ss:$16 sps:$4 sm:$0xff]  }
 0x84e   : > { %12073 = vmatpush1.bf16.msra.mxu0 %v18523_v33  ;;  %12180 = vmatprep.subr.bf16.mxu1 %v18534_v38  ;;  %v18600_v33 = vld [vmem:[#allocation15 + $0x6ac] ss:$16 sps:$4 sm:$0xff]   ;;  %v18603_v38 = vld [vmem:[#allocation15 + $0x6c4] ss:$16 sps:$4 sm:$0xff]  }
 0x84f   : > { %12074 = vmatprep.subr.bf16.mxu0 %v18531_v48  ;;  %v18598_v48 = vld [vmem:[#allocation15 + $0x6a8] ss:$16 sps:$4 sm:$0xff]  }
 0x851   : > { %12181 = vmatpush1.bf16.msra.mxu1 %v18532_v29  ;;  %v18601_v29 = vld [vmem:[#allocation15 + $0x6c0] ss:$16 sps:$4 sm:$0xff]  }
 0x852   : > { %12075 = vmatpush1.bf16.msra.mxu0 %v18529_v57  ;;  %12182 = vmatprep.subr.bf16.mxu1 %v18540_v0  ;;  %v18606_v57 = vld [vmem:[#allocation15 + $0x6cc] ss:$16 sps:$4 sm:$0xff]   ;;  %v18609_v0 = vld [vmem:[#allocation15 + $0x6e4] ss:$16 sps:$4 sm:$0xff]  }
 0x853   : > { %12076 = vmatprep.subr.bf16.mxu0 %v18537_v42  ;;  %v18604_v42 = vld [vmem:[#allocation15 + $0x6c8] ss:$16 sps:$4 sm:$0xff]  }
 0x855   : > { %12183 = vmatpush1.bf16.msra.mxu1 %v18538_v15  ;;  %v18607_v15 = vld [vmem:[#allocation15 + $0x6e0] ss:$16 sps:$4 sm:$0xff]  }
 0x856   : > { %12077 = vmatpush1.bf16.msra.mxu0 %v18535_v46  ;;  %12184 = vmatprep.subr.bf16.mxu1 %v18546_v18  ;;  %v18612_v46 = vld [vmem:[#allocation15 + $0x6ec] ss:$16 sps:$4 sm:$0xff]   ;;  %v18615_v18 = vld [vmem:[#allocation15 + $0x704] ss:$16 sps:$4 sm:$0xff]  }
 0x857   : > { %12078 = vmatprep.subr.bf16.mxu0 %v18543_v31  ;;  %v18610_v31 = vld [vmem:[#allocation15 + $0x6e8] ss:$16 sps:$4 sm:$0xff]  }
 0x859   : > { %12185 = vmatpush1.bf16.msra.mxu1 %v18544_v9  ;;  %v18613_v9 = vld [vmem:[#allocation15 + $0x700] ss:$16 sps:$4 sm:$0xff]  }
 0x85a   : > { %12079 = vmatpush1.bf16.msra.mxu0 %v18541_v45  ;;  %12186 = vmatprep.subr.bf16.mxu1 %v18552_v54  ;;  %v18618_v45 = vld [vmem:[#allocation15 + $0x70c] ss:$16 sps:$4 sm:$0xff]   ;;  %v18621_v54 = vld [vmem:[#allocation15 + $0x724] ss:$16 sps:$4 sm:$0xff]  }
 0x85b   : > { %12080 = vmatprep.subr.bf16.mxu0 %v18549_v49  ;;  %v18616_v49 = vld [vmem:[#allocation15 + $0x708] ss:$16 sps:$4 sm:$0xff]  }
 0x85d   : > { %12187 = vmatpush1.bf16.msra.mxu1 %v18550_v61  ;;  %v18619_v61 = vld [vmem:[#allocation15 + $0x720] ss:$16 sps:$4 sm:$0xff]  }
 0x85e   : > { %12081 = vmatpush1.bf16.msra.mxu0 %v18547_v35  ;;  %12188 = vmatprep.subr.bf16.mxu1 %v18558_v16  ;;  %v18624_v35 = vld [vmem:[#allocation15 + $0x72c] ss:$16 sps:$4 sm:$0xff]   ;;  %v18627_v16 = vld [vmem:[#allocation15 + $0x744] ss:$16 sps:$4 sm:$0xff]  }
 0x85f   : > { %12082 = vmatprep.subr.bf16.mxu0 %v18555_v12  ;;  %v18622_v12 = vld [vmem:[#allocation15 + $0x728] ss:$16 sps:$4 sm:$0xff]  }
 0x861   : > { %12189 = vmatpush1.bf16.msra.mxu1 %v18556_v44  ;;  %v18625_v44 = vld [vmem:[#allocation15 + $0x740] ss:$16 sps:$4 sm:$0xff]  }
 0x862   : > { %12083 = vmatpush1.bf16.msra.mxu0 %v18553_v24  ;;  %12190 = vmatprep.subr.bf16.mxu1 %v18564_v50  ;;  %v18630_v24 = vld [vmem:[#allocation15 + $0x74c] ss:$16 sps:$4 sm:$0xff]   ;;  %v18633_v50 = vld [vmem:[#allocation15 + $0x764] ss:$16 sps:$4 sm:$0xff]  }
 0x863   : > { %12084 = vmatprep.subr.bf16.mxu0 %v18561_v26  ;;  %v18628_v26 = vld [vmem:[#allocation15 + $0x748] ss:$16 sps:$4 sm:$0xff]  }
 0x865   : > { %12191 = vmatpush1.bf16.msra.mxu1 %v18562_v43  ;;  %v18631_v43 = vld [vmem:[#allocation15 + $0x760] ss:$16 sps:$4 sm:$0xff]  }
 0x866   : > { %12085 = vmatpush1.bf16.msra.mxu0 %v18559_v25  ;;  %12213 = vmatprep.subr.bf16.mxu1 %v18570_v53  ;;  %v18636_v25 = vld [vmem:[#allocation15 + $0x76c] ss:$16 sps:$4 sm:$0xff]   ;;  %v18639_v53 = vld [vmem:[#allocation15 + $0x784] ss:$16 sps:$4 sm:$0xff]  }
 0x867   : > { %12107 = vmatprep.subr.bf16.mxu0 %v18567_v19  ;;  %v18634_v19 = vld [vmem:[#allocation15 + $0x768] ss:$16 sps:$4 sm:$0xff]  }
 0x868   : > { %12193 = vmatmul.mubr.bf16.vlgmr.msra.gmra.mrb[8].mxu1 %v21628_v63 }
 0x869   : > { %12087 = vmatmul.mubr.bf16.vlgmr.msra.gmra.mrb[8].mxu0 %v21628_v63  ;;  %12214 = vmatpush1.bf16.msra.mxu1 %v18568_v17  ;;  %v18637_v17 = vld [vmem:[#allocation15 + $0x780] ss:$16 sps:$4 sm:$0xff]  }
 0x86a   : > { %12108 = vmatpush1.bf16.msra.mxu0 %v18565_v41  ;;  %12215 = vmatprep.subr.bf16.mxu1 %v18576_v6  ;;  %v18642_v41 = vld [vmem:[#allocation15 + $0x78c] ss:$16 sps:$4 sm:$0xff]   ;;  %v18645_v6 = vld [vmem:[#allocation15 + $0x7a4] ss:$16 sps:$4 sm:$0xff]  }
 0x86b   : > { %12109 = vmatprep.subr.bf16.mxu0 %v18573_v58  ;;  %12096 = vmatprep.mubr.bf16.mxu0 %v21640_v56  ;;  %v18640_v58 = vld [vmem:[#allocation15 + $0x788] ss:$16 sps:$4 sm:$0xff]  }
 0x86c   : > { %12202 = vmatprep.mubr.bf16.mxu1 %v21640_v56 }
 0x86d   : > { %12216 = vmatpush1.bf16.msra.mxu1 %v18574_v30  ;;  %v18643_v30 = vld [vmem:[#allocation15 + $0x7a0] ss:$16 sps:$4 sm:$0xff]  }
 0x86e   : > { %12110 = vmatpush1.bf16.msra.mxu0 %v18571_v2  ;;  %12217 = vmatprep.subr.bf16.mxu1 %v18582_v55  ;;  %v18648_v2 = vld [vmem:[#allocation15 + $0x7ac] ss:$16 sps:$4 sm:$0xff]   ;;  %v18651_v55 = vld [vmem:[#allocation15 + $0x7c4] ss:$16 sps:$4 sm:$0xff]  }
 0x86f   : > { %12111 = vmatprep.subr.bf16.mxu0 %v18579_v52  ;;  %v18646_v52 = vld [vmem:[#allocation15 + $0x7a8] ss:$16 sps:$4 sm:$0xff]  }
 0x870   : > { %12203 = vmatmul.mubr.bf16.gmra.mrb[12].mxu1 %v21642_v4 }
 0x871   : > { %12097 = vmatmul.mubr.bf16.gmra.mrb[12].mxu0 %v21642_v4  ;;  %12218 = vmatpush1.bf16.msra.mxu1 %v18580_v32  ;;  %v18649_v32 = vld [vmem:[#allocation15 + $0x7c0] ss:$16 sps:$4 sm:$0xff]  }
 0x872   : > { %12112 = vmatpush1.bf16.msra.mxu0 %v18577_v21  ;;  %12219 = vmatprep.subr.bf16.mxu1 %v18588_v27  ;;  %v18654_v21 = vld [vmem:[#allocation15 + $0x7cc] ss:$16 sps:$4 sm:$0xff]   ;;  %v18657_v27 = vld [vmem:[#allocation15 + $0x7e4] ss:$16 sps:$4 sm:$0xff]  }
 0x873   : > { %12113 = vmatprep.subr.bf16.mxu0 %v18585_v1  ;;  %12139 = vmatprep.mubr.bf16.mxu0 %v21650_v14  ;;  %v18652_v1 = vld [vmem:[#allocation15 + $0x7c8] ss:$16 sps:$4 sm:$0xff]  }
 0x874   : > { %12245 = vmatprep.mubr.bf16.mxu1 %v21650_v14 }
 0x875   : > { %12220 = vmatpush1.bf16.msra.mxu1 %v18586_v47  ;;  %v18655_v47 = vld [vmem:[#allocation15 + $0x7e0] ss:$16 sps:$4 sm:$0xff]  }
 0x876   : > { %12114 = vmatpush1.bf16.msra.mxu0 %v18583_v7  ;;  %12221 = vmatprep.subr.bf16.mxu1 %v18594_v8  ;;  %v18660_v7 = vld [vmem:[#allocation15 + $0x7ec] ss:$16 sps:$4 sm:$0xff]   ;;  %v18663_v8 = vld [vmem:[#allocation15 + $0x804] ss:$16 sps:$4 sm:$0xff]  }
 0x877   : > { %12115 = vmatprep.subr.bf16.mxu0 %v18591_v13  ;;  %v18658_v13 = vld [vmem:[#allocation15 + $0x7e8] ss:$16 sps:$4 sm:$0xff]  }
 0x879   : > { %12222 = vmatpush1.bf16.msra.mxu1 %v18592_v40  ;;  %v18661_v40 = vld [vmem:[#allocation15 + $0x800] ss:$16 sps:$4 sm:$0xff]  }
 0x87a   : > { %12116 = vmatpush1.bf16.msra.mxu0 %v18589_v28  ;;  %12223 = vmatprep.subr.bf16.mxu1 %v18600_v33  ;;  %v18666_v28 = vld [vmem:[#allocation15 + $0x80c] ss:$16 sps:$4 sm:$0xff]   ;;  %v18669_v33 = vld [vmem:[#allocation15 + $0x824] ss:$16 sps:$4 sm:$0xff]  }
 0x87b   : > { %12117 = vmatprep.subr.bf16.mxu0 %v18597_v3  ;;  %v18664_v3 = vld [vmem:[#allocation15 + $0x808] ss:$16 sps:$4 sm:$0xff]  }
 0x87d   : > { %12224 = vmatpush1.bf16.msra.mxu1 %v18598_v48  ;;  %v18667_v48 = vld [vmem:[#allocation15 + $0x820] ss:$16 sps:$4 sm:$0xff]  }
 0x87e   : > { %12118 = vmatpush1.bf16.msra.mxu0 %v18595_v23  ;;  %12225 = vmatprep.subr.bf16.mxu1 %v18606_v57  ;;  %v18672_v23 = vld [vmem:[#allocation15 + $0x82c] ss:$16 sps:$4 sm:$0xff]   ;;  %v18675_v57 = vld [vmem:[#allocation15 + $0x844] ss:$16 sps:$4 sm:$0xff]  }
 0x87f   : > { %12119 = vmatprep.subr.bf16.mxu0 %v18603_v38  ;;  %v18670_v38 = vld [vmem:[#allocation15 + $0x828] ss:$16 sps:$4 sm:$0xff]  }
 0x881   : > { %12226 = vmatpush1.bf16.msra.mxu1 %v18604_v42  ;;  %v18673_v42 = vld [vmem:[#allocation15 + $0x840] ss:$16 sps:$4 sm:$0xff]  }
 0x882   : > { %12120 = vmatpush1.bf16.msra.mxu0 %v18601_v29  ;;  %12227 = vmatprep.subr.bf16.mxu1 %v18612_v46  ;;  %v18678_v29 = vld [vmem:[#allocation15 + $0x84c] ss:$16 sps:$4 sm:$0xff]   ;;  %v18681_v46 = vld [vmem:[#allocation15 + $0x864] ss:$16 sps:$4 sm:$0xff]  }
 0x883   : > { %12121 = vmatprep.subr.bf16.mxu0 %v18609_v0  ;;  %v18676_v0 = vld [vmem:[#allocation15 + $0x848] ss:$16 sps:$4 sm:$0xff]  }
 0x885   : > { %12228 = vmatpush1.bf16.msra.mxu1 %v18610_v31  ;;  %v18679_v31 = vld [vmem:[#allocation15 + $0x860] ss:$16 sps:$4 sm:$0xff]  }
 0x886   : > { %12122 = vmatpush1.bf16.msra.mxu0 %v18607_v15  ;;  %12229 = vmatprep.subr.bf16.mxu1 %v18618_v45  ;;  %v18684_v15 = vld [vmem:[#allocation15 + $0x86c] ss:$16 sps:$4 sm:$0xff]   ;;  %v18687_v45 = vld [vmem:[#allocation15 + $0x884] ss:$16 sps:$4 sm:$0xff]  }
 0x887   : > { %12123 = vmatprep.subr.bf16.mxu0 %v18615_v18  ;;  %v18682_v18 = vld [vmem:[#allocation15 + $0x868] ss:$16 sps:$4 sm:$0xff]  }
 0x889   : > { %12230 = vmatpush1.bf16.msra.mxu1 %v18616_v49  ;;  %v18685_v49 = vld [vmem:[#allocation15 + $0x880] ss:$16 sps:$4 sm:$0xff]  }
 0x88a   : > { %12124 = vmatpush1.bf16.msra.mxu0 %v18613_v9  ;;  %12231 = vmatprep.subr.bf16.mxu1 %v18624_v35  ;;  %v18690_v9 = vld [vmem:[#allocation15 + $0x88c] ss:$16 sps:$4 sm:$0xff]   ;;  %v18693_v35 = vld [vmem:[#allocation15 + $0x8a4] ss:$16 sps:$4 sm:$0xff]  }
 0x88b   : > { %12125 = vmatprep.subr.bf16.mxu0 %v18621_v54  ;;  %v18688_v54 = vld [vmem:[#allocation15 + $0x888] ss:$16 sps:$4 sm:$0xff]  }
 0x88d   : > { %12232 = vmatpush1.bf16.msra.mxu1 %v18622_v12  ;;  %v18691_v12 = vld [vmem:[#allocation15 + $0x8a0] ss:$16 sps:$4 sm:$0xff]  }
 0x88e   : > { %12126 = vmatpush1.bf16.msra.mxu0 %v18619_v61  ;;  %12233 = vmatprep.subr.bf16.mxu1 %v18630_v24  ;;  %v18696_v61 = vld [vmem:[#allocation15 + $0x8ac] ss:$16 sps:$4 sm:$0xff]   ;;  %v18699_v24 = vld [vmem:[#allocation15 + $0x8c4] ss:$16 sps:$4 sm:$0xff]  }
 0x88f   : > { %12127 = vmatprep.subr.bf16.mxu0 %v18627_v16  ;;  %v18694_v16 = vld [vmem:[#allocation15 + $0x8a8] ss:$16 sps:$4 sm:$0xff]  }
 0x891   : > { %12234 = vmatpush1.bf16.msra.mxu1 %v18628_v26  ;;  %v18697_v26 = vld [vmem:[#allocation15 + $0x8c0] ss:$16 sps:$4 sm:$0xff]  }
 0x892   : > { %12128 = vmatpush1.bf16.msra.mxu0 %v18625_v44  ;;  %12235 = vmatprep.subr.bf16.mxu1 %v18636_v25  ;;  %v18702_v44 = vld [vmem:[#allocation15 + $0x8cc] ss:$16 sps:$4 sm:$0xff]  }
 0x893   : > { %12129 = vmatprep.subr.bf16.mxu0 %v18633_v50  ;;  %v18705_v50 = vld [vmem:[#allocation15 + $0x8e4] ss:$16 sps:$4 sm:$0xff]   ;;  %v18708_v25 = vld [vmem:[#allocation15 + $0x8ec] ss:$16 sps:$4 sm:$0xff]  }
 0x895   : > { %12236 = vmatpush1.bf16.msra.mxu1 %v18634_v19  ;;  %v18706_v19 = vld [vmem:[#allocation15 + $0x8e8] ss:$16 sps:$4 sm:$0xff]  }
 0x896   : > { %12130 = vmatpush1.bf16.msra.mxu0 %v18631_v43  ;;  %12237 = vmatprep.subr.bf16.mxu1 %v18642_v41  ;;  %v18703_v43 = vld [vmem:[#allocation15 + $0x8e0] ss:$16 sps:$4 sm:$0xff]   ;;  %v18714_v41 = vld [vmem:[#allocation15 + $0x90c] ss:$16 sps:$4 sm:$0xff]  }
 0x897   : > { %12131 = vmatprep.subr.bf16.mxu0 %v18639_v53  ;;  %v18711_v53 = vld [vmem:[#allocation15 + $0x904] ss:$16 sps:$4 sm:$0xff]  }
 0x899   : > { %12238 = vmatpush1.bf16.msra.mxu1 %v18640_v58  ;;  %v18712_v58 = vld [vmem:[#allocation15 + $0x908] ss:$16 sps:$4 sm:$0xff]  }
 0x89a   : > { %12132 = vmatpush1.bf16.msra.mxu0 %v18637_v17  ;;  %12239 = vmatprep.subr.bf16.mxu1 %v18648_v2  ;;  %v18709_v17 = vld [vmem:[#allocation15 + $0x900] ss:$16 sps:$4 sm:$0xff]   ;;  %v18720_v2 = vld [vmem:[#allocation15 + $0x92c] ss:$16 sps:$4 sm:$0xff]  }
 0x89b   : > { %12133 = vmatprep.subr.bf16.mxu0 %v18645_v6  ;;  %v18717_v6 = vld [vmem:[#allocation15 + $0x924] ss:$16 sps:$4 sm:$0xff]  }
 0x89d   : > { %12240 = vmatpush1.bf16.msra.mxu1 %v18646_v52  ;;  %v18718_v52 = vld [vmem:[#allocation15 + $0x928] ss:$16 sps:$4 sm:$0xff]  }
 0x89e   : > { %12134 = vmatpush1.bf16.msra.mxu0 %v18643_v30  ;;  %12241 = vmatprep.subr.bf16.mxu1 %v18654_v21  ;;  %v18715_v30 = vld [vmem:[#allocation15 + $0x920] ss:$16 sps:$4 sm:$0xff]   ;;  %v18726_v21 = vld [vmem:[#allocation15 + $0x94c] ss:$16 sps:$4 sm:$0xff]  }
 0x89f   : > { %12135 = vmatprep.subr.bf16.mxu0 %v18651_v55  ;;  %v18723_v55 = vld [vmem:[#allocation15 + $0x944] ss:$16 sps:$4 sm:$0xff]  }
 0x8a1   : > { %12242 = vmatpush1.bf16.msra.mxu1 %v18652_v1  ;;  %v18724_v1 = vld [vmem:[#allocation15 + $0x948] ss:$16 sps:$4 sm:$0xff]  }
 0x8a2   : > { %12136 = vmatpush1.bf16.msra.mxu0 %v18649_v32  ;;  %12243 = vmatprep.subr.bf16.mxu1 %v18660_v7  ;;  %v18721_v32 = vld [vmem:[#allocation15 + $0x940] ss:$16 sps:$4 sm:$0xff]   ;;  %v18732_v7 = vld [vmem:[#allocation15 + $0x96c] ss:$16 sps:$4 sm:$0xff]  }
 0x8a3   : > { %12137 = vmatprep.subr.bf16.mxu0 %v18657_v27  ;;  %v18729_v27 = vld [vmem:[#allocation15 + $0x964] ss:$16 sps:$4 sm:$0xff]  }
 0x8a5   : > { %12244 = vmatpush1.bf16.msra.mxu1 %v18658_v13  ;;  %v18730_v13 = vld [vmem:[#allocation15 + $0x968] ss:$16 sps:$4 sm:$0xff]  }
 0x8a6   : > { %12138 = vmatpush1.bf16.msra.mxu0 %v18655_v47  ;;  %13141 = vmatprep.subr.bf16.mxu1 %v18666_v28  ;;  %v18727_v47 = vld [vmem:[#allocation15 + $0x960] ss:$16 sps:$4 sm:$0xff]   ;;  %v18738_v28 = vld [vmem:[#allocation15 + $0x98c] ss:$16 sps:$4 sm:$0xff]  }
 0x8a7   : > { %13035 = vmatprep.subr.bf16.mxu0 %v18663_v8  ;;  %v18735_v8 = vld [vmem:[#allocation15 + $0x984] ss:$16 sps:$4 sm:$0xff]  }
 0x8a8   : > { %12246 = vmatmul.mubr.bf16.vlgmr.msra.gmra.mrb[8].mxu1 %v21658_v37 }
 0x8a9   : > { %12140 = vmatmul.mubr.bf16.vlgmr.msra.gmra.mrb[8].mxu0 %v21658_v37  ;;  %13142 = vmatpush1.bf16.msra.mxu1 %v18664_v3  ;;  %v18736_v3 = vld [vmem:[#allocation15 + $0x988] ss:$16 sps:$4 sm:$0xff]  }
 0x8aa   : > { %13036 = vmatpush1.bf16.msra.mxu0 %v18661_v40  ;;  %13143 = vmatprep.subr.bf16.mxu1 %v18672_v23  ;;  %v18733_v40 = vld [vmem:[#allocation15 + $0x980] ss:$16 sps:$4 sm:$0xff]   ;;  %v18744_v23 = vld [vmem:[#allocation15 + $0x9ac] ss:$16 sps:$4 sm:$0xff]  }
 0x8ab   : > { %13037 = vmatprep.subr.bf16.mxu0 %v18669_v33  ;;  %12149 = vmatprep.mubr.bf16.mxu0 %v21660_v51  ;;  %v18741_v33 = vld [vmem:[#allocation15 + $0x9a4] ss:$16 sps:$4 sm:$0xff]  }
 0x8ac   : > { %12255 = vmatprep.mubr.bf16.mxu1 %v21660_v51 }
 0x8ad   : > { %13144 = vmatpush1.bf16.msra.mxu1 %v18670_v38  ;;  %v18742_v38 = vld [vmem:[#allocation15 + $0x9a8] ss:$16 sps:$4 sm:$0xff]  }
 0x8ae   : > { %13038 = vmatpush1.bf16.msra.mxu0 %v18667_v48  ;;  %13145 = vmatprep.subr.bf16.mxu1 %v18678_v29  ;;  %v18739_v48 = vld [vmem:[#allocation15 + $0x9a0] ss:$16 sps:$4 sm:$0xff]   ;;  %v18750_v29 = vld [vmem:[#allocation15 + $0x9cc] ss:$16 sps:$4 sm:$0xff]  }
 0x8af   : > { %13039 = vmatprep.subr.bf16.mxu0 %v18675_v57  ;;  %v18747_v57 = vld [vmem:[#allocation15 + $0x9c4] ss:$16 sps:$4 sm:$0xff]  }
 0x8b0   : > { %12256 = vmatmul.mubr.bf16.gmra.mrb[12].mxu1 %v21666_v59 }
 0x8b1   : > { %12150 = vmatmul.mubr.bf16.gmra.mrb[12].mxu0 %v21666_v59  ;;  %13146 = vmatpush1.bf16.msra.mxu1 %v18676_v0  ;;  %v18748_v0 = vld [vmem:[#allocation15 + $0x9c8] ss:$16 sps:$4 sm:$0xff]  }
 0x8b2   : > { %13040 = vmatpush1.bf16.msra.mxu0 %v18673_v42  ;;  %13147 = vmatprep.subr.bf16.mxu1 %v18684_v15  ;;  %v18745_v42 = vld [vmem:[#allocation15 + $0x9c0] ss:$16 sps:$4 sm:$0xff]   ;;  %v18756_v15 = vld [vmem:[#allocation15 + $0x9ec] ss:$16 sps:$4 sm:$0xff]  }
 0x8b3   : > { %13041 = vmatprep.subr.bf16.mxu0 %v18681_v46  ;;  %13067 = vmatprep.mubr.bf16.mxu0 %v21622_v34  ;;  %v18753_v46 = vld [vmem:[#allocation15 + $0x9e4] ss:$16 sps:$4 sm:$0xff]  }
 0x8b4   : > { %13173 = vmatprep.mubr.bf16.mxu1 %v21622_v34  ;;  %v18700_v34 = vld [vmem:[#allocation15 + $0x8c8] ss:$16 sps:$4 sm:$0xff]  }
 0x8b5   : > { %13148 = vmatpush1.bf16.msra.mxu1 %v18682_v18  ;;  %v18754_v18 = vld [vmem:[#allocation15 + $0x9e8] ss:$16 sps:$4 sm:$0xff]  }
 0x8b6   : > { %13042 = vmatpush1.bf16.msra.mxu0 %v18679_v31  ;;  %13149 = vmatprep.subr.bf16.mxu1 %v18690_v9  ;;  %v18751_v31 = vld [vmem:[#allocation15 + $0x9e0] ss:$16 sps:$4 sm:$0xff]   ;;  %v18762_v9 = vld [vmem:[#allocation15 + $0xa0c] ss:$16 sps:$4 sm:$0xff]  }
 0x8b7   : > { %13043 = vmatprep.subr.bf16.mxu0 %v18687_v45  ;;  %v18759_v45 = vld [vmem:[#allocation15 + $0xa04] ss:$16 sps:$4 sm:$0xff]  }
 0x8b9   : > { %13150 = vmatpush1.bf16.msra.mxu1 %v18688_v54  ;;  %v18760_v54 = vld [vmem:[#allocation15 + $0xa08] ss:$16 sps:$4 sm:$0xff]  }
 0x8ba   : > { %13044 = vmatpush1.bf16.msra.mxu0 %v18685_v49  ;;  %13151 = vmatprep.subr.bf16.mxu1 %v18696_v61  ;;  %v18757_v49 = vld [vmem:[#allocation15 + $0xa00] ss:$16 sps:$4 sm:$0xff]   ;;  %v18768_v61 = vld [vmem:[#allocation15 + $0xa2c] ss:$16 sps:$4 sm:$0xff]  }
 0x8bb   : > { %13045 = vmatprep.subr.bf16.mxu0 %v18693_v35  ;;  %v18765_v35 = vld [vmem:[#allocation15 + $0xa24] ss:$16 sps:$4 sm:$0xff]  }
 0x8bd   : > { %13152 = vmatpush1.bf16.msra.mxu1 %v18694_v16  ;;  %v18766_v16 = vld [vmem:[#allocation15 + $0xa28] ss:$16 sps:$4 sm:$0xff]  }
 0x8be   : > { %13046 = vmatpush1.bf16.msra.mxu0 %v18691_v12  ;;  %13153 = vmatprep.subr.bf16.mxu1 %v18702_v44  ;;  %v18763_v12 = vld [vmem:[#allocation15 + $0xa20] ss:$16 sps:$4 sm:$0xff]   ;;  %v18774_v44 = vld [vmem:[#allocation15 + $0xa4c] ss:$16 sps:$4 sm:$0xff]  }
 0x8bf   : > { %13047 = vmatprep.subr.bf16.mxu0 %v18699_v24  ;;  %v18771_v24 = vld [vmem:[#allocation15 + $0xa44] ss:$16 sps:$4 sm:$0xff]  }
 0x8c1   : > { %13154 = vmatpush1.bf16.msra.mxu1 %v18700_v34  ;;  %v18772_v34 = vld [vmem:[#allocation15 + $0xa48] ss:$16 sps:$4 sm:$0xff]  }
 0x8c2   : > { %13048 = vmatpush1.bf16.msra.mxu0 %v18697_v26  ;;  %13155 = vmatprep.subr.bf16.mxu1 %v18708_v25  ;;  %v18769_v26 = vld [vmem:[#allocation15 + $0xa40] ss:$16 sps:$4 sm:$0xff]  }
 0x8c3   : > { %13049 = vmatprep.subr.bf16.mxu0 %v18705_v50  ;;  %v18777_v50 = vld [vmem:[#allocation15 + $0xa64] ss:$16 sps:$4 sm:$0xff]   ;;  %v18775_v25 = vld [vmem:[#allocation15 + $0xa60] ss:$16 sps:$4 sm:$0xff]  }
 0x8c5   : > { %13156 = vmatpush1.bf16.msra.mxu1 %v18706_v19  ;;  %v18783_v19 = vld [vmem:[#allocation15 + $0xa84] ss:$16 sps:$4 sm:$0xff]  }
 0x8c6   : > { %13050 = vmatpush1.bf16.msra.mxu0 %v18703_v43  ;;  %13157 = vmatprep.subr.bf16.mxu1 %v18714_v41  ;;  %v18778_v43 = vld [vmem:[#allocation15 + $0xa68] ss:$16 sps:$4 sm:$0xff]  }
 0x8c7   : > { %13051 = vmatprep.subr.bf16.mxu0 %v18711_v53  ;;  %v18781_v53 = vld [vmem:[#allocation15 + $0xa80] ss:$16 sps:$4 sm:$0xff]   ;;  %v18784_v41 = vld [vmem:[#allocation15 + $0xa88] ss:$16 sps:$4 sm:$0xff]  }
 0x8c9   : > { %13158 = vmatpush1.bf16.msra.mxu1 %v18712_v58  ;;  %v18787_v58 = vld [vmem:[#allocation15 + $0xaa0] ss:$16 sps:$4 sm:$0xff]  }
 0x8ca   : > { %13052 = vmatpush1.bf16.msra.mxu0 %v18709_v17  ;;  %13159 = vmatprep.subr.bf16.mxu1 %v18720_v2  ;;  %v18789_v17 = vld [vmem:[#allocation15 + $0xaa4] ss:$16 sps:$4 sm:$0xff]  }
 0x8cb   : > { %13053 = vmatprep.subr.bf16.mxu0 %v18717_v6  ;;  %v18790_v6 = vld [vmem:[#allocation15 + $0xaa8] ss:$16 sps:$4 sm:$0xff]   ;;  %v18795_v2 = vld [vmem:[#allocation15 + $0xac4] ss:$16 sps:$4 sm:$0xff]  }
 0x8cd   : > { %13160 = vmatpush1.bf16.msra.mxu1 %v18718_v52 }
 0x8ce   : > { %13054 = vmatpush1.bf16.msra.mxu0 %v18715_v30  ;;  %13161 = vmatprep.subr.bf16.mxu1 %v18726_v21  ;;  %v18798_v30 = vld [vmem:[#allocation15 + $0xacc] ss:$16 sps:$4 sm:$0xff]  }
 0x8cf   : > { %13055 = vmatprep.subr.bf16.mxu0 %v18723_v55 }
 0x8d1   : > { %13162 = vmatpush1.bf16.msra.mxu1 %v18724_v1  ;;  %v18796_v1 = vld [vmem:[#allocation15 + $0xac8] ss:$16 sps:$4 sm:$0xff]  }
 0x8d2   : > { %13056 = vmatpush1.bf16.msra.mxu0 %v18721_v32  ;;  %13163 = vmatprep.subr.bf16.mxu1 %v18732_v7  ;;  %v18793_v32 = vld [vmem:[#allocation15 + $0xac0] ss:$16 sps:$4 sm:$0xff]  }
 0x8d3   : > { %13057 = vmatprep.subr.bf16.mxu0 %v18729_v27 }
 0x8d5   : > { %13164 = vmatpush1.bf16.msra.mxu1 %v18730_v13  ;;  %v18804_v13 = vld [vmem:[#allocation15 + $0xaec] ss:$16 sps:$4 sm:$0xff]  }
 0x8d6   : > { %13058 = vmatpush1.bf16.msra.mxu0 %v18727_v47  ;;  %13165 = vmatprep.subr.bf16.mxu1 %v18738_v28  ;;  %v18801_v47 = vld [vmem:[#allocation15 + $0xae4] ss:$16 sps:$4 sm:$0xff]  }
 0x8d7   : > { %13059 = vmatprep.subr.bf16.mxu0 %v18735_v8 }
 0x8d9   : > { %13166 = vmatpush1.bf16.msra.mxu1 %v18736_v3 }
 0x8da   : > { %13060 = vmatpush1.bf16.msra.mxu0 %v18733_v40  ;;  %13167 = vmatprep.subr.bf16.mxu1 %v18744_v23 }
 0x8db   : > { %13061 = vmatprep.subr.bf16.mxu0 %v18741_v33 }
 0x8dd   : > { %13168 = vmatpush1.bf16.msra.mxu1 %v18742_v38 }
 0x8de   : > { %13062 = vmatpush1.bf16.msra.mxu0 %v18739_v48  ;;  %13169 = vmatprep.subr.bf16.mxu1 %v18750_v29 }
 0x8df   : > { %13063 = vmatprep.subr.bf16.mxu0 %v18747_v57 }
 0x8e1   : > { %13170 = vmatpush1.bf16.msra.mxu1 %v18748_v0 }
 0x8e2   : > { %13064 = vmatpush1.bf16.msra.mxu0 %v18745_v42  ;;  %13171 = vmatprep.subr.bf16.mxu1 %v18756_v15  ;;  %v18802_v15 = vld [vmem:[#allocation15 + $0xae8] ss:$16 sps:$4 sm:$0xff]  }
 0x8e3   : > { %13065 = vmatprep.subr.bf16.mxu0 %v18753_v46  ;;  %v18799_v46 = vld [vmem:[#allocation15 + $0xae0] ss:$16 sps:$4 sm:$0xff]  }
 0x8e5   : > { %13172 = vmatpush1.bf16.msra.mxu1 %v18754_v18 }
 0x8e6   : > { %13066 = vmatpush1.bf16.msra.mxu0 %v18751_v31  ;;  %13194 = vmatprep.subr.bf16.mxu1 %v18762_v9  ;;  %v18810_v9 = vld [vmem:[#allocation15 + $0xb0c] ss:$16 sps:$4 sm:$0xff]  }
 0x8e7   : > { %13088 = vmatprep.subr.bf16.mxu0 %v18759_v45  ;;  %v18807_v45 = vld [vmem:[#allocation15 + $0xb04] ss:$16 sps:$4 sm:$0xff]  }
 0x8e8   : > { %13174 = vmatmul.mubr.bf16.vlgmr.msra.gmra.mrb[16].mxu1 %v21628_v63 }
 0x8e9   : > { %13068 = vmatmul.mubr.bf16.vlgmr.msra.gmra.mrb[16].mxu0 %v21628_v63  ;;  %13195 = vmatpush1.bf16.msra.mxu1 %v18760_v54  ;;  %v18780_v63 = vld [vmem:[#allocation15 + $0xa6c] ss:$16 sps:$4 sm:$0xff]  }
 0x8ea   : > { %13089 = vmatpush1.bf16.msra.mxu0 %v18757_v49  ;;  %13196 = vmatprep.subr.bf16.mxu1 %v18768_v61 }
 0x8eb   : > { %13090 = vmatprep.subr.bf16.mxu0 %v18765_v35  ;;  %13077 = vmatprep.mubr.bf16.mxu0 %v21640_v56  ;;  %v18805_v35 = vld [vmem:[#allocation15 + $0xb00] ss:$16 sps:$4 sm:$0xff]  }
 0x8ec   : > { %13183 = vmatprep.mubr.bf16.mxu1 %v21640_v56  ;;  %v18786_v56 = vld [vmem:[#allocation15 + $0xa8c] ss:$16 sps:$4 sm:$0xff]  }
 0x8ed   : > { %13197 = vmatpush1.bf16.msra.mxu1 %v18766_v16 }
 0x8ee   : > { %13091 = vmatpush1.bf16.msra.mxu0 %v18763_v12  ;;  %13198 = vmatprep.subr.bf16.mxu1 %v18774_v44  ;;  %v18808_v44 = vld [vmem:[#allocation15 + $0xb08] ss:$16 sps:$4 sm:$0xff]  }
 0x8ef   : > { %13092 = vmatprep.subr.bf16.mxu0 %v18771_v24 }
 0x8f0   : > { %13184 = vmatmul.mubr.bf16.gmra.mrb[20].mxu1 %v21642_v4 }
 0x8f1   : > { %13078 = vmatmul.mubr.bf16.gmra.mrb[20].mxu0 %v21642_v4  ;;  %13199 = vmatpush1.bf16.msra.mxu1 %v18772_v34  ;;  %v18792_v4 = vld [vmem:[#allocation15 + $0xaac] ss:$16 sps:$4 sm:$0xff]  }
 0x8f2   : > { %13093 = vmatpush1.bf16.msra.mxu0 %v18769_v26  ;;  %13200 = vmatprep.subr.bf16.mxu1 %v18780_v63 }
 0x8f3   : > { %13094 = vmatprep.subr.bf16.mxu0 %v18777_v50  ;;  %13120 = vmatprep.mubr.bf16.mxu0 %v21650_v14 }
 0x8f4   : > { %13226 = vmatprep.mubr.bf16.mxu1 %v21650_v14 }
 0x8f5   : > { %13201 = vmatpush1.bf16.msra.mxu1 %v18778_v43 }
 0x8f6   : > { %13095 = vmatpush1.bf16.msra.mxu0 %v18775_v25  ;;  %13202 = vmatprep.subr.bf16.mxu1 %v18786_v56  ;;  %v18813_v25 = vld [vmem:[#allocation15 + $0xb24] ss:$16 sps:$4 sm:$0xff]  }
 0x8f7   : > { %13096 = vmatprep.subr.bf16.mxu0 %v18783_v19 }
 0x8f9   : > { %13203 = vmatpush1.bf16.msra.mxu1 %v18784_v41 }
 0x8fa   : > { %13097 = vmatpush1.bf16.msra.mxu0 %v18781_v53  ;;  %13204 = vmatprep.subr.bf16.mxu1 %v18792_v4  ;;  %v18816_v4 = vld [vmem:[#allocation15 + $0xb2c] ss:$16 sps:$4 sm:$0xff]  }
 0x8fb   : > { %13098 = vmatprep.subr.bf16.mxu0 %v18789_v17  ;;  %v21698_v55 = vpop.f32.mrb[0].mxu1 }
 0x8fc   : > { %v21696_v52 = vpop.f32.mrb[0].mxu0  ;;  %v21702_v21 = vpop.f32.mrb[1].mxu1  ;;  %v11368_v28 = vrot.slane %v21698_v55, 7 }
 0x8fd   : > { %v21700_v14 = vpop.f32.mrb[1].mxu0  ;;  %v11351_v7 = vpop.f32.mrb[2].mxu1  ;;  %13205 = vmatpush1.bf16.msra.mxu1 %v18790_v6  ;;  %v11366_v8 = vrot.slane %v21696_v52, 7  ;;  %v11369_v38 = vrot.slane %v21702_v21, 7 }
 0x8fe   : > { %v11245_v27 = vpop.f32.mrb[2].mxu0  ;;  %13099 = vmatpush1.bf16.msra.mxu0 %v18787_v58  ;;  %v11372_v3 = vrot.slane %v11351_v7, 7  ;;  %v11353_v23 = vpop.f32.mrb[3].mxu1  ;;  %13206 = vmatprep.subr.bf16.mxu1 %v18798_v30  ;;  %v11367_v48 = vrot.slane %v21700_v14, 7  ;;  %v18822_v7 = vld [vmem:[#allocation15 + $0xb4c] ss:$16 sps:$4 sm:$0xff]  }
 0x8ff   : > { %v11370_v40 = vrot.slane %v11245_v27, 7  ;;  %v11247_v33 = vpop.f32.mrb[3].mxu0  ;;  %13100 = vmatprep.subr.bf16.mxu0 %v18795_v2  ;;  %v11373_v29 = vrot.slane %v11353_v23, 7  ;;  %v18819_v27 = vld [vmem:[#allocation15 + $0xb44] ss:$16 sps:$4 sm:$0xff]  }
 0x900   : > { %v11371_v57 = vrot.slane %v11247_v33, 7  ;;  %v21714_v0 = vsel %vm3020_vm0, %v11368_v28, %v11372_v3  ;;  %v18825_v33 = vld [vmem:[#allocation15 + $0xb64] ss:$16 sps:$4 sm:$0xff]   ;;  %v18828_v23 = vld [vmem:[#allocation15 + $0xb6c] ss:$16 sps:$4 sm:$0xff]  }
 0x901   : > { %v21710_v42 = vsel %vm3020_vm0, %v11366_v8, %v11370_v40  ;;  %13207 = vmatpush1.bf16.msra.mxu1 %v18796_v1  ;;  %v21722_v18 = vsel %vm3020_vm0, %v11369_v38, %v11373_v29  ;;  %v18814_v1 = vld [vmem:[#allocation15 + $0xb28] ss:$16 sps:$4 sm:$0xff]  }
 0x902   : > { %13101 = vmatpush1.bf16.msra.mxu0 %v18793_v32  ;;  %v21718_v31 = vsel %vm3020_vm0, %v11367_v48, %v11371_v57  ;;  %13208 = vmatprep.subr.bf16.mxu1 %v18804_v13  ;;  %v18811_v32 = vld [vmem:[#allocation15 + $0xb20] ss:$16 sps:$4 sm:$0xff]  }
 0x903   : > { %13102 = vmatprep.subr.bf16.mxu0 %v18801_v47  ;;  %v11357_v54 = vpop.f32.mrb[4].mxu1 }
 0x904   : > { %v11251_v49 = vpop.f32.mrb[4].mxu0  ;;  %v11376_v12 = vrot.slane %v11357_v54, 7  ;;  %v11359_v24 = vpop.f32.mrb[5].mxu1  ;;  %v18838_v54 = vld [vmem:[#allocation15 + $0xba8] ss:$16 sps:$4 sm:$0xff]  }
 0x905   : > { %v11374_v61 = vrot.slane %v11251_v49, 7  ;;  %v11253_v16 = vpop.f32.mrb[5].mxu0  ;;  %v11377_v34 = vrot.slane %v11359_v24, 7  ;;  %v11361_v63 = vpop.f32.mrb[6].mxu1  ;;  %13209 = vmatpush1.bf16.msra.mxu1 %v18802_v15  ;;  %v18832_v15 = vld [vmem:[#allocation15 + $0xb88] ss:$16 sps:$4 sm:$0xff]  }
 0x906   : > { %v11375_v26 = vrot.slane %v11253_v16, 7  ;;  %v11255_v50 = vpop.f32.mrb[6].mxu0  ;;  %13103 = vmatpush1.bf16.msra.mxu0 %v18799_v46  ;;  %v21730_v19 = vsel %vm3020_vm0, %v11372_v3, %v11376_v12  ;;  %v11380_v53 = vrot.slane %v11361_v63, 7  ;;  %v11363_v17 = vpop.f32.mrb[7].mxu1  ;;  %13210 = vmatprep.subr.bf16.mxu1 %v18810_v9  ;;  %v18820_v3 = vld [vmem:[#allocation15 + $0xb48] ss:$16 sps:$4 sm:$0xff]  }
 0x907   : > { %v21726_v43 = vsel %vm3020_vm0, %v11370_v40, %v11374_v61  ;;  %v11378_v56 = vrot.slane %v11255_v50, 7  ;;  %v11257_v41 = vpop.f32.mrb[7].mxu0  ;;  %13104 = vmatprep.subr.bf16.mxu0 %v18807_v45  ;;  %v21738_v6 = vsel %vm3020_vm0, %v11373_v29, %v11377_v34  ;;  %v11381_v30 = vrot.slane %v11363_v17, 7  ;;  %v18817_v40 = vld [vmem:[#allocation15 + $0xb40] ss:$16 sps:$4 sm:$0xff]  }
 0x908   : > { %v21734_v58 = vsel %vm3020_vm0, %v11371_v57, %v11375_v26  ;;  %v11379_v2 = vrot.slane %v11257_v41, 7  ;;  %v21746_v55 = vsel %vm3020_vm0, %v11380_v53, %v11368_v28  ;;  %v21762_v13 = vsel %vm3020_vm0, %v11376_v12, %v11380_v53  ;;  %v18831_v57 = vld [vmem:[#allocation15 + $0xb84] ss:$16 sps:$4 sm:$0xff]   ;;  %v18834_v29 = vld [vmem:[#allocation15 + $0xb8c] ss:$16 sps:$4 sm:$0xff]  }
 0x909   : > { %v21742_v52 = vsel %vm3020_vm0, %v11378_v56, %v11366_v8  ;;  %v21754_v21 = vsel %vm3020_vm0, %v11381_v30, %v11369_v38  ;;  %13211 = vmatpush1.bf16.msra.mxu1 %v18808_v44  ;;  %v21758_v47 = vsel %vm3020_vm0, %v11374_v61, %v11378_v56  ;;  %v21770_v28 = vsel %vm3020_vm0, %v11377_v34, %v11381_v30  ;;  %v18826_v38 = vld [vmem:[#allocation15 + $0xb68] ss:$16 sps:$4 sm:$0xff]   ;;  %v18829_v46 = vld [vmem:[#allocation15 + $0xb80] ss:$16 sps:$4 sm:$0xff]   ;;  %v18837_v45 = vld [vmem:[#allocation15 + $0xba4] ss:$16 sps:$4 sm:$0xff]  }
 0x90a   : > { %v21750_v14 = vsel %vm3020_vm0, %v11379_v2, %v11367_v48  ;;  %13105 = vmatpush1.bf16.msra.mxu0 %v18805_v35  ;;  %13212 = vmatprep.subr.bf16.mxu1 %v18816_v4  ;;  %v21766_v8 = vsel %vm3020_vm0, %v11375_v26, %v11379_v2  ;;  %v18823_v48 = vld [vmem:[#allocation15 + $0xb60] ss:$16 sps:$4 sm:$0xff]   ;;  %v18840_v9 = vld [vmem:[#allocation15 + $0xbac] ss:$16 sps:$4 sm:$0xff]   ;;  %v18843_v35 = vld [vmem:[#allocation15 + $0xbc4] ss:$16 sps:$4 sm:$0xff]   ;;  %v11398_v50 = vmul.f32 %v20568_v20, %v21742_v52 }
 0x90b   : > { %13106 = vmatprep.subr.bf16.mxu0 %v18813_v25  ;;  %v18835_v49 = vld [vmem:[#allocation15 + $0xba0] ss:$16 sps:$4 sm:$0xff]   ;;  %v18846_v61 = vld [vmem:[#allocation15 + $0xbcc] ss:$16 sps:$4 sm:$0xff]   ;;  %v18844_v16 = vld [vmem:[#allocation15 + $0xbc8] ss:$16 sps:$4 sm:$0xff]   ;;  %v11400_v63 = vmul.f32 %v20568_v20, %v21746_v55  ;;  %v11399_v53 = vmul.f32 %v20568_v20, %v21750_v14 }
 0x90c   : > { %v18841_v12 = vld [vmem:[#allocation15 + $0xbc0] ss:$16 sps:$4 sm:$0xff]   ;;  %v18849_v24 = vld [vmem:[#allocation15 + $0xbe4] ss:$16 sps:$4 sm:$0xff]   ;;  %v18852_v44 = vld [vmem:[#allocation15 + $0xbec] ss:$16 sps:$4 sm:$0xff]  }
 0x90d   : > { %13213 = vmatpush1.bf16.msra.mxu1 %v18814_v1  ;;  %v18847_v26 = vld [vmem:[#allocation15 + $0xbe0] ss:$16 sps:$4 sm:$0xff]   ;;  %v18850_v34 = vld [vmem:[#allocation15 + $0xbe8] ss:$16 sps:$4 sm:$0xff]  }
 0x90e   : > { %13107 = vmatpush1.bf16.msra.mxu0 %v18811_v32  ;;  %13214 = vmatprep.subr.bf16.mxu1 %v18822_v7  ;;  %v11408_v7 = vmul.f32 %v20613_v60, %v21730_v19 }
 0x90f   : > { %13108 = vmatprep.subr.bf16.mxu0 %v18819_v27 }
 0x911   : > { %13215 = vmatpush1.bf16.msra.mxu1 %v18820_v3  ;;  %v11409_v3 = vmul.f32 %v20613_v60, %v21738_v6 }
 0x912   : > { %13109 = vmatpush1.bf16.msra.mxu0 %v18817_v40  ;;  %13216 = vmatprep.subr.bf16.mxu1 %v18828_v23 }
 0x913   : > { %13110 = vmatprep.subr.bf16.mxu0 %v18825_v33 }
 0x915   : > { %13217 = vmatpush1.bf16.msra.mxu1 %v18826_v38 }
 0x916   : > { %13111 = vmatpush1.bf16.msra.mxu0 %v18823_v48  ;;  %13218 = vmatprep.subr.bf16.mxu1 %v18834_v29 }
 0x917   : > { %13112 = vmatprep.subr.bf16.mxu0 %v18831_v57 }
 0x919   : > { %13219 = vmatpush1.bf16.msra.mxu1 %v18832_v15  ;;  %v13311_v15 = vld [vmem:[#allocation16] sm:$0xf] }
 0x91a   : > { %13113 = vmatpush1.bf16.msra.mxu0 %v18829_v46  ;;  %13220 = vmatprep.subr.bf16.mxu1 %v18840_v9 }
 0x91b   : > { %13114 = vmatprep.subr.bf16.mxu0 %v18837_v45 }
 0x91d   : > { %13221 = vmatpush1.bf16.msra.mxu1 %v18838_v54 }
 0x91e   : > { %13115 = vmatpush1.bf16.msra.mxu0 %v18835_v49  ;;  %13222 = vmatprep.subr.bf16.mxu1 %v18846_v61  ;;  %v21836_v61 = vrot.slane %v13311_v15, %v20689_v39 }
 0x91f   : > { %13116 = vmatprep.subr.bf16.mxu0 %v18843_v35 }
 0x921   : > { %13223 = vmatpush1.bf16.msra.mxu1 %v18844_v16 }
 0x922   : > { %13117 = vmatpush1.bf16.msra.mxu0 %v18841_v12  ;;  %13224 = vmatprep.subr.bf16.mxu1 %v18852_v44 }
 0x923   : > { %13118 = vmatprep.subr.bf16.mxu0 %v18849_v24 }
 0x925   : > { %13225 = vmatpush1.bf16.msra.mxu1 %v18850_v34 }
 0x926   : > { %13119 = vmatpush1.bf16.msra.mxu0 %v18847_v26 }
 0x928   : > { %13227 = vmatmul.mubr.bf16.vlgmr.msra.gmra.mrb[16].mxu1 %v21658_v37 }
 0x929   : > { %13121 = vmatmul.mubr.bf16.vlgmr.msra.gmra.mrb[16].mxu0 %v21658_v37  ;;  %13236 = vmatprep.mubr.bf16.mxu1 %v21660_v51  ;;  %v11401_v37 = vmul.f32 %v20568_v20, %v21754_v21  ;;  %v11406_v21 = vmul.f32 %v20613_v60, %v21726_v43 }
 0x92a   : > { %13130 = vmatprep.mubr.bf16.mxu0 %v21660_v51 }
 0x930   : > { %13237 = vmatmul.mubr.bf16.gmra.mrb[20].mxu1 %v21666_v59 }
 0x931   : > { %13131 = vmatmul.mubr.bf16.gmra.mrb[20].mxu0 %v21666_v59 }
 0x97b   : > { %v12247_v56 = vpop.f32.mrb[8].mxu1 }
 0x97c   : > { %v12141_v25 = vpop.f32.mrb[8].mxu0  ;;  %v16299_v51 = vadd.f32 %v12247_v56, %v11400_v63  ;;  %v12249_v4 = vpop.f32.mrb[9].mxu1 }
 0x97d   : > { %v16291_v41 = vadd.f32 %v12141_v25, %v11398_v50  ;;  %v12143_v17 = vpop.f32.mrb[9].mxu0  ;;  %v16300_v59 = vadd.f32 %v12249_v4, %v11401_v37  ;;  %v12251_v32 = vpop.f32.mrb[10].mxu1  ;;  %v21851_v37 = vrot.slane %v13311_v15, %v20695_v11 }
 0x97e   : > { %v16292_v2 = vadd.f32 %v12143_v17, %v11399_v53  ;;  %v12145_v30 = vpop.f32.mrb[10].mxu0  ;;  %v21790_v55 = vadd.f32 %v12251_v32, %v21714_v0  ;;  %v12253_v27 = vpop.f32.mrb[11].mxu1  ;;  %v11407_v0 = vmul.f32 %v20613_v60, %v21734_v58  ;;  %v21848_v53 = vrot.slane %v13311_v15, %v20692_v62  ;;  %v13397_v17 = vld [vmem:[#allocation18] sm:$0xf] }
 0x97f   : > { %v21787_v52 = vadd.f32 %v12145_v30, %v21710_v42  ;;  %v12147_v1 = vpop.f32.mrb[11].mxu0  ;;  %v21796_v20 = vadd.f32 %v12253_v27, %v21722_v18 }
 0x980   : > { %v21793_v14 = vadd.f32 %v12147_v1, %v21718_v31 }
 0x983   : > { %v12257_v42 = vpop.f32.mrb[12].mxu1 }
 0x984   : > { %v12151_v40 = vpop.f32.mrb[12].mxu0  ;;  %v21808_v31 = vadd.f32 %v12257_v42, %v11408_v7  ;;  %v12259_v23 = vpop.f32.mrb[13].mxu1 }
 0x985   : > { %v21806_v33 = vadd.f32 %v12151_v40, %v11406_v21  ;;  %v12153_v18 = vpop.f32.mrb[13].mxu0  ;;  %v21812_v43 = vadd.f32 %v12259_v23, %v11409_v3  ;;  %v12261_v19 = vpop.f32.mrb[14].mxu1 }
 0x986   : > { %v21810_v48 = vadd.f32 %v12153_v18, %v11407_v0  ;;  %v12155_v38 = vpop.f32.mrb[14].mxu0  ;;  %v21818_v58 = vadd.f32 %v12261_v19, %v21762_v13  ;;  %v12263_v60 = vpop.f32.mrb[15].mxu1  ;;  %v21833_v13 = vrot.slane %v13311_v15, %v20686_v10  ;;  %v21871_v0 = vrot.slane %v13397_v17, %v20689_v39 }
 0x987   : > { %v21815_v57 = vadd.f32 %v12155_v38, %v21758_v47  ;;  %v12157_v29 = vpop.f32.mrb[15].mxu0  ;;  %v21824_v46 = vadd.f32 %v12263_v60, %v21770_v28  ;;  %v21877_v38 = vrot.slane %v13397_v17, %v20695_v11 }
 0x988   : > { %v21821_v6 = vadd.f32 %v12157_v29, %v21766_v8 }
 0x9fb   : > { %v21826_v9 = vpop.f32.mrb[16].mxu1 }
 0x9fc   : > { %v13122_v45 = vpop.f32.mrb[16].mxu0  ;;  %v21830_v54 = vpop.f32.mrb[17].mxu1  ;;  %v13249_v28 = vrot.slane %v21826_v9, 1 }
 0x9fd   : > { %v21828_v49 = vpop.f32.mrb[17].mxu0  ;;  %v13232_v35 = vpop.f32.mrb[18].mxu1  ;;  %v13247_v8 = vrot.slane %v13122_v45, 1  ;;  %v13250_v34 = vrot.slane %v21830_v54, 1 }
 0x9fe   : > { %v13126_v47 = vpop.f32.mrb[18].mxu0  ;;  %v13253_v16 = vrot.slane %v13232_v35, 1  ;;  %v13234_v44 = vpop.f32.mrb[19].mxu1  ;;  %v13248_v26 = vrot.slane %v21828_v49, 1 }
 0x9ff   : > { %v13251_v12 = vrot.slane %v13126_v47, 1  ;;  %v13128_v24 = vpop.f32.mrb[19].mxu0  ;;  %v13254_v63 = vrot.slane %v13234_v44, 1 }
 0xa00   : > { %v13252_v50 = vrot.slane %v13128_v24, 1  ;;  %v13273_v56 = vsel %vm6734_vm3, %v13249_v28, %v13253_v16 }
 0xa01   : > { %v13271_v25 = vsel %vm6734_vm3, %v13247_v8, %v13251_v12  ;;  %v13297_v30 = vadd.f32 %v16299_v51, %v13273_v56  ;;  %v13274_v1 = vsel %vm6734_vm3, %v13250_v34, %v13254_v63  ;;  %v21868_v51 = vrot.slane %v13397_v17, %v20692_v62 }
 0xa02   : > { %v13295_v4 = vadd.f32 %v16291_v41, %v13271_v25  ;;  %v13272_v32 = vsel %vm6734_vm3, %v13248_v26, %v13252_v50  ;;  %v13298_v21 = vadd.f32 %v16300_v59, %v13274_v1  ;;  %v21865_v41 = vrot.slane %v13397_v17, %v20686_v10 }
 0xa03   : > { %v13296_v27 = vadd.f32 %v16292_v2, %v13272_v32  ;;  %v13238_v42 = vpop.f32.mrb[20].mxu1  ;;  %v21874_v3 = vadd.f32 %v21836_v61, %v13297_v30 }
 0xa04   : > { %v21862_v7 = vadd.f32 %v21833_v13, %v13295_v4  ;;  %v13132_v40 = vpop.f32.mrb[20].mxu0  ;;  %v13257_v2 = vrot.slane %v13238_v42, 1  ;;  %v13240_v23 = vpop.f32.mrb[21].mxu1  ;;  %v21883_v10 = vadd.f32 %v21851_v37, %v13298_v21 }
 0xa05   : > { %v13255_v18 = vrot.slane %v13132_v40, 1  ;;  %v13134_v59 = vpop.f32.mrb[21].mxu0  ;;  %v21880_v19 = vadd.f32 %v21848_v53, %v13296_v27  ;;  %v13258_v29 = vrot.slane %v13240_v23, 1  ;;  %v13242_v60 = vpop.f32.mrb[22].mxu1  ;;  %vm13351_vm11 = vcmp.ge.f32.partialorder %v21874_v3, 0.0 }
 0xa06   : > { %v13256_v62 = vrot.slane %v13134_v59, 1  ;;  %v13136_v39 = vpop.f32.mrb[22].mxu0  ;;  %v13365_v15 = vmul.f32 0.2, %v21862_v7  ;;  %v13269_v47 = vsel %vm6734_vm3, %v13253_v16, %v13257_v2  ;;  %v13244_v24 = vpop.f32.mrb[23].mxu1  ;;  %v13261_v40 = vrot.slane %v13242_v60, 1 }
 0xa07   : > { %v13267_v45 = vsel %vm6734_vm3, %v13251_v12, %v13255_v18  ;;  %v13259_v11 = vrot.slane %v13136_v39, 1  ;;  %v13138_v35 = vpop.f32.mrb[23].mxu0  ;;  %v13285_v25 = vmul.f32 %v20752_v36, %v13269_v47  ;;  %v13270_v17 = vsel %vm6734_vm3, %v13254_v63, %v13258_v29 }
 0xa08   : > { %v13283_v44 = vmul.f32 %v20752_v36, %v13267_v45  ;;  %v13268_v56 = vsel %vm6734_vm3, %v13252_v50, %v13256_v62  ;;  %v13286_v12 = vmul.f32 %v20752_v36, %v13270_v17  ;;  %v13366_v42 = vmul.f32 0.2, %v21880_v19 }
 0xa09   : > { %v13284_v4 = vmul.f32 %v20752_v36, %v13268_v56  ;;  %v13263_v16 = vsel %vm6734_vm3, %v13255_v18, %v13259_v11  ;;  %v13275_v30 = vsel %vm6734_vm3, %v13259_v11, %v13247_v8  ;;  %v13301_v1 = vadd.f32 %v21790_v55, %v13285_v25 }
 0xa0a   : > { %v13299_v32 = vadd.f32 %v21787_v52, %v13283_v44  ;;  %v13291_v27 = vmul.f32 %v20757_v5, %v13275_v30  ;;  %v13303_v50 = vadd.f32 %v21806_v33, %v13263_v16  ;;  %v13302_v21 = vadd.f32 %v21796_v20, %v13286_v12 }
 0xa0b   : > { %v13300_v63 = vadd.f32 %v21793_v14, %v13284_v4  ;;  %v13260_v36 = vrot.slane %v13138_v35, 1  ;;  %v21915_v55 = vadd.f32 %v21836_v61, %v13301_v1  ;;  %v13265_v14 = vsel %vm6734_vm3, %v13257_v2, %v13261_v40 }
 0xa0c   : > { %v21910_v18 = vadd.f32 %v21833_v13, %v13299_v32  ;;  %v13307_v8 = vadd.f32 %v21815_v57, %v13291_v27  ;;  %v13341_v52 = vadd.f32 %v21833_v13, %v13303_v50  ;;  %v13277_v20 = vsel %vm6734_vm3, %v13261_v40, %v13249_v28 }
 0xa0d   : > { %v21918_v33 = vadd.f32 %v21848_v53, %v13300_v63  ;;  %v21930_v57 = vadd.f32 %v21851_v37, %v13302_v21  ;;  %v13293_v39 = vmul.f32 %v20757_v5, %v13277_v20  ;;  %v13305_v45 = vadd.f32 %v21808_v31, %v13265_v14 }
 0xa0e   : > { %v21927_v59 = vmul.f32 0.2, %v21910_v18  ;;  %v21933_v23 = vadd.f32 %v21833_v13, %v13307_v8  ;;  %v13373_v60 = vmul.f32 0.2, %v13341_v52  ;;  %v13264_v9 = vsel %vm6734_vm3, %v13256_v62, %v13260_v36 }
 0xa0f   : > { %v13276_v28 = vsel %vm6734_vm3, %v13260_v36, %v13248_v26  ;;  %v13370_v2 = vmul.f32 0.2, %v21918_v33  ;;  %v13309_v47 = vadd.f32 %v21818_v58, %v13293_v39  ;;  %v13304_v11 = vadd.f32 %v21810_v48, %v13264_v9 }
 0xa10   : > { %v13292_v13 = vmul.f32 %v20757_v5, %v13276_v28  ;;  %v21948_v35 = vmul.f32 0.2, %v21933_v23  ;;  %v13343_v31 = vadd.f32 %v21836_v61, %v13305_v45  ;;  %v13262_v44 = vrot.slane %v13244_v24, 1 }
 0xa11   : > { %vm13349_vm0 = vcmp.ge.f32.partialorder %v21862_v7, 0.0  ;;  %v13342_v26 = vadd.f32 %v21848_v53, %v13304_v11  ;;  %vm13350_vm10 = vcmp.ge.f32.partialorder %v21880_v19, 0.0  ;;  %v21957_v58 = vadd.f32 %v21836_v61, %v13309_v47 }
 0xa12   : > { %v13308_v49 = vadd.f32 %v21821_v6, %v13292_v13  ;;  %v13266_v48 = vsel %vm6734_vm3, %v13258_v29, %v13262_v44  ;;  %v13278_v62 = vsel %vm6734_vm3, %v13262_v44, %v13250_v34  ;;  %v13367_v24 = vmul.f32 0.2, %v21874_v3 }
 0xa13   : > { %v13294_v25 = vmul.f32 %v20757_v5, %v13278_v62  ;;  %v13306_v56 = vadd.f32 %v21812_v43, %v13266_v48  ;;  %vm13352_vm12 = vcmp.ge.f32.partialorder %v21883_v10, 0.0  ;;  %v13368_v61 = vmul.f32 0.2, %v21883_v10 }
 0xa14   : > { %v13346_v6 = vadd.f32 %v21848_v53, %v13308_v49  ;;  %v13381_v17 = vsel %vm13349_vm0, %v21862_v7, %v13365_v15  ;;  %v13382_v29 = vsel %vm13350_vm10, %v21880_v19, %v13366_v42  ;;  %v13383_v54 = vsel %vm13351_vm11, %v21874_v3, %v13367_v24 }
 0xa15   : > { %v13374_v22 = vmul.f32 0.2, %v13342_v26  ;;  %v13310_v4 = vadd.f32 %v21824_v46, %v13294_v25  ;;  %v13344_v53 = vadd.f32 %v21851_v37, %v13306_v56  ;;  %v13384_v5 = vsel %vm13352_vm12, %v21883_v10, %v13368_v61 }
 0xa16   : > { %v13378_v34 = vmul.f32 0.2, %v13346_v6  ;;  %vm13362_vm3 = vcmp.ge.f32.partialorder %v13346_v6, 0.0  ;;  %v13419_v43 = vmul.f32 %v21865_v41, %v13381_v17  ;;  %v13420_v12 = vmul.f32 %v21868_v51, %v13382_v29 }
 0xa17   : > { %v13421_v16 = vmul.f32 %v21871_v0, %v13383_v54  ;;  %v13348_v7 = vadd.f32 %v21851_v37, %v13310_v4  ;;  %v13422_v19 = vmul.f32 %v21877_v38, %v13384_v5  ;;  %vm13357_vm13 = vcmp.ge.f32.partialorder %v13341_v52, 0.0 }
 0xa18   : > { %vm13358_vm14 = vcmp.ge.f32.partialorder %v13342_v26, 0.0  ;;  %v13435_v3 = vadd.f32 %v13420_v12, %v13419_v43  ;;  %vm13359_vm15 = vcmp.ge.f32.partialorder %v13343_v31, 0.0  ;;  %vm13360_vm1 = vcmp.ge.f32.partialorder %v13344_v53, 0.0 }
 0xa19   : > { %v13375_v46 = vmul.f32 0.2, %v13343_v31  ;;  %v13376_v15 = vmul.f32 0.2, %v13344_v53  ;;  %v13389_v30 = vsel %vm13357_vm13, %v13341_v52, %v13373_v60  ;;  %v13390_v32 = vsel %vm13358_vm14, %v13342_v26, %v13374_v22 }
 0xa1a   : > { %vm13353_vm2 = vcmp.ge.f32.partialorder %v21910_v18, 0.0  ;;  %v13436_v10 = vadd.f32 %v13435_v3, %v13421_v16  ;;  %v13427_v27 = vmul.f32 %v21865_v41, %v13389_v30  ;;  %v13428_v50 = vmul.f32 %v21868_v51, %v13390_v32 }
 0xa1b   : > { %v13391_v1 = vsel %vm13359_vm15, %v13343_v31, %v13375_v46  ;;  %v13392_v37 = vsel %vm13360_vm1, %v13344_v53, %v13376_v15  ;;  %vm13354_vm4 = vcmp.ge.f32.partialorder %v21918_v33, 0.0  ;;  %vm13355_vm5 = vcmp.ge.f32.partialorder %v21915_v55, 0.0 }
 0xa1c   : > { %v13429_v63 = vmul.f32 %v21871_v0, %v13391_v1  ;;  %v13437_v21 = vadd.f32 %v13436_v10, %v13422_v19  ;;  %v13430_v40 = vmul.f32 %v21877_v38, %v13392_v37  ;;  %v13445_v36 = vadd.f32 %v13428_v50, %v13427_v27 }
 0xa1d   : > { %vm13356_vm6 = vcmp.ge.f32.partialorder %v21930_v57, 0.0  ;;  %v13371_v42 = vmul.f32 0.2, %v21915_v55  ;;  %v13372_v8 = vmul.f32 0.2, %v21930_v57  ;;  %v13385_v52 = vsel %vm13353_vm2, %v21910_v18, %v21927_v59 }
 0xa1e   : > { %v13386_v14 = vsel %vm13354_vm4, %v21918_v33, %v13370_v2  ;;  %13438 = vadd.xlane.f32.xlu0 %v13437_v21  ;;  %v13446_v20 = vadd.f32 %v13445_v36, %v13429_v63  ;;  %v13423_v39 = vmul.f32 %v21865_v41, %v13385_v52  ;;  %vm13361_vm7 = vcmp.ge.f32.partialorder %v21933_v23, 0.0 }
 0xa1f   : > { %v13424_v60 = vmul.f32 %v21868_v51, %v13386_v14  ;;  %v13387_v45 = vsel %vm13355_vm5, %v21915_v55, %v13371_v42  ;;  %v13388_v9 = vsel %vm13356_vm6, %v21930_v57, %v13372_v8  ;;  %vm13363_vm8 = vcmp.ge.f32.partialorder %v21957_v58, 0.0 }
 0xa20   : > { %v13447_v28 = vadd.f32 %v13446_v20, %v13430_v40  ;;  %v13425_v47 = vmul.f32 %v21871_v0, %v13387_v45  ;;  %vm13364_vm9 = vcmp.ge.f32.partialorder %v13348_v7, 0.0  ;;  %v13379_v33 = vmul.f32 0.2, %v21957_v58 }
 0xa21   : > { %v13440_v18 = vadd.f32 %v13424_v60, %v13423_v39  ;;  %v13380_v59 = vmul.f32 0.2, %v13348_v7  ;;  %v13393_v2 = vsel %vm13361_vm7, %v21933_v23, %v21948_v35  ;;  %v13394_v13 = vsel %vm13362_vm3, %v13346_v6, %v13378_v34  ;;  %v16056_v6 = vld [vmem:[#allocation3] ss:$0 sm:$0xff] }
 0xa22   : > { %13448 = vadd.xlane.f32.xlu1 %v13447_v28  ;;  %v13426_v55 = vmul.f32 %v21877_v38, %v13388_v9  ;;  %v13431_v57 = vmul.f32 %v21865_v41, %v13393_v2  ;;  %v13432_v31 = vmul.f32 %v21868_v51, %v13394_v13  ;;  %v13395_v44 = vsel %vm13363_vm8, %v21957_v58, %v13379_v33 }
 0xa23   : > { %v13441_v11 = vadd.f32 %v13440_v18, %v13425_v47  ;;  %v13396_v49 = vsel %vm13364_vm9, %v13348_v7, %v13380_v59  ;;  %v13433_v48 = vmul.f32 %v21871_v0, %v13395_v44  ;;  %vm13490_vm0 = vcmask 7168  }
 0xa24   : > { %v13450_v62 = vadd.f32 %v13432_v31, %v13431_v57  ;;  %v13434_v23 = vmul.f32 %v21877_v38, %v13396_v49 }
 0xa25   : > { %v13442_v26 = vadd.f32 %v13441_v11, %v13426_v55 }
 0xa26   : > { %v13451_v35 = vadd.f32 %v13450_v62, %v13433_v48 }
 0xa27   : > { %13443 = vadd.xlane.f32.xlu0 %v13442_v26 }
 0xa28   : > { %v13452_v24 = vadd.f32 %v13451_v35, %v13434_v23 }
 0xa2a   : > { %13453 = vadd.xlane.f32.xlu1 %v13452_v24 }
 0xaab   : > { %v13439_v25 = vpop.xlane.xlu0 %13438 }
 0xaac   : > { %v13462_v56 = vadd.f32 %v16056_v6, %v13439_v25 }
 0xaae   : > { %v13466_v61 = vsub.f32 0.0, %v13462_v56 }
 0xaaf   : > { %v13449_v41 = vpop.xlane.xlu1 %13448 }
 0xab0   : > { %v13470_v17 = vmul.f32 1.442695, %v13466_v61  ;;  %v13464_v51 = vadd.f32 %v16056_v6, %v13449_v41 }
 0xab2   : > { %18853 = vpow2.f32 %v13470_v17  ;;  %v13468_v58 = vsub.f32 0.0, %v13464_v51 }
 0xab4   : > { %v13444_v29 = vpop.xlane.xlu0 %13443  ;;  %v13474_v54 = vmul.f32 1.442695, %v13468_v58 }
 0xab5   : > { %v13463_v22 = vadd.f32 %v16056_v6, %v13444_v29 }
 0xab6   : > { %18855 = vpow2.f32 %v13474_v54 }
 0xab7   : > { %v13467_v0 = vsub.f32 0.0, %v13463_v22  ;;  %v13454_v34 = vpop.xlane.xlu1 %13453 }
 0xab8   : > { %v13465_v38 = vadd.f32 %v16056_v6, %v13454_v34 }
 0xab9   : > { %v13472_v4 = vmul.f32 1.442695, %v13467_v0 }
 0xaba   : > { %v13469_v53 = vsub.f32 0.0, %v13465_v38 }
 0xabb   : > { %18857 = vpow2.f32 %v13472_v4 }
 0xabc   : > { %v18854_v5 = vpop.eup %18853  ;;  %v13476_v43 = vmul.f32 1.442695, %v13469_v53 }
 0xabd   : > { %v13478_v12 = vadd.f32 1.0, %v18854_v5 }
 0xabe   : > { %18859 = vpow2.f32 %v13476_v43 }
 0xabf   : > { %18861 = vrcp.f32 %v13478_v12 }
 0xac0   : > { %v18856_v16 = vpop.eup %18855 }
 0xac1   : > { %v13480_v7 = vadd.f32 1.0, %v18856_v16 }
 0xac3   : > { %18863 = vrcp.f32 %v13480_v7 }
 0xac5   : > { %v18858_v19 = vpop.eup %18857 }
 0xac6   : > { %v13479_v3 = vadd.f32 1.0, %v18858_v19 }
 0xac8   : > { %18865 = vrcp.f32 %v13479_v3  ;;  %v18860_v46 = vpop.eup %18859 }
 0xac9   : > { %v18862_v15 = vpop.eup %18861  ;;  %v13481_v30 = vadd.f32 1.0, %v18860_v46 }
 0xaca   : > { %13491 = vst.msk [vmem:[%s22085_s10] sm:$0xff] %vm13490_vm0, %v18862_v15 }
 0xacb   : > { %18867 = vrcp.f32 %v13481_v30 }
 0xacd   : > { %v18864_v32 = vpop.eup %18863 }
 0xace   : > { %13493 = vst.msk [vmem:[%s22085_s10 + $0x10] sm:$0xff] %vm13490_vm0, %v18864_v32 }
 0xad2   : > { %v18866_v10 = vpop.eup %18865 }
 0xad3   : > { %13492 = vst.msk [vmem:[%s22085_s10 + $0x8] sm:$0xff] %vm13490_vm0, %v18866_v10 }
 0xad5   : > { %v18868_v1 = vpop.eup %18867 }
 0xad6   : > { %13494 = vst.msk [vmem:[%s22085_s10 + $0x18] sm:$0xff] %vm13490_vm0, %v18868_v1 }
 0xad7 PF: > { %s22131_s17 = sld [smem:[#allocation32_spill]]  ;;  %s16066_s7 = sshll.u32 %s19290_s9, 9 }
 0xad8   : > { %s22132_s27 = sld [smem:[#allocation36_spill]]  ;;  %s13512_s16 = sshll.u32 %s20855_s29, 4  ;;  %s22031_s16 = int_to_ptr.vmem [resolvable:$true] %s13512_s16 }
 0xad9   : > { %s13496_s18 = scalar_lea.sflag [#allocation6], %s19582_s23  ;;  %s19093_s26 = scalar_lea.vmem %s22031_s16, 2048 }
 0xada   : > { %p19094_p8 = scmp.ne.s32.totalorder %s22031_s16, %s19093_s26  ;;  %s19202_s5 = smov [#allocation19]  }
 0xadb   : > { %s19097_s12 = sshll.u32 %s19202_s5, 4  ;;  %s19098_s12 = int_to_ptr.vmem [resolvable:$false] %s19097_s12 }
 0xadc   : > { %s19099_s9 = scalar_lea.vmem %s19098_s12, 4096  ;;  %p19100_p4 = scmp.lt.s32.totalorder %s22031_s16, %s19098_s12 }
 0xadd   : > { %p22133_p13 = scmp.ne.s32.totalorder %s22131_s17, 0  ;;  %p19101_p10 = scmp.lt.s32.totalorder %s19099_s9, %s19093_s26 }
 0xade   : > { %s22028_s25 = scalar_lea.hbm %s22132_s27, %s16066_s7 }
 0xadf   : > { %p19095_p9 = pnand %p19094_p8, %p22133_p13  ;;  %p19102_p2 = por %p19101_p10, %p19100_p4 }
 0xae1   : > { %p19096_p0 = pneg %p19095_p9 }
 0xae3   : > { %p19103_p7 = pnand %p19102_p2, %p19096_p0 }
 0xae5   : > { %19106 = shalt.err (!%p19103_p7)
}
 0xae6   : > { %s19107_s29 = scalar_lea.hbm %s22028_s25, 2048  ;;  %s19111_s19 = scalar_lea.hbm %s22132_s27, 4096 }
 0xae7   : > { %p19108_p1 = scmp.ne.s32.totalorder %s22028_s25, %s19107_s29  ;;  %p19112_p6 = scmp.lt.u32.totalorder %s22028_s25, %s22132_s27 }
 0xae8   : > { %p19113_p12 = scmp.lt.u32.totalorder %s19111_s19, %s19107_s29  ;;  %p19115_p8 = scmp.lt.u32.totalorder %s19107_s29, %s22028_s25 }
 0xae9   : > { %p19109_p5 = pnand %p19108_p1, %p22133_p13 }
 0xaea   : > { %p19114_p3 = por %p19113_p12, %p19112_p6 }
 0xaeb   : > { %p19110_p11 = pneg %p19109_p5 }
 0xaec   : > { %p19116_p9 = por %p19115_p8, %p19114_p3 }
 0xaee   : > { %p19117_p0 = pnand %p19116_p9, %p19110_p11 }
 0xaf0   : > { %19120 = shalt.err (!%p19117_p0)
}
 0xaf1   : > { %s19203_s28 = smov 512   ;;  %s19204_s7 = smov 1024  }
 0xaf2   : > { %s19205_s13 = smov 32  }
 0xaf3   : > { %16395 = dma.vmem_to_hbm [thread:$0]  (%p22133_p13), %s22031_s16, 2048, %s22028_s25, %s13496_s18, %s19203_s28, %s19204_s7, %s19205_s13  }
 0xaf4 PF: > { %s22134_s30 = sld [smem:[#allocation29_spill]]  ;;  %s22135_s26 = sld [smem:[#allocation33_spill]] }
 0xaf5   : > { %p22137_p10 = scmp.ge.s32.totalorder %s19175_s22, 2 }
 0xafa   : > { %s13530_s5 = sand.u32 1, %s22134_s30   ;;  %p22136_p4 = scmp.ne.s32.totalorder %s22135_s26, 0 }
 0xafb   : > { %s13531_s12 = scalar_lea.sflag [#allocation6], %s13530_s5 }
 0xafc   : > { %p16414_p2 = pnand %p22137_p10, %p22136_p4 }
 0xafe   : > { %19158 = dma.done.wait (!%p16414_p2), %s13531_s12, 2048  }
 0xaff   : > { %19160 = vsyncadd (!%p16414_p2), %s13531_s12, 4294965248  ;;  %s22138_s22 = sld [smem:[#allocation30_spill]]  ;;  %s22139_s9 = sld [smem:[#allocation31_spill]] }
 0xb00   : > { %s22140_s19 = smov %s19167_s20  ;;  %s22141_s20 = smov %s19171_s21 }
 0xb05   : > { %p33_p7 = scmp.ge.s32.totalorder %s22138_s22, 4   ;;  %s22142_s21 = smov %s22139_s9 }
 0xb07   :  { %35 = sbr.rel (!%p33_p7) target bundleno = 14 (0xe), region = 188 }
 0xb0e   :  { %13536 = vsyncpa [#allocation5], 1 }
 0xb0f   :  { %13538 = vsyncpa [#allocation5 + $0x1], 1 }
 0xb10   :  { %13539 = vsyncpa [#allocation8], 1 }
 0xb11   :  { %13541 = vsyncpa [#allocation8 + $0x1], 1 }
 0xb12   :  { %13542 = vsyncpa [#allocation11], 1 }
 0xb13   :  { %13544 = vsyncpa [#allocation11 + $0x1], 1 }
 0xb14   :  { %13545 = vsyncpa [#allocation14], 1 }
 0xb15   :  { %13546 = vsyncpa [#allocation17], 1 }
 0xb16   :  { %13547 = vsyncpa [#allocation6], 1 }
 0xb17   :  { %13549 = vsyncpa [#allocation6 + $0x1], 1 }

</bundles_post_ra>
